<compile_context>
chip_gen: v6e
topology: v6e:2x2x1
jax: 0.10.0
libtpu: 0.0.40
codegen_flags: <defaults>
</compile_context>

<pallas_src>
import functools

import jax
import jax.numpy as jnp
from jax.experimental import pallas as pl
from jax.experimental.pallas import tpu as pltpu


# ---------------------------------------------------------------------------
# Kernels
# ---------------------------------------------------------------------------
def _make_backbone_kernel(*, num_res_blocks, nb, h, w, c, cin, c_pol, c_val):
    """Fused start-block + ResBlocks + policy/value head convs."""
    m = nb * h * w  # batch folded into the matmul M dimension

    def conv3x3(buf_ref, w_band):
        # buf_ref: (nb, h+2, w+2, c) bf16 VMEM scratch with a zero halo.
        # w_band:  (3, 3*c, cout) bf16 value, rows ordered (dx, cin).
        x = buf_ref[...]
        acc = None
        for dy in range(3):
            # Concatenate the 3 dx-shifted windows along channels -> K = 3*c.
            band = jnp.concatenate(
                [x[:, dy:dy + h, dx:dx + w, :] for dx in range(3)], axis=-1)
            part = jnp.dot(band.reshape(m, 3 * c), w_band[dy],
                           preferred_element_type=jnp.float32)
            acc = part if acc is None else acc + part
        return acc  # (m, cout) f32

    def kernel(x_ref,
               sw_ref, ssc_ref, ssh_ref,          # start conv
               bw_ref, bsc_ref, bsh_ref,          # stacked res-block convs
               pw_ref, psc_ref, psh_ref,          # policy head conv
               vw_ref, vsc_ref, vsh_ref,          # value head conv
               pol_ref, val_ref,                  # outputs
               buf_a, buf_b):                     # VMEM scratch (padded maps)
        # Zero both padded buffers: establishes the conv halo and clears the
        # unused input channels / stale data from previous grid steps.
        buf_a[...] = jnp.zeros_like(buf_a)
        buf_b[...] = jnp.zeros_like(buf_b)

        # Stage the input block into the interior of buf_a (channels [0:cin]).
        buf_a[:, 1:h + 1, 1:w + 1, 0:cin] = x_ref[...].astype(buf_a.dtype)

        # ---- start block: conv3x3 + BN + ReLU --------------------------------
        y = conv3x3(buf_a, sw_ref[...])
        y = jnp.maximum(y * ssc_ref[...] + ssh_ref[...], 0.0)
        buf_a[:, 1:h + 1, 1:w + 1, :] = y.reshape(nb, h, w, c).astype(buf_a.dtype)

        # ---- residual blocks --------------------------------------------------
        for i in range(num_res_blocks):
            res = y                                           # (m, c) f32
            t = conv3x3(buf_a, bw_ref[2 * i])
            t = jnp.maximum(t * bsc_ref[2 * i] + bsh_ref[2 * i], 0.0)
            buf_b[:, 1:h + 1, 1:w + 1, :] = (
                t.reshape(nb, h, w, c).astype(buf_b.dtype))
            y = conv3x3(buf_b, bw_ref[2 * i + 1])
            y = jnp.maximum(y * bsc_ref[2 * i + 1] + bsh_ref[2 * i + 1] + res, 0.0)
            buf_a[:, 1:h + 1, 1:w + 1, :] = (
                y.reshape(nb, h, w, c).astype(buf_a.dtype))

        # ---- policy head: conv3x3 + BN + ReLU ---------------------------------
        p = conv3x3(buf_a, pw_ref[...])
        p = jnp.maximum(p * psc_ref[...] + psh_ref[...], 0.0)
        pol_ref[...] = p.reshape(nb, h, w, c_pol).astype(pol_ref.dtype)

        # ---- value head: conv3x3 + BN + ReLU ----------------------------------
        v = conv3x3(buf_a, vw_ref[...])
        v = jnp.maximum(v * vsc_ref[...] + vsh_ref[...], 0.0)
        val_ref[...] = v.reshape(nb, h, w, c_val).astype(val_ref.dtype)

    return kernel


def _heads_fc_kernel(pf_ref, pw_ref, pb_ref, vf_ref, vw_ref, vb_ref,
                     pol_ref, val_ref):
    """Both head FCs in one call: policy = x@Wp + bp, value = tanh(x@Wv + bv)."""
    logits = jnp.dot(pf_ref[...], pw_ref[...],
                     preferred_element_type=jnp.float32) + pb_ref[...]
    pol_ref[...] = logits.astype(pol_ref.dtype)

    val = jnp.dot(vf_ref[...], vw_ref[...],
                  preferred_element_type=jnp.float32) + vb_ref[...]
    val_ref[...] = jnp.tanh(val).astype(val_ref.dtype)


# ---------------------------------------------------------------------------
# Pallas wrappers
# ---------------------------------------------------------------------------
def _pick_batch_block(n):
    for nb in (8, 4, 2):
        if n % nb == 0:
            return nb
    return 1


def _backbone_call(x_nhwc, params):
    n, h, w, cin = x_nhwc.shape
    blocks_w = params["blocks_w"]
    l2 = blocks_w.shape[0]
    c = blocks_w.shape[-1]
    c_pol = params["polc_w"].shape[-1]
    c_val = params["valc_w"].shape[-1]

    nb = _pick_batch_block(n)
    grid = (n // nb,)

    kernel = _make_backbone_kernel(num_res_blocks=l2 // 2, nb=nb, h=h, w=w,
                                   c=c, cin=cin, c_pol=c_pol, c_val=c_val)

    in_specs = [
        pl.BlockSpec((nb, h, w, cin), lambda b: (b, 0, 0, 0)),
        pl.BlockSpec(params["start_w"].shape, lambda b: (0, 0, 0)),
        pl.BlockSpec(params["start_s"].shape, lambda b: (0, 0)),
        pl.BlockSpec(params["start_h"].shape, lambda b: (0, 0)),
        pl.BlockSpec(blocks_w.shape, lambda b: (0, 0, 0, 0)),
        pl.BlockSpec(params["blocks_s"].shape, lambda b: (0, 0, 0)),
        pl.BlockSpec(params["blocks_h"].shape, lambda b: (0, 0, 0)),
        pl.BlockSpec(params["polc_w"].shape, lambda b: (0, 0, 0)),
        pl.BlockSpec(params["polc_s"].shape, lambda b: (0, 0)),
        pl.BlockSpec(params["polc_h"].shape, lambda b: (0, 0)),
        pl.BlockSpec(params["valc_w"].shape, lambda b: (0, 0, 0)),
        pl.BlockSpec(params["valc_s"].shape, lambda b: (0, 0)),
        pl.BlockSpec(params["valc_h"].shape, lambda b: (0, 0)),
    ]
    out_specs = [
        pl.BlockSpec((nb, h, w, c_pol), lambda b: (b, 0, 0, 0)),
        pl.BlockSpec((nb, h, w, c_val), lambda b: (b, 0, 0, 0)),
    ]
    out_shape = [
        jax.ShapeDtypeStruct((n, h, w, c_pol), jnp.bfloat16),
        jax.ShapeDtypeStruct((n, h, w, c_val), jnp.bfloat16),
    ]
    scratch_shapes = [
        pltpu.VMEM((nb, h + 2, w + 2, c), jnp.bfloat16),
        pltpu.VMEM((nb, h + 2, w + 2, c), jnp.bfloat16),
    ]

    return pl.pallas_call(
        kernel,
        grid=grid,
        in_specs=in_specs,
        out_specs=out_specs,
        out_shape=out_shape,
        scratch_shapes=scratch_shapes,
        compiler_params=pltpu.CompilerParams(
            dimension_semantics=("parallel",)),
    )(x_nhwc,
      params["start_w"], params["start_s"], params["start_h"],
      blocks_w, params["blocks_s"], params["blocks_h"],
      params["polc_w"], params["polc_s"], params["polc_h"],
      params["valc_w"], params["valc_s"], params["valc_h"])


def _heads_fc_call(p_flat, pfc_w, pfc_b, v_flat, vfc_w, vfc_b):
    n, fp = p_flat.shape
    _, fv = v_flat.shape
    ap = pfc_w.shape[1]
    av = vfc_w.shape[1]
    return pl.pallas_call(
        _heads_fc_kernel,
        grid=(1,),
        in_specs=[
            pl.BlockSpec((n, fp), lambda i: (0, 0)),
            pl.BlockSpec((fp, ap), lambda i: (0, 0)),
            pl.BlockSpec((1, ap), lambda i: (0, 0)),
            pl.BlockSpec((n, fv), lambda i: (0, 0)),
            pl.BlockSpec((fv, av), lambda i: (0, 0)),
            pl.BlockSpec((1, av), lambda i: (0, 0)),
        ],
        out_specs=[
            pl.BlockSpec((n, ap), lambda i: (0, 0)),
            pl.BlockSpec((n, av), lambda i: (0, 0)),
        ],
        out_shape=[
            jax.ShapeDtypeStruct((n, ap), jnp.float32),
            jax.ShapeDtypeStruct((n, av), jnp.float32),
        ],
    )(p_flat, pfc_w, pfc_b, v_flat, vfc_w, vfc_b)


# ---------------------------------------------------------------------------
# Parameter init (deterministic, synthetic) + layout conversion from PyTorch
# ---------------------------------------------------------------------------
def _init_conv_bn_torch(key, cin, cout, eps=1e-5):
    k = jax.random.split(key, 6)
    w_oihw = jax.random.normal(k[0], (cout, cin, 3, 3), jnp.float32) / jnp.sqrt(9.0 * cin)
    conv_b = 0.05 * jax.random.normal(k[1], (cout,), jnp.float32)
    gamma = 1.0 + 0.1 * jax.random.normal(k[2], (cout,), jnp.float32)
    beta = 0.1 * jax.random.normal(k[3], (cout,), jnp.float32)
    rmean = 0.1 * jax.random.normal(k[4], (cout,), jnp.float32)
    rvar = 1.0 + 0.1 * jax.random.uniform(k[5], (cout,), jnp.float32)
    scale = gamma / jnp.sqrt(rvar + eps)          # BN scale
    shift = beta + (conv_b - rmean) * scale       # conv bias folded into BN shift
    return w_oihw, scale, shift


def _conv_to_band(w_oihw, cin_pad):
    """PyTorch (Cout,Cin,3,3) -> MXU band layout (3, 3*cin_pad, Cout) bf16.

    Row index of the band is dx*cin_pad + cin, matching the in-kernel channel
    concatenation of the 3 dx-shifted windows.  Extra input channels are
    zero-padded (used to lift the start conv to the hidden channel count)."""
    cout, cin, kh, kw = w_oihw.shape
    whwio = jnp.transpose(w_oihw, (2, 3, 1, 0))               # (kh, kw, Cin, Cout)
    if cin_pad > cin:
        whwio = jnp.pad(whwio, ((0, 0), (0, 0), (0, cin_pad - cin), (0, 0)))
    return whwio.reshape(kh, kw * cin_pad, cout).astype(jnp.bfloat16)


def _fc_to_nhwc(w_torch, b_torch, c, h, wd):
    """PyTorch Linear (A, C*H*W) over an NCHW flatten -> (H*W*C, A_pad) over an
    NHWC flatten (transpose folded into the weights), A padded to 128 lanes."""
    a = w_torch.shape[0]
    a_pad = ((a + 127) // 128) * 128
    wt = w_torch.reshape(a, c, h, wd)
    wt = jnp.transpose(wt, (2, 3, 1, 0)).reshape(h * wd * c, a)
    wt = jnp.pad(wt, ((0, 0), (0, a_pad - a)))
    b = jnp.pad(b_torch, (0, a_pad - a))
    return wt.astype(jnp.bfloat16), b.reshape(1, a_pad).astype(jnp.float32)


def init_resnet_params(key, input_size, num_hidden, num_res_blocks,
                       board_h, board_w, action_size):
    assert num_res_blocks >= 1
    c = num_hidden
    keys = jax.random.split(key, 5 + 2 * num_res_blocks)

    sw, ssc, ssh = _init_conv_bn_torch(keys[0], input_size, c)

    bw, bsc, bsh = [], [], []
    for i in range(num_res_blocks):
        w1, s1, h1 = _init_conv_bn_torch(keys[1 + 2 * i], c, c)
        w2, s2, h2 = _init_conv_bn_torch(keys[2 + 2 * i], c, c)
        bw += [_conv_to_band(w1, c), _conv_to_band(w2, c)]
        bsc += [s1, s2]
        bsh += [h1, h2]

    pw, psc, psh = _init_conv_bn_torch(keys[1 + 2 * num_res_blocks], c, 32)
    vw, vsc, vsh = _init_conv_bn_torch(keys[3 + 2 * num_res_blocks], c, 3)

    state = board_h * board_w
    kp1, kp2 = jax.random.split(keys[2 + 2 * num_res_blocks])
    kv1, kv2 = jax.random.split(keys[4 + 2 * num_res_blocks])
    pfc_w = jax.random.normal(kp1, (action_size, 32 * state), jnp.float32) / jnp.sqrt(32.0 * state)
    pfc_b = 0.05 * jax.random.normal(kp2, (action_size,), jnp.float32)
    vfc_w = jax.random.normal(kv1, (1, 3 * state), jnp.float32) / jnp.sqrt(3.0 * state)
    vfc_b = 0.05 * jax.random.normal(kv2, (1,), jnp.float32)

    pfc_wt, pfc_bb = _fc_to_nhwc(pfc_w, pfc_b, 32, board_h, board_w)
    vfc_wt, vfc_bb = _fc_to_nhwc(vfc_w, vfc_b, 3, board_h, board_w)

    return {
        "start_w": _conv_to_band(sw, c),
        "start_s": ssc.reshape(1, c), "start_h": ssh.reshape(1, c),
        "blocks_w": jnp.stack(bw),                        # (2*L, 3, 3*C, C) bf16
        "blocks_s": jnp.stack(bsc)[:, None, :],           # (2*L, 1, C) f32
        "blocks_h": jnp.stack(bsh)[:, None, :],
        "polc_w": _conv_to_band(pw, c),
        "polc_s": psc.reshape(1, 32), "polc_h": psh.reshape(1, 32),
        "valc_w": _conv_to_band(vw, c),
        "valc_s": vsc.reshape(1, 3), "valc_h": vsh.reshape(1, 3),
        "pfc_w": pfc_wt, "pfc_b": pfc_bb,                 # (2048, 128) / (1, 128)
        "vfc_w": vfc_wt, "vfc_b": vfc_bb,                 # (192, 128)  / (1, 128)
    }


# ---------------------------------------------------------------------------
# Forward pass: 2 pallas_calls total
# ---------------------------------------------------------------------------
@functools.partial(jax.jit, static_argnames=("action_size",))
def resnet_forward(x_nchw, params, *, action_size):
    # PyTorch input is NCHW; kernels run in NHWC.
    x = jnp.transpose(x_nchw, (0, 2, 3, 1)).astype(jnp.float32)

    pol_act, val_act = _backbone_call(x, params)          # fused backbone + head convs

    n = x.shape[0]
    # NHWC flatten is contiguous; the NCHW permutation is folded into the FC weights.
    p_flat = pol_act.reshape(n, -1)
    v_flat = val_act.reshape(n, -1)

    pol_pad, val_pad = _heads_fc_call(p_flat, params["pfc_w"], params["pfc_b"],
                                      v_flat, params["vfc_w"], params["vfc_b"])
    policy = pol_pad[:, :action_size]
    value = val_pad[:, :1]
    return policy, value


# ---------------------------------------------------------------------------
if __name__ == "__main__":
    # Small synthetic "game": 8x8 board, 3 input planes, 65 actions.
    batch = 2
    input_size = 3
    board = 8
    num_hidden = 32
    num_res_blocks = 2
    action_size = 65

    key = jax.random.PRNGKey(0)
    k_params, k_x = jax.random.split(key)

    params = init_resnet_params(k_params, input_size, num_hidden,
                                num_res_blocks, board, board, action_size)
    x = jax.random.normal(k_x, (batch, input_size, board, board), jnp.float32)

    policy, value = resnet_forward(x, params, action_size=action_size)
    jax.block_until_ready((policy, value))

    assert policy.shape == (batch, action_size), policy.shape
    assert value.shape == (batch, 1), value.shape
    assert bool(jnp.all(jnp.isfinite(policy))) and bool(jnp.all(jnp.isfinite(value)))
    assert bool(jnp.all(jnp.abs(value) <= 1.0))  # tanh output range

    print("KERNEL_OK")
</pallas_src>

<mosaic_0001>
module attributes {stable_mosaic.version = 11 : i64} {
  func.func @kernel(%arg0: i32, %arg1: memref<2x8x8x3xf32, #tpu.memory_space<vmem>>, %arg2: memref<3x96x32xbf16, #tpu.memory_space<vmem>>, %arg3: memref<1x32xf32, #tpu.memory_space<vmem>>, %arg4: memref<1x32xf32, #tpu.memory_space<vmem>>, %arg5: memref<4x3x96x32xbf16, #tpu.memory_space<vmem>>, %arg6: memref<4x1x32xf32, #tpu.memory_space<vmem>>, %arg7: memref<4x1x32xf32, #tpu.memory_space<vmem>>, %arg8: memref<3x96x32xbf16, #tpu.memory_space<vmem>>, %arg9: memref<1x32xf32, #tpu.memory_space<vmem>>, %arg10: memref<1x32xf32, #tpu.memory_space<vmem>>, %arg11: memref<3x96x3xbf16, #tpu.memory_space<vmem>>, %arg12: memref<1x3xf32, #tpu.memory_space<vmem>>, %arg13: memref<1x3xf32, #tpu.memory_space<vmem>>, %arg14: memref<2x8x8x32xbf16, #tpu.memory_space<vmem>>, %arg15: memref<2x8x8x3xbf16, #tpu.memory_space<vmem>>, %arg16: memref<2x10x10x32xbf16, #tpu.memory_space<vmem>>, %arg17: memref<2x10x10x32xbf16, #tpu.memory_space<vmem>>) attributes {dimension_semantics = [#tpu.dimension_semantics<parallel>], iteration_bounds = array<i64: 1>, scalar_prefetch = 0 : i64, scratch_operands = 2 : i64, tpu.core_type = #tpu.core_type<tc>, window_params = [{transform_indices = @transform_0, window_bounds = array<i64: 2, 8, 8, 3>}, {pipeline_mode = #tpu.pipeline_mode<synchronous>, transform_indices = @transform_1, window_bounds = array<i64: 3, 96, 32>}, {pipeline_mode = #tpu.pipeline_mode<synchronous>, transform_indices = @transform_2, window_bounds = array<i64: 1, 32>}, {pipeline_mode = #tpu.pipeline_mode<synchronous>, transform_indices = @transform_3, window_bounds = array<i64: 1, 32>}, {pipeline_mode = #tpu.pipeline_mode<synchronous>, transform_indices = @transform_4, window_bounds = array<i64: 4, 3, 96, 32>}, {pipeline_mode = #tpu.pipeline_mode<synchronous>, transform_indices = @transform_5, window_bounds = array<i64: 4, 1, 32>}, {pipeline_mode = #tpu.pipeline_mode<synchronous>, transform_indices = @transform_6, window_bounds = array<i64: 4, 1, 32>}, {pipeline_mode = #tpu.pipeline_mode<synchronous>, transform_indices = @transform_7, window_bounds = array<i64: 3, 96, 32>}, {pipeline_mode = #tpu.pipeline_mode<synchronous>, transform_indices = @transform_8, window_bounds = array<i64: 1, 32>}, {pipeline_mode = #tpu.pipeline_mode<synchronous>, transform_indices = @transform_9, window_bounds = array<i64: 1, 32>}, {pipeline_mode = #tpu.pipeline_mode<synchronous>, transform_indices = @transform_10, window_bounds = array<i64: 3, 96, 3>}, {pipeline_mode = #tpu.pipeline_mode<synchronous>, transform_indices = @transform_11, window_bounds = array<i64: 1, 3>}, {pipeline_mode = #tpu.pipeline_mode<synchronous>, transform_indices = @transform_12, window_bounds = array<i64: 1, 3>}, {transform_indices = @transform_13, window_bounds = array<i64: 2, 8, 8, 32>}, {transform_indices = @transform_14, window_bounds = array<i64: 2, 8, 8, 3>}]} {
    %cst = arith.constant 0.000000e+00 : bf16
    %0 = vector.broadcast %cst : bf16 to vector<2x10x10x32xbf16>
    %c0 = arith.constant 0 : index
    %c0_0 = arith.constant 0 : index
    %c0_1 = arith.constant 0 : index
    %c0_2 = arith.constant 0 : index
    %1 = vector.load %arg16[%c0, %c0_0, %c0_1, %c0_2] : memref<2x10x10x32xbf16, #tpu.memory_space<vmem>>, vector<2x10x10x32xbf16>
    tpu.vector_store %arg16[%c0, %c0_0, %c0_1, %c0_2], %0 {strides = array<i32>} : memref<2x10x10x32xbf16, #tpu.memory_space<vmem>>, vector<2x10x10x32xbf16>,
    %cst_3 = arith.constant 0.000000e+00 : bf16
    %2 = vector.broadcast %cst_3 : bf16 to vector<2x10x10x32xbf16>
    %c0_4 = arith.constant 0 : index
    %c0_5 = arith.constant 0 : index
    %c0_6 = arith.constant 0 : index
    %c0_7 = arith.constant 0 : index
    %3 = vector.load %arg17[%c0_4, %c0_5, %c0_6, %c0_7] : memref<2x10x10x32xbf16, #tpu.memory_space<vmem>>, vector<2x10x10x32xbf16>
    tpu.vector_store %arg17[%c0_4, %c0_5, %c0_6, %c0_7], %2 {strides = array<i32>} : memref<2x10x10x32xbf16, #tpu.memory_space<vmem>>, vector<2x10x10x32xbf16>,
    %c0_8 = arith.constant 0 : index
    %c0_9 = arith.constant 0 : index
    %c0_10 = arith.constant 0 : index
    %c0_11 = arith.constant 0 : index
    %4 = vector.load %arg1[%c0_8, %c0_9, %c0_10, %c0_11] : memref<2x8x8x3xf32, #tpu.memory_space<vmem>>, vector<2x8x8x3xf32>
    %5 = arith.truncf %4 : vector<2x8x8x3xf32> to vector<2x8x8x3xbf16>
    %c0_12 = arith.constant 0 : index
    %c1 = arith.constant 1 : index
    %c1_13 = arith.constant 1 : index
    %c0_14 = arith.constant 0 : index
    %6 = vector.load %arg16[%c0_12, %c1, %c1_13, %c0_14] : memref<2x10x10x32xbf16, #tpu.memory_space<vmem>>, vector<2x8x8x3xbf16>
    tpu.vector_store %arg16[%c0_12, %c1, %c1_13, %c0_14], %5 {strides = array<i32>} : memref<2x10x10x32xbf16, #tpu.memory_space<vmem>>, vector<2x8x8x3xbf16>,
    %c0_15 = arith.constant 0 : index
    %c0_16 = arith.constant 0 : index
    %c0_17 = arith.constant 0 : index
    %7 = vector.load %arg2[%c0_15, %c0_16, %c0_17] : memref<3x96x32xbf16, #tpu.memory_space<vmem>>, vector<3x96x32xbf16>
    %c0_18 = arith.constant 0 : index
    %c0_19 = arith.constant 0 : index
    %c0_20 = arith.constant 0 : index
    %c0_21 = arith.constant 0 : index
    %8 = vector.load %arg16[%c0_18, %c0_19, %c0_20, %c0_21] : memref<2x10x10x32xbf16, #tpu.memory_space<vmem>>, vector<2x10x10x32xbf16>
    %9 = vector.extract_strided_slice %8 {offsets = [0, 0, 0, 0], sizes = [2, 8, 8, 32], strides = [1, 1, 1, 1]} : vector<2x10x10x32xbf16> to vector<2x8x8x32xbf16>
    %10 = vector.extract_strided_slice %8 {offsets = [0, 0, 1, 0], sizes = [2, 8, 8, 32], strides = [1, 1, 1, 1]} : vector<2x10x10x32xbf16> to vector<2x8x8x32xbf16>
    %11 = vector.extract_strided_slice %8 {offsets = [0, 0, 2, 0], sizes = [2, 8, 8, 32], strides = [1, 1, 1, 1]} : vector<2x10x10x32xbf16> to vector<2x8x8x32xbf16>
    %12 = tpu.concatenate %9, %10, %11 in 3 : vector<2x8x8x32xbf16>, vector<2x8x8x32xbf16>, vector<2x8x8x32xbf16> -> vector<2x8x8x96xbf16>
    %13 = vector.shape_cast %12 : vector<2x8x8x96xbf16> to vector<128x96xbf16>
    %14 = vector.extract_strided_slice %7 {offsets = [0, 0, 0], sizes = [1, 96, 32], strides = [1, 1, 1]} : vector<3x96x32xbf16> to vector<1x96x32xbf16>
    %15 = vector.shape_cast %14 : vector<1x96x32xbf16> to vector<96x32xbf16>
    %cst_22 = arith.constant dense<0.000000e+00> : vector<128x32xf32>
    %16 = tpu.matmul %13, %15, %cst_22 {dimension_numbers = #tpu.dot_dimension_numbers<[1], [0], [0], [1], [0, 0, 1, 1], [], []>} : vector<128x96xbf16>, vector<96x32xbf16>, vector<128x32xf32> -> vector<128x32xf32>
    %17 = vector.extract_strided_slice %8 {offsets = [0, 1, 0, 0], sizes = [2, 8, 8, 32], strides = [1, 1, 1, 1]} : vector<2x10x10x32xbf16> to vector<2x8x8x32xbf16>
    %18 = vector.extract_strided_slice %8 {offsets = [0, 1, 1, 0], sizes = [2, 8, 8, 32], strides = [1, 1, 1, 1]} : vector<2x10x10x32xbf16> to vector<2x8x8x32xbf16>
    %19 = vector.extract_strided_slice %8 {offsets = [0, 1, 2, 0], sizes = [2, 8, 8, 32], strides = [1, 1, 1, 1]} : vector<2x10x10x32xbf16> to vector<2x8x8x32xbf16>
    %20 = tpu.concatenate %17, %18, %19 in 3 : vector<2x8x8x32xbf16>, vector<2x8x8x32xbf16>, vector<2x8x8x32xbf16> -> vector<2x8x8x96xbf16>
    %21 = vector.shape_cast %20 : vector<2x8x8x96xbf16> to vector<128x96xbf16>
    %22 = vector.extract_strided_slice %7 {offsets = [1, 0, 0], sizes = [1, 96, 32], strides = [1, 1, 1]} : vector<3x96x32xbf16> to vector<1x96x32xbf16>
    %23 = vector.shape_cast %22 : vector<1x96x32xbf16> to vector<96x32xbf16>
    %cst_23 = arith.constant dense<0.000000e+00> : vector<128x32xf32>
    %24 = tpu.matmul %21, %23, %cst_23 {dimension_numbers = #tpu.dot_dimension_numbers<[1], [0], [0], [1], [0, 0, 1, 1], [], []>} : vector<128x96xbf16>, vector<96x32xbf16>, vector<128x32xf32> -> vector<128x32xf32>
    %25 = arith.addf %16, %24 : vector<128x32xf32>
    %26 = vector.extract_strided_slice %8 {offsets = [0, 2, 0, 0], sizes = [2, 8, 8, 32], strides = [1, 1, 1, 1]} : vector<2x10x10x32xbf16> to vector<2x8x8x32xbf16>
    %27 = vector.extract_strided_slice %8 {offsets = [0, 2, 1, 0], sizes = [2, 8, 8, 32], strides = [1, 1, 1, 1]} : vector<2x10x10x32xbf16> to vector<2x8x8x32xbf16>
    %28 = vector.extract_strided_slice %8 {offsets = [0, 2, 2, 0], sizes = [2, 8, 8, 32], strides = [1, 1, 1, 1]} : vector<2x10x10x32xbf16> to vector<2x8x8x32xbf16>
    %29 = tpu.concatenate %26, %27, %28 in 3 : vector<2x8x8x32xbf16>, vector<2x8x8x32xbf16>, vector<2x8x8x32xbf16> -> vector<2x8x8x96xbf16>
    %30 = vector.shape_cast %29 : vector<2x8x8x96xbf16> to vector<128x96xbf16>
    %31 = vector.extract_strided_slice %7 {offsets = [2, 0, 0], sizes = [1, 96, 32], strides = [1, 1, 1]} : vector<3x96x32xbf16> to vector<1x96x32xbf16>
    %32 = vector.shape_cast %31 : vector<1x96x32xbf16> to vector<96x32xbf16>
    %cst_24 = arith.constant dense<0.000000e+00> : vector<128x32xf32>
    %33 = tpu.matmul %30, %32, %cst_24 {dimension_numbers = #tpu.dot_dimension_numbers<[1], [0], [0], [1], [0, 0, 1, 1], [], []>} : vector<128x96xbf16>, vector<96x32xbf16>, vector<128x32xf32> -> vector<128x32xf32>
    %34 = arith.addf %25, %33 : vector<128x32xf32>
    %c0_25 = arith.constant 0 : index
    %c0_26 = arith.constant 0 : index
    %35 = vector.load %arg3[%c0_25, %c0_26] : memref<1x32xf32, #tpu.memory_space<vmem>>, vector<1x32xf32>
    %36 = vector.broadcast %35 : vector<1x32xf32> to vector<128x32xf32>
    %37 = arith.mulf %34, %36 : vector<128x32xf32>
    %c0_27 = arith.constant 0 : index
    %c0_28 = arith.constant 0 : index
    %38 = vector.load %arg4[%c0_27, %c0_28] : memref<1x32xf32, #tpu.memory_space<vmem>>, vector<1x32xf32>
    %39 = vector.broadcast %38 : vector<1x32xf32> to vector<128x32xf32>
    %40 = arith.addf %37, %39 : vector<128x32xf32>
    %cst_29 = arith.constant 0.000000e+00 : f32
    %41 = vector.broadcast %cst_29 : f32 to vector<128x32xf32>
    %42 = arith.maximumf %40, %41 : vector<128x32xf32>
    %43 = vector.shape_cast %42 : vector<128x32xf32> to vector<2x8x8x32xf32>
    %44 = arith.truncf %43 : vector<2x8x8x32xf32> to vector<2x8x8x32xbf16>
    %c0_30 = arith.constant 0 : index
    %c1_31 = arith.constant 1 : index
    %c1_32 = arith.constant 1 : index
    %c0_33 = arith.constant 0 : index
    %45 = vector.load %arg16[%c0_30, %c1_31, %c1_32, %c0_33] : memref<2x10x10x32xbf16, #tpu.memory_space<vmem>>, vector<2x8x8x32xbf16>
    tpu.vector_store %arg16[%c0_30, %c1_31, %c1_32, %c0_33], %44 {strides = array<i32>} : memref<2x10x10x32xbf16, #tpu.memory_space<vmem>>, vector<2x8x8x32xbf16>,
    %c0_34 = arith.constant 0 : index
    %c0_35 = arith.constant 0 : index
    %c0_36 = arith.constant 0 : index
    %c0_37 = arith.constant 0 : index
    %46 = vector.load %arg5[%c0_34, %c0_35, %c0_36, %c0_37] : memref<4x3x96x32xbf16, #tpu.memory_space<vmem>>, vector<1x3x96x32xbf16>
    %47 = vector.shape_cast %46 : vector<1x3x96x32xbf16> to vector<3x96x32xbf16>
    %c0_38 = arith.constant 0 : index
    %c0_39 = arith.constant 0 : index
    %c0_40 = arith.constant 0 : index
    %c0_41 = arith.constant 0 : index
    %48 = vector.load %arg16[%c0_38, %c0_39, %c0_40, %c0_41] : memref<2x10x10x32xbf16, #tpu.memory_space<vmem>>, vector<2x10x10x32xbf16>
    %49 = vector.extract_strided_slice %48 {offsets = [0, 0, 0, 0], sizes = [2, 8, 8, 32], strides = [1, 1, 1, 1]} : vector<2x10x10x32xbf16> to vector<2x8x8x32xbf16>
    %50 = vector.extract_strided_slice %48 {offsets = [0, 0, 1, 0], sizes = [2, 8, 8, 32], strides = [1, 1, 1, 1]} : vector<2x10x10x32xbf16> to vector<2x8x8x32xbf16>
    %51 = vector.extract_strided_slice %48 {offsets = [0, 0, 2, 0], sizes = [2, 8, 8, 32], strides = [1, 1, 1, 1]} : vector<2x10x10x32xbf16> to vector<2x8x8x32xbf16>
    %52 = tpu.concatenate %49, %50, %51 in 3 : vector<2x8x8x32xbf16>, vector<2x8x8x32xbf16>, vector<2x8x8x32xbf16> -> vector<2x8x8x96xbf16>
    %53 = vector.shape_cast %52 : vector<2x8x8x96xbf16> to vector<128x96xbf16>
    %54 = vector.extract_strided_slice %47 {offsets = [0, 0, 0], sizes = [1, 96, 32], strides = [1, 1, 1]} : vector<3x96x32xbf16> to vector<1x96x32xbf16>
    %55 = vector.shape_cast %54 : vector<1x96x32xbf16> to vector<96x32xbf16>
    %cst_42 = arith.constant dense<0.000000e+00> : vector<128x32xf32>
    %56 = tpu.matmul %53, %55, %cst_42 {dimension_numbers = #tpu.dot_dimension_numbers<[1], [0], [0], [1], [0, 0, 1, 1], [], []>} : vector<128x96xbf16>, vector<96x32xbf16>, vector<128x32xf32> -> vector<128x32xf32>
    %57 = vector.extract_strided_slice %48 {offsets = [0, 1, 0, 0], sizes = [2, 8, 8, 32], strides = [1, 1, 1, 1]} : vector<2x10x10x32xbf16> to vector<2x8x8x32xbf16>
    %58 = vector.extract_strided_slice %48 {offsets = [0, 1, 1, 0], sizes = [2, 8, 8, 32], strides = [1, 1, 1, 1]} : vector<2x10x10x32xbf16> to vector<2x8x8x32xbf16>
    %59 = vector.extract_strided_slice %48 {offsets = [0, 1, 2, 0], sizes = [2, 8, 8, 32], strides = [1, 1, 1, 1]} : vector<2x10x10x32xbf16> to vector<2x8x8x32xbf16>
    %60 = tpu.concatenate %57, %58, %59 in 3 : vector<2x8x8x32xbf16>, vector<2x8x8x32xbf16>, vector<2x8x8x32xbf16> -> vector<2x8x8x96xbf16>
    %61 = vector.shape_cast %60 : vector<2x8x8x96xbf16> to vector<128x96xbf16>
    %62 = vector.extract_strided_slice %47 {offsets = [1, 0, 0], sizes = [1, 96, 32], strides = [1, 1, 1]} : vector<3x96x32xbf16> to vector<1x96x32xbf16>
    %63 = vector.shape_cast %62 : vector<1x96x32xbf16> to vector<96x32xbf16>
    %cst_43 = arith.constant dense<0.000000e+00> : vector<128x32xf32>
    %64 = tpu.matmul %61, %63, %cst_43 {dimension_numbers = #tpu.dot_dimension_numbers<[1], [0], [0], [1], [0, 0, 1, 1], [], []>} : vector<128x96xbf16>, vector<96x32xbf16>, vector<128x32xf32> -> vector<128x32xf32>
    %65 = arith.addf %56, %64 : vector<128x32xf32>
    %66 = vector.extract_strided_slice %48 {offsets = [0, 2, 0, 0], sizes = [2, 8, 8, 32], strides = [1, 1, 1, 1]} : vector<2x10x10x32xbf16> to vector<2x8x8x32xbf16>
    %67 = vector.extract_strided_slice %48 {offsets = [0, 2, 1, 0], sizes = [2, 8, 8, 32], strides = [1, 1, 1, 1]} : vector<2x10x10x32xbf16> to vector<2x8x8x32xbf16>
    %68 = vector.extract_strided_slice %48 {offsets = [0, 2, 2, 0], sizes = [2, 8, 8, 32], strides = [1, 1, 1, 1]} : vector<2x10x10x32xbf16> to vector<2x8x8x32xbf16>
    %69 = tpu.concatenate %66, %67, %68 in 3 : vector<2x8x8x32xbf16>, vector<2x8x8x32xbf16>, vector<2x8x8x32xbf16> -> vector<2x8x8x96xbf16>
    %70 = vector.shape_cast %69 : vector<2x8x8x96xbf16> to vector<128x96xbf16>
    %71 = vector.extract_strided_slice %47 {offsets = [2, 0, 0], sizes = [1, 96, 32], strides = [1, 1, 1]} : vector<3x96x32xbf16> to vector<1x96x32xbf16>
    %72 = vector.shape_cast %71 : vector<1x96x32xbf16> to vector<96x32xbf16>
    %cst_44 = arith.constant dense<0.000000e+00> : vector<128x32xf32>
    %73 = tpu.matmul %70, %72, %cst_44 {dimension_numbers = #tpu.dot_dimension_numbers<[1], [0], [0], [1], [0, 0, 1, 1], [], []>} : vector<128x96xbf16>, vector<96x32xbf16>, vector<128x32xf32> -> vector<128x32xf32>
    %74 = arith.addf %65, %73 : vector<128x32xf32>
    %c0_45 = arith.constant 0 : index
    %c0_46 = arith.constant 0 : index
    %c0_47 = arith.constant 0 : index
    %75 = vector.load %arg6[%c0_45, %c0_46, %c0_47] : memref<4x1x32xf32, #tpu.memory_space<vmem>>, vector<1x1x32xf32>
    %76 = vector.shape_cast %75 : vector<1x1x32xf32> to vector<1x32xf32>
    %77 = vector.broadcast %76 : vector<1x32xf32> to vector<128x32xf32>
    %78 = arith.mulf %74, %77 : vector<128x32xf32>
    %c0_48 = arith.constant 0 : index
    %c0_49 = arith.constant 0 : index
    %c0_50 = arith.constant 0 : index
    %79 = vector.load %arg7[%c0_48, %c0_49, %c0_50] : memref<4x1x32xf32, #tpu.memory_space<vmem>>, vector<1x1x32xf32>
    %80 = vector.shape_cast %79 : vector<1x1x32xf32> to vector<1x32xf32>
    %81 = vector.broadcast %80 : vector<1x32xf32> to vector<128x32xf32>
    %82 = arith.addf %78, %81 : vector<128x32xf32>
    %cst_51 = arith.constant 0.000000e+00 : f32
    %83 = vector.broadcast %cst_51 : f32 to vector<128x32xf32>
    %84 = arith.maximumf %82, %83 : vector<128x32xf32>
    %85 = vector.shape_cast %84 : vector<128x32xf32> to vector<2x8x8x32xf32>
    %86 = arith.truncf %85 : vector<2x8x8x32xf32> to vector<2x8x8x32xbf16>
    %c0_52 = arith.constant 0 : index
    %c1_53 = arith.constant 1 : index
    %c1_54 = arith.constant 1 : index
    %c0_55 = arith.constant 0 : index
    %87 = vector.load %arg17[%c0_52, %c1_53, %c1_54, %c0_55] : memref<2x10x10x32xbf16, #tpu.memory_space<vmem>>, vector<2x8x8x32xbf16>
    tpu.vector_store %arg17[%c0_52, %c1_53, %c1_54, %c0_55], %86 {strides = array<i32>} : memref<2x10x10x32xbf16, #tpu.memory_space<vmem>>, vector<2x8x8x32xbf16>,
    %c1_56 = arith.constant 1 : index
    %c0_57 = arith.constant 0 : index
    %c0_58 = arith.constant 0 : index
    %c0_59 = arith.constant 0 : index
    %88 = vector.load %arg5[%c1_56, %c0_57, %c0_58, %c0_59] : memref<4x3x96x32xbf16, #tpu.memory_space<vmem>>, vector<1x3x96x32xbf16>
    %89 = vector.shape_cast %88 : vector<1x3x96x32xbf16> to vector<3x96x32xbf16>
    %c0_60 = arith.constant 0 : index
    %c0_61 = arith.constant 0 : index
    %c0_62 = arith.constant 0 : index
    %c0_63 = arith.constant 0 : index
    %90 = vector.load %arg17[%c0_60, %c0_61, %c0_62, %c0_63] : memref<2x10x10x32xbf16, #tpu.memory_space<vmem>>, vector<2x10x10x32xbf16>
    %91 = vector.extract_strided_slice %90 {offsets = [0, 0, 0, 0], sizes = [2, 8, 8, 32], strides = [1, 1, 1, 1]} : vector<2x10x10x32xbf16> to vector<2x8x8x32xbf16>
    %92 = vector.extract_strided_slice %90 {offsets = [0, 0, 1, 0], sizes = [2, 8, 8, 32], strides = [1, 1, 1, 1]} : vector<2x10x10x32xbf16> to vector<2x8x8x32xbf16>
    %93 = vector.extract_strided_slice %90 {offsets = [0, 0, 2, 0], sizes = [2, 8, 8, 32], strides = [1, 1, 1, 1]} : vector<2x10x10x32xbf16> to vector<2x8x8x32xbf16>
    %94 = tpu.concatenate %91, %92, %93 in 3 : vector<2x8x8x32xbf16>, vector<2x8x8x32xbf16>, vector<2x8x8x32xbf16> -> vector<2x8x8x96xbf16>
    %95 = vector.shape_cast %94 : vector<2x8x8x96xbf16> to vector<128x96xbf16>
    %96 = vector.extract_strided_slice %89 {offsets = [0, 0, 0], sizes = [1, 96, 32], strides = [1, 1, 1]} : vector<3x96x32xbf16> to vector<1x96x32xbf16>
    %97 = vector.shape_cast %96 : vector<1x96x32xbf16> to vector<96x32xbf16>
    %cst_64 = arith.constant dense<0.000000e+00> : vector<128x32xf32>
    %98 = tpu.matmul %95, %97, %cst_64 {dimension_numbers = #tpu.dot_dimension_numbers<[1], [0], [0], [1], [0, 0, 1, 1], [], []>} : vector<128x96xbf16>, vector<96x32xbf16>, vector<128x32xf32> -> vector<128x32xf32>
    %99 = vector.extract_strided_slice %90 {offsets = [0, 1, 0, 0], sizes = [2, 8, 8, 32], strides = [1, 1, 1, 1]} : vector<2x10x10x32xbf16> to vector<2x8x8x32xbf16>
    %100 = vector.extract_strided_slice %90 {offsets = [0, 1, 1, 0], sizes = [2, 8, 8, 32], strides = [1, 1, 1, 1]} : vector<2x10x10x32xbf16> to vector<2x8x8x32xbf16>
    %101 = vector.extract_strided_slice %90 {offsets = [0, 1, 2, 0], sizes = [2, 8, 8, 32], strides = [1, 1, 1, 1]} : vector<2x10x10x32xbf16> to vector<2x8x8x32xbf16>
    %102 = tpu.concatenate %99, %100, %101 in 3 : vector<2x8x8x32xbf16>, vector<2x8x8x32xbf16>, vector<2x8x8x32xbf16> -> vector<2x8x8x96xbf16>
    %103 = vector.shape_cast %102 : vector<2x8x8x96xbf16> to vector<128x96xbf16>
    %104 = vector.extract_strided_slice %89 {offsets = [1, 0, 0], sizes = [1, 96, 32], strides = [1, 1, 1]} : vector<3x96x32xbf16> to vector<1x96x32xbf16>
    %105 = vector.shape_cast %104 : vector<1x96x32xbf16> to vector<96x32xbf16>
    %cst_65 = arith.constant dense<0.000000e+00> : vector<128x32xf32>
    %106 = tpu.matmul %103, %105, %cst_65 {dimension_numbers = #tpu.dot_dimension_numbers<[1], [0], [0], [1], [0, 0, 1, 1], [], []>} : vector<128x96xbf16>, vector<96x32xbf16>, vector<128x32xf32> -> vector<128x32xf32>
    %107 = arith.addf %98, %106 : vector<128x32xf32>
    %108 = vector.extract_strided_slice %90 {offsets = [0, 2, 0, 0], sizes = [2, 8, 8, 32], strides = [1, 1, 1, 1]} : vector<2x10x10x32xbf16> to vector<2x8x8x32xbf16>
    %109 = vector.extract_strided_slice %90 {offsets = [0, 2, 1, 0], sizes = [2, 8, 8, 32], strides = [1, 1, 1, 1]} : vector<2x10x10x32xbf16> to vector<2x8x8x32xbf16>
    %110 = vector.extract_strided_slice %90 {offsets = [0, 2, 2, 0], sizes = [2, 8, 8, 32], strides = [1, 1, 1, 1]} : vector<2x10x10x32xbf16> to vector<2x8x8x32xbf16>
    %111 = tpu.concatenate %108, %109, %110 in 3 : vector<2x8x8x32xbf16>, vector<2x8x8x32xbf16>, vector<2x8x8x32xbf16> -> vector<2x8x8x96xbf16>
    %112 = vector.shape_cast %111 : vector<2x8x8x96xbf16> to vector<128x96xbf16>
    %113 = vector.extract_strided_slice %89 {offsets = [2, 0, 0], sizes = [1, 96, 32], strides = [1, 1, 1]} : vector<3x96x32xbf16> to vector<1x96x32xbf16>
    %114 = vector.shape_cast %113 : vector<1x96x32xbf16> to vector<96x32xbf16>
    %cst_66 = arith.constant dense<0.000000e+00> : vector<128x32xf32>
    %115 = tpu.matmul %112, %114, %cst_66 {dimension_numbers = #tpu.dot_dimension_numbers<[1], [0], [0], [1], [0, 0, 1, 1], [], []>} : vector<128x96xbf16>, vector<96x32xbf16>, vector<128x32xf32> -> vector<128x32xf32>
    %116 = arith.addf %107, %115 : vector<128x32xf32>
    %c1_67 = arith.constant 1 : index
    %c0_68 = arith.constant 0 : index
    %c0_69 = arith.constant 0 : index
    %117 = vector.load %arg6[%c1_67, %c0_68, %c0_69] : memref<4x1x32xf32, #tpu.memory_space<vmem>>, vector<1x1x32xf32>
    %118 = vector.shape_cast %117 : vector<1x1x32xf32> to vector<1x32xf32>
    %119 = vector.broadcast %118 : vector<1x32xf32> to vector<128x32xf32>
    %120 = arith.mulf %116, %119 : vector<128x32xf32>
    %c1_70 = arith.constant 1 : index
    %c0_71 = arith.constant 0 : index
    %c0_72 = arith.constant 0 : index
    %121 = vector.load %arg7[%c1_70, %c0_71, %c0_72] : memref<4x1x32xf32, #tpu.memory_space<vmem>>, vector<1x1x32xf32>
    %122 = vector.shape_cast %121 : vector<1x1x32xf32> to vector<1x32xf32>
    %123 = vector.broadcast %122 : vector<1x32xf32> to vector<128x32xf32>
    %124 = arith.addf %120, %123 : vector<128x32xf32>
    %125 = arith.addf %124, %42 : vector<128x32xf32>
    %cst_73 = arith.constant 0.000000e+00 : f32
    %126 = vector.broadcast %cst_73 : f32 to vector<128x32xf32>
    %127 = arith.maximumf %125, %126 : vector<128x32xf32>
    %128 = vector.shape_cast %127 : vector<128x32xf32> to vector<2x8x8x32xf32>
    %129 = arith.truncf %128 : vector<2x8x8x32xf32> to vector<2x8x8x32xbf16>
    %c0_74 = arith.constant 0 : index
    %c1_75 = arith.constant 1 : index
    %c1_76 = arith.constant 1 : index
    %c0_77 = arith.constant 0 : index
    %130 = vector.load %arg16[%c0_74, %c1_75, %c1_76, %c0_77] : memref<2x10x10x32xbf16, #tpu.memory_space<vmem>>, vector<2x8x8x32xbf16>
    tpu.vector_store %arg16[%c0_74, %c1_75, %c1_76, %c0_77], %129 {strides = array<i32>} : memref<2x10x10x32xbf16, #tpu.memory_space<vmem>>, vector<2x8x8x32xbf16>,
    %c2 = arith.constant 2 : index
    %c0_78 = arith.constant 0 : index
    %c0_79 = arith.constant 0 : index
    %c0_80 = arith.constant 0 : index
    %131 = vector.load %arg5[%c2, %c0_78, %c0_79, %c0_80] : memref<4x3x96x32xbf16, #tpu.memory_space<vmem>>, vector<1x3x96x32xbf16>
    %132 = vector.shape_cast %131 : vector<1x3x96x32xbf16> to vector<3x96x32xbf16>
    %c0_81 = arith.constant 0 : index
    %c0_82 = arith.constant 0 : index
    %c0_83 = arith.constant 0 : index
    %c0_84 = arith.constant 0 : index
    %133 = vector.load %arg16[%c0_81, %c0_82, %c0_83, %c0_84] : memref<2x10x10x32xbf16, #tpu.memory_space<vmem>>, vector<2x10x10x32xbf16>
    %134 = vector.extract_strided_slice %133 {offsets = [0, 0, 0, 0], sizes = [2, 8, 8, 32], strides = [1, 1, 1, 1]} : vector<2x10x10x32xbf16> to vector<2x8x8x32xbf16>
    %135 = vector.extract_strided_slice %133 {offsets = [0, 0, 1, 0], sizes = [2, 8, 8, 32], strides = [1, 1, 1, 1]} : vector<2x10x10x32xbf16> to vector<2x8x8x32xbf16>
    %136 = vector.extract_strided_slice %133 {offsets = [0, 0, 2, 0], sizes = [2, 8, 8, 32], strides = [1, 1, 1, 1]} : vector<2x10x10x32xbf16> to vector<2x8x8x32xbf16>
    %137 = tpu.concatenate %134, %135, %136 in 3 : vector<2x8x8x32xbf16>, vector<2x8x8x32xbf16>, vector<2x8x8x32xbf16> -> vector<2x8x8x96xbf16>
    %138 = vector.shape_cast %137 : vector<2x8x8x96xbf16> to vector<128x96xbf16>
    %139 = vector.extract_strided_slice %132 {offsets = [0, 0, 0], sizes = [1, 96, 32], strides = [1, 1, 1]} : vector<3x96x32xbf16> to vector<1x96x32xbf16>
    %140 = vector.shape_cast %139 : vector<1x96x32xbf16> to vector<96x32xbf16>
    %cst_85 = arith.constant dense<0.000000e+00> : vector<128x32xf32>
    %141 = tpu.matmul %138, %140, %cst_85 {dimension_numbers = #tpu.dot_dimension_numbers<[1], [0], [0], [1], [0, 0, 1, 1], [], []>} : vector<128x96xbf16>, vector<96x32xbf16>, vector<128x32xf32> -> vector<128x32xf32>
    %142 = vector.extract_strided_slice %133 {offsets = [0, 1, 0, 0], sizes = [2, 8, 8, 32], strides = [1, 1, 1, 1]} : vector<2x10x10x32xbf16> to vector<2x8x8x32xbf16>
    %143 = vector.extract_strided_slice %133 {offsets = [0, 1, 1, 0], sizes = [2, 8, 8, 32], strides = [1, 1, 1, 1]} : vector<2x10x10x32xbf16> to vector<2x8x8x32xbf16>
    %144 = vector.extract_strided_slice %133 {offsets = [0, 1, 2, 0], sizes = [2, 8, 8, 32], strides = [1, 1, 1, 1]} : vector<2x10x10x32xbf16> to vector<2x8x8x32xbf16>
    %145 = tpu.concatenate %142, %143, %144 in 3 : vector<2x8x8x32xbf16>, vector<2x8x8x32xbf16>, vector<2x8x8x32xbf16> -> vector<2x8x8x96xbf16>
    %146 = vector.shape_cast %145 : vector<2x8x8x96xbf16> to vector<128x96xbf16>
    %147 = vector.extract_strided_slice %132 {offsets = [1, 0, 0], sizes = [1, 96, 32], strides = [1, 1, 1]} : vector<3x96x32xbf16> to vector<1x96x32xbf16>
    %148 = vector.shape_cast %147 : vector<1x96x32xbf16> to vector<96x32xbf16>
    %cst_86 = arith.constant dense<0.000000e+00> : vector<128x32xf32>
    %149 = tpu.matmul %146, %148, %cst_86 {dimension_numbers = #tpu.dot_dimension_numbers<[1], [0], [0], [1], [0, 0, 1, 1], [], []>} : vector<128x96xbf16>, vector<96x32xbf16>, vector<128x32xf32> -> vector<128x32xf32>
    %150 = arith.addf %141, %149 : vector<128x32xf32>
    %151 = vector.extract_strided_slice %133 {offsets = [0, 2, 0, 0], sizes = [2, 8, 8, 32], strides = [1, 1, 1, 1]} : vector<2x10x10x32xbf16> to vector<2x8x8x32xbf16>
    %152 = vector.extract_strided_slice %133 {offsets = [0, 2, 1, 0], sizes = [2, 8, 8, 32], strides = [1, 1, 1, 1]} : vector<2x10x10x32xbf16> to vector<2x8x8x32xbf16>
    %153 = vector.extract_strided_slice %133 {offsets = [0, 2, 2, 0], sizes = [2, 8, 8, 32], strides = [1, 1, 1, 1]} : vector<2x10x10x32xbf16> to vector<2x8x8x32xbf16>
    %154 = tpu.concatenate %151, %152, %153 in 3 : vector<2x8x8x32xbf16>, vector<2x8x8x32xbf16>, vector<2x8x8x32xbf16> -> vector<2x8x8x96xbf16>
    %155 = vector.shape_cast %154 : vector<2x8x8x96xbf16> to vector<128x96xbf16>
    %156 = vector.extract_strided_slice %132 {offsets = [2, 0, 0], sizes = [1, 96, 32], strides = [1, 1, 1]} : vector<3x96x32xbf16> to vector<1x96x32xbf16>
    %157 = vector.shape_cast %156 : vector<1x96x32xbf16> to vector<96x32xbf16>
    %cst_87 = arith.constant dense<0.000000e+00> : vector<128x32xf32>
    %158 = tpu.matmul %155, %157, %cst_87 {dimension_numbers = #tpu.dot_dimension_numbers<[1], [0], [0], [1], [0, 0, 1, 1], [], []>} : vector<128x96xbf16>, vector<96x32xbf16>, vector<128x32xf32> -> vector<128x32xf32>
    %159 = arith.addf %150, %158 : vector<128x32xf32>
    %c2_88 = arith.constant 2 : index
    %c0_89 = arith.constant 0 : index
    %c0_90 = arith.constant 0 : index
    %160 = vector.load %arg6[%c2_88, %c0_89, %c0_90] : memref<4x1x32xf32, #tpu.memory_space<vmem>>, vector<1x1x32xf32>
    %161 = vector.shape_cast %160 : vector<1x1x32xf32> to vector<1x32xf32>
    %162 = vector.broadcast %161 : vector<1x32xf32> to vector<128x32xf32>
    %163 = arith.mulf %159, %162 : vector<128x32xf32>
    %c2_91 = arith.constant 2 : index
    %c0_92 = arith.constant 0 : index
    %c0_93 = arith.constant 0 : index
    %164 = vector.load %arg7[%c2_91, %c0_92, %c0_93] : memref<4x1x32xf32, #tpu.memory_space<vmem>>, vector<1x1x32xf32>
    %165 = vector.shape_cast %164 : vector<1x1x32xf32> to vector<1x32xf32>
    %166 = vector.broadcast %165 : vector<1x32xf32> to vector<128x32xf32>
    %167 = arith.addf %163, %166 : vector<128x32xf32>
    %cst_94 = arith.constant 0.000000e+00 : f32
    %168 = vector.broadcast %cst_94 : f32 to vector<128x32xf32>
    %169 = arith.maximumf %167, %168 : vector<128x32xf32>
    %170 = vector.shape_cast %169 : vector<128x32xf32> to vector<2x8x8x32xf32>
    %171 = arith.truncf %170 : vector<2x8x8x32xf32> to vector<2x8x8x32xbf16>
    %c0_95 = arith.constant 0 : index
    %c1_96 = arith.constant 1 : index
    %c1_97 = arith.constant 1 : index
    %c0_98 = arith.constant 0 : index
    %172 = vector.load %arg17[%c0_95, %c1_96, %c1_97, %c0_98] : memref<2x10x10x32xbf16, #tpu.memory_space<vmem>>, vector<2x8x8x32xbf16>
    tpu.vector_store %arg17[%c0_95, %c1_96, %c1_97, %c0_98], %171 {strides = array<i32>} : memref<2x10x10x32xbf16, #tpu.memory_space<vmem>>, vector<2x8x8x32xbf16>,
    %c3 = arith.constant 3 : index
    %c0_99 = arith.constant 0 : index
    %c0_100 = arith.constant 0 : index
    %c0_101 = arith.constant 0 : index
    %173 = vector.load %arg5[%c3, %c0_99, %c0_100, %c0_101] : memref<4x3x96x32xbf16, #tpu.memory_space<vmem>>, vector<1x3x96x32xbf16>
    %174 = vector.shape_cast %173 : vector<1x3x96x32xbf16> to vector<3x96x32xbf16>
    %c0_102 = arith.constant 0 : index
    %c0_103 = arith.constant 0 : index
    %c0_104 = arith.constant 0 : index
    %c0_105 = arith.constant 0 : index
    %175 = vector.load %arg17[%c0_102, %c0_103, %c0_104, %c0_105] : memref<2x10x10x32xbf16, #tpu.memory_space<vmem>>, vector<2x10x10x32xbf16>
    %176 = vector.extract_strided_slice %175 {offsets = [0, 0, 0, 0], sizes = [2, 8, 8, 32], strides = [1, 1, 1, 1]} : vector<2x10x10x32xbf16> to vector<2x8x8x32xbf16>
    %177 = vector.extract_strided_slice %175 {offsets = [0, 0, 1, 0], sizes = [2, 8, 8, 32], strides = [1, 1, 1, 1]} : vector<2x10x10x32xbf16> to vector<2x8x8x32xbf16>
    %178 = vector.extract_strided_slice %175 {offsets = [0, 0, 2, 0], sizes = [2, 8, 8, 32], strides = [1, 1, 1, 1]} : vector<2x10x10x32xbf16> to vector<2x8x8x32xbf16>
    %179 = tpu.concatenate %176, %177, %178 in 3 : vector<2x8x8x32xbf16>, vector<2x8x8x32xbf16>, vector<2x8x8x32xbf16> -> vector<2x8x8x96xbf16>
    %180 = vector.shape_cast %179 : vector<2x8x8x96xbf16> to vector<128x96xbf16>
    %181 = vector.extract_strided_slice %174 {offsets = [0, 0, 0], sizes = [1, 96, 32], strides = [1, 1, 1]} : vector<3x96x32xbf16> to vector<1x96x32xbf16>
    %182 = vector.shape_cast %181 : vector<1x96x32xbf16> to vector<96x32xbf16>
    %cst_106 = arith.constant dense<0.000000e+00> : vector<128x32xf32>
    %183 = tpu.matmul %180, %182, %cst_106 {dimension_numbers = #tpu.dot_dimension_numbers<[1], [0], [0], [1], [0, 0, 1, 1], [], []>} : vector<128x96xbf16>, vector<96x32xbf16>, vector<128x32xf32> -> vector<128x32xf32>
    %184 = vector.extract_strided_slice %175 {offsets = [0, 1, 0, 0], sizes = [2, 8, 8, 32], strides = [1, 1, 1, 1]} : vector<2x10x10x32xbf16> to vector<2x8x8x32xbf16>
    %185 = vector.extract_strided_slice %175 {offsets = [0, 1, 1, 0], sizes = [2, 8, 8, 32], strides = [1, 1, 1, 1]} : vector<2x10x10x32xbf16> to vector<2x8x8x32xbf16>
    %186 = vector.extract_strided_slice %175 {offsets = [0, 1, 2, 0], sizes = [2, 8, 8, 32], strides = [1, 1, 1, 1]} : vector<2x10x10x32xbf16> to vector<2x8x8x32xbf16>
    %187 = tpu.concatenate %184, %185, %186 in 3 : vector<2x8x8x32xbf16>, vector<2x8x8x32xbf16>, vector<2x8x8x32xbf16> -> vector<2x8x8x96xbf16>
    %188 = vector.shape_cast %187 : vector<2x8x8x96xbf16> to vector<128x96xbf16>
    %189 = vector.extract_strided_slice %174 {offsets = [1, 0, 0], sizes = [1, 96, 32], strides = [1, 1, 1]} : vector<3x96x32xbf16> to vector<1x96x32xbf16>
    %190 = vector.shape_cast %189 : vector<1x96x32xbf16> to vector<96x32xbf16>
    %cst_107 = arith.constant dense<0.000000e+00> : vector<128x32xf32>
    %191 = tpu.matmul %188, %190, %cst_107 {dimension_numbers = #tpu.dot_dimension_numbers<[1], [0], [0], [1], [0, 0, 1, 1], [], []>} : vector<128x96xbf16>, vector<96x32xbf16>, vector<128x32xf32> -> vector<128x32xf32>
    %192 = arith.addf %183, %191 : vector<128x32xf32>
    %193 = vector.extract_strided_slice %175 {offsets = [0, 2, 0, 0], sizes = [2, 8, 8, 32], strides = [1, 1, 1, 1]} : vector<2x10x10x32xbf16> to vector<2x8x8x32xbf16>
    %194 = vector.extract_strided_slice %175 {offsets = [0, 2, 1, 0], sizes = [2, 8, 8, 32], strides = [1, 1, 1, 1]} : vector<2x10x10x32xbf16> to vector<2x8x8x32xbf16>
    %195 = vector.extract_strided_slice %175 {offsets = [0, 2, 2, 0], sizes = [2, 8, 8, 32], strides = [1, 1, 1, 1]} : vector<2x10x10x32xbf16> to vector<2x8x8x32xbf16>
    %196 = tpu.concatenate %193, %194, %195 in 3 : vector<2x8x8x32xbf16>, vector<2x8x8x32xbf16>, vector<2x8x8x32xbf16> -> vector<2x8x8x96xbf16>
    %197 = vector.shape_cast %196 : vector<2x8x8x96xbf16> to vector<128x96xbf16>
    %198 = vector.extract_strided_slice %174 {offsets = [2, 0, 0], sizes = [1, 96, 32], strides = [1, 1, 1]} : vector<3x96x32xbf16> to vector<1x96x32xbf16>
    %199 = vector.shape_cast %198 : vector<1x96x32xbf16> to vector<96x32xbf16>
    %cst_108 = arith.constant dense<0.000000e+00> : vector<128x32xf32>
    %200 = tpu.matmul %197, %199, %cst_108 {dimension_numbers = #tpu.dot_dimension_numbers<[1], [0], [0], [1], [0, 0, 1, 1], [], []>} : vector<128x96xbf16>, vector<96x32xbf16>, vector<128x32xf32> -> vector<128x32xf32>
    %201 = arith.addf %192, %200 : vector<128x32xf32>
    %c3_109 = arith.constant 3 : index
    %c0_110 = arith.constant 0 : index
    %c0_111 = arith.constant 0 : index
    %202 = vector.load %arg6[%c3_109, %c0_110, %c0_111] : memref<4x1x32xf32, #tpu.memory_space<vmem>>, vector<1x1x32xf32>
    %203 = vector.shape_cast %202 : vector<1x1x32xf32> to vector<1x32xf32>
    %204 = vector.broadcast %203 : vector<1x32xf32> to vector<128x32xf32>
    %205 = arith.mulf %201, %204 : vector<128x32xf32>
    %c3_112 = arith.constant 3 : index
    %c0_113 = arith.constant 0 : index
    %c0_114 = arith.constant 0 : index
    %206 = vector.load %arg7[%c3_112, %c0_113, %c0_114] : memref<4x1x32xf32, #tpu.memory_space<vmem>>, vector<1x1x32xf32>
    %207 = vector.shape_cast %206 : vector<1x1x32xf32> to vector<1x32xf32>
    %208 = vector.broadcast %207 : vector<1x32xf32> to vector<128x32xf32>
    %209 = arith.addf %205, %208 : vector<128x32xf32>
    %210 = arith.addf %209, %127 : vector<128x32xf32>
    %cst_115 = arith.constant 0.000000e+00 : f32
    %211 = vector.broadcast %cst_115 : f32 to vector<128x32xf32>
    %212 = arith.maximumf %210, %211 : vector<128x32xf32>
    %213 = vector.shape_cast %212 : vector<128x32xf32> to vector<2x8x8x32xf32>
    %214 = arith.truncf %213 : vector<2x8x8x32xf32> to vector<2x8x8x32xbf16>
    %c0_116 = arith.constant 0 : index
    %c1_117 = arith.constant 1 : index
    %c1_118 = arith.constant 1 : index
    %c0_119 = arith.constant 0 : index
    %215 = vector.load %arg16[%c0_116, %c1_117, %c1_118, %c0_119] : memref<2x10x10x32xbf16, #tpu.memory_space<vmem>>, vector<2x8x8x32xbf16>
    tpu.vector_store %arg16[%c0_116, %c1_117, %c1_118, %c0_119], %214 {strides = array<i32>} : memref<2x10x10x32xbf16, #tpu.memory_space<vmem>>, vector<2x8x8x32xbf16>,
    %c0_120 = arith.constant 0 : index
    %c0_121 = arith.constant 0 : index
    %c0_122 = arith.constant 0 : index
    %216 = vector.load %arg8[%c0_120, %c0_121, %c0_122] : memref<3x96x32xbf16, #tpu.memory_space<vmem>>, vector<3x96x32xbf16>
    %c0_123 = arith.constant 0 : index
    %c0_124 = arith.constant 0 : index
    %c0_125 = arith.constant 0 : index
    %c0_126 = arith.constant 0 : index
    %217 = vector.load %arg16[%c0_123, %c0_124, %c0_125, %c0_126] : memref<2x10x10x32xbf16, #tpu.memory_space<vmem>>, vector<2x10x10x32xbf16>
    %218 = vector.extract_strided_slice %217 {offsets = [0, 0, 0, 0], sizes = [2, 8, 8, 32], strides = [1, 1, 1, 1]} : vector<2x10x10x32xbf16> to vector<2x8x8x32xbf16>
    %219 = vector.extract_strided_slice %217 {offsets = [0, 0, 1, 0], sizes = [2, 8, 8, 32], strides = [1, 1, 1, 1]} : vector<2x10x10x32xbf16> to vector<2x8x8x32xbf16>
    %220 = vector.extract_strided_slice %217 {offsets = [0, 0, 2, 0], sizes = [2, 8, 8, 32], strides = [1, 1, 1, 1]} : vector<2x10x10x32xbf16> to vector<2x8x8x32xbf16>
    %221 = tpu.concatenate %218, %219, %220 in 3 : vector<2x8x8x32xbf16>, vector<2x8x8x32xbf16>, vector<2x8x8x32xbf16> -> vector<2x8x8x96xbf16>
    %222 = vector.shape_cast %221 : vector<2x8x8x96xbf16> to vector<128x96xbf16>
    %223 = vector.extract_strided_slice %216 {offsets = [0, 0, 0], sizes = [1, 96, 32], strides = [1, 1, 1]} : vector<3x96x32xbf16> to vector<1x96x32xbf16>
    %224 = vector.shape_cast %223 : vector<1x96x32xbf16> to vector<96x32xbf16>
    %cst_127 = arith.constant dense<0.000000e+00> : vector<128x32xf32>
    %225 = tpu.matmul %222, %224, %cst_127 {dimension_numbers = #tpu.dot_dimension_numbers<[1], [0], [0], [1], [0, 0, 1, 1], [], []>} : vector<128x96xbf16>, vector<96x32xbf16>, vector<128x32xf32> -> vector<128x32xf32>
    %226 = vector.extract_strided_slice %217 {offsets = [0, 1, 0, 0], sizes = [2, 8, 8, 32], strides = [1, 1, 1, 1]} : vector<2x10x10x32xbf16> to vector<2x8x8x32xbf16>
    %227 = vector.extract_strided_slice %217 {offsets = [0, 1, 1, 0], sizes = [2, 8, 8, 32], strides = [1, 1, 1, 1]} : vector<2x10x10x32xbf16> to vector<2x8x8x32xbf16>
    %228 = vector.extract_strided_slice %217 {offsets = [0, 1, 2, 0], sizes = [2, 8, 8, 32], strides = [1, 1, 1, 1]} : vector<2x10x10x32xbf16> to vector<2x8x8x32xbf16>
    %229 = tpu.concatenate %226, %227, %228 in 3 : vector<2x8x8x32xbf16>, vector<2x8x8x32xbf16>, vector<2x8x8x32xbf16> -> vector<2x8x8x96xbf16>
    %230 = vector.shape_cast %229 : vector<2x8x8x96xbf16> to vector<128x96xbf16>
    %231 = vector.extract_strided_slice %216 {offsets = [1, 0, 0], sizes = [1, 96, 32], strides = [1, 1, 1]} : vector<3x96x32xbf16> to vector<1x96x32xbf16>
    %232 = vector.shape_cast %231 : vector<1x96x32xbf16> to vector<96x32xbf16>
    %cst_128 = arith.constant dense<0.000000e+00> : vector<128x32xf32>
    %233 = tpu.matmul %230, %232, %cst_128 {dimension_numbers = #tpu.dot_dimension_numbers<[1], [0], [0], [1], [0, 0, 1, 1], [], []>} : vector<128x96xbf16>, vector<96x32xbf16>, vector<128x32xf32> -> vector<128x32xf32>
    %234 = arith.addf %225, %233 : vector<128x32xf32>
    %235 = vector.extract_strided_slice %217 {offsets = [0, 2, 0, 0], sizes = [2, 8, 8, 32], strides = [1, 1, 1, 1]} : vector<2x10x10x32xbf16> to vector<2x8x8x32xbf16>
    %236 = vector.extract_strided_slice %217 {offsets = [0, 2, 1, 0], sizes = [2, 8, 8, 32], strides = [1, 1, 1, 1]} : vector<2x10x10x32xbf16> to vector<2x8x8x32xbf16>
    %237 = vector.extract_strided_slice %217 {offsets = [0, 2, 2, 0], sizes = [2, 8, 8, 32], strides = [1, 1, 1, 1]} : vector<2x10x10x32xbf16> to vector<2x8x8x32xbf16>
    %238 = tpu.concatenate %235, %236, %237 in 3 : vector<2x8x8x32xbf16>, vector<2x8x8x32xbf16>, vector<2x8x8x32xbf16> -> vector<2x8x8x96xbf16>
    %239 = vector.shape_cast %238 : vector<2x8x8x96xbf16> to vector<128x96xbf16>
    %240 = vector.extract_strided_slice %216 {offsets = [2, 0, 0], sizes = [1, 96, 32], strides = [1, 1, 1]} : vector<3x96x32xbf16> to vector<1x96x32xbf16>
    %241 = vector.shape_cast %240 : vector<1x96x32xbf16> to vector<96x32xbf16>
    %cst_129 = arith.constant dense<0.000000e+00> : vector<128x32xf32>
    %242 = tpu.matmul %239, %241, %cst_129 {dimension_numbers = #tpu.dot_dimension_numbers<[1], [0], [0], [1], [0, 0, 1, 1], [], []>} : vector<128x96xbf16>, vector<96x32xbf16>, vector<128x32xf32> -> vector<128x32xf32>
    %243 = arith.addf %234, %242 : vector<128x32xf32>
    %c0_130 = arith.constant 0 : index
    %c0_131 = arith.constant 0 : index
    %244 = vector.load %arg9[%c0_130, %c0_131] : memref<1x32xf32, #tpu.memory_space<vmem>>, vector<1x32xf32>
    %245 = vector.broadcast %244 : vector<1x32xf32> to vector<128x32xf32>
    %246 = arith.mulf %243, %245 : vector<128x32xf32>
    %c0_132 = arith.constant 0 : index
    %c0_133 = arith.constant 0 : index
    %247 = vector.load %arg10[%c0_132, %c0_133] : memref<1x32xf32, #tpu.memory_space<vmem>>, vector<1x32xf32>
    %248 = vector.broadcast %247 : vector<1x32xf32> to vector<128x32xf32>
    %249 = arith.addf %246, %248 : vector<128x32xf32>
    %cst_134 = arith.constant 0.000000e+00 : f32
    %250 = vector.broadcast %cst_134 : f32 to vector<128x32xf32>
    %251 = arith.maximumf %249, %250 : vector<128x32xf32>
    %252 = vector.shape_cast %251 : vector<128x32xf32> to vector<2x8x8x32xf32>
    %253 = arith.truncf %252 : vector<2x8x8x32xf32> to vector<2x8x8x32xbf16>
    %c0_135 = arith.constant 0 : index
    %c0_136 = arith.constant 0 : index
    %c0_137 = arith.constant 0 : index
    %c0_138 = arith.constant 0 : index
    %254 = vector.load %arg14[%c0_135, %c0_136, %c0_137, %c0_138] : memref<2x8x8x32xbf16, #tpu.memory_space<vmem>>, vector<2x8x8x32xbf16>
    tpu.vector_store %arg14[%c0_135, %c0_136, %c0_137, %c0_138], %253 {strides = array<i32>} : memref<2x8x8x32xbf16, #tpu.memory_space<vmem>>, vector<2x8x8x32xbf16>,
    %c0_139 = arith.constant 0 : index
    %c0_140 = arith.constant 0 : index
    %c0_141 = arith.constant 0 : index
    %255 = vector.load %arg11[%c0_139, %c0_140, %c0_141] : memref<3x96x3xbf16, #tpu.memory_space<vmem>>, vector<3x96x3xbf16>
    %c0_142 = arith.constant 0 : index
    %c0_143 = arith.constant 0 : index
    %c0_144 = arith.constant 0 : index
    %c0_145 = arith.constant 0 : index
    %256 = vector.load %arg16[%c0_142, %c0_143, %c0_144, %c0_145] : memref<2x10x10x32xbf16, #tpu.memory_space<vmem>>, vector<2x10x10x32xbf16>
    %257 = vector.extract_strided_slice %256 {offsets = [0, 0, 0, 0], sizes = [2, 8, 8, 32], strides = [1, 1, 1, 1]} : vector<2x10x10x32xbf16> to vector<2x8x8x32xbf16>
    %258 = vector.extract_strided_slice %256 {offsets = [0, 0, 1, 0], sizes = [2, 8, 8, 32], strides = [1, 1, 1, 1]} : vector<2x10x10x32xbf16> to vector<2x8x8x32xbf16>
    %259 = vector.extract_strided_slice %256 {offsets = [0, 0, 2, 0], sizes = [2, 8, 8, 32], strides = [1, 1, 1, 1]} : vector<2x10x10x32xbf16> to vector<2x8x8x32xbf16>
    %260 = tpu.concatenate %257, %258, %259 in 3 : vector<2x8x8x32xbf16>, vector<2x8x8x32xbf16>, vector<2x8x8x32xbf16> -> vector<2x8x8x96xbf16>
    %261 = vector.shape_cast %260 : vector<2x8x8x96xbf16> to vector<128x96xbf16>
    %262 = vector.extract_strided_slice %255 {offsets = [0, 0, 0], sizes = [1, 96, 3], strides = [1, 1, 1]} : vector<3x96x3xbf16> to vector<1x96x3xbf16>
    %263 = vector.shape_cast %262 : vector<1x96x3xbf16> to vector<96x3xbf16>
    %cst_146 = arith.constant dense<0.000000e+00> : vector<128x3xf32>
    %264 = tpu.matmul %261, %263, %cst_146 {dimension_numbers = #tpu.dot_dimension_numbers<[1], [0], [0], [1], [0, 0, 1, 1], [], []>} : vector<128x96xbf16>, vector<96x3xbf16>, vector<128x3xf32> -> vector<128x3xf32>
    %265 = vector.extract_strided_slice %256 {offsets = [0, 1, 0, 0], sizes = [2, 8, 8, 32], strides = [1, 1, 1, 1]} : vector<2x10x10x32xbf16> to vector<2x8x8x32xbf16>
    %266 = vector.extract_strided_slice %256 {offsets = [0, 1, 1, 0], sizes = [2, 8, 8, 32], strides = [1, 1, 1, 1]} : vector<2x10x10x32xbf16> to vector<2x8x8x32xbf16>
    %267 = vector.extract_strided_slice %256 {offsets = [0, 1, 2, 0], sizes = [2, 8, 8, 32], strides = [1, 1, 1, 1]} : vector<2x10x10x32xbf16> to vector<2x8x8x32xbf16>
    %268 = tpu.concatenate %265, %266, %267 in 3 : vector<2x8x8x32xbf16>, vector<2x8x8x32xbf16>, vector<2x8x8x32xbf16> -> vector<2x8x8x96xbf16>
    %269 = vector.shape_cast %268 : vector<2x8x8x96xbf16> to vector<128x96xbf16>
    %270 = vector.extract_strided_slice %255 {offsets = [1, 0, 0], sizes = [1, 96, 3], strides = [1, 1, 1]} : vector<3x96x3xbf16> to vector<1x96x3xbf16>
    %271 = vector.shape_cast %270 : vector<1x96x3xbf16> to vector<96x3xbf16>
    %cst_147 = arith.constant dense<0.000000e+00> : vector<128x3xf32>
    %272 = tpu.matmul %269, %271, %cst_147 {dimension_numbers = #tpu.dot_dimension_numbers<[1], [0], [0], [1], [0, 0, 1, 1], [], []>} : vector<128x96xbf16>, vector<96x3xbf16>, vector<128x3xf32> -> vector<128x3xf32>
    %273 = arith.addf %264, %272 : vector<128x3xf32>
    %274 = vector.extract_strided_slice %256 {offsets = [0, 2, 0, 0], sizes = [2, 8, 8, 32], strides = [1, 1, 1, 1]} : vector<2x10x10x32xbf16> to vector<2x8x8x32xbf16>
    %275 = vector.extract_strided_slice %256 {offsets = [0, 2, 1, 0], sizes = [2, 8, 8, 32], strides = [1, 1, 1, 1]} : vector<2x10x10x32xbf16> to vector<2x8x8x32xbf16>
    %276 = vector.extract_strided_slice %256 {offsets = [0, 2, 2, 0], sizes = [2, 8, 8, 32], strides = [1, 1, 1, 1]} : vector<2x10x10x32xbf16> to vector<2x8x8x32xbf16>
    %277 = tpu.concatenate %274, %275, %276 in 3 : vector<2x8x8x32xbf16>, vector<2x8x8x32xbf16>, vector<2x8x8x32xbf16> -> vector<2x8x8x96xbf16>
    %278 = vector.shape_cast %277 : vector<2x8x8x96xbf16> to vector<128x96xbf16>
    %279 = vector.extract_strided_slice %255 {offsets = [2, 0, 0], sizes = [1, 96, 3], strides = [1, 1, 1]} : vector<3x96x3xbf16> to vector<1x96x3xbf16>
    %280 = vector.shape_cast %279 : vector<1x96x3xbf16> to vector<96x3xbf16>
    %cst_148 = arith.constant dense<0.000000e+00> : vector<128x3xf32>
    %281 = tpu.matmul %278, %280, %cst_148 {dimension_numbers = #tpu.dot_dimension_numbers<[1], [0], [0], [1], [0, 0, 1, 1], [], []>} : vector<128x96xbf16>, vector<96x3xbf16>, vector<128x3xf32> -> vector<128x3xf32>
    %282 = arith.addf %273, %281 : vector<128x3xf32>
    %c0_149 = arith.constant 0 : index
    %c0_150 = arith.constant 0 : index
    %283 = vector.load %arg12[%c0_149, %c0_150] : memref<1x3xf32, #tpu.memory_space<vmem>>, vector<1x3xf32>
    %284 = vector.broadcast %283 : vector<1x3xf32> to vector<128x3xf32>
    %285 = arith.mulf %282, %284 : vector<128x3xf32>
    %c0_151 = arith.constant 0 : index
    %c0_152 = arith.constant 0 : index
    %286 = vector.load %arg13[%c0_151, %c0_152] : memref<1x3xf32, #tpu.memory_space<vmem>>, vector<1x3xf32>
    %287 = vector.broadcast %286 : vector<1x3xf32> to vector<128x3xf32>
    %288 = arith.addf %285, %287 : vector<128x3xf32>
    %cst_153 = arith.constant 0.000000e+00 : f32
    %289 = vector.broadcast %cst_153 : f32 to vector<128x3xf32>
    %290 = arith.maximumf %288, %289 : vector<128x3xf32>
    %291 = vector.shape_cast %290 : vector<128x3xf32> to vector<2x8x8x3xf32>
    %292 = arith.truncf %291 : vector<2x8x8x3xf32> to vector<2x8x8x3xbf16>
    %c0_154 = arith.constant 0 : index
    %c0_155 = arith.constant 0 : index
    %c0_156 = arith.constant 0 : index
    %c0_157 = arith.constant 0 : index
    %293 = vector.load %arg15[%c0_154, %c0_155, %c0_156, %c0_157] : memref<2x8x8x3xbf16, #tpu.memory_space<vmem>>, vector<2x8x8x3xbf16>
    tpu.vector_store %arg15[%c0_154, %c0_155, %c0_156, %c0_157], %292 {strides = array<i32>} : memref<2x8x8x3xbf16, #tpu.memory_space<vmem>>, vector<2x8x8x3xbf16>,
    return
  }
  func.func @transform_0(%arg0: i32) -> (i32, i32, i32, i32) {
    %c0_i32 = arith.constant 0 : i32
    %c0_i32_0 = arith.constant 0 : i32
    %c0_i32_1 = arith.constant 0 : i32
    %c0_i32_2 = arith.constant 0 : i32
    return %arg0, %c0_i32, %c0_i32_0, %c0_i32_1 : i32, i32, i32, i32
  }
  func.func @transform_1(%arg0: i32) -> (i32, i32, i32) {
    %c0_i32 = arith.constant 0 : i32
    %c0_i32_0 = arith.constant 0 : i32
    %c0_i32_1 = arith.constant 0 : i32
    %c0_i32_2 = arith.constant 0 : i32
    return %c0_i32, %c0_i32_0, %c0_i32_1 : i32, i32, i32
  }
  func.func @transform_2(%arg0: i32) -> (i32, i32) {
    %c0_i32 = arith.constant 0 : i32
    %c0_i32_0 = arith.constant 0 : i32
    %c0_i32_1 = arith.constant 0 : i32
    return %c0_i32, %c0_i32_0 : i32, i32
  }
  func.func @transform_3(%arg0: i32) -> (i32, i32) {
    %c0_i32 = arith.constant 0 : i32
    %c0_i32_0 = arith.constant 0 : i32
    %c0_i32_1 = arith.constant 0 : i32
    return %c0_i32, %c0_i32_0 : i32, i32
  }
  func.func @transform_4(%arg0: i32) -> (i32, i32, i32, i32) {
    %c0_i32 = arith.constant 0 : i32
    %c0_i32_0 = arith.constant 0 : i32
    %c0_i32_1 = arith.constant 0 : i32
    %c0_i32_2 = arith.constant 0 : i32
    %c0_i32_3 = arith.constant 0 : i32
    return %c0_i32, %c0_i32_0, %c0_i32_1, %c0_i32_2 : i32, i32, i32, i32
  }
  func.func @transform_5(%arg0: i32) -> (i32, i32, i32) {
    %c0_i32 = arith.constant 0 : i32
    %c0_i32_0 = arith.constant 0 : i32
    %c0_i32_1 = arith.constant 0 : i32
    %c0_i32_2 = arith.constant 0 : i32
    return %c0_i32, %c0_i32_0, %c0_i32_1 : i32, i32, i32
  }
  func.func @transform_6(%arg0: i32) -> (i32, i32, i32) {
    %c0_i32 = arith.constant 0 : i32
    %c0_i32_0 = arith.constant 0 : i32
    %c0_i32_1 = arith.constant 0 : i32
    %c0_i32_2 = arith.constant 0 : i32
    return %c0_i32, %c0_i32_0, %c0_i32_1 : i32, i32, i32
  }
  func.func @transform_7(%arg0: i32) -> (i32, i32, i32) {
    %c0_i32 = arith.constant 0 : i32
    %c0_i32_0 = arith.constant 0 : i32
    %c0_i32_1 = arith.constant 0 : i32
    %c0_i32_2 = arith.constant 0 : i32
    return %c0_i32, %c0_i32_0, %c0_i32_1 : i32, i32, i32
  }
  func.func @transform_8(%arg0: i32) -> (i32, i32) {
    %c0_i32 = arith.constant 0 : i32
    %c0_i32_0 = arith.constant 0 : i32
    %c0_i32_1 = arith.constant 0 : i32
    return %c0_i32, %c0_i32_0 : i32, i32
  }
  func.func @transform_9(%arg0: i32) -> (i32, i32) {
    %c0_i32 = arith.constant 0 : i32
    %c0_i32_0 = arith.constant 0 : i32
    %c0_i32_1 = arith.constant 0 : i32
    return %c0_i32, %c0_i32_0 : i32, i32
  }
  func.func @transform_10(%arg0: i32) -> (i32, i32, i32) {
    %c0_i32 = arith.constant 0 : i32
    %c0_i32_0 = arith.constant 0 : i32
    %c0_i32_1 = arith.constant 0 : i32
    %c0_i32_2 = arith.constant 0 : i32
    return %c0_i32, %c0_i32_0, %c0_i32_1 : i32, i32, i32
  }
  func.func @transform_11(%arg0: i32) -> (i32, i32) {
    %c0_i32 = arith.constant 0 : i32
    %c0_i32_0 = arith.constant 0 : i32
    %c0_i32_1 = arith.constant 0 : i32
    return %c0_i32, %c0_i32_0 : i32, i32
  }
  func.func @transform_12(%arg0: i32) -> (i32, i32) {
    %c0_i32 = arith.constant 0 : i32
    %c0_i32_0 = arith.constant 0 : i32
    %c0_i32_1 = arith.constant 0 : i32
    return %c0_i32, %c0_i32_0 : i32, i32
  }
  func.func @transform_13(%arg0: i32) -> (i32, i32, i32, i32) {
    %c0_i32 = arith.constant 0 : i32
    %c0_i32_0 = arith.constant 0 : i32
    %c0_i32_1 = arith.constant 0 : i32
    %c0_i32_2 = arith.constant 0 : i32
    return %arg0, %c0_i32, %c0_i32_0, %c0_i32_1 : i32, i32, i32, i32
  }
  func.func @transform_14(%arg0: i32) -> (i32, i32, i32, i32) {
    %c0_i32 = arith.constant 0 : i32
    %c0_i32_0 = arith.constant 0 : i32
    %c0_i32_1 = arith.constant 0 : i32
    %c0_i32_2 = arith.constant 0 : i32
    return %arg0, %c0_i32, %c0_i32_0, %c0_i32_1 : i32, i32, i32, i32
  }
}

module attributes {stable_mosaic.version = 11 : i64} {
  func.func @_heads_fc_kernel(%arg0: i32, %arg1: memref<2x2048xbf16, #tpu.memory_space<vmem>>, %arg2: memref<2048x128xbf16, #tpu.memory_space<vmem>>, %arg3: memref<1x128xf32, #tpu.memory_space<vmem>>, %arg4: memref<2x192xbf16, #tpu.memory_space<vmem>>, %arg5: memref<192x128xbf16, #tpu.memory_space<vmem>>, %arg6: memref<1x128xf32, #tpu.memory_space<vmem>>, %arg7: memref<2x128xf32, #tpu.memory_space<vmem>>, %arg8: memref<2x128xf32, #tpu.memory_space<vmem>>) attributes {dimension_semantics = [#tpu.dimension_semantics<arbitrary>], iteration_bounds = array<i64: 1>, scalar_prefetch = 0 : i64, scratch_operands = 0 : i64, tpu.core_type = #tpu.core_type<tc>, window_params = [{pipeline_mode = #tpu.pipeline_mode<synchronous>, transform_indices = @transform_0, window_bounds = array<i64: 2, 2048>}, {pipeline_mode = #tpu.pipeline_mode<synchronous>, transform_indices = @transform_1, window_bounds = array<i64: 2048, 128>}, {pipeline_mode = #tpu.pipeline_mode<synchronous>, transform_indices = @transform_2, window_bounds = array<i64: 1, 128>}, {pipeline_mode = #tpu.pipeline_mode<synchronous>, transform_indices = @transform_3, window_bounds = array<i64: 2, 192>}, {pipeline_mode = #tpu.pipeline_mode<synchronous>, transform_indices = @transform_4, window_bounds = array<i64: 192, 128>}, {pipeline_mode = #tpu.pipeline_mode<synchronous>, transform_indices = @transform_5, window_bounds = array<i64: 1, 128>}, {pipeline_mode = #tpu.pipeline_mode<synchronous>, transform_indices = @transform_6, window_bounds = array<i64: 2, 128>}, {pipeline_mode = #tpu.pipeline_mode<synchronous>, transform_indices = @transform_7, window_bounds = array<i64: 2, 128>}]} {
    %c0 = arith.constant 0 : index
    %c0_0 = arith.constant 0 : index
    %0 = vector.load %arg1[%c0, %c0_0] : memref<2x2048xbf16, #tpu.memory_space<vmem>>, vector<2x2048xbf16>
    %c0_1 = arith.constant 0 : index
    %c0_2 = arith.constant 0 : index
    %1 = vector.load %arg2[%c0_1, %c0_2] : memref<2048x128xbf16, #tpu.memory_space<vmem>>, vector<2048x128xbf16>
    %cst = arith.constant dense<0.000000e+00> : vector<2x128xf32>
    %2 = tpu.matmul %0, %1, %cst {dimension_numbers = #tpu.dot_dimension_numbers<[1], [0], [0], [1], [0, 0, 1, 1], [], []>} : vector<2x2048xbf16>, vector<2048x128xbf16>, vector<2x128xf32> -> vector<2x128xf32>
    %c0_3 = arith.constant 0 : index
    %c0_4 = arith.constant 0 : index
    %3 = vector.load %arg3[%c0_3, %c0_4] : memref<1x128xf32, #tpu.memory_space<vmem>>, vector<1x128xf32>
    %4 = vector.broadcast %3 : vector<1x128xf32> to vector<2x128xf32>
    %5 = arith.addf %2, %4 : vector<2x128xf32>
    %c0_5 = arith.constant 0 : index
    %c0_6 = arith.constant 0 : index
    %6 = vector.load %arg7[%c0_5, %c0_6] : memref<2x128xf32, #tpu.memory_space<vmem>>, vector<2x128xf32>
    tpu.vector_store %arg7[%c0_5, %c0_6], %5 {strides = array<i32>} : memref<2x128xf32, #tpu.memory_space<vmem>>, vector<2x128xf32>,
    %c0_7 = arith.constant 0 : index
    %c0_8 = arith.constant 0 : index
    %7 = vector.load %arg4[%c0_7, %c0_8] : memref<2x192xbf16, #tpu.memory_space<vmem>>, vector<2x192xbf16>
    %c0_9 = arith.constant 0 : index
    %c0_10 = arith.constant 0 : index
    %8 = vector.load %arg5[%c0_9, %c0_10] : memref<192x128xbf16, #tpu.memory_space<vmem>>, vector<192x128xbf16>
    %cst_11 = arith.constant dense<0.000000e+00> : vector<2x128xf32>
    %9 = tpu.matmul %7, %8, %cst_11 {dimension_numbers = #tpu.dot_dimension_numbers<[1], [0], [0], [1], [0, 0, 1, 1], [], []>} : vector<2x192xbf16>, vector<192x128xbf16>, vector<2x128xf32> -> vector<2x128xf32>
    %c0_12 = arith.constant 0 : index
    %c0_13 = arith.constant 0 : index
    %10 = vector.load %arg6[%c0_12, %c0_13] : memref<1x128xf32, #tpu.memory_space<vmem>>, vector<1x128xf32>
    %11 = vector.broadcast %10 : vector<1x128xf32> to vector<2x128xf32>
    %12 = arith.addf %9, %11 : vector<2x128xf32>
    %13 = math.tanh %12 : vector<2x128xf32>
    %c0_14 = arith.constant 0 : index
    %c0_15 = arith.constant 0 : index
    %14 = vector.load %arg8[%c0_14, %c0_15] : memref<2x128xf32, #tpu.memory_space<vmem>>, vector<2x128xf32>
    tpu.vector_store %arg8[%c0_14, %c0_15], %13 {strides = array<i32>} : memref<2x128xf32, #tpu.memory_space<vmem>>, vector<2x128xf32>,
    return
  }
  func.func @transform_0(%arg0: i32) -> (i32, i32) {
    %c0_i32 = arith.constant 0 : i32
    %c0_i32_0 = arith.constant 0 : i32
    %c0_i32_1 = arith.constant 0 : i32
    return %c0_i32, %c0_i32_0 : i32, i32
  }
  func.func @transform_1(%arg0: i32) -> (i32, i32) {
    %c0_i32 = arith.constant 0 : i32
    %c0_i32_0 = arith.constant 0 : i32
    %c0_i32_1 = arith.constant 0 : i32
    return %c0_i32, %c0_i32_0 : i32, i32
  }
  func.func @transform_2(%arg0: i32) -> (i32, i32) {
    %c0_i32 = arith.constant 0 : i32
    %c0_i32_0 = arith.constant 0 : i32
    %c0_i32_1 = arith.constant 0 : i32
    return %c0_i32, %c0_i32_0 : i32, i32
  }
  func.func @transform_3(%arg0: i32) -> (i32, i32) {
    %c0_i32 = arith.constant 0 : i32
    %c0_i32_0 = arith.constant 0 : i32
    %c0_i32_1 = arith.constant 0 : i32
    return %c0_i32, %c0_i32_0 : i32, i32
  }
  func.func @transform_4(%arg0: i32) -> (i32, i32) {
    %c0_i32 = arith.constant 0 : i32
    %c0_i32_0 = arith.constant 0 : i32
    %c0_i32_1 = arith.constant 0 : i32
    return %c0_i32, %c0_i32_0 : i32, i32
  }
  func.func @transform_5(%arg0: i32) -> (i32, i32) {
    %c0_i32 = arith.constant 0 : i32
    %c0_i32_0 = arith.constant 0 : i32
    %c0_i32_1 = arith.constant 0 : i32
    return %c0_i32, %c0_i32_0 : i32, i32
  }
  func.func @transform_6(%arg0: i32) -> (i32, i32) {
    %c0_i32 = arith.constant 0 : i32
    %c0_i32_0 = arith.constant 0 : i32
    %c0_i32_1 = arith.constant 0 : i32
    return %c0_i32, %c0_i32_0 : i32, i32
  }
  func.func @transform_7(%arg0: i32) -> (i32, i32) {
    %c0_i32 = arith.constant 0 : i32
    %c0_i32_0 = arith.constant 0 : i32
    %c0_i32_1 = arith.constant 0 : i32
    return %c0_i32, %c0_i32_0 : i32, i32
  }
}

</mosaic_0001>

<bundles_post_ra>
// kernel: resnet_forward.3
= control target key start
LH: loop header
LB: loop body
LE: loop exit
PB: predicated region body
PF: predicated region fallthrough
CT: control target
= control target key end

     0   :  { %v298_v28 = vlaneseq  ;;  %v2178_v36 = vmov 1966171168   ;;  %vm1625_vm0 = vcmask 523264   ;;  %s2730_s0 = inlined_call_operand.vmem [shape: bf16[2,2048], index: 0, kind: input, shape index: {}]   ;;  %s2731_s1 = inlined_call_operand.vmem [shape: bf16[2048,128], index: 1, kind: input, shape index: {}]   ;;  %s2732_s2 = inlined_call_operand.vmem [shape: f32[1,128], index: 2, kind: input, shape index: {}]   ;;  %s2733_s3 = inlined_call_operand.vmem [shape: bf16[2,192], index: 3, kind: input, shape index: {}]   ;;  %s2734_s4 = inlined_call_operand.vmem [shape: bf16[192,128], index: 4, kind: input, shape index: {}]   ;;  %s2735_s5 = inlined_call_operand.vmem [shape: f32[1,128], index: 5, kind: input, shape index: {}]   ;;  %s2736_s6 = inlined_call_operand.hbm [shape: f32[2,128], index: 6, kind: output, shape index: {0}]   ;;  %s2737_s7 = inlined_call_operand.vmem [shape: f32[2,128], index: 7, kind: output, shape index: {1}]  }
   0x1   :  { %v2012_v0 = vld [vmem:[%s2731_s1 + $0x78] sm:$0xff]   ;;  %v2016_v4 = vld [vmem:[%s2731_s1 + $0x70] sm:$0xff]   ;;  %v2020_v8 = vld [vmem:[%s2731_s1 + $0x68] sm:$0xff]   ;;  %v296_v37 = vunpack.c.l.s4 %v2178_v36 }
   0x2   :  { %v2013_v1 = vld [vmem:[%s2731_s1 + $0x38] sm:$0xff]   ;;  %1833 = vmatprep.subr.bf16.mxu1 %v2012_v0  ;;  %v2017_v5 = vld [vmem:[%s2731_s1 + $0x30] sm:$0xff]   ;;  %v2021_v9 = vld [vmem:[%s2731_s1 + $0x28] sm:$0xff]   ;;  %v299_v33 = vshrl.u32 %v298_v28, 7 }
   0x3   :  { %v2014_v2 = vld [vmem:[%s2731_s1 + $0x178] sm:$0xff]   ;;  %1834 = vmatpush3.bf16.msra.mxu1 %v2013_v1  ;;  %v2018_v6 = vld [vmem:[%s2731_s1 + $0x170] sm:$0xff]   ;;  %v2022_v10 = vld [vmem:[%s2731_s1 + $0x168] sm:$0xff]   ;;  %v297_v38 = vunpack.c.0.s8 %v296_v37 }
   0x4   :  { %v2015_v3 = vld [vmem:[%s2731_s1 + $0x138] sm:$0xff]   ;;  %1877 = vmatprep.subr.bf16.mxu0 %v2014_v2  ;;  %1835 = vmatprep.subr.bf16.mxu1 %v2016_v4  ;;  %v2019_v7 = vld [vmem:[%s2731_s1 + $0x130] sm:$0xff]   ;;  %v2023_v11 = vld [vmem:[%s2731_s1 + $0x128] sm:$0xff]  }
   0x5   :  { %1878 = vmatpush3.bf16.msra.mxu0 %v2015_v3  ;;  %v2024_v12 = vld [vmem:[%s2731_s1 + $0x60] sm:$0xff]   ;;  %v2028_v16 = vld [vmem:[%s2731_s1 + $0x58] sm:$0xff]   ;;  %v2032_v20 = vld [vmem:[%s2731_s1 + $0x50] sm:$0xff]   ;;  %v2326_v41 = vsub.s32 %v297_v38, %v299_v33 }
   0x6   :  { %1879 = vmatprep.subr.bf16.mxu0 %v2018_v6  ;;  %v2025_v13 = vld [vmem:[%s2731_s1 + $0x20] sm:$0xff]   ;;  %v2029_v17 = vld [vmem:[%s2731_s1 + $0x18] sm:$0xff]   ;;  %v2033_v21 = vld [vmem:[%s2731_s1 + $0x10] sm:$0xff]  }
   0x7   :  { %1836 = vmatpush3.bf16.msra.mxu1 %v2017_v5  ;;  %v2026_v14 = vld [vmem:[%s2731_s1 + $0x160] sm:$0xff]   ;;  %v2030_v18 = vld [vmem:[%s2731_s1 + $0x158] sm:$0xff]   ;;  %v2034_v22 = vld [vmem:[%s2731_s1 + $0x150] sm:$0xff]  }
   0x8   :  { %1837 = vmatprep.subr.bf16.mxu1 %v2020_v8  ;;  %v2027_v15 = vld [vmem:[%s2731_s1 + $0x120] sm:$0xff]   ;;  %v2031_v19 = vld [vmem:[%s2731_s1 + $0x118] sm:$0xff]   ;;  %v2035_v23 = vld [vmem:[%s2731_s1 + $0x110] sm:$0xff]  }
   0x9   :  { %1880 = vmatpush3.bf16.msra.mxu0 %v2019_v7  ;;  %v2036_v24 = vld [vmem:[%s2731_s1 + $0x48] sm:$0xff]   ;;  %v2040_v29 = vld [vmem:[%s2731_s1 + $0x40] sm:$0xff]   ;;  %v2044_v35 = vld [vmem:[%s2731_s1 + $0xf8] sm:$0xff]  }
   0xa   :  { %1881 = vmatprep.subr.bf16.mxu0 %v2022_v10  ;;  %v2037_v25 = vld [vmem:[%s2731_s1 + $0x8] sm:$0xff]   ;;  %v2041_v30 = vld [vmem:[%s2731_s1] sm:$0xff]   ;;  %v2047_v40 = vld [vmem:[%s2731_s1 + $0x278] sm:$0xff]  }
   0xb   :  { %1838 = vmatpush3.bf16.msra.mxu1 %v2021_v9  ;;  %v2038_v26 = vld [vmem:[%s2731_s1 + $0x148] sm:$0xff]   ;;  %v2042_v31 = vld [vmem:[%s2731_s1 + $0x140] sm:$0xff]   ;;  %v2045_v45 = vld [vmem:[%s2731_s1 + $0xb8] sm:$0xff]  }
   0xc   :  { %1839 = vmatprep.subr.bf16.mxu1 %v2024_v12  ;;  %v2039_v27 = vld [vmem:[%s2731_s1 + $0x108] sm:$0xff]   ;;  %v2043_v32 = vld [vmem:[%s2731_s1 + $0x100] sm:$0xff]   ;;  %v2048_v49 = vld [vmem:[%s2731_s1 + $0x238] sm:$0xff]  }
   0xd   :  { %1882 = vmatpush3.bf16.msra.mxu0 %v2023_v11  ;;  %v27_v34 = vld [vmem:[%s2730_s0] sm:$0xff]  ;;  %v2049_v52 = vld [vmem:[%s2731_s1 + $0xf0] sm:$0xff]   ;;  %v2053_v57 = vld [vmem:[%s2731_s1 + $0xe8] sm:$0xff]  }
   0xe   :  { %1883 = vmatprep.subr.bf16.mxu0 %v2026_v14  ;;  %v294_v39 = vcombine.high %v27_v34, %v27_v34  ;;  %v301_v42 = vrot.slane %v27_v34, %v2326_v41  ;;  %v2051_v53 = vld [vmem:[%s2731_s1 + $0x270] sm:$0xff]   ;;  %v2055_v58 = vld [vmem:[%s2731_s1 + $0x268] sm:$0xff]   ;;  %v2057_v61 = vld [vmem:[%s2731_s1 + $0xe0] sm:$0xff]  }
   0xf   :  { %1840 = vmatpush3.bf16.msra.mxu1 %v2025_v13  ;;  %v2050_v55 = vld [vmem:[%s2731_s1 + $0xb0] sm:$0xff]   ;;  %v2054_v59 = vld [vmem:[%s2731_s1 + $0xa8] sm:$0xff]   ;;  %v2059_v62 = vld [vmem:[%s2731_s1 + $0x260] sm:$0xff]  }
  0x10   :  { %1841 = vmatprep.subr.bf16.mxu1 %v2028_v16  ;;  %v308_v43 = vrot.slane %v294_v39, %v2326_v41  ;;  %v309_v44 = vcombine.high %v301_v42, %v301_v42  ;;  %v2334_v47 = vrot.slane %v301_v42, %v2326_v41  ;;  %v2052_v56 = vld [vmem:[%s2731_s1 + $0x230] sm:$0xff]   ;;  %v2056_v60 = vld [vmem:[%s2731_s1 + $0x228] sm:$0xff]   ;;  %v2058_v63 = vld [vmem:[%s2731_s1 + $0xa0] sm:$0xff]  }
  0x11   :  { %1884 = vmatpush3.bf16.msra.mxu0 %v2027_v15  ;;  %v2060_v0 = vld [vmem:[%s2731_s1 + $0x220] sm:$0xff]   ;;  %v2061_v1 = vld [vmem:[%s2731_s1 + $0xd8] sm:$0xff]   ;;  %v2065_v5 = vld [vmem:[%s2731_s1 + $0xd0] sm:$0xff]  }
  0x12   :  { %1885 = vmatprep.subr.bf16.mxu0 %v2030_v18  ;;  %v310_v46 = vcombine.high %v308_v43, %v308_v43  ;;  %v2337_v48 = vrot.slane %v308_v43, %v2326_v41  ;;  %v331_v50 = vrot.slane %v309_v44, %v2326_v41  ;;  %v2063_v2 = vld [vmem:[%s2731_s1 + $0x258] sm:$0xff]   ;;  %v2067_v6 = vld [vmem:[%s2731_s1 + $0x250] sm:$0xff]   ;;  %v2069_v9 = vld [vmem:[%s2731_s1 + $0xc8] sm:$0xff]  }
  0x13   :  { %1842 = vmatpush3.bf16.msra.mxu1 %v2029_v17  ;;  %v2062_v3 = vld [vmem:[%s2731_s1 + $0x98] sm:$0xff]   ;;  %v2066_v7 = vld [vmem:[%s2731_s1 + $0x90] sm:$0xff]   ;;  %v2071_v10 = vld [vmem:[%s2731_s1 + $0x248] sm:$0xff]  }
  0x14   :  { %1843 = vmatprep.subr.bf16.mxu1 %v2032_v20  ;;  %v2344_v51 = vrot.slane %v310_v46, %v2326_v41  ;;  %v341_v54 = vcombine.high %v331_v50, %v331_v50  ;;  %1208 = vmatprep.mubr.bf16.mxu1 %v331_v50  ;;  %v2064_v4 = vld [vmem:[%s2731_s1 + $0x218] sm:$0xff]   ;;  %v2068_v8 = vld [vmem:[%s2731_s1 + $0x210] sm:$0xff]   ;;  %v2070_v11 = vld [vmem:[%s2731_s1 + $0x88] sm:$0xff]  }
  0x15   :  { %1886 = vmatpush3.bf16.msra.mxu0 %v2031_v19  ;;  %v2072_v12 = vld [vmem:[%s2731_s1 + $0x208] sm:$0xff]   ;;  %v2073_v14 = vld [vmem:[%s2731_s1 + $0xc0] sm:$0xff]   ;;  %v2082_v33 = vld [vmem:[%s2731_s1 + $0x1b0] sm:$0xff]  }
  0x16   :  { %1887 = vmatprep.subr.bf16.mxu0 %v2034_v22  ;;  %1288 = vmatprep.mubr.bf16.mxu0 %v2344_v51  ;;  %v28_v13 = vld [vmem:[%s2730_s0 + $0x8] sm:$0xff]  ;;  %v2075_v17 = vld [vmem:[%s2731_s1 + $0x240] sm:$0xff]   ;;  %v2077_v22 = vld [vmem:[%s2731_s1 + $0x1f8] sm:$0xff]  }
  0x17   :  { %1844 = vmatpush3.bf16.msra.mxu1 %v2033_v21  ;;  %v350_v15 = vrot.slane %v28_v13, %v2326_v41  ;;  %v343_v16 = vcombine.high %v28_v13, %v28_v13  ;;  %v2074_v18 = vld [vmem:[%s2731_s1 + $0x80] sm:$0xff]   ;;  %v2085_v36 = vld [vmem:[%s2731_s1 + $0x1e8] sm:$0xff]   ;;  %v2095_v46 = vld [vmem:[%s2731_s1 + $0x358] sm:$0xff]  }
  0x18   :  { %1845 = vmatprep.subr.bf16.mxu1 %v2036_v24  ;;  %v2076_v21 = vld [vmem:[%s2731_s1 + $0x200] sm:$0xff]   ;;  %v2079_v24 = vld [vmem:[%s2731_s1 + $0x378] sm:$0xff]   ;;  %v2087_v37 = vld [vmem:[%s2731_s1 + $0x368] sm:$0xff]  }
  0x19   :  { %1888 = vmatpush3.bf16.msra.mxu0 %v2035_v23  ;;  %v358_v19 = vcombine.high %v350_v15, %v350_v15  ;;  %v2435_v20 = vrot.slane %v343_v16, %v2326_v41  ;;  %v2458_v28 = vrot.slane %v350_v15, %v2326_v41  ;;  %v2086_v38 = vld [vmem:[%s2731_s1 + $0x1a8] sm:$0xff]   ;;  %v2091_v42 = vld [vmem:[%s2731_s1 + $0x360] sm:$0xff]   ;;  %v2097_v50 = vld [vmem:[%s2731_s1 + $0x1d0] sm:$0xff]  }
  0x1a   :  { %1889 = vmatprep.subr.bf16.mxu0 %v2038_v26  ;;  %v2088_v39 = vld [vmem:[%s2731_s1 + $0x328] sm:$0xff]   ;;  %v2090_v43 = vld [vmem:[%s2731_s1 + $0x1a0] sm:$0xff]   ;;  %v2122_v13 = vld [vmem:[%s2731_s1 + $0x2d8] sm:$0xff]  }
  0x1b   :  { %1846 = vmatpush3.bf16.msra.mxu1 %v2037_v25  ;;  %v2444_v23 = vrot.slane %v358_v19, %v2326_v41  ;;  %v2078_v25 = vld [vmem:[%s2731_s1 + $0x1b8] sm:$0xff]   ;;  %v359_v26 = vcombine.high %v2435_v20, %v2435_v20  ;;  %v2092_v44 = vld [vmem:[%s2731_s1 + $0x320] sm:$0xff]   ;;  %v2125_v16 = vld [vmem:[%s2731_s1 + $0x2d0] sm:$0xff]  }
  0x1c   :  { %1847 = vmatprep.subr.bf16.mxu1 %v2040_v29  ;;  %v2080_v29 = vld [vmem:[%s2731_s1 + $0x338] sm:$0xff]   ;;  %v2128_v19 = vld [vmem:[%s2731_s1 + $0x2c8] sm:$0xff]  }
  0x1d   :  { %1890 = vmatpush3.bf16.msra.mxu0 %v2039_v27  ;;  %v339_v27 = vcombine.high %v2334_v47, %v2334_v47  ;;  %v2475_v34 = vrot.slane %v359_v26, %v2326_v41  ;;  %v2124_v15 = vld [vmem:[%s2734_s4 + $0x18] sm:$0xff]  }
  0x1e   :  { %1891 = vmatprep.subr.bf16.mxu0 %v2042_v31  ;;  %v2083_v31 = vld [vmem:[%s2731_s1 + $0x370] sm:$0xff]  }
  0x1f   :  { %1848 = vmatpush3.bf16.msra.mxu1 %v2041_v30  ;;  %v2081_v30 = vld [vmem:[%s2731_s1 + $0x1f0] sm:$0xff]  }
  0x20   :  { %1855 = vmatprep.subr.bf16.mxu1 %v2044_v35  ;;  %v2084_v35 = vld [vmem:[%s2731_s1 + $0x330] sm:$0xff]  }
  0x21   :  { %1892 = vmatpush3.bf16.msra.mxu0 %v2043_v32  ;;  %v342_v32 = vcombine.high %v2344_v51, %v2344_v51  ;;  %v2099_v51 = vld [vmem:[%s2731_s1 + $0x350] sm:$0xff]  }
  0x22   :  { %1921 = vmatprep.subr.bf16.mxu0 %v2047_v40  ;;  %1209 = vmatmul.mubr.bf16.vlgmr.msra.gmra.mxu1 %v2334_v47  ;;  %v2089_v40 = vld [vmem:[%s2731_s1 + $0x1e0] sm:$0xff]   ;;  %v2094_v47 = vld [vmem:[%s2731_s1 + $0x198] sm:$0xff]  }
  0x23   :  { %1856 = vmatpush3.bf16.msra.mxu1 %v2045_v45  ;;  %1248 = vmatprep.mubr.bf16.mxu1 %v341_v54  ;;  %v2093_v45 = vld [vmem:[%s2731_s1 + $0x1d8] sm:$0xff]   ;;  %v2101_v54 = vld [vmem:[%s2731_s1 + $0x1c8] sm:$0xff]  }
  0x24   :  { %1289 = vmatmul.mubr.bf16.vlgmr.msra.gmra.mxu0 %v2337_v48  ;;  %1857 = vmatprep.subr.bf16.mxu1 %v2049_v52  ;;  %v2098_v52 = vld [vmem:[%s2731_s1 + $0x190] sm:$0xff]  }
  0x25   :  { %1922 = vmatpush3.bf16.msra.mxu0 %v2048_v49  ;;  %1368 = vmatprep.mubr.bf16.mxu0 %v2444_v23  ;;  %v2096_v49 = vld [vmem:[%s2731_s1 + $0x318] sm:$0xff]  }
  0x26   :  { %1923 = vmatprep.subr.bf16.mxu0 %v2051_v53  ;;  %v2100_v53 = vld [vmem:[%s2731_s1 + $0x310] sm:$0xff]  }
  0x27   :  { %1858 = vmatpush3.bf16.msra.mxu1 %v2050_v55  ;;  %v2103_v55 = vld [vmem:[%s2731_s1 + $0x348] sm:$0xff]  }
  0x28   :  { %1859 = vmatprep.subr.bf16.mxu1 %v2053_v57  ;;  %v2104_v57 = vld [vmem:[%s2731_s1 + $0x308] sm:$0xff]  }
  0x29   :  { %1924 = vmatpush3.bf16.msra.mxu0 %v2052_v56  ;;  %v2102_v56 = vld [vmem:[%s2731_s1 + $0x188] sm:$0xff]  }
  0x2a   :  { %1925 = vmatprep.subr.bf16.mxu0 %v2055_v58  ;;  %v2105_v58 = vld [vmem:[%s2731_s1 + $0x1c0] sm:$0xff]  }
  0x2b   :  { %1860 = vmatpush3.bf16.msra.mxu1 %v2054_v59  ;;  %v2107_v59 = vld [vmem:[%s2731_s1 + $0x340] sm:$0xff]  }
  0x2c   :  { %1861 = vmatprep.subr.bf16.mxu1 %v2057_v61  ;;  %v2108_v61 = vld [vmem:[%s2731_s1 + $0x300] sm:$0xff]  }
  0x2d   :  { %1926 = vmatpush3.bf16.msra.mxu0 %v2056_v60  ;;  %v2106_v60 = vld [vmem:[%s2731_s1 + $0x180] sm:$0xff]  }
  0x2e   :  { %1927 = vmatprep.subr.bf16.mxu0 %v2059_v62  ;;  %v2109_v62 = vld [vmem:[%s2731_s1 + $0x2f8] sm:$0xff]  }
  0x2f   :  { %1862 = vmatpush3.bf16.msra.mxu1 %v2058_v63  ;;  %v340_v63 = vcombine.high %v2337_v48, %v2337_v48  ;;  %v2113_v48 = vld [vmem:[%s2731_s1 + $0x2f0] sm:$0xff]  }
  0x30   :  { %1863 = vmatprep.subr.bf16.mxu1 %v2061_v1  ;;  %v2564_v1 = vrot.slane %v2435_v20, %v2326_v41  ;;  %v2129_v20 = vld [vmem:[%s2731_s1 + $0x288] sm:$0xff]  }
  0x31   :  { %1928 = vmatpush3.bf16.msra.mxu0 %v2060_v0  ;;  %v2110_v0 = vld [vmem:[%s2731_s1 + $0x2b8] sm:$0xff]  }
  0x32   :  { %1929 = vmatprep.subr.bf16.mxu0 %v2063_v2  ;;  %v2112_v2 = vld [vmem:[%s2734_s4 + $0x38] sm:$0xff]  }
  0x33   :  { %1864 = vmatpush3.bf16.msra.mxu1 %v2062_v3  ;;  %v2179_v3 = vmov 0  }
  0x34   :  { %1865 = vmatprep.subr.bf16.mxu1 %v2065_v5  ;;  %v2114_v5 = vld [vmem:[%s2731_s1 + $0x2b0] sm:$0xff]  }
  0x35   :  { %1930 = vmatpush3.bf16.msra.mxu0 %v2064_v4  ;;  %v390_v4 = vcombine.high %v2444_v23, %v2444_v23  ;;  %v2132_v23 = vld [vmem:[%s2731_s1 + $0x280] sm:$0xff]  }
  0x36   :  { %1931 = vmatprep.subr.bf16.mxu0 %v2067_v6  ;;  %v2115_v6 = vld [vmem:[%s2734_s4 + $0x30] sm:$0xff]  }
  0x37   :  { %1866 = vmatpush3.bf16.msra.mxu1 %v2066_v7  ;;  %v2116_v7 = vld [vmem:[%s2731_s1 + $0x2e8] sm:$0xff]  }
  0x38   :  { %1867 = vmatprep.subr.bf16.mxu1 %v2069_v9  ;;  %v2118_v9 = vld [vmem:[%s2734_s4 + $0x28] sm:$0xff]  }
  0x39   :  { %1932 = vmatpush3.bf16.msra.mxu0 %v2068_v8  ;;  %v2117_v8 = vld [vmem:[%s2731_s1 + $0x2a8] sm:$0xff]  }
  0x3a   :  { %1933 = vmatprep.subr.bf16.mxu0 %v2071_v10  ;;  %v2119_v10 = vld [vmem:[%s2731_s1 + $0x2e0] sm:$0xff]  }
  0x3b   :  { %1868 = vmatpush3.bf16.msra.mxu1 %v2070_v11  ;;  %v2120_v11 = vld [vmem:[%s2731_s1 + $0x2a0] sm:$0xff]  }
  0x3c   :  { %1869 = vmatprep.subr.bf16.mxu1 %v2073_v14  ;;  %v2123_v14 = vld [vmem:[%s2731_s1 + $0x298] sm:$0xff]  }
  0x3d   :  { %1934 = vmatpush3.bf16.msra.mxu0 %v2072_v12  ;;  %v2121_v12 = vld [vmem:[%s2734_s4 + $0x20] sm:$0xff]  }
  0x3e   :  { %1935 = vmatprep.subr.bf16.mxu0 %v2075_v17  ;;  %v2126_v17 = vld [vmem:[%s2731_s1 + $0x290] sm:$0xff]  }
  0x3f   :  { %1870 = vmatpush3.bf16.msra.mxu1 %v2074_v18  ;;  %v2127_v18 = vld [vmem:[%s2734_s4 + $0x10] sm:$0xff]  }
  0x40   :  { %1899 = vmatprep.subr.bf16.mxu1 %v2077_v22  ;;  %v2131_v22 = vld [vmem:[%s2731_s1 + $0x2c0] sm:$0xff]  }
  0x41   :  { %1936 = vmatpush3.bf16.msra.mxu0 %v2076_v21  ;;  %v2130_v21 = vld [vmem:[%s2734_s4 + $0x8] sm:$0xff]  }
  0x42   :  { %1965 = vmatprep.subr.bf16.mxu0 %v2079_v24  ;;  %1249 = vmatmul.mubr.bf16.vlgmr.msra.gmra.mxu1 %v339_v27  ;;  %v1819_v24 = vld.sshfl [vmem:[%s2733_s3] sm:$0x11 pattern:$0x75316420]  ;;  %v2134_v27 = vld [vmem:[%s2731_s1 + $0x3f8] sm:$0xff]  }
  0x43   :  { %1900 = vmatpush3.bf16.msra.mxu1 %v2078_v25  ;;  %1328 = vmatprep.mubr.bf16.mxu1 %v342_v32  ;;  %v2133_v25 = vld [vmem:[%s2734_s4] sm:$0xff]   ;;  %v1537_v26 = vcombine.high %v1819_v24, %v1819_v24  ;;  %v2136_v32 = vld [vmem:[%s2734_s4 + $0x58] sm:$0xff]  }
  0x44   :  { %1369 = vmatmul.mubr.bf16.vlgmr.msra.gmra.mxu0 %v2458_v28  ;;  %1901 = vmatprep.subr.bf16.mxu1 %v2081_v30  ;;  %v388_v30 = vcombine.high %v2458_v28, %v2458_v28  ;;  %v391_v28 = vcombine.high %v2475_v34, %v2475_v34 }
  0x45   :  { %1966 = vmatpush3.bf16.msra.mxu0 %v2080_v29  ;;  %1448 = vmatprep.mubr.bf16.mxu0 %v2475_v34  ;;  %v1551_v29 = vrot.slane %v1537_v26, %v2326_v41 }
  0x46   :  { %1967 = vmatprep.subr.bf16.mxu0 %v2083_v31  ;;  %v2135_v31 = vld [vmem:[%s2731_s1 + $0x3b8] sm:$0xff]  }
  0x47   :  { %1902 = vmatpush3.bf16.msra.mxu1 %v2082_v33  ;;  %v2137_v33 = vld [vmem:[%s2731_s1 + $0x3f0] sm:$0xff]  }
  0x48   :  { %1903 = vmatprep.subr.bf16.mxu1 %v2085_v36 }
  0x49   :  { %1968 = vmatpush3.bf16.msra.mxu0 %v2084_v35 }
  0x4a   :  { %1969 = vmatprep.subr.bf16.mxu0 %v2087_v37 }
  0x4b   :  { %1904 = vmatpush3.bf16.msra.mxu1 %v2086_v38 }
  0x4c   :  { %1905 = vmatprep.subr.bf16.mxu1 %v2089_v40 }
  0x4d   :  { %1970 = vmatpush3.bf16.msra.mxu0 %v2088_v39 }
  0x4e   :  { %1971 = vmatprep.subr.bf16.mxu0 %v2091_v42 }
  0x4f   :  { %1906 = vmatpush3.bf16.msra.mxu1 %v2090_v43 }
  0x50   :  { %1907 = vmatprep.subr.bf16.mxu1 %v2093_v45 }
  0x51   :  { %1972 = vmatpush3.bf16.msra.mxu0 %v2092_v44 }
  0x52   :  { %1973 = vmatprep.subr.bf16.mxu0 %v2095_v46 }
  0x53   :  { %1908 = vmatpush3.bf16.msra.mxu1 %v2094_v47 }
  0x54   :  { %1909 = vmatprep.subr.bf16.mxu1 %v2097_v50 }
  0x55   :  { %1974 = vmatpush3.bf16.msra.mxu0 %v2096_v49 }
  0x56   :  { %1975 = vmatprep.subr.bf16.mxu0 %v2099_v51 }
  0x57   :  { %1910 = vmatpush3.bf16.msra.mxu1 %v2098_v52 }
  0x58   :  { %1911 = vmatprep.subr.bf16.mxu1 %v2101_v54 }
  0x59   :  { %1976 = vmatpush3.bf16.msra.mxu0 %v2100_v53 }
  0x5a   :  { %1977 = vmatprep.subr.bf16.mxu0 %v2103_v55 }
  0x5b   :  { %1912 = vmatpush3.bf16.msra.mxu1 %v2102_v56 }
  0x5c   :  { %1913 = vmatprep.subr.bf16.mxu1 %v2105_v58 }
  0x5d   :  { %1978 = vmatpush3.bf16.msra.mxu0 %v2104_v57 }
  0x5e   :  { %1979 = vmatprep.subr.bf16.mxu0 %v2107_v59 }
  0x5f   :  { %1914 = vmatpush3.bf16.msra.mxu1 %v2106_v60 }
  0x60   :  { %1943 = vmatprep.subr.bf16.mxu1 %v2109_v62 }
  0x61   :  { %1980 = vmatpush3.bf16.msra.mxu0 %v2108_v61 }
  0x62   :  { %1629 = vmatprep.subr.bf16.mxu0 %v2179_v3  ;;  %1329 = vmatmul.mubr.bf16.vlgmr.msra.gmra.mxu1 %v340_v63 }
  0x63   :  { %1944 = vmatpush3.bf16.msra.mxu1 %v2110_v0  ;;  %1408 = vmatprep.mubr.bf16.mxu1 %v390_v4 }
  0x64   :  { %1449 = vmatmul.mubr.bf16.vlgmr.msra.gmra.mxu0 %v2564_v1  ;;  %1945 = vmatprep.subr.bf16.mxu1 %v2113_v48 }
  0x65   :  { %1630 = vmatpush1.bf16.msra.mxu0 %v2112_v2  ;;  %1832 = vmatprep.mubr.msk.bf16.mxu0 %vm1625_vm0, %v1551_v29 }
  0x66   :  { %1631 = vmatprep.subr.bf16.mxu0 %v2179_v3 }
  0x67   :  { %1946 = vmatpush3.bf16.msra.mxu1 %v2114_v5 }
  0x68   :  { %1947 = vmatprep.subr.bf16.mxu1 %v2116_v7 }
  0x69   :  { %1632 = vmatpush1.bf16.msra.mxu0 %v2115_v6 }
  0x6a   :  { %1633 = vmatprep.subr.bf16.mxu0 %v2179_v3 }
  0x6b   :  { %1948 = vmatpush3.bf16.msra.mxu1 %v2117_v8 }
  0x6c   :  { %1949 = vmatprep.subr.bf16.mxu1 %v2119_v10 }
  0x6d   :  { %1634 = vmatpush1.bf16.msra.mxu0 %v2118_v9 }
  0x6e   :  { %1635 = vmatprep.subr.bf16.mxu0 %v2179_v3 }
  0x6f   :  { %1950 = vmatpush3.bf16.msra.mxu1 %v2120_v11 }
  0x70   :  { %1951 = vmatprep.subr.bf16.mxu1 %v2122_v13 }
  0x71   :  { %1636 = vmatpush1.bf16.msra.mxu0 %v2121_v12 }
  0x72   :  { %1637 = vmatprep.subr.bf16.mxu0 %v2179_v3 }
  0x73   :  { %1952 = vmatpush3.bf16.msra.mxu1 %v2123_v14 }
  0x74   :  { %1953 = vmatprep.subr.bf16.mxu1 %v2125_v16 }
  0x75   :  { %1638 = vmatpush1.bf16.msra.mxu0 %v2124_v15 }
  0x76   :  { %1639 = vmatprep.subr.bf16.mxu0 %v2179_v3 }
  0x77   :  { %1954 = vmatpush3.bf16.msra.mxu1 %v2126_v17 }
  0x78   :  { %1955 = vmatprep.subr.bf16.mxu1 %v2128_v19 }
  0x79   :  { %1640 = vmatpush1.bf16.msra.mxu0 %v2127_v18 }
  0x7a   :  { %1641 = vmatprep.subr.bf16.mxu0 %v2179_v3 }
  0x7b   :  { %1956 = vmatpush3.bf16.msra.mxu1 %v2129_v20 }
  0x7c   :  { %1957 = vmatprep.subr.bf16.mxu1 %v2131_v22 }
  0x7d   :  { %1642 = vmatpush1.bf16.msra.mxu0 %v2130_v21 }
  0x7e   :  { %1643 = vmatprep.subr.bf16.mxu0 %v2179_v3 }
  0x7f   :  { %1958 = vmatpush3.bf16.msra.mxu1 %v2132_v23 }
  0x80   :  { %1987 = vmatprep.subr.bf16.mxu1 %v2134_v27 }
  0x81   :  { %1644 = vmatpush1.bf16.msra.mxu0 %v2133_v25 }
  0x82   :  { %1653 = vmatprep.subr.bf16.mxu0 %v2179_v3 }
  0x83   :  { %13 = vsyncpa [#allocation3], 0  ;;  %1409 = vmatmul.mubr.bf16.vlgmr.msra.gmra.mxu1 %v388_v30  ;;  %v2138_v35 = vld [vmem:[%s2731_s1 + $0x3b0] sm:$0xff]   ;;  %v2140_v37 = vld [vmem:[%s2731_s1 + $0x3e8] sm:$0xff]   ;;  %v1544_v44 = vrot.slane %v1819_v24, %v2326_v41  ;;  %v389_v52 = vcombine.high %v2564_v1, %v2564_v1  ;;  %s2180_s28 = smov [#allocation2]  }
  0x84   :  { %1988 = vmatpush3.bf16.msra.mxu1 %v2135_v31  ;;  %v2139_v36 = vld [vmem:[%s2734_s4 + $0x50] sm:$0xff]   ;;  %1488 = vmatprep.mubr.bf16.mxu1 %v391_v28  ;;  %v2141_v34 = vld [vmem:[%s2731_s1 + $0x3a8] sm:$0xff]   ;;  %v2143_v39 = vld [vmem:[%s2731_s1 + $0x3e0] sm:$0xff]   ;;  %s1677_s29 = sshll.u32 %s2180_s28, 4  ;;  %s1678_s29 = int_to_ptr.vmem [resolvable:$true] %s1677_s29 }
  0x85   :  { %1654 = vmatpush2.bf16.msra.mxu0 %v2136_v32  ;;  %1989 = vmatprep.subr.bf16.mxu1 %v2137_v33  ;;  %v2142_v38 = vld [vmem:[%s2734_s4 + $0x48] sm:$0xff]   ;;  %v2144_v40 = vld [vmem:[%s2731_s1 + $0x3a0] sm:$0xff]   ;;  %v2146_v43 = vld [vmem:[%s2731_s1 + $0x3d8] sm:$0xff]   ;;  %p2161_p1 = scmp.lt.s32.totalorder %s1678_s29, %s1678_s29 }
  0x86   :  { %1655 = vmatprep.subr.bf16.mxu0 %v2179_v3  ;;  %v2145_v42 = vld [vmem:[%s2734_s4 + $0x40] sm:$0xff]   ;;  %v2147_v45 = vld [vmem:[%s2731_s1 + $0x398] sm:$0xff]   ;;  %v2148_v46 = vld [vmem:[%s2731_s1 + $0x3d0] sm:$0xff]  }
  0x87   :  { %v2149_v47 = vld [vmem:[%s2731_s1 + $0x390] sm:$0xff]   ;;  %v2150_v41 = vld [vmem:[%s2731_s1 + $0x3c8] sm:$0xff]   ;;  %v2152_v50 = vld [vmem:[%s2731_s1 + $0x3c0] sm:$0xff]  }
  0x88   :  { %1990 = vmatpush3.bf16.msra.mxu1 %v2138_v35  ;;  %v2151_v49 = vld [vmem:[%s2731_s1 + $0x388] sm:$0xff]   ;;  %v2153_v51 = vld [vmem:[%s2731_s1 + $0x380] sm:$0xff]  }
  0x89   :  { %1656 = vmatpush2.bf16.msra.mxu0 %v2139_v36  ;;  %1991 = vmatprep.subr.bf16.mxu1 %v2140_v37  ;;  %v1689_v63 = vld [vmem:[%s2732_s2] ss:$0 sm:$0xff] }
  0x8a   :  { %1657 = vmatprep.subr.bf16.mxu0 %v2179_v3  ;;  %v1818_v32 = vld [vmem:[%s2735_s5] ss:$0 sm:$0xff]  ;;  %s2156_s5 = scalar_lea.vmem %s1678_s29, 32 }
  0x8b   :  { %p2157_p0 = scmp.ne.s32.totalorder %s1678_s29, %s2156_s5  ;;  %p2162_p2 = scmp.lt.s32.totalorder %s2156_s5, %s2156_s5 }
  0x8c   :  { %1992 = vmatpush3.bf16.msra.mxu1 %v2141_v34 }
  0x8d   :  { %1658 = vmatpush2.bf16.msra.mxu0 %v2142_v38  ;;  %1993 = vmatprep.subr.bf16.mxu1 %v2143_v39  ;;  %p2163_p3 = por %p2162_p2, %p2161_p1 }
  0x8e   :  { %1659 = vmatprep.subr.bf16.mxu0 %v2179_v3 }
  0x8f   :  { %p2164_p4 = pnand %p2163_p3, %p2157_p0 }
  0x90   :  { %1994 = vmatpush3.bf16.msra.mxu1 %v2144_v40 }
  0x91   :  { %1660 = vmatpush2.bf16.msra.mxu0 %v2145_v42  ;;  %1995 = vmatprep.subr.bf16.mxu1 %v2146_v43 }
  0x94   :  { %1662 = vmatmul.mubr.bf16.vlgmr.msra.gmra.mxu0 %v1544_v44  ;;  %1996 = vmatpush3.bf16.msra.mxu1 %v2147_v45 }
  0x95   :  { %1997 = vmatprep.subr.bf16.mxu1 %v2148_v46 }
  0x98   :  { %1998 = vmatpush3.bf16.msra.mxu1 %v2149_v47 }
  0x99   :  { %1999 = vmatprep.subr.bf16.mxu1 %v2150_v41 }
  0x9c   :  { %2000 = vmatpush3.bf16.msra.mxu1 %v2151_v49 }
  0x9d   :  { %2001 = vmatprep.subr.bf16.mxu1 %v2152_v50 }
  0xa0   :  { %2002 = vmatpush3.bf16.msra.mxu1 %v2153_v51 }
  0xa3   :  { %1489 = vmatmul.mubr.bf16.vlgmr.msra.gmra.mxu1 %v389_v52 }
  0xe2   :  { %v1849_v53 = vpop.f32.mrf.mxu1 }
  0xe4   :  { %v1893_v54 = vpop.f32.mrf.mxu0  ;;  %v1850_v55 = vpop.f32.mrf.mxu1 }
  0xe5   :  { %v1851_v57 = vadd.f32 %v1850_v55, %v1849_v53 }
  0xe6   :  { %v1894_v56 = vpop.f32.mrf.mxu0  ;;  %v1852_v59 = vpop.f32.mrf.mxu1 }
  0xe7   :  { %v1895_v58 = vadd.f32 %v1894_v56, %v1893_v54  ;;  %v1211_v48 = vadd.f32 %v1851_v57, %v1689_v63 }
  0xe8   :  { %v1896_v60 = vpop.f32.mrf.mxu0  ;;  %v1853_v61 = vpop.f32.mrf.mxu1 }
  0xea   :  { %v1897_v62 = vpop.f32.mrf.mxu0 }
 0x102   :  { %v1871_v0 = vpop.f32.mrf.mxu1 }
 0x104   :  { %v1937_v2 = vpop.f32.mrf.mxu0  ;;  %v1872_v3 = vpop.f32.mrf.mxu1 }
 0x105   :  { %v1873_v4 = vadd.f32 %v1872_v3, %v1871_v0 }
 0x106   :  { %v1938_v1 = vpop.f32.mrf.mxu0  ;;  %v1874_v6 = vpop.f32.mrf.mxu1 }
 0x107   :  { %v1939_v5 = vadd.f32 %v1938_v1, %v1937_v2  ;;  %v1251_v8 = vadd.f32 %v1873_v4, %v1211_v48 }
 0x108   :  { %v1940_v7 = vpop.f32.mrf.mxu0  ;;  %v1875_v9 = vpop.f32.mrf.mxu1 }
 0x109   :  { %v1291_v11 = vadd.f32 %v1895_v58, %v1251_v8 }
 0x10a   :  { %v1941_v10 = vpop.f32.mrf.mxu0 }
 0x122   :  { %v1915_v12 = vpop.f32.mrf.mxu1 }
 0x124   :  { %v1981_v13 = vpop.f32.mrf.mxu0  ;;  %v1916_v14 = vpop.f32.mrf.mxu1 }
 0x125   :  { %v1917_v16 = vadd.f32 %v1916_v14, %v1915_v12 }
 0x126   :  { %v1982_v15 = vpop.f32.mrf.mxu0  ;;  %v1918_v17 = vpop.f32.mrf.mxu1 }
 0x127   :  { %v1331_v19 = vadd.f32 %v1917_v16, %v1291_v11  ;;  %v1983_v27 = vadd.f32 %v1982_v15, %v1981_v13 }
 0x128   :  { %v1984_v18 = vpop.f32.mrf.mxu0  ;;  %v1919_v20 = vpop.f32.mrf.mxu1 }
 0x129   :  { %v1371_v22 = vadd.f32 %v1939_v5, %v1331_v19 }
 0x12a   :  { %v1985_v21 = vpop.f32.mrf.mxu0 }
 0x143   :  { %v1959_v23 = vpop.f32.mrf.mxu1 }
 0x145   :  { %v1960_v24 = vpop.f32.mrf.mxu1 }
 0x146   :  { %v1961_v25 = vadd.f32 %v1960_v24, %v1959_v23 }
 0x147   :  { %v1962_v26 = vpop.f32.mrf.mxu1 }
 0x148   :  { %v1411_v29 = vadd.f32 %v1961_v25, %v1371_v22 }
 0x149   :  { %v1963_v30 = vpop.f32.mrf.mxu1 }
 0x14a   :  { %v1451_v31 = vadd.f32 %v1983_v27, %v1411_v29 }
 0x154   :  { %v1663_v33 = vpop.f32.mrf.mxu0 }
 0x155   :  { %v1664_v28 = vadd.f32 %v1818_v32, %v1663_v33 }
 0x156   :  { %v1665_v35 = vpop.f32.mrf.mxu0 }
 0x157   :  { %2154 = vtanh.f32 %v1664_v28 }
 0x158   :  { %v1666_v36 = vpop.f32.mrf.mxu0 }
 0x15a   :  { %v1667_v37 = vpop.f32.mrf.mxu0 }
 0x163   :  { %v2003_v38 = vpop.f32.mrf.mxu1 }
 0x164   :  { %v2155_v34 = vpop.eup %2154 }
 0x165   :  { %1670 = vst [vmem:[%s2737_s7] sm:$0x3] %v2155_v34  ;;  %v2004_v39 = vpop.f32.mrf.mxu1 }
 0x166   :  { %v2005_v40 = vadd.f32 %v2004_v39, %v2003_v38 }
 0x167   :  { %v2006_v42 = vpop.f32.mrf.mxu1 }
 0x168   :  { %v1491_v43 = vadd.f32 %v2005_v40, %v1451_v31 }
 0x169   :  { %v2007_v44 = vpop.f32.mrf.mxu1 }
 0x16a   :  { %1496 = vst [vmem:[#allocation2] sm:$0x3] %v1491_v43 }
 0x16b   :  { %2167 = shalt.err (!%p2164_p4)
}
 0x16c   :  { %1680 = dma.vmem_to_hbm [thread:$0]  %s1678_s29, 32, %s2736_s6, [#allocation3]  }
 0x16d   :  { %2176 = dma.done.wait [#allocation3], 32  }
 0x16e   :  { %2177 = vsyncadd [#allocation3], 4294967264 }
 0x16f   :  { %1688 = vsyncpa [#allocation3], 1 }

// kernel: resnet_forward.2
= control target key start
LH: loop header
LB: loop body
LE: loop exit
PB: predicated region body
PF: predicated region fallthrough
CT: control target
= control target key end

     0   :  { %vm47_vm0 = vcmask 257024   ;;  %vm49_vm1 = vcmask 253952   ;;  %v11981_v0 = vmov 0   ;;  %vm370_vm2 = vcmask 19456   ;;  %s11982_s29 = smov 64   ;;  %s11983_s24 = smov 32   ;;  %s15725_s0 = inlined_call_operand.vmem [shape: f32[2,8,8,3], index: 0, kind: input, shape index: {}]   ;;  %s15726_s1 = inlined_call_operand.vmem [shape: bf16[3,96,32], index: 1, kind: input, shape index: {}]   ;;  %s15727_s2 = inlined_call_operand.vmem [shape: f32[1,32], index: 2, kind: input, shape index: {}]   ;;  %s15728_s3 = inlined_call_operand.vmem [shape: f32[1,32], index: 3, kind: input, shape index: {}]   ;;  %s15729_s4 = inlined_call_operand.vmem [shape: bf16[4,3,96,32], index: 4, kind: input, shape index: {}]   ;;  %s15730_s5 = inlined_call_operand.vmem [shape: f32[4,1,32], index: 5, kind: input, shape index: {}]   ;;  %s15731_s6 = inlined_call_operand.vmem [shape: f32[4,1,32], index: 6, kind: input, shape index: {}]   ;;  %s15732_s7 = inlined_call_operand.vmem [shape: bf16[3,96,32], index: 7, kind: input, shape index: {}]   ;;  %s15733_s10 = inlined_call_operand.vmem [shape: bf16[3,96,3], index: 10, kind: input, shape index: {}]   ;;  %s15734_s8 = inlined_call_operand.vmem [shape: f32[1,32], index: 8, kind: input, shape index: {}]   ;;  %s15735_s9 = inlined_call_operand.vmem [shape: f32[1,32], index: 9, kind: input, shape index: {}]   ;;  %s15736_s13 = inlined_call_operand.vmem [shape: bf16[2,8,8,32], index: 13, kind: output, shape index: {0}]   ;;  %s15737_s11 = inlined_call_operand.vmem [shape: f32[1,3], index: 11, kind: input, shape index: {}]   ;;  %s15738_s12 = inlined_call_operand.vmem [shape: f32[1,3], index: 12, kind: input, shape index: {}]   ;;  %s15739_s14 = inlined_call_operand.vmem [shape: bf16[2,8,8,3], index: 14, kind: output, shape index: {1}]  }
   0x1   :  { %53 = vst.msk [vmem:[#allocation2 + $0x10] sm:$0xf] %vm47_vm0, %v11981_v0  ;;  %v12066_v1 = vld [vmem:[%s15725_s0 + $0x8] sm:$0xff]  ;;  %48 = vst.msk [vmem:[#allocation2] sm:$0xf] %vm47_vm0, %v11981_v0  ;;  %v129_v3 = vld [vmem:[%s15725_s0] sm:$0xff] }
   0x2   :  { %54 = vst.msk [vmem:[#allocation2 + $0x14] sm:$0x1] %vm49_vm1, %v11981_v0  ;;  %50 = vst.msk [vmem:[#allocation2 + $0x4] sm:$0x1] %vm49_vm1, %v11981_v0  ;;  %v10714_v2 = vpack.c.bf16 %v12066_v1, %v12066_v1  ;;  %vm371_vm3 = vsmask.f32 7938  ;;  %v10713_v5 = vpack.c.bf16 %v129_v3, %v129_v3 }
   0x3   :  { %51 = vst.msk [vmem:[#allocation2 + $0x8] sm:$0xf] %vm47_vm0, %v11981_v0  ;;  %55 = vst.msk [vmem:[#allocation2 + $0x18] sm:$0xf] %vm47_vm0, %v11981_v0  ;;  %v132_v4 = vld [vmem:[%s15725_s0 + $0x18] sm:$0xff]  ;;  %vm376_vm4 = vcmask 16384  }
   0x4   :  { %52 = vst.msk [vmem:[#allocation2 + $0xc] sm:$0x1] %vm49_vm1, %v11981_v0  ;;  %56 = vst.msk [vmem:[#allocation2 + $0x1c] sm:$0x1] %vm49_vm1, %v11981_v0  ;;  %vm377_vm5 = vsmask.f32 256  ;;  %v10716_v6 = vpack.c.bf16 %v132_v4, %v132_v4 }
   0x5   :  { %57 = vst.msk [vmem:[#allocation2 + $0x20] sm:$0xf] %vm47_vm0, %v11981_v0  ;;  %59 = vst.msk [vmem:[#allocation2 + $0x28] sm:$0xf] %vm47_vm0, %v11981_v0  ;;  %v131_v7 = vld [vmem:[%s15725_s0 + $0x10] sm:$0xff]  ;;  %v133_v8 = vld [vmem:[%s15725_s0 + $0x20] sm:$0xff] }
   0x6   :  { %58 = vst.msk [vmem:[#allocation2 + $0x24] sm:$0x1] %vm49_vm1, %v11981_v0  ;;  %60 = vst.msk [vmem:[#allocation2 + $0x2c] sm:$0x1] %vm49_vm1, %v11981_v0  ;;  %v218_v9 = vshrl.u32 %v10714_v2, 16  ;;  %v221_v10 = vshll.u32 %v10714_v2, 16  ;;  %v10715_v11 = vpack.c.bf16 %v131_v7, %v131_v7  ;;  %v12238_v12 = vpack.c.bf16 %v133_v8, %v133_v8 }
   0x7   :  { %61 = vst.msk [vmem:[#allocation2 + $0x30] sm:$0xf] %vm47_vm0, %v11981_v0  ;;  %63 = vst.msk [vmem:[#allocation2 + $0x38] sm:$0xf] %vm47_vm0, %v11981_v0  ;;  %v134_v13 = vld [vmem:[%s15725_s0 + $0x28] sm:$0xff]  ;;  %v210_v15 = vshrl.u32 %v10713_v5, 16 }
   0x8   :  { %62 = vst.msk [vmem:[#allocation2 + $0x34] sm:$0x1] %vm49_vm1, %v11981_v0  ;;  %64 = vst.msk [vmem:[#allocation2 + $0x3c] sm:$0x1] %vm49_vm1, %v11981_v0  ;;  %v213_v16 = vshll.u32 %v10713_v5, 16  ;;  %v234_v17 = vshrl.u32 %v10716_v6, 16  ;;  %v10718_v29 = vpack.c.bf16 %v134_v13, %v134_v13 }
   0x9   :  { %65 = vst.msk [vmem:[#allocation2 + $0x40] sm:$0xf] %vm47_vm0, %v11981_v0  ;;  %67 = vst.msk [vmem:[#allocation2 + $0x48] sm:$0xf] %vm47_vm0, %v11981_v0  ;;  %v237_v18 = vshll.u32 %v10716_v6, 16  ;;  %v136_v19 = vld [vmem:[%s15725_s0 + $0x38] sm:$0xff] }
   0xa   :  { %66 = vst.msk [vmem:[#allocation2 + $0x44] sm:$0x1] %vm49_vm1, %v11981_v0  ;;  %68 = vst.msk [vmem:[#allocation2 + $0x4c] sm:$0x1] %vm49_vm1, %v11981_v0  ;;  %v220_v20 = vrot.slane %v218_v9, 7  ;;  %v226_v22 = vshrl.u32 %v10715_v11, 16  ;;  %v10720_v35 = vpack.c.bf16 %v136_v19, %v136_v19 }
   0xb   :  { %69 = vst.msk [vmem:[#allocation2 + $0x50] sm:$0xf] %vm47_vm0, %v11981_v0  ;;  %71 = vst.msk [vmem:[#allocation2 + $0x58] sm:$0xf] %vm47_vm0, %v11981_v0  ;;  %v229_v23 = vshll.u32 %v10715_v11, 16  ;;  %v242_v24 = vshrl.u32 %v12238_v12, 16 }
   0xc   :  { %70 = vst.msk [vmem:[#allocation2 + $0x54] sm:$0x1] %vm49_vm1, %v11981_v0  ;;  %72 = vst.msk [vmem:[#allocation2 + $0x5c] sm:$0x1] %vm49_vm1, %v11981_v0  ;;  %v212_v26 = vrot.slane %v210_v15, 7  ;;  %v236_v27 = vrot.slane %v234_v17, 7  ;;  %v223_v30 = vor.u32 %v221_v10, %v220_v20 }
   0xd   :  { %73 = vst.msk [vmem:[#allocation2 + $0x60] sm:$0xf] %vm47_vm0, %v11981_v0  ;;  %75 = vst.msk [vmem:[#allocation2 + $0x68] sm:$0xf] %vm47_vm0, %v11981_v0  ;;  %v245_v28 = vshll.u32 %v12238_v12, 16  ;;  %v224_v31 = vrot.slane %v220_v20, 4 }
   0xe   :  { %74 = vst.msk [vmem:[#allocation2 + $0x64] sm:$0x1] %vm49_vm1, %v11981_v0  ;;  %76 = vst.msk [vmem:[#allocation2 + $0x6c] sm:$0x1] %vm49_vm1, %v11981_v0  ;;  %v382_v32 = vld [vmem:[#allocation2 + $0x10] sm:$0xf]  ;;  %v215_v36 = vor.u32 %v213_v16, %v212_v26  ;;  %v239_v40 = vor.u32 %v237_v18, %v236_v27 }
   0xf   :  { %77 = vst.msk [vmem:[#allocation2 + $0x70] sm:$0xf] %vm47_vm0, %v11981_v0  ;;  %79 = vst.msk [vmem:[#allocation2 + $0x78] sm:$0xf] %vm47_vm0, %v11981_v0  ;;  %v385_v33 = vld [vmem:[#allocation2 + $0x14] sm:$0x1] }
  0x10   :  { %78 = vst.msk [vmem:[#allocation2 + $0x74] sm:$0x1] %vm49_vm1, %v11981_v0  ;;  %80 = vst.msk [vmem:[#allocation2 + $0x7c] sm:$0x1] %vm49_vm1, %v11981_v0  ;;  %v228_v34 = vrot.slane %v226_v22, 7  ;;  %v216_v37 = vrot.slane %v212_v26, 4 }
  0x11   :  { %81 = vst.msk [vmem:[#allocation2 + $0x80] sm:$0xf] %vm47_vm0, %v11981_v0  ;;  %83 = vst.msk [vmem:[#allocation2 + $0x88] sm:$0xf] %vm47_vm0, %v11981_v0  ;;  %v373_v38 = vld [vmem:[#allocation2 + $0x8] sm:$0xf] }
  0x12   :  { %82 = vst.msk [vmem:[#allocation2 + $0x84] sm:$0x1] %vm49_vm1, %v11981_v0  ;;  %84 = vst.msk [vmem:[#allocation2 + $0x8c] sm:$0x1] %vm49_vm1, %v11981_v0  ;;  %v379_v39 = vld [vmem:[#allocation2 + $0xc] sm:$0x1]  ;;  %v231_v46 = vor.u32 %v229_v23, %v228_v34 }
  0x13   :  { %85 = vst.msk [vmem:[#allocation2 + $0x90] sm:$0xf] %vm47_vm0, %v11981_v0  ;;  %87 = vst.msk [vmem:[#allocation2 + $0x98] sm:$0xf] %vm47_vm0, %v11981_v0  ;;  %v240_v41 = vrot.slane %v236_v27, 4  ;;  %v232_v47 = vrot.slane %v228_v34, 4 }
  0x14   :  { %86 = vst.msk [vmem:[#allocation2 + $0x94] sm:$0x1] %vm49_vm1, %v11981_v0  ;;  %88 = vst.msk [vmem:[#allocation2 + $0x9c] sm:$0x1] %vm49_vm1, %v11981_v0  ;;  %v394_v44 = vld [vmem:[#allocation2 + $0x20] sm:$0xf] }
  0x15   :  { %89 = vst.msk [vmem:[#allocation3] sm:$0xf] %vm47_vm0, %v11981_v0  ;;  %91 = vst.msk [vmem:[#allocation3 + $0x8] sm:$0xf] %vm47_vm0, %v11981_v0  ;;  %v397_v45 = vld [vmem:[#allocation2 + $0x24] sm:$0x1] }
  0x16   :  { %90 = vst.msk [vmem:[#allocation3 + $0x4] sm:$0x1] %vm49_vm1, %v11981_v0  ;;  %92 = vst.msk [vmem:[#allocation3 + $0xc] sm:$0x1] %vm49_vm1, %v11981_v0  ;;  %v135_v48 = vld [vmem:[%s15725_s0 + $0x30] sm:$0xff]  ;;  %v138_v55 = vld [vmem:[%s15725_s0 + $0x48] sm:$0xff] }
  0x17   :  { %93 = vst.msk [vmem:[#allocation3 + $0x10] sm:$0xf] %vm47_vm0, %v11981_v0  ;;  %95 = vst.msk [vmem:[#allocation3 + $0x18] sm:$0xf] %vm47_vm0, %v11981_v0  ;;  %v388_v53 = vld [vmem:[#allocation2 + $0x18] sm:$0xf]  ;;  %v10719_v2 = vpack.c.bf16 %v135_v48, %v135_v48  ;;  %v12291_v7 = vpack.c.bf16 %v138_v55, %v138_v55 }
  0x18   :  { %94 = vst.msk [vmem:[#allocation3 + $0x14] sm:$0x1] %vm49_vm1, %v11981_v0  ;;  %96 = vst.msk [vmem:[#allocation3 + $0x1c] sm:$0x1] %vm49_vm1, %v11981_v0  ;;  %v391_v54 = vld [vmem:[#allocation2 + $0x1c] sm:$0x1] }
  0x19   :  { %97 = vst.msk [vmem:[#allocation3 + $0x20] sm:$0xf] %vm47_vm0, %v11981_v0  ;;  %99 = vst.msk [vmem:[#allocation3 + $0x28] sm:$0xf] %vm47_vm0, %v11981_v0  ;;  %v244_v58 = vrot.slane %v242_v24, 7  ;;  %v250_v60 = vshrl.u32 %v10718_v29, 16 }
  0x1a   :  { %98 = vst.msk [vmem:[#allocation3 + $0x24] sm:$0x1] %vm49_vm1, %v11981_v0  ;;  %100 = vst.msk [vmem:[#allocation3 + $0x2c] sm:$0x1] %vm49_vm1, %v11981_v0  ;;  %v400_v59 = vld [vmem:[#allocation2 + $0x28] sm:$0xf] }
  0x1b   :  { %101 = vst.msk [vmem:[#allocation3 + $0x30] sm:$0xf] %vm47_vm0, %v11981_v0  ;;  %103 = vst.msk [vmem:[#allocation3 + $0x38] sm:$0xf] %vm47_vm0, %v11981_v0  ;;  %v137_v61 = vld [vmem:[%s15725_s0 + $0x40] sm:$0xff]  ;;  %v253_v63 = vshll.u32 %v10718_v29, 16  ;;  %v247_v3 = vor.u32 %v245_v28, %v244_v58 }
  0x1c   :  { %102 = vst.msk [vmem:[#allocation3 + $0x34] sm:$0x1] %vm49_vm1, %v11981_v0  ;;  %104 = vst.msk [vmem:[#allocation3 + $0x3c] sm:$0x1] %vm49_vm1, %v11981_v0  ;;  %v403_v62 = vld [vmem:[#allocation2 + $0x2c] sm:$0x1]  ;;  %v12293_v12 = vpack.c.bf16 %v137_v61, %v137_v61 }
  0x1d   :  { %105 = vst.msk [vmem:[#allocation3 + $0x40] sm:$0xf] %vm47_vm0, %v11981_v0  ;;  %107 = vst.msk [vmem:[#allocation3 + $0x48] sm:$0xf] %vm47_vm0, %v11981_v0  ;;  %v269_v1 = vshll.u32 %v10720_v35, 16  ;;  %v248_v4 = vrot.slane %v244_v58, 4 }
  0x1e   :  { %106 = vst.msk [vmem:[#allocation3 + $0x44] sm:$0x1] %vm49_vm1, %v11981_v0  ;;  %108 = vst.msk [vmem:[#allocation3 + $0x4c] sm:$0x1] %vm49_vm1, %v11981_v0  ;;  %v252_v5 = vrot.slane %v250_v60, 7  ;;  %v258_v10 = vshrl.u32 %v10719_v2, 16 }
  0x1f   :  { %109 = vst.msk [vmem:[#allocation3 + $0x50] sm:$0xf] %vm47_vm0, %v11981_v0  ;;  %111 = vst.msk [vmem:[#allocation3 + $0x58] sm:$0xf] %vm47_vm0, %v11981_v0  ;;  %v406_v6 = vld [vmem:[#allocation2 + $0x30] sm:$0xf] }
  0x20   :  { %110 = vst.msk [vmem:[#allocation3 + $0x54] sm:$0x1] %vm49_vm1, %v11981_v0  ;;  %112 = vst.msk [vmem:[#allocation3 + $0x5c] sm:$0x1] %vm49_vm1, %v11981_v0  ;;  %v409_v8 = vld [vmem:[#allocation2 + $0x34] sm:$0x1]  ;;  %v255_v17 = vor.u32 %v253_v63, %v252_v5 }
  0x21   :  { %113 = vst.msk [vmem:[#allocation3 + $0x60] sm:$0xf] %vm47_vm0, %v11981_v0  ;;  %115 = vst.msk [vmem:[#allocation3 + $0x68] sm:$0xf] %vm47_vm0, %v11981_v0  ;;  %v261_v11 = vshll.u32 %v10719_v2, 16  ;;  %v11726_v13 = vld [vmem:[%s15726_s1 + $0x58] sm:$0xff]  }
  0x22   :  { %114 = vst.msk [vmem:[#allocation3 + $0x64] sm:$0x1] %vm49_vm1, %v11981_v0  ;;  %116 = vst.msk [vmem:[#allocation3 + $0x6c] sm:$0x1] %vm49_vm1, %v11981_v0  ;;  %v256_v18 = vrot.slane %v252_v5, 4  ;;  %v11727_v22 = vld [vmem:[%s15726_s1 + $0x50] sm:$0xff]   ;;  %11103 = vmatprep.subr.bf16.mxu0 %v11726_v13 }
  0x23   :  { %117 = vst.msk [vmem:[#allocation3 + $0x70] sm:$0xf] %vm47_vm0, %v11981_v0  ;;  %119 = vst.msk [vmem:[#allocation3 + $0x78] sm:$0xf] %vm47_vm0, %v11981_v0  ;;  %v418_v19 = vld [vmem:[#allocation2 + $0x40] sm:$0xf]  ;;  %11104 = vmatpush3.bf16.msra.mxu0 %v11726_v13 }
  0x24   :  { %118 = vst.msk [vmem:[#allocation3 + $0x74] sm:$0x1] %vm49_vm1, %v11981_v0  ;;  %120 = vst.msk [vmem:[#allocation3 + $0x7c] sm:$0x1] %vm49_vm1, %v11981_v0  ;;  %v421_v20 = vld [vmem:[#allocation2 + $0x44] sm:$0x1]  ;;  %11105 = vmatprep.subr.bf16.mxu0 %v11727_v22 }
  0x25   :  { %121 = vst.msk [vmem:[#allocation3 + $0x80] sm:$0xf] %vm47_vm0, %v11981_v0  ;;  %123 = vst.msk [vmem:[#allocation3 + $0x88] sm:$0xf] %vm47_vm0, %v11981_v0  ;;  %v12305_v26 = vrot.slane %v258_v10, 7  ;;  %v282_v27 = vshrl.u32 %v12291_v7, 16 }
  0x26   :  { %122 = vst.msk [vmem:[#allocation3 + $0x84] sm:$0x1] %vm49_vm1, %v11981_v0  ;;  %124 = vst.msk [vmem:[#allocation3 + $0x8c] sm:$0x1] %vm49_vm1, %v11981_v0  ;;  %v140_v28 = vld [vmem:[%s15725_s0 + $0x58] sm:$0xff]  ;;  %v12314_v29 = vld [vmem:[%s15726_s1 + $0x48] sm:$0xff]  }
  0x27   :  { %125 = vst.msk [vmem:[#allocation3 + $0x90] sm:$0xf] %vm47_vm0, %v11981_v0  ;;  %127 = vst.msk [vmem:[#allocation3 + $0x98] sm:$0xf] %vm47_vm0, %v11981_v0  ;;  %v285_v34 = vshll.u32 %v12291_v7, 16  ;;  %v142_v58 = vld [vmem:[%s15725_s0 + $0x68] sm:$0xff]  ;;  %11106 = vmatpush3.bf16.msra.mxu0 %v11727_v22 }
  0x28   :  { %126 = vst.msk [vmem:[#allocation3 + $0x94] sm:$0x1] %vm49_vm1, %v11981_v0  ;;  %128 = vst.msk [vmem:[#allocation3 + $0x9c] sm:$0x1] %vm49_vm1, %v11981_v0  ;;  %v266_v0 = vshrl.u32 %v10720_v35, 16  ;;  %v274_v35 = vshrl.u32 %v12293_v12, 16  ;;  %11107 = vmatprep.subr.bf16.mxu0 %v12314_v29 }
  0x29   :  { %vm12245_vm6 = vmand %vm49_vm1, %vm377_vm5  ;;  %v141_v63 = vld [vmem:[%s15725_s0 + $0x60] sm:$0xff]  ;;  %v415_v13 = vld [vmem:[#allocation2 + $0x3c] sm:$0x1]  ;;  %vm820_vm9 = vcmask 261120   ;;  %vm869_vm10 = vcmask 523264   ;;  %vm1022_vm11 = vcmask 785408  }
  0x2a   :  { %vm12254_vm7 = vmand %vm370_vm2, %vm371_vm3  ;;  %v268_v9 = vrot.slane %v266_v0, 7  ;;  %v143_v0 = vld [vmem:[%s15725_s0 + $0x70] sm:$0xff]  ;;  %v12383_v22 = vpack.c.bf16 %v141_v63, %v141_v63  ;;  %v427_v63 = vld [vmem:[#allocation2 + $0x5c] sm:$0x1] }
  0x2b   :  { %vm12261_vm8 = vmand %vm376_vm4, %vm377_vm5  ;;  %v383_v42 = vsel %vm12254_vm7, %v223_v30, %v382_v32  ;;  %v374_v49 = vsel %vm12254_vm7, %v215_v36, %v373_v38  ;;  %v395_v51 = vsel %vm12254_vm7, %v239_v40, %v394_v44  ;;  %v389_v56 = vsel %vm12254_vm7, %v231_v46, %v388_v53  ;;  %v139_v53 = vld [vmem:[%s15725_s0 + $0x50] sm:$0xff]  ;;  %11108 = vmatpush3.bf16.msra.mxu0 %v12314_v29 }
  0x2c   :  { %v386_v43 = vsel %vm12261_vm8, %v224_v31, %v385_v33  ;;  %384 = vst [vmem:[#allocation2 + $0x10] sm:$0xf] %v383_v42  ;;  %v380_v50 = vsel %vm12261_vm8, %v216_v37, %v379_v39  ;;  %v398_v52 = vsel %vm12261_vm8, %v240_v41, %v397_v45  ;;  %375 = vst [vmem:[#allocation2 + $0x8] sm:$0xf] %v374_v49  ;;  %v272_v24 = vrot.slane %v268_v9, 4 }
  0x2d   :  { %387 = vst [vmem:[#allocation2 + $0x14] sm:$0x1] %v386_v43  ;;  %381 = vst [vmem:[#allocation2 + $0xc] sm:$0x1] %v380_v50  ;;  %v392_v57 = vsel %vm12261_vm8, %v232_v47, %v391_v54  ;;  %v401_v15 = vsel %vm12254_vm7, %v247_v3, %v400_v59  ;;  %v404_v16 = vsel %vm12261_vm8, %v248_v4, %v403_v62 }
  0x2e   :  { %396 = vst [vmem:[#allocation2 + $0x20] sm:$0xf] %v395_v51  ;;  %399 = vst [vmem:[#allocation2 + $0x24] sm:$0x1] %v398_v52  ;;  %v271_v23 = vor.u32 %v269_v1, %v268_v9  ;;  %v407_v32 = vsel %vm12254_vm7, %v255_v17, %v406_v6  ;;  %v410_v33 = vsel %vm12261_vm8, %v256_v18, %v409_v8  ;;  %v412_v52 = vld [vmem:[#allocation2 + $0x38] sm:$0xf] }
  0x2f   :  { %390 = vst [vmem:[#allocation2 + $0x18] sm:$0xf] %v389_v56  ;;  %393 = vst [vmem:[#allocation2 + $0x1c] sm:$0x1] %v392_v57  ;;  %v422_v41 = vsel %vm12261_vm8, %v272_v24, %v421_v20  ;;  %v263_v46 = vor.u32 %v261_v11, %v12305_v26  ;;  %v12339_v47 = vpack.c.bf16 %v140_v28, %v140_v28  ;;  %v264_v18 = vrot.slane %v12305_v26, 4 }
  0x30   :  { %402 = vst [vmem:[#allocation2 + $0x28] sm:$0xf] %v401_v15  ;;  %405 = vst [vmem:[#allocation2 + $0x2c] sm:$0x1] %v404_v16  ;;  %v419_v40 = vsel %vm12254_vm7, %v271_v23, %v418_v19  ;;  %v12369_v6 = vpack.c.bf16 %v139_v53, %v139_v53  ;;  %v11729_v15 = vld [vmem:[%s15726_s1 + $0x40] sm:$0xff]   ;;  %v284_v19 = vrot.slane %v282_v27, 7  ;;  %v12381_v20 = vpack.c.bf16 %v142_v58, %v142_v58 }
  0x31   :  { %408 = vst [vmem:[#allocation2 + $0x30] sm:$0xf] %v407_v32  ;;  %411 = vst [vmem:[#allocation2 + $0x34] sm:$0x1] %v410_v33  ;;  %v413_v5 = vsel %vm12254_vm7, %v263_v46, %v412_v52  ;;  %11109 = vmatprep.subr.bf16.mxu0 %v11729_v15  ;;  %v433_v52 = vld [vmem:[#allocation2 + $0x64] sm:$0x1] }
  0x32   :  { %420 = vst [vmem:[#allocation2 + $0x40] sm:$0xf] %v419_v40  ;;  %423 = vst [vmem:[#allocation2 + $0x44] sm:$0x1] %v422_v41  ;;  %11110 = vmatpush3.bf16.msra.mxu0 %v11729_v15 }
  0x33   :  { %v12316_v30 = vld [vmem:[#allocation2 + $0x10] sm:$0xf]  ;;  %v12327_v37 = vld [vmem:[#allocation2 + $0x8] sm:$0xf]  ;;  %414 = vst [vmem:[#allocation2 + $0x38] sm:$0xf] %v413_v5  ;;  %vm12781_vm12 = vmand %vm47_vm0, %vm371_vm3 }
  0x34   :  { %v513_v31 = vld [vmem:[#allocation2 + $0x14] sm:$0x1]  ;;  %v511_v38 = vld [vmem:[#allocation2 + $0xc] sm:$0x1] }
  0x35   :  { %v12325_v36 = vcombine.low %v12316_v30, %v513_v31  ;;  %v12329_v39 = vld [vmem:[#allocation2 + $0x20] sm:$0xf]  ;;  %v9946_v42 = vcombine.low %v12327_v37, %v511_v38  ;;  %v517_v43 = vld [vmem:[#allocation2 + $0x24] sm:$0x1]  ;;  %v12394_v38 = vpack.c.bf16 %v143_v0, %v143_v0  ;;  %v298_v0 = vshrl.u32 %v12339_v47, 16 }
  0x36   :  { %v12336_v44 = vld [vmem:[#allocation2 + $0x18] sm:$0xf]  ;;  %v515_v45 = vld [vmem:[#allocation2 + $0x1c] sm:$0x1]  ;;  %v12343_v49 = vcombine.low %v12329_v39, %v517_v43  ;;  %v430_v43 = vld [vmem:[#allocation2 + $0x60] sm:$0xf] }
  0x37   :  { %v774_v48 = vrot.slane %v12325_v36, 1  ;;  %v9948_v50 = vcombine.low %v12336_v44, %v515_v45  ;;  %v643_v51 = vshrl.u32 %v12325_v36, 16  ;;  %v773_v54 = vrot.slane %v9946_v42, 1  ;;  %v12364_v1 = vld [vmem:[#allocation2 + $0x28] sm:$0xf]  ;;  %v11730_v45 = vld [vmem:[%s15726_s1 + $0x38] sm:$0xff]  }
  0x38   :  { %v636_v55 = vshrl.u32 %v9946_v42, 16  ;;  %v638_v56 = vshll.u32 %v9946_v42, 16  ;;  %v645_v57 = vshll.u32 %v12325_v36, 16  ;;  %v776_v59 = vrot.slane %v12343_v49, 1  ;;  %v519_v2 = vld [vmem:[#allocation2 + $0x2c] sm:$0x1]  ;;  %11111 = vmatprep.subr.bf16.mxu0 %v11730_v45 }
  0x39   :  { %792 = vrot.lane.b32.xlu1 %v774_v48, %s11982_s29  ;;  %v775_v60 = vrot.slane %v9948_v50, 1  ;;  %v650_v61 = vshrl.u32 %v9948_v50, 16  ;;  %v652_v62 = vshll.u32 %v9948_v50, 16  ;;  %790 = vrot.lane.b32.xlu0 %v773_v54, %s11982_s29  ;;  %v657_v4 = vshrl.u32 %v12343_v49, 16  ;;  %v12376_v16 = vld [vmem:[#allocation2 + $0x30] sm:$0xf] }
  0x3a   :  { %v640_v3 = vrot.slane %v638_v56, 1  ;;  %v9950_v8 = vcombine.low %v12364_v1, %v519_v2  ;;  %v659_v10 = vshll.u32 %v12343_v49, 16  ;;  %v647_v11 = vrot.slane %v645_v57, 1  ;;  %v521_v17 = vld [vmem:[#allocation2 + $0x34] sm:$0x1]  ;;  %11112 = vmatpush3.bf16.msra.mxu0 %v11730_v45 }
  0x3b   :  { %v654_v9 = vrot.slane %v652_v62, 1  ;;  %v9951_v24 = vcombine.low %v12376_v16, %v521_v17  ;;  %v12388_v32 = vld [vmem:[#allocation2 + $0x40] sm:$0xf]  ;;  %v525_v33 = vld [vmem:[#allocation2 + $0x44] sm:$0x1]  ;;  %v416_v50 = vsel %vm12261_vm8, %v264_v18, %v415_v13  ;;  %v287_v54 = vor.u32 %v285_v34, %v284_v19  ;;  %v11731_v56 = vld [vmem:[%s15726_s1 + $0x30] sm:$0xff]  }
  0x3c   :  { %v777_v23 = vrot.slane %v9950_v8, 1  ;;  %v641_v28 = vor.u32 %v640_v3, %v636_v55  ;;  %v661_v31 = vrot.slane %v659_v10, 1  ;;  %v664_v26 = vshrl.u32 %v9950_v8, 16  ;;  %417 = vst [vmem:[#allocation2 + $0x3c] sm:$0x1] %v416_v50  ;;  %11113 = vmatprep.subr.bf16.mxu0 %v11731_v56 }
  0x3d   :  { %796 = vrot.lane.b32.xlu1 %v776_v59, %s11982_s29  ;;  %794 = vrot.lane.b32.xlu0 %v775_v60, %s11982_s29  ;;  %v666_v27 = vshll.u32 %v9950_v8, 16  ;;  %v12392_v36 = vcombine.low %v12388_v32, %v525_v33  ;;  %v778_v29 = vrot.slane %v9951_v24, 1  ;;  %v655_v40 = vor.u32 %v654_v9, %v650_v61  ;;  %v424_v62 = vld [vmem:[#allocation2 + $0x58] sm:$0xf]  ;;  %v445_v8 = vld [vmem:[#allocation2 + $0x74] sm:$0x1] }
  0x3e   :  { %v12396_v41 = vor.u32 %v647_v11, %v643_v51  ;;  %v673_v42 = vshll.u32 %v9951_v24, 16  ;;  %v671_v46 = vshrl.u32 %v9951_v24, 16  ;;  %v662_v53 = vor.u32 %v661_v31, %v657_v4  ;;  %v12430_v13 = vld [vmem:[#allocation2 + $0x38] sm:$0xf]  ;;  %v436_v17 = vld [vmem:[#allocation2 + $0x68] sm:$0xf]  ;;  %11114 = vmatpush3.bf16.msra.mxu0 %v11731_v56 }
  0x3f   :  { %v668_v48 = vrot.slane %v666_v27, 1  ;;  %v915_v49 = vshll.u32 %v12392_v36, 16  ;;  %v288_v55 = vrot.slane %v284_v19, 4  ;;  %v913_v58 = vshrl.u32 %v12392_v36, 16  ;;  %v439_v31 = vld [vmem:[#allocation2 + $0x6c] sm:$0x1] }
  0x40   :  { %v675_v51 = vrot.slane %v673_v42, 1  ;;  %v276_v59 = vrot.slane %v274_v35, 7  ;;  %v277_v60 = vshll.u32 %v12293_v12, 16  ;;  %v431_v7 = vsel %vm12254_vm7, %v287_v54, %v430_v43  ;;  %v442_v12 = vld [vmem:[#allocation2 + $0x70] sm:$0xf] }
  0x41   :  { %798 = vrot.lane.b32.xlu1 %v777_v23, %s11982_s29  ;;  %800 = vrot.lane.b32.xlu0 %v778_v29, %s11982_s29  ;;  %v12411_v57 = vor.u32 %v668_v48, %v664_v26  ;;  %v917_v61 = vrot.slane %v915_v49, 1  ;;  %v434_v34 = vsel %vm12261_vm8, %v288_v55, %v433_v52  ;;  %432 = vst [vmem:[#allocation2 + $0x60] sm:$0xf] %v431_v7  ;;  %v301_v35 = vshll.u32 %v12339_v47, 16  ;;  %v457_v48 = vld [vmem:[#allocation2 + $0x84] sm:$0x1] }
  0x42   :  { %v12422_v2 = vor.u32 %v675_v51, %v671_v46  ;;  %435 = vst [vmem:[#allocation2 + $0x64] sm:$0x1] %v434_v34  ;;  %v279_v3 = vor.u32 %v277_v60, %v276_v59  ;;  %v280_v4 = vrot.slane %v276_v59, 4  ;;  %v300_v5 = vrot.slane %v298_v0, 7  ;;  %v454_v46 = vld [vmem:[#allocation2 + $0x80] sm:$0xf] }
  0x43   :  { %v290_v9 = vshrl.u32 %v12369_v6, 16  ;;  %v293_v10 = vshll.u32 %v12369_v6, 16  ;;  %v314_v11 = vshrl.u32 %v12381_v20, 16  ;;  %v317_v18 = vshll.u32 %v12381_v20, 16  ;;  %v523_v26 = vld [vmem:[#allocation2 + $0x3c] sm:$0x1] }
  0x44   :  { %v425_v47 = vsel %vm12254_vm7, %v279_v3, %v424_v62  ;;  %v428_v15 = vsel %vm12261_vm8, %v280_v4, %v427_v63  ;;  %v306_v19 = vshrl.u32 %v12383_v22, 16  ;;  %v303_v6 = vor.u32 %v301_v35, %v300_v5  ;;  %v448_v49 = vld [vmem:[#allocation2 + $0x78] sm:$0xf]  ;;  %v451_v51 = vld [vmem:[#allocation2 + $0x7c] sm:$0x1] }
  0x45   :  { %746 = vrot.lane.b32.xlu1 %v655_v40, %s11983_s24  ;;  %742 = vrot.lane.b32.xlu0 %v641_v28, %s11983_s24  ;;  %426 = vst [vmem:[#allocation2 + $0x58] sm:$0xf] %v425_v47  ;;  %429 = vst [vmem:[#allocation2 + $0x5c] sm:$0x1] %v428_v15  ;;  %v304_v23 = vrot.slane %v300_v5, 4  ;;  %v292_v24 = vrot.slane %v290_v9, 7  ;;  %v918_v33 = vor.u32 %v917_v61, %v913_v58 }
  0x46   :  { %v316_v28 = vrot.slane %v314_v11, 7  ;;  %v308_v27 = vrot.slane %v306_v19, 7  ;;  %v309_v29 = vshll.u32 %v12383_v22, 16  ;;  %v322_v40 = vshrl.u32 %v12394_v38, 16  ;;  %v460_v4 = vld [vmem:[#allocation2 + $0x88] sm:$0xf] }
  0x47   :  { %v12442_v20 = vcombine.low %v12430_v13, %v523_v26  ;;  %v443_v42 = vsel %vm12254_vm7, %v303_v6, %v442_v12  ;;  %v446_v43 = vsel %vm12261_vm8, %v304_v23, %v445_v8  ;;  %v295_v45 = vor.u32 %v293_v10, %v292_v24  ;;  %v463_v35 = vld [vmem:[#allocation2 + $0x8c] sm:$0x1] }
  0x48   :  { %444 = vst [vmem:[#allocation2 + $0x70] sm:$0xf] %v443_v42  ;;  %447 = vst [vmem:[#allocation2 + $0x74] sm:$0x1] %v446_v43  ;;  %v296_v22 = vrot.slane %v292_v24, 4  ;;  %v319_v50 = vor.u32 %v317_v18, %v316_v28  ;;  %v320_v52 = vrot.slane %v316_v28, 4 }
  0x49   :  { %748 = vrot.lane.b32.xlu1 %v662_v53, %s11983_s24  ;;  %744 = vrot.lane.b32.xlu0 %v12396_v41, %s11983_s24  ;;  %v311_v53 = vor.u32 %v309_v29, %v308_v27  ;;  %v678_v54 = vshrl.u32 %v12442_v20, 16  ;;  %v680_v55 = vshll.u32 %v12442_v20, 16  ;;  %v12452_v56 = vld [vmem:[#allocation2 + $0x60] sm:$0xf]  ;;  %v437_v58 = vsel %vm12254_vm7, %v295_v45, %v436_v17  ;;  %v144_v41 = vld [vmem:[%s15725_s0 + $0x78] sm:$0xff] }
  0x4a   :  { %v325_v59 = vshll.u32 %v12394_v38, 16  ;;  %v533_v60 = vld [vmem:[#allocation2 + $0x64] sm:$0x1]  ;;  %438 = vst [vmem:[#allocation2 + $0x68] sm:$0xf] %v437_v58  ;;  %v440_v61 = vsel %vm12261_vm8, %v296_v22, %v439_v31  ;;  %v455_v7 = vsel %vm12254_vm7, %v319_v50, %v454_v46  ;;  %v458_v34 = vsel %vm12261_vm8, %v320_v52, %v457_v48 }
  0x4b   :  { %v312_v62 = vrot.slane %v308_v27, 4  ;;  %v682_v38 = vrot.slane %v680_v55, 1  ;;  %v12469_v63 = vcombine.low %v12452_v56, %v533_v60  ;;  %441 = vst [vmem:[#allocation2 + $0x6c] sm:$0x1] %v440_v61  ;;  %456 = vst [vmem:[#allocation2 + $0x80] sm:$0xf] %v455_v7  ;;  %v449_v0 = vsel %vm12254_vm7, %v311_v53, %v448_v49 }
  0x4c   :  { %459 = vst [vmem:[#allocation2 + $0x84] sm:$0x1] %v458_v34  ;;  %v324_v3 = vrot.slane %v322_v40, 7  ;;  %v12475_v12 = vld [vmem:[#allocation2 + $0x58] sm:$0xf]  ;;  %v10728_v8 = vpack.c.bf16 %v144_v41, %v144_v41  ;;  %v930_v10 = vrot.slane %v12392_v36, 1 }
  0x4d   :  { %752 = vrot.lane.b32.xlu1 %v12422_v2, %s11983_s24  ;;  %750 = vrot.lane.b32.xlu0 %v12411_v57, %s11983_s24  ;;  %v531_v5 = vld [vmem:[#allocation2 + $0x5c] sm:$0x1]  ;;  %450 = vst [vmem:[#allocation2 + $0x78] sm:$0xf] %v449_v0  ;;  %v452_v2 = vsel %vm12261_vm8, %v312_v62, %v451_v51  ;;  %v683_v9 = vor.u32 %v682_v38, %v678_v54  ;;  %v701_v11 = vshll.u32 %v12469_v63, 16  ;;  %v779_v15 = vrot.slane %v12442_v20, 1 }
  0x4e   :  { %v12482_v47 = vcombine.low %v12475_v12, %v531_v5  ;;  %453 = vst [vmem:[#allocation2 + $0x7c] sm:$0x1] %v452_v2  ;;  %v327_v57 = vor.u32 %v325_v59, %v324_v3  ;;  %v328_v17 = vrot.slane %v324_v3, 4  ;;  %v330_v18 = vshrl.u32 %v10728_v8, 16  ;;  %v466_v31 = vld [vmem:[#allocation2 + $0x90] sm:$0xf] }
  0x4f   :  { %v699_v19 = vshrl.u32 %v12469_v63, 16  ;;  %v703_v6 = vrot.slane %v701_v11, 1  ;;  %v12489_v24 = vld [vmem:[#allocation2 + $0x70] sm:$0xf]  ;;  %v537_v28 = vld [vmem:[#allocation2 + $0x74] sm:$0x1] }
  0x50   :  { %v692_v23 = vshrl.u32 %v12482_v47, 16  ;;  %v694_v36 = vshll.u32 %v12482_v47, 16  ;;  %v461_v26 = vsel %vm12254_vm7, %v327_v57, %v460_v4  ;;  %v464_v27 = vsel %vm12261_vm8, %v328_v17, %v463_v35  ;;  %v469_v43 = vld [vmem:[#allocation2 + $0x94] sm:$0x1]  ;;  %v12517_v34 = vld [vmem:[%s15726_s1 + $0x88] sm:$0xff]  }
  0x51   :  { %926 = vrot.lane.b32.xlu1 %v918_v33, %s11983_s24  ;;  %754 = vrot.lane.b32.xlu0 %v683_v9, %s11983_s24  ;;  %v332_v33 = vrot.slane %v330_v18, 7  ;;  %v333_v29 = vshll.u32 %v10728_v8, 16  ;;  %v12497_v20 = vcombine.low %v12489_v24, %v537_v28  ;;  %v12499_v42 = vld [vmem:[#allocation2 + $0x68] sm:$0xf]  ;;  %462 = vst [vmem:[#allocation2 + $0x88] sm:$0xf] %v461_v26  ;;  %v704_v22 = vor.u32 %v703_v6, %v699_v19 }
  0x52   :  { %v696_v40 = vrot.slane %v694_v36, 1  ;;  %465 = vst [vmem:[#allocation2 + $0x8c] sm:$0x1] %v464_v27  ;;  %v535_v45 = vld [vmem:[#allocation2 + $0x6c] sm:$0x1]  ;;  %11159 = vmatprep.subr.bf16.mxu0 %v12517_v34  ;;  %v782_v2 = vrot.slane %v12469_v63, 1 }
  0x53   :  { %v12501_v46 = vld [vmem:[#allocation2 + $0x80] sm:$0xf]  ;;  %v541_v48 = vld [vmem:[#allocation2 + $0x84] sm:$0x1]  ;;  %v335_v49 = vor.u32 %v333_v29, %v332_v33  ;;  %v713_v50 = vshrl.u32 %v12497_v20, 16  ;;  %v715_v52 = vshll.u32 %v12497_v20, 16  ;;  %v9956_v53 = vcombine.low %v12499_v42, %v535_v45 }
  0x54   :  { %v12507_v51 = vld [vmem:[#allocation2 + $0x78] sm:$0xf]  ;;  %v697_v54 = vor.u32 %v696_v40, %v692_v23  ;;  %v336_v58 = vrot.slane %v332_v33, 4  ;;  %v11734_v62 = vld [vmem:[%s15726_s1 + $0x28] sm:$0xff]   ;;  %v12524_v0 = vcombine.low %v12501_v46, %v541_v48  ;;  %v11735_v9 = vld [vmem:[%s15726_s1 + $0x20] sm:$0xff]   ;;  %v784_v17 = vrot.slane %v12497_v20, 1 }
  0x55   :  { %932 = vrot.lane.b32.xlu1 %v930_v10, %s11982_s29  ;;  %802 = vrot.lane.b32.xlu0 %v779_v15, %s11982_s29  ;;  %v539_v55 = vld [vmem:[#allocation2 + $0x7c] sm:$0x1]  ;;  %v467_v59 = vsel %vm12254_vm7, %v335_v49, %v466_v31  ;;  %v717_v41 = vrot.slane %v715_v52, 1  ;;  %v706_v60 = vshrl.u32 %v9956_v53, 16  ;;  %v708_v61 = vshll.u32 %v9956_v53, 16  ;;  %v11739_v20 = vld [vmem:[%s15726_s1 + $0x10] sm:$0xff]  }
  0x56   :  { %468 = vst [vmem:[#allocation2 + $0x90] sm:$0xf] %v467_v59  ;;  %v470_v7 = vsel %vm12261_vm8, %v336_v58, %v469_v43  ;;  %v9958_v25 = vcombine.low %v12507_v51, %v539_v55  ;;  %11131 = vmatprep.subr.bf16.mxu1 %v11734_v62  ;;  %v729_v8 = vshll.u32 %v12524_v0, 16  ;;  %v781_v10 = vrot.slane %v12482_v47, 1  ;;  %v11737_v47 = vld [vmem:[%s15726_s1 + $0x18] sm:$0xff]   ;;  %v11741_v45 = vld [vmem:[%s15726_s1 + $0x8] sm:$0xff]  }
  0x57   :  { %v718_v21 = vor.u32 %v717_v41, %v713_v50  ;;  %v710_v38 = vrot.slane %v708_v61, 1  ;;  %471 = vst [vmem:[#allocation2 + $0x94] sm:$0x1] %v470_v7  ;;  %11132 = vmatpush3.bf16.msra.mxu1 %v11734_v62  ;;  %v783_v18 = vrot.slane %v9956_v53, 1  ;;  %v727_v63 = vshrl.u32 %v12524_v0, 16  ;;  %v11742_v55 = vld [vmem:[%s15726_s1] sm:$0xff]  }
  0x58   :  { %v12528_v3 = vld [vmem:[#allocation2 + $0x88] sm:$0xf]  ;;  %v722_v11 = vshll.u32 %v9958_v25, 16  ;;  %11133 = vmatprep.subr.bf16.mxu1 %v11735_v9  ;;  %v731_v6 = vrot.slane %v729_v8, 1  ;;  %v720_v36 = vshrl.u32 %v9958_v25, 16  ;;  %v785_v48 = vrot.slane %v9958_v25, 1 }
  0x59   :  { %760 = vrot.lane.b32.xlu1 %v704_v22, %s11983_s24  ;;  %758 = vrot.lane.b32.xlu0 %v697_v54, %s11983_s24  ;;  %v711_v4 = vor.u32 %v710_v38, %v706_v60  ;;  %v543_v35 = vld [vmem:[#allocation2 + $0x8c] sm:$0x1]  ;;  %v12555_v29 = vld [vmem:[#allocation2] sm:$0xf]  ;;  %v509_v40 = vld [vmem:[#allocation2 + $0x4] sm:$0x1] }
  0x5a   :  { %v12532_v5 = vcombine.low %v12528_v3, %v543_v35  ;;  %v724_v31 = vrot.slane %v722_v11, 1  ;;  %v732_v27 = vor.u32 %v731_v6, %v727_v63  ;;  %v9945_v52 = vcombine.low %v12555_v29, %v509_v40  ;;  %v12567_v53 = vld [vmem:[#allocation2 + $0x48] sm:$0xf]  ;;  %v527_v54 = vld [vmem:[#allocation2 + $0x4c] sm:$0x1] }
  0x5b   :  { %11134 = vmatpush3.bf16.msra.mxu1 %v11735_v9  ;;  %v786_v59 = vrot.slane %v12524_v0, 1  ;;  %v10007_v60 = vcombine.low %v12567_v53, %v527_v54  ;;  %v12576_v61 = vld [vmem:[#allocation2 + $0x50] sm:$0xf]  ;;  %v529_v7 = vld [vmem:[#allocation2 + $0x54] sm:$0x1] }
  0x5c   :  { %v736_v57 = vshll.u32 %v12532_v5, 16  ;;  %v734_v28 = vshrl.u32 %v12532_v5, 16  ;;  %11135 = vmatprep.subr.bf16.mxu1 %v11737_v47  ;;  %v725_v43 = vor.u32 %v724_v31, %v720_v36  ;;  %v631_v41 = vshll.u32 %v9945_v52, 16  ;;  %v12579_v38 = vld [vmem:[#allocation2 + $0x98] sm:$0xf] }
  0x5d   :  { %764 = vrot.lane.b32.xlu1 %v718_v21, %s11983_s24  ;;  %762 = vrot.lane.b32.xlu0 %v711_v4, %s11983_s24  ;;  %v12542_v15 = vld [vmem:[#allocation2 + $0x90] sm:$0xf]  ;;  %v629_v21 = vshrl.u32 %v9945_v52, 16  ;;  %v787_v25 = vrot.slane %v12532_v5, 1  ;;  %v1326_v0 = vshll.u32 %v10007_v60, 16  ;;  %v9953_v35 = vcombine.low %v12576_v61, %v529_v7 }
  0x5e   :  { %v545_v19 = vld [vmem:[#allocation2 + $0x94] sm:$0x1]  ;;  %v738_v26 = vrot.slane %v736_v57, 1  ;;  %v633_v4 = vrot.slane %v631_v41, 1  ;;  %v772_v8 = vrot.slane %v9945_v52, 1  ;;  %v1324_v11 = vshrl.u32 %v10007_v60, 16 }
  0x5f   :  { %v9962_v23 = vcombine.low %v12542_v15, %v545_v19  ;;  %11136 = vmatpush3.bf16.msra.mxu1 %v11737_v47  ;;  %v1328_v57 = vrot.slane %v1326_v0, 1  ;;  %v685_v63 = vshrl.u32 %v9953_v35, 16 }
  0x60   :  { %11137 = vmatprep.subr.bf16.mxu1 %v11739_v20  ;;  %v739_v50 = vor.u32 %v738_v26, %v734_v28 }
  0x61   :  { %808 = vrot.lane.b32.xlu1 %v782_v2, %s11982_s29  ;;  %806 = vrot.lane.b32.xlu0 %v781_v10, %s11982_s29  ;;  %v922_v33 = vshll.u32 %v9962_v23, 16  ;;  %v920_v49 = vshrl.u32 %v9962_v23, 16  ;;  %v931_v62 = vrot.slane %v9962_v23, 1  ;;  %v547_v2 = vld [vmem:[#allocation2 + $0x9c] sm:$0x1]  ;;  %v634_v10 = vor.u32 %v633_v4, %v629_v21 }
  0x62   :  { %v10008_v9 = vcombine.low %v12579_v38, %v547_v2  ;;  %v1329_v5 = vor.u32 %v1328_v57, %v1324_v11  ;;  %v780_v23 = vrot.slane %v9953_v35, 1  ;;  %v11738_v57 = vld [vmem:[%s15726_s1 + $0x70] sm:$0xff]  }
  0x63   :  { %11138 = vmatpush3.bf16.msra.mxu1 %v11739_v20  ;;  %v924_v22 = vrot.slane %v922_v33, 1 }
  0x64   :  { %11139 = vmatprep.subr.bf16.mxu1 %v11741_v45  ;;  %v1333_v6 = vshll.u32 %v10008_v9, 16  ;;  %v1331_v36 = vshrl.u32 %v10008_v9, 16  ;;  %v1342_v28 = vrot.slane %v10008_v9, 1 }
  0x65   :  { %812 = vrot.lane.b32.xlu1 %v784_v17, %s11982_s29  ;;  %810 = vrot.lane.b32.xlu0 %v783_v18, %s11982_s29  ;;  %v925_v58 = vor.u32 %v924_v22, %v920_v49  ;;  %v687_v17 = vshll.u32 %v9953_v35, 16  ;;  %v1341_v18 = vrot.slane %v10007_v60, 1 }
  0x66   :  { %v1335_v31 = vrot.slane %v1333_v6, 1  ;;  %v11743_v6 = vld [vmem:[%s15726_s1 + $0x60] sm:$0xff]  }
  0x67   :  { %11140 = vmatpush3.bf16.msra.mxu1 %v11741_v45  ;;  %v689_v19 = vrot.slane %v687_v17, 1 }
  0x68   :  { %11141 = vmatprep.subr.bf16.mxu1 %v11742_v55  ;;  %v1336_v26 = vor.u32 %v1335_v31, %v1331_v36 }
  0x69   :  { %768 = vrot.lane.b32.xlu1 %v732_v27, %s11983_s24  ;;  %766 = vrot.lane.b32.xlu0 %v725_v43, %s11983_s24  ;;  %v690_v47 = vor.u32 %v689_v19, %v685_v63 }
  0x6b   :  { %11142 = vmatpush3.bf16.msra.mxu1 %v11742_v55 }
  0x6d   :  { %814 = vrot.lane.b32.xlu1 %v785_v48, %s11982_s29  ;;  %770 = vrot.lane.b32.xlu0 %v739_v50, %s11983_s24 }
  0x71   :  { %928 = vrot.lane.b32.xlu1 %v925_v58, %s11983_s24  ;;  %816 = vrot.lane.b32.xlu0 %v786_v59, %s11982_s29 }
  0x75   :  { %934 = vrot.lane.b32.xlu1 %v931_v62, %s11982_s29  ;;  %818 = vrot.lane.b32.xlu0 %v787_v25, %s11982_s29 }
  0x79   :  { %788 = vrot.lane.b32.xlu1 %v772_v8, %s11982_s29  ;;  %740 = vrot.lane.b32.xlu0 %v634_v10, %s11983_s24  ;;  %v11736_v8 = vld [vmem:[%s15726_s1 + $0x78] sm:$0xff]  }
  0x7d   :  { %1343 = vrot.lane.b32.xlu1 %v1341_v18, %s11982_s29  ;;  %1337 = vrot.lane.b32.xlu0 %v1329_v5, %s11983_s24  ;;  %v11740_v5 = vld [vmem:[%s15726_s1 + $0x68] sm:$0xff]  }
  0x81   :  { %804 = vrot.lane.b32.xlu1 %v780_v23, %s11982_s29  ;;  %756 = vrot.lane.b32.xlu0 %v690_v47, %s11983_s24 }
  0x85   :  { %1345 = vrot.lane.b32.xlu1 %v1342_v28, %s11982_s29  ;;  %1339 = vrot.lane.b32.xlu0 %v1336_v26, %s11983_s24 }
  0xab   :  { %v793_v27 = vpop.permute.xlu1 %792  ;;  %v791_v33 = vpop.permute.xlu0 %790 }
  0xaf   :  { %v797_v40 = vpop.permute.xlu1 %796  ;;  %v795_v20 = vpop.permute.xlu0 %794 }
  0xb3   :  { %v799_v43 = vpop.permute.xlu1 %798  ;;  %v801_v45 = vpop.permute.xlu0 %800 }
  0xb7   :  { %v747_v48 = vpop.permute.xlu1 %746  ;;  %v743_v49 = vpop.permute.xlu0 %742 }
  0xb8   :  { %v832_v22 = vsel %vm820_vm9, %v12336_v44, %v747_v48  ;;  %v826_v50 = vsel %vm820_vm9, %v12327_v37, %v743_v49 }
  0xb9   :  { %v12602_v58 = vsel %vm869_vm10, %v832_v22, %v795_v20  ;;  %v12612_v60 = vsel %vm869_vm10, %v826_v50, %v791_v33 }
  0xbb   :  { %v749_v52 = vpop.permute.xlu1 %748  ;;  %v745_v55 = vpop.permute.xlu0 %744 }
  0xbc   :  { %v835_v54 = vsel %vm820_vm9, %v12329_v39, %v749_v52  ;;  %v829_v41 = vsel %vm820_vm9, %v12316_v30, %v745_v55  ;;  %v11733_v30 = vld [vmem:[%s15726_s1 + $0x80] sm:$0xff]  }
  0xbd   :  { %v12605_v59 = vsel %vm869_vm10, %v835_v54, %v797_v40  ;;  %v12615_v37 = vsel %vm869_vm10, %v829_v41, %v793_v27 }
  0xbe   :  { %v9964_v44 = vcombine.low %v12602_v58, %v12605_v59  ;;  %v9963_v7 = vcombine.low %v12612_v60, %v12615_v37 }
  0xbf   :  { %v753_v39 = vpop.permute.xlu1 %752  ;;  %v751_v21 = vpop.permute.xlu0 %750 }
  0xc0   :  { %v841_v62 = vsel %vm820_vm9, %v12376_v16, %v753_v39  ;;  %v838_v4 = vsel %vm820_vm9, %v12364_v1, %v751_v21  ;;  %11115 = vmatprep.mubr.msk.bf16.mxu0 %vm1022_vm11, %v9963_v7 }
  0xc1   :  { %v12625_v25 = vsel %vm869_vm10, %v841_v62, %v801_v45  ;;  %v12631_v0 = vsel %vm869_vm10, %v838_v4, %v799_v43  ;;  %11116 = vmatmul.mubr.msk.bf16.vlgmr.msra.gmra.mxu0 %vm1022_vm11, %v9964_v44  ;;  %v9986_v4 = vcombine.low %v12615_v37, %v12602_v58 }
  0xc2   :  { %v9965_v16 = vcombine.low %v12631_v0, %v12625_v25  ;;  %11160 = vmatpush3.bf16.msra.mxu0 %v12517_v34 }
  0xc3   :  { %v927_v35 = vpop.permute.xlu1 %926  ;;  %v755_v2 = vpop.permute.xlu0 %754  ;;  %11161 = vmatprep.subr.bf16.mxu0 %v11733_v30 }
  0xc4   :  { %11119 = vmatprep.mubr.msk.bf16.mxu0 %vm1022_vm11, %v9965_v16  ;;  %v938_v1 = vsel %vm820_vm9, %v12388_v32, %v927_v35  ;;  %v844_v10 = vsel %vm820_vm9, %v12430_v13, %v755_v2 }
  0xc6   :  { %11162 = vmatpush3.bf16.msra.mxu0 %v11733_v30 }
  0xc7   :  { %v933_v9 = vpop.permute.xlu1 %932  ;;  %v803_v34 = vpop.permute.xlu0 %802  ;;  %11163 = vmatprep.subr.bf16.mxu0 %v11736_v8 }
  0xc8   :  { %v12646_v11 = vsel %vm869_vm10, %v938_v1, %v933_v9  ;;  %v12652_v17 = vsel %vm869_vm10, %v844_v10, %v803_v34  ;;  %v9987_v9 = vcombine.low %v12605_v59, %v12631_v0 }
  0xc9   :  { %v9966_v32 = vcombine.low %v12652_v17, %v12646_v11  ;;  %v9988_v58 = vcombine.low %v12625_v25, %v12652_v17 }
  0xca   :  { %11164 = vmatpush3.bf16.msra.mxu0 %v11736_v8 }
  0xcb   :  { %v761_v18 = vpop.permute.xlu1 %760  ;;  %11120 = vmatmul.mubr.msk.bf16.gmra.mxu0 %vm1022_vm11, %v9966_v32  ;;  %v759_v13 = vpop.permute.xlu0 %758  ;;  %11165 = vmatprep.subr.bf16.mxu0 %v11738_v57 }
  0xcc   :  { %v853_v23 = vsel %vm820_vm9, %v12452_v56, %v761_v18  ;;  %v850_v36 = vsel %vm820_vm9, %v12475_v12, %v759_v13 }
  0xce   :  { %11166 = vmatpush3.bf16.msra.mxu0 %v11738_v57 }
  0xcf   :  { %v765_v63 = vpop.permute.xlu1 %764  ;;  %v763_v19 = vpop.permute.xlu0 %762  ;;  %11167 = vmatprep.subr.bf16.mxu0 %v11740_v5 }
  0xd0   :  { %v859_v33 = vsel %vm820_vm9, %v12489_v24, %v765_v63  ;;  %v856_v56 = vsel %vm820_vm9, %v12499_v42, %v763_v19 }
  0xd2   :  { %11168 = vmatpush3.bf16.msra.mxu0 %v11740_v5 }
  0xd3   :  { %v809_v47 = vpop.permute.xlu1 %808  ;;  %v807_v28 = vpop.permute.xlu0 %806  ;;  %11169 = vmatprep.subr.bf16.mxu0 %v11743_v6 }
  0xd4   :  { %v891_v31 = vsel %vm869_vm10, %v853_v23, %v809_v47  ;;  %v889_v26 = vsel %vm869_vm10, %v850_v36, %v807_v28 }
  0xd5   :  { %v9967_v27 = vcombine.low %v889_v26, %v891_v31 }
  0xd6   :  { %11170 = vmatpush3.bf16.msra.mxu0 %v11743_v6 }
  0xd7   :  { %v813_v40 = vpop.permute.xlu1 %812  ;;  %11123 = vmatprep.mubr.msk.bf16.mxu0 %vm1022_vm11, %v9967_v27  ;;  %v811_v12 = vpop.permute.xlu0 %810 }
  0xd8   :  { %v895_v20 = vsel %vm869_vm10, %v859_v33, %v813_v40  ;;  %v893_v43 = vsel %vm869_vm10, %v856_v56, %v811_v12 }
  0xd9   :  { %v9968_v45 = vcombine.low %v893_v43, %v895_v20  ;;  %v9990_v57 = vcombine.low %v891_v31, %v893_v43 }
  0xdb   :  { %v769_v48 = vpop.permute.xlu1 %768  ;;  %11124 = vmatmul.mubr.msk.bf16.gmra.mxu0 %vm1022_vm11, %v9968_v45  ;;  %v767_v49 = vpop.permute.xlu0 %766 }
  0xdc   :  { %v865_v52 = vsel %vm820_vm9, %v12501_v46, %v769_v48  ;;  %v862_v42 = vsel %vm820_vm9, %v12507_v51, %v767_v49  ;;  %v12748_v49 = vld [vmem:[%s15727_s2] ss:$0 sm:$0xff] }
  0xdf   :  { %v815_v22 = vpop.permute.xlu1 %814  ;;  %v771_v50 = vpop.permute.xlu0 %770 }
  0xe0   :  { %v897_v55 = vsel %vm869_vm10, %v862_v42, %v815_v22  ;;  %v868_v62 = vsel %vm820_vm9, %v12528_v3, %v771_v50 }
  0xe3   :  { %v929_v24 = vpop.permute.xlu1 %928  ;;  %v817_v54 = vpop.permute.xlu0 %816 }
  0xe4   :  { %v899_v41 = vsel %vm869_vm10, %v865_v52, %v817_v54  ;;  %v941_v39 = vsel %vm820_vm9, %v12542_v15, %v929_v24  ;;  %v12753_v24 = vld [vmem:[%s15728_s3] ss:$0 sm:$0xff] }
  0xe5   :  { %v9969_v44 = vcombine.low %v897_v55, %v899_v41 }
  0xe7   :  { %v935_v7 = vpop.permute.xlu1 %934  ;;  %11127 = vmatprep.mubr.msk.bf16.mxu0 %vm1022_vm11, %v9969_v44  ;;  %v819_v46 = vpop.permute.xlu0 %818 }
  0xe8   :  { %v945_v21 = vsel %vm869_vm10, %v941_v39, %v935_v7  ;;  %v901_v51 = vsel %vm869_vm10, %v868_v62, %v819_v46  ;;  %v11764_v7 = vld [vmem:[%s15729_s4 + $0x58] sm:$0xff]  }
  0xe9   :  { %v9970_v30 = vcombine.low %v901_v51, %v945_v21  ;;  %v9992_v17 = vcombine.low %v899_v41, %v901_v51  ;;  %11187 = vmatprep.subr.bf16.mxu1 %v11764_v7 }
  0xeb   :  { %v789_v16 = vpop.permute.xlu1 %788  ;;  %11128 = vmatmul.mubr.msk.bf16.gmra.mxu0 %vm1022_vm11, %v9970_v30  ;;  %v741_v35 = vpop.permute.xlu0 %740 }
  0xec   :  { %v823_v15 = vsel %vm820_vm9, %v12555_v29, %v741_v35  ;;  %11171 = vmatprep.mubr.msk.bf16.mxu0 %vm1022_vm11, %v9986_v4 }
  0xed   :  { %v871_v3 = vsel %vm869_vm10, %v823_v15, %v789_v16 }
  0xee   :  { %v9985_v8 = vcombine.low %v871_v3, %v12612_v60 }
  0xef   :  { %v1344_v2 = vpop.permute.xlu1 %1343  ;;  %v1338_v1 = vpop.permute.xlu0 %1337 }
  0xf0   :  { %11143 = vmatprep.mubr.msk.bf16.mxu1 %vm1022_vm11, %v9985_v8  ;;  %v1349_v37 = vsel %vm820_vm9, %v12567_v53, %v1338_v1  ;;  %v9991_v53 = vcombine.low %v895_v20, %v897_v55 }
  0xf1   :  { %11144 = vmatmul.mubr.msk.bf16.vlgmr.msra.gmra.mxu1 %vm1022_vm11, %v9986_v4  ;;  %v1354_v0 = vsel %vm869_vm10, %v1349_v37, %v1344_v2 }
  0xf2   :  { %11147 = vmatprep.mubr.msk.bf16.mxu1 %vm1022_vm11, %v9987_v9  ;;  %v10009_v25 = vcombine.low %v12646_v11, %v1354_v0  ;;  %11188 = vmatpush3.bf16.msra.mxu1 %v11764_v7 }
  0xf3   :  { %v805_v29 = vpop.permute.xlu1 %804  ;;  %11172 = vmatmul.mubr.msk.bf16.vlgmr.msra.gmra.mxu0 %vm1022_vm11, %v9987_v9  ;;  %v757_v60 = vpop.permute.xlu0 %756 }
  0xf4   :  { %v847_v10 = vsel %vm820_vm9, %v12576_v61, %v757_v60  ;;  %11175 = vmatprep.mubr.msk.bf16.mxu0 %vm1022_vm11, %v9988_v58 }
  0xf5   :  { %v887_v59 = vsel %vm869_vm10, %v847_v10, %v805_v29 }
  0xf6   :  { %v9989_v34 = vcombine.low %v887_v59, %v889_v26 }
  0xf7   :  { %v1340_v61 = vpop.permute.xlu0 %1339  ;;  %v1346_v11 = vpop.permute.xlu1 %1345 }
  0xf8   :  { %v1352_v32 = vsel %vm820_vm9, %v12579_v38, %v1340_v61  ;;  %v1820_v61 = vld [vmem:[#allocation2 + $0x18] sm:$0xf] }
  0xf9   :  { %11148 = vmatmul.mubr.msk.bf16.gmra.mxu1 %vm1022_vm11, %v9988_v58  ;;  %v1356_v18 = vsel %vm869_vm10, %v1352_v32, %v1346_v11 }
  0xfa   :  { %11151 = vmatprep.mubr.msk.bf16.mxu1 %vm1022_vm11, %v9989_v34  ;;  %v10010_v13 = vcombine.low %v945_v21, %v1356_v18 }
  0xfb   :  { %11176 = vmatmul.mubr.msk.bf16.gmra.mxu0 %vm1022_vm11, %v10009_v25 }
  0xfc   :  { %11179 = vmatprep.mubr.msk.bf16.mxu0 %vm1022_vm11, %v9990_v57 }
 0x101   :  { %11152 = vmatmul.mubr.msk.bf16.gmra.mxu1 %vm1022_vm11, %v9990_v57 }
 0x102   :  { %11155 = vmatprep.mubr.msk.bf16.mxu1 %vm1022_vm11, %v9991_v53 }
 0x103   :  { %11180 = vmatmul.mubr.msk.bf16.gmra.mxu0 %vm1022_vm11, %v9991_v53 }
 0x104   :  { %11183 = vmatprep.mubr.msk.bf16.mxu0 %vm1022_vm11, %v9992_v17 }
 0x109   :  { %11156 = vmatmul.mubr.msk.bf16.gmra.mxu1 %vm1022_vm11, %v9992_v17  ;;  %v1823_v17 = vld [vmem:[#allocation2 + $0x1c] sm:$0x1] }
 0x10b   :  { %11184 = vmatmul.mubr.msk.bf16.gmra.mxu0 %vm1022_vm11, %v10010_v13 }
 0x181   :  { %v11117_v5 = vpop.f32.mrf.mxu0 }
 0x183   :  { %v1081_v63 = vpop.f32.mrf.mxu0 }
 0x185   :  { %v11118_v19 = vpop.f32.mrf.mxu0 }
 0x187   :  { %v1084_v6 = vpop.f32.mrf.mxu0 }
 0x18b   :  { %v11121_v23 = vpop.f32.mrf.mxu0 }
 0x18d   :  { %v1097_v47 = vpop.f32.mrf.mxu0 }
 0x18f   :  { %v11122_v36 = vpop.f32.mrf.mxu0 }
 0x191   :  { %v12727_v38 = vpop.f32.mrf.mxu0 }
 0x19b   :  { %v12729_v31 = vpop.f32.mrf.mxu0 }
 0x19d   :  { %v12731_v28 = vpop.f32.mrf.mxu0 }
 0x19f   :  { %v12733_v26 = vpop.f32.mrf.mxu0 }
 0x1a1   :  { %v12735_v27 = vpop.f32.mrf.mxu0 }
 0x1ab   :  { %v12737_v33 = vpop.f32.mrf.mxu0 }
 0x1ad   :  { %v12739_v40 = vpop.f32.mrf.mxu0 }
 0x1af   :  { %v12741_v56 = vpop.f32.mrf.mxu0 }
 0x1b1   :  { %v12743_v20 = vpop.f32.mrf.mxu0  ;;  %v11145_v12 = vpop.f32.mrf.mxu1 }
 0x1b2   :  { %v1259_v43 = vadd.f32 %v11145_v12, %v11117_v5 }
 0x1b3   :  { %v1250_v45 = vpop.f32.mrf.mxu1  ;;  %v11173_v48 = vpop.f32.mrf.mxu0 }
 0x1b4   :  { %v1251_v22 = vadd.f32 %v1250_v45, %v1081_v63  ;;  %v1504_v50 = vadd.f32 %v11173_v48, %v1259_v43  ;;  %v1806_v43 = vld [vmem:[#allocation2 + $0x8] sm:$0xf]  ;;  %v1811_v45 = vld [vmem:[#allocation2 + $0xc] sm:$0x1] }
 0x1b5   :  { %v11146_v52 = vpop.f32.mrf.mxu1  ;;  %v1439_v42 = vpop.f32.mrf.mxu0 }
 0x1b6   :  { %v1527_v54 = vmul.f32 %v12748_v49, %v1504_v50  ;;  %v1262_v55 = vadd.f32 %v11146_v52, %v11118_v19  ;;  %v1502_v41 = vadd.f32 %v1439_v42, %v1251_v22 }
 0x1b7   :  { %v1253_v44 = vpop.f32.mrf.mxu1  ;;  %v11174_v39 = vpop.f32.mrf.mxu0 }
 0x1b8   :  { %v1550_v62 = vadd.f32 %v12753_v24, %v1527_v54  ;;  %v1525_v21 = vmul.f32 %v12748_v49, %v1502_v41  ;;  %v1254_v46 = vadd.f32 %v1253_v44, %v1084_v6  ;;  %v1505_v51 = vadd.f32 %v11174_v39, %v1262_v55 }
 0x1b9   :  { %v11149_v30 = vpop.f32.mrf.mxu1  ;;  %v1442_v4 = vpop.f32.mrf.mxu0 }
 0x1ba   :  { %v12761_v16 = vmax.f32 %v1550_v62, 0.0  ;;  %v1548_v35 = vadd.f32 %v12753_v24, %v1525_v21  ;;  %v1528_v15 = vmul.f32 %v12748_v49, %v1505_v51  ;;  %v1275_v3 = vadd.f32 %v11149_v30, %v11121_v23 }
 0x1bb   :  { %v1503_v2 = vadd.f32 %v1442_v4, %v1254_v46  ;;  %v1266_v8 = vpop.f32.mrf.mxu1  ;;  %v11177_v1 = vpop.f32.mrf.mxu0 }
 0x1bc   :  { %v10731_v9 = vpack.c.bf16 %v12761_v16, %v12761_v16  ;;  %v12767_v58 = vmax.f32 %v1548_v35, 0.0  ;;  %v1551_v29 = vadd.f32 %v12753_v24, %v1528_v15  ;;  %v1267_v37 = vadd.f32 %v1266_v8, %v1097_v47  ;;  %v1826_v15 = vld [vmem:[#allocation2 + $0x20] sm:$0xf] }
 0x1bd   :  { %v1526_v60 = vmul.f32 %v12748_v49, %v1503_v2  ;;  %v1508_v10 = vadd.f32 %v11177_v1, %v1275_v3  ;;  %v11150_v59 = vpop.f32.mrf.mxu1  ;;  %v1455_v0 = vpop.f32.mrf.mxu0  ;;  %v1829_v3 = vld [vmem:[#allocation2 + $0x24] sm:$0x1] }
 0x1be   :  { %v1661_v34 = vshrl.u32 %v10731_v9, 16  ;;  %v1664_v25 = vshll.u32 %v10731_v9, 16  ;;  %v10729_v57 = vpack.c.bf16 %v12767_v58, %v12767_v58  ;;  %v12773_v53 = vmax.f32 %v1551_v29, 0.0 }
 0x1bf   :  { %v1549_v32 = vadd.f32 %v12753_v24, %v1526_v60  ;;  %v1531_v11 = vmul.f32 %v12748_v49, %v1508_v10  ;;  %v1278_v18 = vadd.f32 %v11150_v59, %v11122_v36  ;;  %v1506_v13 = vadd.f32 %v1455_v0, %v1267_v37  ;;  %v1269_v5 = vpop.f32.mrf.mxu1  ;;  %v11178_v63 = vpop.f32.mrf.mxu0  ;;  %v1814_v59 = vld [vmem:[#allocation2 + $0x10] sm:$0xf]  ;;  %v1817_v0 = vld [vmem:[#allocation2 + $0x14] sm:$0x1] }
 0x1c0   :  { %v1663_v19 = vrot.slane %v1661_v34, 7  ;;  %v1645_v6 = vshrl.u32 %v10729_v57, 16  ;;  %v1648_v23 = vshll.u32 %v10729_v57, 16  ;;  %v10732_v47 = vpack.c.bf16 %v12773_v53, %v12773_v53 }
 0x1c1   :  { %v12785_v48 = vmax.f32 %v1549_v32, 0.0  ;;  %v1554_v36 = vadd.f32 %v12753_v24, %v1531_v11  ;;  %v1529_v22 = vmul.f32 %v12748_v49, %v1506_v13  ;;  %v1270_v50 = vadd.f32 %v1269_v5, %v12727_v38  ;;  %v11153_v52 = vpop.f32.mrf.mxu1  ;;  %v1458_v42 = vpop.f32.mrf.mxu0 }
 0x1c2   :  { %v1666_v54 = vor.u32 %v1664_v25, %v1663_v19  ;;  %v1667_v55 = vrot.slane %v1663_v19, 4  ;;  %v1647_v41 = vrot.slane %v1645_v6, 7  ;;  %v1669_v44 = vshrl.u32 %v10732_v47, 16 }
 0x1c3   :  { %v1672_v39 = vshll.u32 %v10732_v47, 16  ;;  %v10730_v7 = vpack.c.bf16 %v12785_v48, %v12785_v48  ;;  %v12792_v62 = vmax.f32 %v1554_v36, 0.0  ;;  %v1552_v21 = vadd.f32 %v12753_v24, %v1529_v22  ;;  %v1282_v46 = vpop.f32.mrf.mxu1  ;;  %v11181_v51 = vpop.f32.mrf.mxu0 }
 0x1c4   :  { %v1821_v30 = vsel %vm12781_vm12, %v1666_v54, %v1820_v61  ;;  %v1824_v38 = vsel %vm12245_vm6, %v1667_v55, %v1823_v17  ;;  %v1650_v4 = vor.u32 %v1648_v23, %v1647_v41  ;;  %v1651_v35 = vrot.slane %v1647_v41, 4 }
 0x1c5   :  { %1822 = vst [vmem:[#allocation2 + $0x18] sm:$0xf] %v1821_v30  ;;  %1825 = vst [vmem:[#allocation2 + $0x1c] sm:$0x1] %v1824_v38  ;;  %v1671_v2 = vrot.slane %v1669_v44, 7  ;;  %v1653_v8 = vshrl.u32 %v10730_v7, 16  ;;  %v10735_v9 = vpack.c.bf16 %v12792_v62, %v12792_v62  ;;  %v11154_v29 = vpop.f32.mrf.mxu1  ;;  %v1471_v37 = vpop.f32.mrf.mxu0  ;;  %v1509_v25 = vadd.f32 %v11178_v63, %v1278_v18 }
 0x1c6   :  { %v1656_v1 = vshll.u32 %v10730_v7, 16  ;;  %v1807_v60 = vsel %vm12781_vm12, %v1650_v4, %v1806_v43  ;;  %v1812_v10 = vsel %vm12245_vm6, %v1651_v35, %v1811_v45  ;;  %v12805_v34 = vmax.f32 %v1552_v21, 0.0  ;;  %v1844_v43 = vld [vmem:[#allocation2 + $0x38] sm:$0xf]  ;;  %v1847_v45 = vld [vmem:[#allocation2 + $0x3c] sm:$0x1] }
 0x1c7   :  { %1808 = vst [vmem:[#allocation2 + $0x8] sm:$0xf] %v1807_v60  ;;  %1813 = vst [vmem:[#allocation2 + $0xc] sm:$0x1] %v1812_v10  ;;  %v1674_v57 = vor.u32 %v1672_v39, %v1671_v2  ;;  %v1675_v61 = vrot.slane %v1671_v2, 4  ;;  %v1655_v17 = vrot.slane %v1653_v8, 7  ;;  %v1532_v5 = vmul.f32 %v12748_v49, %v1509_v25  ;;  %v1285_v6 = vpop.f32.mrf.mxu1  ;;  %v11182_v36 = vpop.f32.mrf.mxu0 }
 0x1c8   :  { %v1693_v32 = vshrl.u32 %v10735_v9, 16  ;;  %v1696_v11 = vshll.u32 %v10735_v9, 16  ;;  %v10733_v13 = vpack.c.bf16 %v12805_v34, %v12805_v34  ;;  %v1291_v19 = vadd.f32 %v11153_v52, %v12729_v31  ;;  %v1832_v38 = vld [vmem:[#allocation2 + $0x28] sm:$0xf] }
 0x1c9   :  { %v1827_v23 = vsel %vm12781_vm12, %v1674_v57, %v1826_v15  ;;  %v1830_v18 = vsel %vm12245_vm6, %v1675_v61, %v1829_v3  ;;  %v1658_v63 = vor.u32 %v1656_v1, %v1655_v17  ;;  %v1659_v47 = vrot.slane %v1655_v17, 4  ;;  %v11157_v35 = vpop.f32.mrf.mxu1  ;;  %v1835_v15 = vld [vmem:[#allocation2 + $0x2c] sm:$0x1]  ;;  %v1474_v9 = vpop.f32.mrf.mxu0 }
 0x1ca   :  { %1828 = vst [vmem:[#allocation2 + $0x20] sm:$0xf] %v1827_v23  ;;  %1831 = vst [vmem:[#allocation2 + $0x24] sm:$0x1] %v1830_v18  ;;  %v1695_v22 = vrot.slane %v1693_v32, 7  ;;  %v1677_v54 = vshrl.u32 %v10733_v13, 16  ;;  %v1555_v41 = vadd.f32 %v12753_v24, %v1532_v5  ;;  %v1507_v44 = vadd.f32 %v1458_v42, %v1270_v50 }
 0x1cb   :  { %v1680_v55 = vshll.u32 %v10733_v13, 16  ;;  %v1815_v31 = vsel %vm12781_vm12, %v1658_v63, %v1814_v59  ;;  %v1818_v52 = vsel %vm12245_vm6, %v1659_v47, %v1817_v0  ;;  %v1283_v39 = vadd.f32 %v1282_v46, %v12731_v28  ;;  %v1298_v25 = vpop.f32.mrf.mxu1 }
 0x1cc   :  { %1816 = vst [vmem:[#allocation2 + $0x10] sm:$0xf] %v1815_v31  ;;  %1819 = vst [vmem:[#allocation2 + $0x14] sm:$0x1] %v1818_v52  ;;  %v1698_v7 = vor.u32 %v1696_v11, %v1695_v22  ;;  %v1699_v21 = vrot.slane %v1695_v22, 4  ;;  %v1679_v30 = vrot.slane %v1677_v54, 7  ;;  %v1530_v3 = vmul.f32 %v12748_v49, %v1507_v44  ;;  %v11185_v11 = vpop.f32.mrf.mxu0 }
 0x1cd   :  { %v12821_v4 = vmax.f32 %v1555_v41, 0.0  ;;  %v1512_v2 = vadd.f32 %v11181_v51, %v1291_v19  ;;  %v1294_v8 = vadd.f32 %v11154_v29, %v12733_v26  ;;  %v1510_v1 = vadd.f32 %v1471_v37, %v1283_v39  ;;  %v1838_v52 = vld [vmem:[#allocation2 + $0x30] sm:$0xf] }
 0x1ce   :  { %v1845_v28 = vsel %vm12781_vm12, %v1698_v7, %v1844_v43  ;;  %v1848_v50 = vsel %vm12245_vm6, %v1699_v21, %v1847_v45  ;;  %v1682_v42 = vor.u32 %v1680_v55, %v1679_v30  ;;  %v1683_v46 = vrot.slane %v1679_v30, 4 }
 0x1cf   :  { %1846 = vst [vmem:[#allocation2 + $0x38] sm:$0xf] %v1845_v28  ;;  %1849 = vst [vmem:[#allocation2 + $0x3c] sm:$0x1] %v1848_v50  ;;  %v10736_v60 = vpack.c.bf16 %v12821_v4, %v12821_v4  ;;  %v1553_v10 = vadd.f32 %v12753_v24, %v1530_v3  ;;  %v1535_v51 = vmul.f32 %v12748_v49, %v1512_v2  ;;  %v11765_v3 = vld [vmem:[%s15729_s4 + $0x50] sm:$0xff]   ;;  %v1487_v50 = vpop.f32.mrf.mxu0 }
 0x1d0   :  { %v1533_v26 = vmul.f32 %v12748_v49, %v1510_v1  ;;  %v1833_v29 = vsel %vm12781_vm12, %v1682_v42, %v1832_v38  ;;  %v1836_v37 = vsel %vm12245_vm6, %v1683_v46, %v1835_v15  ;;  %v1286_v59 = vadd.f32 %v1285_v6, %v12735_v27  ;;  %v1850_v27 = vld [vmem:[#allocation2 + $0x40] sm:$0xf]  ;;  %v1853_v6 = vld [vmem:[#allocation2 + $0x44] sm:$0x1]  ;;  %v11158_v15 = vpop.f32.mrf.mxu1  ;;  %v1841_v2 = vld [vmem:[#allocation2 + $0x34] sm:$0x1]  ;;  %11189 = vmatprep.subr.bf16.mxu1 %v11765_v3 }
 0x1d1   :  { %v1513_v0 = vadd.f32 %v11182_v36, %v1294_v8  ;;  %1834 = vst [vmem:[#allocation2 + $0x28] sm:$0xf] %v1833_v29  ;;  %1837 = vst [vmem:[#allocation2 + $0x2c] sm:$0x1] %v1836_v37  ;;  %v1701_v57 = vshrl.u32 %v10736_v60, 16  ;;  %v1704_v61 = vshll.u32 %v10736_v60, 16  ;;  %v1558_v32 = vadd.f32 %v12753_v24, %v1535_v51  ;;  %11190 = vmatpush3.bf16.msra.mxu1 %v11765_v3 }
 0x1d2   :  { %v12839_v17 = vmax.f32 %v1553_v10, 0.0  ;;  %v1556_v13 = vadd.f32 %v12753_v24, %v1533_v26  ;;  %v1307_v19 = vadd.f32 %v11157_v35, %v12737_v33  ;;  %v1511_v23 = vadd.f32 %v1474_v9, %v1286_v59  ;;  %v1868_v60 = vld [vmem:[#allocation2 + $0x68] sm:$0xf]  ;;  %v1871_v10 = vld [vmem:[#allocation2 + $0x6c] sm:$0x1] }
 0x1d3   :  { %v1536_v5 = vmul.f32 %v12748_v49, %v1513_v0  ;;  %v1703_v18 = vrot.slane %v1701_v57, 7  ;;  %v12847_v47 = vmax.f32 %v1558_v32, 0.0  ;;  %v1299_v43 = vadd.f32 %v1298_v25, %v12739_v40  ;;  %v1856_v51 = vld [vmem:[#allocation2 + $0x58] sm:$0xf]  ;;  %v1859_v26 = vld [vmem:[#allocation2 + $0x5c] sm:$0x1] }
 0x1d4   :  { %v10734_v63 = vpack.c.bf16 %v12839_v17, %v12839_v17  ;;  %v12850_v45 = vmax.f32 %v1556_v13, 0.0  ;;  %v1534_v22 = vmul.f32 %v12748_v49, %v1511_v23  ;;  %v1516_v54 = vadd.f32 %v11185_v11, %v1307_v19  ;;  %v1865_v3 = vld [vmem:[#allocation2 + $0x64] sm:$0x1] }
 0x1d5   :  { %v1559_v36 = vadd.f32 %v12753_v24, %v1536_v5  ;;  %v1706_v55 = vor.u32 %v1704_v61, %v1703_v18  ;;  %v1707_v33 = vrot.slane %v1703_v18, 4  ;;  %v10739_v44 = vpack.c.bf16 %v12847_v47, %v12847_v47  ;;  %v11766_v5 = vld [vmem:[%s15729_s4 + $0x48] sm:$0xff]  }
 0x1d6   :  { %v1685_v41 = vshrl.u32 %v10734_v63, 16  ;;  %v1688_v31 = vshll.u32 %v10734_v63, 16  ;;  %v10737_v39 = vpack.c.bf16 %v12850_v45, %v12850_v45  ;;  %v1557_v40 = vadd.f32 %v12753_v24, %v1534_v22  ;;  %v11186_v63 = vpop.f32.mrf.mxu0  ;;  %v1947_v22 = vld [vmem:[#allocation2 + $0x1c] sm:$0x1]  ;;  %11191 = vmatprep.subr.bf16.mxu1 %v11766_v5 }
 0x1d7   :  { %v12858_v7 = vmax.f32 %v1559_v36, 0.0  ;;  %v1851_v21 = vsel %vm12781_vm12, %v1706_v55, %v1850_v27  ;;  %v1854_v30 = vsel %vm12245_vm6, %v1707_v33, %v1853_v6  ;;  %v1539_v35 = vmul.f32 %v12748_v49, %v1516_v54  ;;  %v1877_v6 = vld [vmem:[#allocation2 + $0x74] sm:$0x1]  ;;  %v12882_v36 = vld [vmem:[#allocation2 + $0x18] sm:$0xf]  ;;  %11192 = vmatpush3.bf16.msra.mxu1 %v11766_v5 }
 0x1d8   :  { %v1687_v38 = vrot.slane %v1685_v41, 7  ;;  %1852 = vst [vmem:[#allocation2 + $0x40] sm:$0xf] %v1851_v21  ;;  %1855 = vst [vmem:[#allocation2 + $0x44] sm:$0x1] %v1854_v30  ;;  %v1725_v8 = vshrl.u32 %v10739_v44, 16  ;;  %v1310_v57 = vadd.f32 %v11158_v15, %v12741_v56  ;;  %v1514_v41 = vadd.f32 %v1487_v50, %v1299_v43 }
 0x1d9   :  { %v1728_v1 = vshll.u32 %v10739_v44, 16  ;;  %v1709_v9 = vshrl.u32 %v10737_v39, 16  ;;  %v1712_v28 = vshll.u32 %v10737_v39, 16  ;;  %v10740_v29 = vpack.c.bf16 %v12858_v7, %v12858_v7  ;;  %v1874_v56 = vld [vmem:[#allocation2 + $0x70] sm:$0xf] }
 0x1da   :  { %v1690_v42 = vor.u32 %v1688_v31, %v1687_v38  ;;  %v1691_v46 = vrot.slane %v1687_v38, 4  ;;  %v12871_v37 = vmax.f32 %v1557_v40, 0.0  ;;  %v1727_v59 = vrot.slane %v1725_v8, 7  ;;  %v1301_v31 = vpop.f32.mrf.mxu1  ;;  %v1862_v15 = vld [vmem:[#allocation2 + $0x60] sm:$0xf] }
 0x1db   :  { %v1711_v0 = vrot.slane %v1709_v9, 7  ;;  %v1562_v25 = vadd.f32 %v12753_v24, %v1539_v35  ;;  %v1733_v11 = vshrl.u32 %v10740_v29, 16  ;;  %v1736_v13 = vshll.u32 %v10740_v29, 16  ;;  %v12896_v35 = vld [vmem:[#allocation2 + $0x20] sm:$0xf] }
 0x1dc   :  { %v1839_v61 = vsel %vm12781_vm12, %v1690_v42, %v1838_v52  ;;  %v1842_v32 = vsel %vm12245_vm6, %v1691_v46, %v1841_v2  ;;  %v1730_v19 = vor.u32 %v1728_v1, %v1727_v59  ;;  %v1731_v23 = vrot.slane %v1727_v59, 4  ;;  %v1949_v50 = vld [vmem:[#allocation2 + $0x24] sm:$0x1]  ;;  %v12911_v59 = vld [vmem:[#allocation2 + $0x8] sm:$0xf] }
 0x1dd   :  { %1840 = vst [vmem:[#allocation2 + $0x30] sm:$0xf] %v1839_v61  ;;  %1843 = vst [vmem:[#allocation2 + $0x34] sm:$0x1] %v1842_v32  ;;  %v1714_v18 = vor.u32 %v1712_v28, %v1711_v0  ;;  %v1715_v27 = vrot.slane %v1711_v0, 4  ;;  %v1735_v54 = vrot.slane %v1733_v11, 7  ;;  %v10738_v55 = vpack.c.bf16 %v12871_v37, %v12871_v37  ;;  %v1490_v28 = vpop.f32.mrf.mxu0 }
 0x1de   :  { %v12886_v33 = vmax.f32 %v1562_v25, 0.0  ;;  %v1869_v52 = vsel %vm12781_vm12, %v1730_v19, %v1868_v60  ;;  %v1872_v44 = vsel %vm12245_vm6, %v1731_v23, %v1871_v10  ;;  %v1537_v8 = vmul.f32 %v12748_v49, %v1514_v41  ;;  %v1943_v0 = vld [vmem:[#allocation2 + $0xc] sm:$0x1]  ;;  %v12914_v11 = vld [vmem:[#allocation2 + $0x10] sm:$0xf] }
 0x1df   :  { %v1857_v39 = vsel %vm12781_vm12, %v1714_v18, %v1856_v51  ;;  %v1860_v40 = vsel %vm12245_vm6, %v1715_v27, %v1859_v26  ;;  %1870 = vst [vmem:[#allocation2 + $0x68] sm:$0xf] %v1869_v52  ;;  %1873 = vst [vmem:[#allocation2 + $0x6c] sm:$0x1] %v1872_v44  ;;  %v1738_v43 = vor.u32 %v1736_v13, %v1735_v54  ;;  %v1739_v21 = vrot.slane %v1735_v54, 4  ;;  %v11767_v27 = vld [vmem:[%s15729_s4 + $0x40] sm:$0xff]  }
 0x1e0   :  { %1858 = vst [vmem:[#allocation2 + $0x58] sm:$0xf] %v1857_v39  ;;  %1861 = vst [vmem:[#allocation2 + $0x5c] sm:$0x1] %v1860_v40  ;;  %v1717_v30 = vshrl.u32 %v10738_v55, 16  ;;  %v1720_v38 = vshll.u32 %v10738_v55, 16  ;;  %v10743_v2 = vpack.c.bf16 %v12886_v33, %v12886_v33  ;;  %v1302_v1 = vadd.f32 %v1301_v31, %v12743_v20  ;;  %11193 = vmatprep.subr.bf16.mxu1 %v11767_v27 }
 0x1e1   :  { %v1517_v9 = vadd.f32 %v11186_v63, %v1310_v57  ;;  %v1875_v42 = vsel %vm12781_vm12, %v1738_v43, %v1874_v56  ;;  %v1878_v46 = vsel %vm12245_vm6, %v1739_v21, %v1877_v6  ;;  %v12907_v10 = vcombine.low %v12882_v36, %v1947_v22  ;;  %v1945_v18 = vld [vmem:[#allocation2 + $0x14] sm:$0x1]  ;;  %v1892_v63 = vld [vmem:[#allocation2 + $0x88] sm:$0xf]  ;;  %v1895_v22 = vld [vmem:[#allocation2 + $0x8c] sm:$0x1]  ;;  %11194 = vmatpush3.bf16.msra.mxu1 %v11767_v27 }
 0x1e2   :  { %v1719_v60 = vrot.slane %v1717_v30, 7  ;;  %1876 = vst [vmem:[#allocation2 + $0x70] sm:$0xf] %v1875_v42  ;;  %1879 = vst [vmem:[#allocation2 + $0x74] sm:$0x1] %v1878_v46  ;;  %v1757_v51 = vshrl.u32 %v10743_v2, 16  ;;  %v1560_v29 = vadd.f32 %v12753_v24, %v1537_v8  ;;  %v1515_v32 = vadd.f32 %v1490_v28, %v1302_v1 }
 0x1e3   :  { %v1760_v26 = vshll.u32 %v10743_v2, 16  ;;  %v1540_v20 = vmul.f32 %v12748_v49, %v1517_v9  ;;  %v2207_v61 = vrot.slane %v12907_v10, 1  ;;  %v12920_v23 = vcombine.low %v12896_v35, %v1949_v50  ;;  %v1880_v9 = vld [vmem:[#allocation2 + $0x78] sm:$0xf]  ;;  %v1883_v46 = vld [vmem:[#allocation2 + $0x7c] sm:$0x1] }
 0x1e4   :  { %v1722_v25 = vor.u32 %v1720_v38, %v1719_v60  ;;  %v1723_v57 = vrot.slane %v1719_v60, 4  ;;  %v1759_v13 = vrot.slane %v1757_v51, 7  ;;  %v12916_v5 = vmax.f32 %v1560_v29, 0.0  ;;  %v1955_v27 = vld [vmem:[#allocation2 + $0x3c] sm:$0x1] }
 0x1e5   :  { %v1563_v19 = vadd.f32 %v12753_v24, %v1540_v20  ;;  %2226 = vrot.lane.b32.xlu0 %v2207_v61, %s11982_s29  ;;  %v1538_v54 = vmul.f32 %v12748_v49, %v1515_v32  ;;  %v12932_v55 = vcombine.low %v12911_v59, %v1943_v0  ;;  %v2208_v40 = vrot.slane %v12920_v23, 1  ;;  %v11769_v20 = vld [vmem:[%s15729_s4 + $0x30] sm:$0xff]   ;;  %v12967_v61 = vld [vmem:[#allocation2 + $0x38] sm:$0xf] }
 0x1e6   :  { %v1863_v56 = vsel %vm12781_vm12, %v1722_v25, %v1862_v15  ;;  %v1866_v6 = vsel %vm12245_vm6, %v1723_v57, %v1865_v3  ;;  %v1762_v41 = vor.u32 %v1760_v26, %v1759_v13  ;;  %v1763_v31 = vrot.slane %v1759_v13, 4  ;;  %v11768_v15 = vld [vmem:[%s15729_s4 + $0x38] sm:$0xff]  }
 0x1e7   :  { %1864 = vst [vmem:[#allocation2 + $0x60] sm:$0xf] %v1863_v56  ;;  %1867 = vst [vmem:[#allocation2 + $0x64] sm:$0x1] %v1866_v6  ;;  %v10741_v52 = vpack.c.bf16 %v12916_v5, %v12916_v5  ;;  %v12936_v44 = vmax.f32 %v1563_v19, 0.0  ;;  %v1561_v39 = vadd.f32 %v12753_v24, %v1538_v54  ;;  %v2205_v43 = vrot.slane %v12932_v55, 1  ;;  %2228 = vrot.lane.b32.xlu1 %v2208_v40, %s11982_s29 }
 0x1e8   :  { %v12942_v49 = vcombine.low %v12914_v11, %v1945_v18  ;;  %v1893_v21 = vsel %vm12781_vm12, %v1762_v41, %v1892_v63  ;;  %v1896_v30 = vsel %vm12245_vm6, %v1763_v31, %v1895_v22  ;;  %v2082_v28 = vshrl.u32 %v12907_v10, 16  ;;  %11195 = vmatprep.subr.bf16.mxu1 %v11768_v15  ;;  %v1898_v6 = vld [vmem:[#allocation2 + $0x90] sm:$0xf]  ;;  %v1901_v63 = vld [vmem:[#allocation2 + $0x94] sm:$0x1] }
 0x1e9   :  { %v1741_v38 = vshrl.u32 %v10741_v52, 16  ;;  %1894 = vst [vmem:[#allocation2 + $0x88] sm:$0xf] %v1893_v21  ;;  %1897 = vst [vmem:[#allocation2 + $0x8c] sm:$0x1] %v1896_v30  ;;  %v1744_v24 = vshll.u32 %v10741_v52, 16  ;;  %v10744_v3 = vpack.c.bf16 %v12936_v44, %v12936_v44  ;;  %2222 = vrot.lane.b32.xlu0 %v2205_v43, %s11982_s29  ;;  %11196 = vmatpush3.bf16.msra.mxu1 %v11768_v15 }
 0x1ea   :  { %v12953_v2 = vmax.f32 %v1561_v39, 0.0  ;;  %v2206_v8 = vrot.slane %v12942_v49, 1  ;;  %v2084_v50 = vshll.u32 %v12907_v10, 16  ;;  %v2091_v42 = vshll.u32 %v12920_v23, 16  ;;  %11197 = vmatprep.subr.bf16.mxu1 %v11769_v20  ;;  %v12975_v41 = vld [vmem:[#allocation2 + $0x28] sm:$0xf] }
 0x1eb   :  { %v1743_v1 = vrot.slane %v1741_v38, 7  ;;  %v1765_v60 = vshrl.u32 %v10744_v3, 16  ;;  %v1768_v51 = vshll.u32 %v10744_v3, 16  ;;  %v2089_v29 = vshrl.u32 %v12920_v23, 16  ;;  %v1951_v43 = vld [vmem:[#allocation2 + $0x2c] sm:$0x1] }
 0x1ec   :  { %v10742_v26 = vpack.c.bf16 %v12953_v2, %v12953_v2  ;;  %v2086_v57 = vrot.slane %v2084_v50, 1  ;;  %v2093_v10 = vrot.slane %v2091_v42, 1  ;;  %2224 = vrot.lane.b32.xlu1 %v2206_v8, %s11982_s29  ;;  %v2070_v18 = vshll.u32 %v12932_v55, 16  ;;  %v1886_v21 = vld [vmem:[#allocation2 + $0x80] sm:$0xf] }
 0x1ed   :  { %v1746_v0 = vor.u32 %v1744_v24, %v1743_v1  ;;  %v1747_v25 = vrot.slane %v1743_v1, 4  ;;  %v1767_v32 = vrot.slane %v1765_v60, 7  ;;  %11198 = vmatpush3.bf16.msra.mxu1 %v11769_v20  ;;  %v1889_v30 = vld [vmem:[#allocation2 + $0x84] sm:$0x1]  ;;  %v2068_v38 = vshrl.u32 %v12932_v55, 16 }
 0x1ee   :  { %v1749_v13 = vshrl.u32 %v10742_v26, 16  ;;  %v1752_v19 = vshll.u32 %v10742_v26, 16  ;;  %v2087_v22 = vor.u32 %v2086_v57, %v2082_v28  ;;  %v2094_v54 = vor.u32 %v2093_v10, %v2089_v29  ;;  %v12986_v28 = vld [vmem:[#allocation2 + $0x40] sm:$0xf]  ;;  %v1957_v50 = vld [vmem:[#allocation2 + $0x44] sm:$0x1] }
 0x1ef   :  { %v1881_v23 = vsel %vm12781_vm12, %v1746_v0, %v1880_v9  ;;  %v1884_v56 = vsel %vm12245_vm6, %v1747_v25, %v1883_v46  ;;  %v1770_v31 = vor.u32 %v1768_v51, %v1767_v32  ;;  %v1771_v52 = vrot.slane %v1767_v32, 4  ;;  %v12996_v25 = vld [vmem:[#allocation2 + $0x30] sm:$0xf] }
 0x1f0   :  { %1882 = vst [vmem:[#allocation2 + $0x78] sm:$0xf] %v1881_v23  ;;  %1885 = vst [vmem:[#allocation2 + $0x7c] sm:$0x1] %v1884_v56  ;;  %v1751_v39 = vrot.slane %v1749_v13, 7  ;;  %v2072_v40 = vrot.slane %v2070_v18, 1  ;;  %2178 = vrot.lane.b32.xlu0 %v2087_v22, %s11983_s24  ;;  %v10050_v24 = vcombine.low %v12967_v61, %v1955_v27  ;;  %2180 = vrot.lane.b32.xlu1 %v2094_v54, %s11983_s24 }
 0x1f1   :  { %v2077_v15 = vshll.u32 %v12942_v49, 16  ;;  %v1899_v3 = vsel %vm12781_vm12, %v1770_v31, %v1898_v6  ;;  %v1902_v8 = vsel %vm12245_vm6, %v1771_v52, %v1901_v63  ;;  %v2075_v42 = vshrl.u32 %v12942_v49, 16  ;;  %v1953_v49 = vld [vmem:[#allocation2 + $0x34] sm:$0x1]  ;;  %v12999_v13 = vld [vmem:[#allocation2 + $0x68] sm:$0xf] }
 0x1f2   :  { %v1754_v1 = vor.u32 %v1752_v19, %v1751_v39  ;;  %v1755_v9 = vrot.slane %v1751_v39, 4  ;;  %1900 = vst [vmem:[#allocation2 + $0x90] sm:$0xf] %v1899_v3  ;;  %1903 = vst [vmem:[#allocation2 + $0x94] sm:$0x1] %v1902_v8  ;;  %v2073_v55 = vor.u32 %v2072_v40, %v2068_v38  ;;  %v10048_v60 = vcombine.low %v12975_v41, %v1951_v43 }
 0x1f3   :  { %v2079_v46 = vrot.slane %v2077_v15, 1  ;;  %v2112_v29 = vshll.u32 %v10050_v24, 16  ;;  %v10059_v0 = vcombine.low %v12986_v28, %v1957_v50  ;;  %v2211_v57 = vrot.slane %v10050_v24, 1  ;;  %v1967_v19 = vld [vmem:[#allocation2 + $0x6c] sm:$0x1] }
 0x1f4   :  { %v1887_v51 = vsel %vm12781_vm12, %v1754_v1, %v1886_v21  ;;  %v1890_v26 = vsel %vm12245_vm6, %v1755_v9, %v1889_v30  ;;  %2174 = vrot.lane.b32.xlu0 %v2073_v55, %s11983_s24  ;;  %v2098_v32 = vshll.u32 %v10048_v60, 16  ;;  %v13001_v18 = vld [vmem:[#allocation2 + $0x70] sm:$0xf]  ;;  %v13003_v27 = vld [vmem:[#allocation2 + $0x58] sm:$0xf]  ;;  %v2110_v23 = vshrl.u32 %v10050_v24, 16 }
 0x1f5   :  { %1888 = vst [vmem:[#allocation2 + $0x80] sm:$0xf] %v1887_v51  ;;  %1891 = vst [vmem:[#allocation2 + $0x84] sm:$0x1] %v1890_v26  ;;  %v2080_v20 = vor.u32 %v2079_v46, %v2075_v42  ;;  %v2114_v10 = vrot.slane %v2112_v29, 1  ;;  %v2209_v56 = vrot.slane %v10048_v60, 1  ;;  %v10049_v63 = vcombine.low %v12996_v25, %v1953_v49 }
 0x1f6   :  { %v2345_v6 = vshll.u32 %v10059_v0, 16  ;;  %v1969_v22 = vld [vmem:[#allocation2 + $0x74] sm:$0x1]  ;;  %v1963_v54 = vld [vmem:[#allocation2 + $0x5c] sm:$0x1]  ;;  %v2100_v40 = vrot.slane %v2098_v32, 1  ;;  %v13011_v30 = vcombine.low %v12999_v13, %v1967_v19 }
 0x1f7   :  { %2176 = vrot.lane.b32.xlu1 %v2080_v20, %s11983_s24  ;;  %v13007_v31 = vld [vmem:[#allocation2 + $0x60] sm:$0xf]  ;;  %v1965_v52 = vld [vmem:[#allocation2 + $0x64] sm:$0x1]  ;;  %v2115_v39 = vor.u32 %v2114_v10, %v2110_v23  ;;  %v2096_v43 = vshrl.u32 %v10048_v60, 16  ;;  %v2360_v21 = vrot.slane %v10059_v0, 1  ;;  %v13014_v38 = vcombine.low %v13001_v18, %v1969_v22 }
 0x1f8   :  { %2234 = vrot.lane.b32.xlu0 %v2211_v57, %s11982_s29  ;;  %v2347_v15 = vrot.slane %v2345_v6, 1  ;;  %v2105_v24 = vshll.u32 %v10049_v63, 16  ;;  %v13018_v3 = vcombine.low %v13003_v27, %v1963_v54  ;;  %v13021_v8 = vcombine.low %v13007_v31, %v1965_v52  ;;  %v13029_v26 = vld [vmem:[#allocation2 + $0x88] sm:$0xf]  ;;  %v1975_v57 = vld [vmem:[#allocation2 + $0x8c] sm:$0x1] }
 0x1f9   :  { %v2101_v1 = vor.u32 %v2100_v40, %v2096_v43  ;;  %v2343_v9 = vshrl.u32 %v10059_v0, 16  ;;  %v2140_v50 = vshll.u32 %v13011_v30, 16  ;;  %v2147_v55 = vshll.u32 %v13014_v38, 16  ;;  %v1971_v6 = vld [vmem:[#allocation2 + $0x7c] sm:$0x1] }
 0x1fa   :  { %v2107_v46 = vrot.slane %v2105_v24, 1  ;;  %v2126_v60 = vshll.u32 %v13018_v3, 16  ;;  %v2133_v51 = vshll.u32 %v13021_v8, 16  ;;  %v2210_v29 = vrot.slane %v10049_v63, 1 }
 0x1fb   :  { %2230 = vrot.lane.b32.xlu1 %v2209_v56, %s11982_s29  ;;  %v2348_v42 = vor.u32 %v2347_v15, %v2343_v9  ;;  %v2103_v20 = vshrl.u32 %v10049_v63, 16  ;;  %v2215_v49 = vrot.slane %v13011_v30, 1  ;;  %v2216_v0 = vrot.slane %v13014_v38, 1  ;;  %v13038_v56 = vld [vmem:[#allocation2 + $0x78] sm:$0xf] }
 0x1fc   :  { %2186 = vrot.lane.b32.xlu0 %v2115_v39, %s11983_s24  ;;  %v2213_v10 = vrot.slane %v13018_v3, 1  ;;  %v2214_v32 = vrot.slane %v13021_v8, 1  ;;  %v2138_v19 = vshrl.u32 %v13011_v30, 16  ;;  %v2145_v23 = vshrl.u32 %v13014_v38, 16  ;;  %v11770_v30 = vld [vmem:[%s15729_s4 + $0x28] sm:$0xff]  }
 0x1fd   :  { %v2142_v22 = vrot.slane %v2140_v50, 1  ;;  %v2149_v63 = vrot.slane %v2147_v55, 1  ;;  %v2124_v54 = vshrl.u32 %v13018_v3, 16  ;;  %v2131_v52 = vshrl.u32 %v13021_v8, 16  ;;  %v13052_v38 = vld [vmem:[%s15729_s4 + $0x88] sm:$0xff]   ;;  %11215 = vmatprep.subr.bf16.mxu0 %v11770_v30  ;;  %v11772_v3 = vld [vmem:[%s15729_s4 + $0x20] sm:$0xff]  }
 0x1fe   :  { %v2108_v39 = vor.u32 %v2107_v46, %v2103_v20  ;;  %v2128_v40 = vrot.slane %v2126_v60, 1  ;;  %v2135_v43 = vrot.slane %v2133_v51, 1  ;;  %v10056_v15 = vcombine.low %v13038_v56, %v1971_v6  ;;  %11216 = vmatpush3.bf16.msra.mxu0 %v11770_v30  ;;  %11243 = vmatprep.subr.bf16.mxu1 %v13052_v38  ;;  %v13062_v8 = vld [vmem:[#allocation2 + $0x90] sm:$0xf]  ;;  %v13064_v9 = vld [vmem:[#allocation2 + $0x80] sm:$0xf] }
 0x1ff   :  { %2362 = vrot.lane.b32.xlu1 %v2360_v21, %s11982_s29  ;;  %v13044_v21 = vcombine.low %v13029_v26, %v1975_v57  ;;  %v1973_v50 = vld [vmem:[#allocation2 + $0x84] sm:$0x1]  ;;  %11217 = vmatprep.subr.bf16.mxu0 %v11772_v3  ;;  %v11774_v60 = vld [vmem:[%s15729_s4 + $0x18] sm:$0xff]   ;;  %v2143_v51 = vor.u32 %v2142_v22, %v2138_v19  ;;  %v13076_v6 = vld [vmem:[#allocation2] sm:$0xf] }
 0x200   :  { %2182 = vrot.lane.b32.xlu0 %v2101_v1, %s11983_s24  ;;  %v1977_v1 = vld [vmem:[#allocation2 + $0x94] sm:$0x1]  ;;  %v2154_v46 = vshll.u32 %v10056_v15, 16  ;;  %v10057_v20 = vcombine.low %v13064_v9, %v1973_v50  ;;  %v2152_v57 = vshrl.u32 %v10056_v15, 16  ;;  %v2136_v22 = vor.u32 %v2135_v43, %v2131_v52 }
 0x201   :  { %v2166_v24 = vshrl.u32 %v13044_v21, 16  ;;  %v2168_v55 = vshll.u32 %v13044_v21, 16  ;;  %v11776_v19 = vld [vmem:[%s15729_s4 + $0x10] sm:$0xff]  }
 0x202   :  { %11218 = vmatpush3.bf16.msra.mxu0 %v11772_v3  ;;  %v2156_v30 = vrot.slane %v2154_v46, 1  ;;  %v1961_v46 = vld [vmem:[#allocation2 + $0x54] sm:$0x1] }
 0x203   :  { %2356 = vrot.lane.b32.xlu1 %v2348_v42, %s11983_s24  ;;  %v2217_v42 = vrot.slane %v10056_v15, 1  ;;  %11219 = vmatprep.subr.bf16.mxu0 %v11774_v60  ;;  %v13085_v15 = vld [vmem:[#allocation2 + $0x48] sm:$0xf] }
 0x204   :  { %2232 = vrot.lane.b32.xlu0 %v2210_v29, %s11982_s29  ;;  %v10060_v29 = vcombine.low %v13062_v8, %v1977_v1  ;;  %v11778_v1 = vld [vmem:[%s15729_s4 + $0x8] sm:$0xff]   ;;  %v2157_v52 = vor.u32 %v2156_v30, %v2152_v57 }
 0x206   :  { %11220 = vmatpush3.bf16.msra.mxu0 %v11774_v60  ;;  %v2352_v3 = vshll.u32 %v10060_v29, 16  ;;  %v2350_v43 = vshrl.u32 %v10060_v29, 16  ;;  %v11780_v60 = vld [vmem:[%s15729_s4] sm:$0xff]  }
 0x207   :  { %2184 = vrot.lane.b32.xlu1 %v2108_v39, %s11983_s24  ;;  %v1941_v39 = vld [vmem:[#allocation2 + $0x4] sm:$0x1]  ;;  %11221 = vmatprep.subr.bf16.mxu0 %v11776_v19 }
 0x208   :  { %2242 = vrot.lane.b32.xlu0 %v2215_v49, %s11982_s29  ;;  %v2150_v49 = vor.u32 %v2149_v63, %v2145_v23  ;;  %v10043_v63 = vcombine.low %v13076_v6, %v1941_v39 }
 0x20a   :  { %11222 = vmatpush3.bf16.msra.mxu0 %v11776_v19  ;;  %v2063_v50 = vshll.u32 %v10043_v63, 16  ;;  %v2061_v57 = vshrl.u32 %v10043_v63, 16  ;;  %v1979_v19 = vld [vmem:[#allocation2 + $0x9c] sm:$0x1] }
 0x20b   :  { %2244 = vrot.lane.b32.xlu1 %v2216_v0, %s11982_s29  ;;  %v2170_v0 = vrot.slane %v2168_v55, 1  ;;  %11223 = vmatprep.subr.bf16.mxu0 %v11778_v1 }
 0x20c   :  { %2238 = vrot.lane.b32.xlu0 %v2213_v10, %s11982_s29  ;;  %v2129_v10 = vor.u32 %v2128_v40, %v2124_v54  ;;  %v1959_v54 = vld [vmem:[#allocation2 + $0x4c] sm:$0x1]  ;;  %v2354_v40 = vrot.slane %v2352_v3, 1  ;;  %v2065_v39 = vrot.slane %v2063_v50, 1 }
 0x20d   :  { %v2171_v23 = vor.u32 %v2170_v0, %v2166_v24  ;;  %v13092_v24 = vld [vmem:[#allocation2 + $0x50] sm:$0xf]  ;;  %v2159_v0 = vshrl.u32 %v10057_v20, 16 }
 0x20e   :  { %11224 = vmatpush3.bf16.msra.mxu0 %v11778_v1  ;;  %v10051_v3 = vcombine.low %v13092_v24, %v1961_v46 }
 0x20f   :  { %2240 = vrot.lane.b32.xlu1 %v2214_v32, %s11982_s29  ;;  %v2161_v32 = vshll.u32 %v10057_v20, 16  ;;  %11225 = vmatprep.subr.bf16.mxu0 %v11780_v60 }
 0x210   :  { %2194 = vrot.lane.b32.xlu0 %v2143_v51, %s11983_s24  ;;  %v2355_v51 = vor.u32 %v2354_v40, %v2350_v43  ;;  %v2119_v1 = vshll.u32 %v10051_v3, 16  ;;  %v2204_v43 = vrot.slane %v10043_v63, 1 }
 0x211   :  { %v2163_v55 = vrot.slane %v2161_v32, 1  ;;  %v13102_v32 = vld [vmem:[#allocation2 + $0x98] sm:$0xf] }
 0x212   :  { %11226 = vmatpush3.bf16.msra.mxu0 %v11780_v60  ;;  %v2121_v46 = vrot.slane %v2119_v1, 1 }
 0x213   :  { %2196 = vrot.lane.b32.xlu1 %v2150_v49, %s11983_s24  ;;  %v10105_v49 = vcombine.low %v13085_v15, %v1959_v54 }
 0x214   :  { %2190 = vrot.lane.b32.xlu0 %v2129_v10, %s11983_s24  ;;  %v2164_v10 = vor.u32 %v2163_v55, %v2159_v0  ;;  %v2117_v55 = vshrl.u32 %v10051_v3, 16  ;;  %v2212_v0 = vrot.slane %v10051_v3, 1 }
 0x215   :  { %v2755_v30 = vshll.u32 %v10105_v49, 16  ;;  %v2753_v54 = vshrl.u32 %v10105_v49, 16  ;;  %v2770_v60 = vrot.slane %v10105_v49, 1 }
 0x217   :  { %2192 = vrot.lane.b32.xlu1 %v2136_v22, %s11983_s24  ;;  %v2219_v22 = vrot.slane %v13044_v21, 1  ;;  %v2757_v40 = vrot.slane %v2755_v30, 1 }
 0x218   :  { %2202 = vrot.lane.b32.xlu0 %v2171_v23, %s11983_s24  ;;  %v2066_v23 = vor.u32 %v2065_v39, %v2061_v57 }
 0x219   :  { %v2758_v50 = vor.u32 %v2757_v40, %v2753_v54 }
 0x21b   :  { %2246 = vrot.lane.b32.xlu1 %v2217_v42, %s11982_s29  ;;  %v2218_v42 = vrot.slane %v10057_v20, 1  ;;  %v2361_v20 = vrot.slane %v10060_v29, 1 }
 0x21c   :  { %2198 = vrot.lane.b32.xlu0 %v2157_v52, %s11983_s24  ;;  %v10106_v52 = vcombine.low %v13102_v32, %v1979_v19 }
 0x21e   :  { %v2762_v21 = vshll.u32 %v10106_v52, 16  ;;  %v2760_v29 = vshrl.u32 %v10106_v52, 16  ;;  %v2771_v57 = vrot.slane %v10106_v52, 1 }
 0x21f   :  { %2358 = vrot.lane.b32.xlu1 %v2355_v51, %s11983_s24  ;;  %v2122_v51 = vor.u32 %v2121_v46, %v2117_v55 }
 0x220   :  { %2248 = vrot.lane.b32.xlu0 %v2218_v42, %s11982_s29  ;;  %v2764_v42 = vrot.slane %v2762_v21, 1 }
 0x222   :  { %v2765_v63 = vor.u32 %v2764_v42, %v2760_v29 }
 0x223   :  { %2200 = vrot.lane.b32.xlu1 %v2164_v10, %s11983_s24 }
 0x224   :  { %2250 = vrot.lane.b32.xlu0 %v2219_v22, %s11982_s29 }
 0x227   :  { %2364 = vrot.lane.b32.xlu1 %v2361_v20, %s11982_s29 }
 0x228   :  { %2172 = vrot.lane.b32.xlu0 %v2066_v23, %s11983_s24 }
 0x22b   :  { %2220 = vrot.lane.b32.xlu1 %v2204_v43, %s11982_s29 }
 0x22c   :  { %2766 = vrot.lane.b32.xlu0 %v2758_v50, %s11983_s24 }
 0x22f   :  { %2772 = vrot.lane.b32.xlu1 %v2770_v60, %s11982_s29 }
 0x230   :  { %2188 = vrot.lane.b32.xlu0 %v2122_v51, %s11983_s24  ;;  %v11775_v51 = vld [vmem:[%s15729_s4 + $0x78] sm:$0xff]  }
 0x233   :  { %2236 = vrot.lane.b32.xlu1 %v2212_v0, %s11982_s29  ;;  %v11777_v0 = vld [vmem:[%s15729_s4 + $0x70] sm:$0xff]  }
 0x234   :  { %2768 = vrot.lane.b32.xlu0 %v2765_v63, %s11983_s24 }
 0x237   :  { %2774 = vrot.lane.b32.xlu1 %v2771_v57, %s11982_s29 }
 0x257   :  { %v2227_v39 = vpop.permute.xlu0 %2226 }
 0x259   :  { %v2229_v49 = vpop.permute.xlu1 %2228 }
 0x25b   :  { %v2223_v10 = vpop.permute.xlu0 %2222 }
 0x25e   :  { %v2225_v30 = vpop.permute.xlu1 %2224 }
 0x262   :  { %v2179_v19 = vpop.permute.xlu0 %2178  ;;  %v2181_v22 = vpop.permute.xlu1 %2180 }
 0x263   :  { %v2266_v23 = vsel %vm820_vm9, %v12896_v35, %v2181_v22  ;;  %v2263_v20 = vsel %vm820_vm9, %v12882_v36, %v2179_v19 }
 0x264   :  { %v13124_v1 = vsel %vm869_vm10, %v2266_v23, %v2229_v49  ;;  %v13135_v55 = vsel %vm869_vm10, %v2263_v20, %v2227_v39 }
 0x266   :  { %v2175_v3 = vpop.permute.xlu0 %2174 }
 0x267   :  { %v2257_v54 = vsel %vm820_vm9, %v12911_v59, %v2175_v3  ;;  %v10062_v59 = vcombine.low %v13135_v55, %v13124_v1 }
 0x268   :  { %v13129_v43 = vsel %vm869_vm10, %v2257_v54, %v2223_v10  ;;  %v11779_v10 = vld [vmem:[%s15729_s4 + $0x68] sm:$0xff]  }
 0x269   :  { %v2177_v40 = vpop.permute.xlu1 %2176 }
 0x26a   :  { %v2260_v52 = vsel %vm820_vm9, %v12914_v11, %v2177_v40  ;;  %v2235_v35 = vpop.permute.xlu0 %2234  ;;  %v11773_v11 = vld [vmem:[%s15729_s4 + $0x80] sm:$0xff]  }
 0x26b   :  { %v13132_v50 = vsel %vm869_vm10, %v2260_v52, %v2225_v30 }
 0x26c   :  { %v10061_v36 = vcombine.low %v13129_v43, %v13132_v50 }
 0x26d   :  { %v2231_v46 = vpop.permute.xlu1 %2230 }
 0x26e   :  { %11199 = vmatprep.mubr.msk.bf16.mxu1 %vm1022_vm11, %v10061_v36  ;;  %v2187_v21 = vpop.permute.xlu0 %2186 }
 0x26f   :  { %11200 = vmatmul.mubr.msk.bf16.vlgmr.msra.gmra.mxu1 %vm1022_vm11, %v10062_v59  ;;  %v2275_v39 = vsel %vm820_vm9, %v12967_v61, %v2187_v21 }
 0x270   :  { %11244 = vmatpush3.bf16.msra.mxu1 %v13052_v38  ;;  %v13172_v61 = vsel %vm869_vm10, %v2275_v39, %v2235_v35 }
 0x271   :  { %v2363_v60 = vpop.permute.xlu1 %2362  ;;  %11245 = vmatprep.subr.bf16.mxu1 %v11773_v11 }
 0x272   :  { %v2183_v29 = vpop.permute.xlu0 %2182 }
 0x273   :  { %v2269_v38 = vsel %vm820_vm9, %v12975_v41, %v2183_v29 }
 0x274   :  { %11246 = vmatpush3.bf16.msra.mxu1 %v11773_v11  ;;  %v2311_v19 = vsel %vm869_vm10, %v2269_v38, %v2231_v46 }
 0x275   :  { %v2357_v42 = vpop.permute.xlu1 %2356  ;;  %11247 = vmatprep.subr.bf16.mxu1 %v11775_v51 }
 0x276   :  { %v2368_v63 = vsel %vm820_vm9, %v12986_v28, %v2357_v42  ;;  %v2233_v57 = vpop.permute.xlu0 %2232 }
 0x277   :  { %v13163_v30 = vsel %vm869_vm10, %v2368_v63, %v2363_v60 }
 0x278   :  { %11248 = vmatpush3.bf16.msra.mxu1 %v11775_v51  ;;  %v10064_v3 = vcombine.low %v13172_v61, %v13163_v30 }
 0x279   :  { %v2185_v49 = vpop.permute.xlu1 %2184  ;;  %11249 = vmatprep.subr.bf16.mxu1 %v11777_v0 }
 0x27a   :  { %v2272_v28 = vsel %vm820_vm9, %v12996_v25, %v2185_v49  ;;  %v2243_v22 = vpop.permute.xlu0 %2242  ;;  %v11781_v25 = vld [vmem:[%s15729_s4 + $0x60] sm:$0xff]  }
 0x27b   :  { %v13169_v41 = vsel %vm869_vm10, %v2272_v28, %v2233_v57 }
 0x27c   :  { %v10063_v23 = vcombine.low %v2311_v19, %v13169_v41  ;;  %11250 = vmatpush3.bf16.msra.mxu1 %v11777_v0 }
 0x27d   :  { %v2245_v54 = vpop.permute.xlu1 %2244  ;;  %11251 = vmatprep.subr.bf16.mxu1 %v11779_v10 }
 0x27e   :  { %11203 = vmatprep.mubr.msk.bf16.mxu1 %vm1022_vm11, %v10063_v23  ;;  %v2239_v20 = vpop.permute.xlu0 %2238 }
 0x27f   :  { %11204 = vmatmul.mubr.msk.bf16.gmra.mxu1 %vm1022_vm11, %v10064_v3 }
 0x280   :  { %11252 = vmatpush3.bf16.msra.mxu1 %v11779_v10 }
 0x281   :  { %v2241_v40 = vpop.permute.xlu1 %2240  ;;  %11253 = vmatprep.subr.bf16.mxu1 %v11781_v25 }
 0x282   :  { %v2195_v52 = vpop.permute.xlu0 %2194 }
 0x283   :  { %v2287_v11 = vsel %vm820_vm9, %v12999_v13, %v2195_v52 }
 0x284   :  { %11254 = vmatpush3.bf16.msra.mxu1 %v11781_v25 }
 0x285   :  { %v2197_v35 = vpop.permute.xlu1 %2196 }
 0x286   :  { %v2290_v36 = vsel %vm820_vm9, %v13001_v18, %v2197_v35  ;;  %v2191_v59 = vpop.permute.xlu0 %2190  ;;  %v2323_v18 = vsel %vm869_vm10, %v2287_v11, %v2243_v22  ;;  %v10084_v35 = vcombine.low %v13132_v50, %v13135_v55  ;;  %v10085_v11 = vcombine.low %v13124_v1, %v2311_v19 }
 0x287   :  { %v2281_v46 = vsel %vm820_vm9, %v13003_v27, %v2191_v59  ;;  %v2325_v60 = vsel %vm869_vm10, %v2290_v36, %v2245_v54  ;;  %v10086_v50 = vcombine.low %v13169_v41, %v13172_v61 }
 0x288   :  { %v2319_v29 = vsel %vm869_vm10, %v2281_v46, %v2239_v20  ;;  %v10066_v57 = vcombine.low %v2323_v18, %v2325_v60 }
 0x289   :  { %v2193_v21 = vpop.permute.xlu1 %2192 }
 0x28a   :  { %v2284_v51 = vsel %vm820_vm9, %v13007_v31, %v2193_v21  ;;  %v2203_v0 = vpop.permute.xlu0 %2202 }
 0x28b   :  { %v2321_v42 = vsel %vm869_vm10, %v2284_v51, %v2241_v40  ;;  %v2299_v54 = vsel %vm820_vm9, %v13029_v26, %v2203_v0 }
 0x28c   :  { %v10065_v63 = vcombine.low %v2319_v29, %v2321_v42 }
 0x28d   :  { %v2247_v38 = vpop.permute.xlu1 %2246 }
 0x28e   :  { %11207 = vmatprep.mubr.msk.bf16.mxu1 %vm1022_vm11, %v10065_v63  ;;  %v2199_v27 = vpop.permute.xlu0 %2198 }
 0x28f   :  { %11208 = vmatmul.mubr.msk.bf16.gmra.mxu1 %vm1022_vm11, %v10066_v57  ;;  %v2293_v31 = vsel %vm820_vm9, %v13038_v56, %v2199_v27 }
 0x290   :  { %v2327_v28 = vsel %vm869_vm10, %v2293_v31, %v2247_v38 }
 0x291   :  { %v2359_v13 = vpop.permute.xlu1 %2358 }
 0x292   :  { %v2249_v39 = vpop.permute.xlu0 %2248  ;;  %v2371_v25 = vsel %vm820_vm9, %v13062_v8, %v2359_v13 }
 0x295   :  { %v2201_v49 = vpop.permute.xlu1 %2200 }
 0x296   :  { %v2296_v10 = vsel %vm820_vm9, %v13064_v9, %v2201_v49  ;;  %v2251_v23 = vpop.permute.xlu0 %2250 }
 0x297   :  { %v2329_v22 = vsel %vm869_vm10, %v2296_v10, %v2249_v39  ;;  %v2331_v40 = vsel %vm869_vm10, %v2299_v54, %v2251_v23 }
 0x298   :  { %v10067_v3 = vcombine.low %v2327_v28, %v2329_v22  ;;  %v10090_v63 = vcombine.low %v2329_v22, %v2331_v40 }
 0x299   :  { %v2365_v20 = vpop.permute.xlu1 %2364 }
 0x29a   :  { %v2375_v56 = vsel %vm869_vm10, %v2371_v25, %v2365_v20  ;;  %11211 = vmatprep.mubr.msk.bf16.mxu1 %vm1022_vm11, %v10067_v3  ;;  %v2173_v52 = vpop.permute.xlu0 %2172 }
 0x29b   :  { %v10068_v9 = vcombine.low %v2331_v40, %v2375_v56  ;;  %v2254_v36 = vsel %vm820_vm9, %v13076_v6, %v2173_v52 }
 0x29d   :  { %v2221_v59 = vpop.permute.xlu1 %2220  ;;  %11212 = vmatmul.mubr.msk.bf16.gmra.mxu1 %vm1022_vm11, %v10068_v9 }
 0x29e   :  { %v2301_v26 = vsel %vm869_vm10, %v2254_v36, %v2221_v59  ;;  %11255 = vmatprep.mubr.msk.bf16.mxu1 %vm1022_vm11, %v10084_v35  ;;  %v2767_v46 = vpop.permute.xlu0 %2766 }
 0x29f   :  { %v10083_v8 = vcombine.low %v2301_v26, %v13129_v43  ;;  %v2778_v43 = vsel %vm820_vm9, %v13085_v15, %v2767_v46  ;;  %v10089_v15 = vcombine.low %v2325_v60, %v2327_v28  ;;  %v11802_v26 = vld [vmem:[%s15729_s4 + $0xe8] sm:$0xff]  }
 0x2a0   :  { %11271 = vmatprep.subr.bf16.mxu0 %v11802_v26 }
 0x2a1   :  { %v2773_v21 = vpop.permute.xlu1 %2772  ;;  %11227 = vmatprep.mubr.msk.bf16.mxu0 %vm1022_vm11, %v10083_v8  ;;  %v13272_v8 = vld [vmem:[%s15731_s6] ss:$0 sm:$0xff] }
 0x2a2   :  { %11228 = vmatmul.mubr.msk.bf16.vlgmr.msra.gmra.mxu0 %vm1022_vm11, %v10084_v35  ;;  %v2189_v6 = vpop.permute.xlu0 %2188  ;;  %v2783_v19 = vsel %vm869_vm10, %v2778_v43, %v2773_v21  ;;  %v13264_v35 = vld [vmem:[%s15730_s5] ss:$0 sm:$0xff] }
 0x2a3   :  { %11231 = vmatprep.mubr.msk.bf16.mxu0 %vm1022_vm11, %v10085_v11  ;;  %v2278_v55 = vsel %vm820_vm9, %v13092_v24, %v2189_v6  ;;  %v10107_v41 = vcombine.low %v13163_v30, %v2783_v19  ;;  %v10088_v24 = vcombine.low %v2321_v42, %v2323_v18  ;;  %11272 = vmatpush3.bf16.msra.mxu0 %v11802_v26 }
 0x2a5   :  { %v2237_v51 = vpop.permute.xlu1 %2236  ;;  %11256 = vmatmul.mubr.msk.bf16.vlgmr.msra.gmra.mxu1 %vm1022_vm11, %v10085_v11 }
 0x2a6   :  { %v2317_v1 = vsel %vm869_vm10, %v2278_v55, %v2237_v51  ;;  %11259 = vmatprep.mubr.msk.bf16.mxu1 %vm1022_vm11, %v10086_v50  ;;  %v2769_v61 = vpop.permute.xlu0 %2768 }
 0x2a7   :  { %v10087_v0 = vcombine.low %v2317_v1, %v2319_v29  ;;  %v2781_v29 = vsel %vm820_vm9, %v13102_v32, %v2769_v61 }
 0x2a9   :  { %v2775_v57 = vpop.permute.xlu1 %2774 }
 0x2aa   :  { %11232 = vmatmul.mubr.msk.bf16.gmra.mxu0 %vm1022_vm11, %v10086_v50  ;;  %v2785_v30 = vsel %vm869_vm10, %v2781_v29, %v2775_v57 }
 0x2ab   :  { %11235 = vmatprep.mubr.msk.bf16.mxu0 %vm1022_vm11, %v10087_v0  ;;  %v10108_v42 = vcombine.low %v2375_v56, %v2785_v30 }
 0x2ad   :  { %11260 = vmatmul.mubr.msk.bf16.gmra.mxu1 %vm1022_vm11, %v10107_v41 }
 0x2ae   :  { %11263 = vmatprep.mubr.msk.bf16.mxu1 %vm1022_vm11, %v10088_v24 }
 0x2b2   :  { %11236 = vmatmul.mubr.msk.bf16.gmra.mxu0 %vm1022_vm11, %v10088_v24 }
 0x2b3   :  { %11239 = vmatprep.mubr.msk.bf16.mxu0 %vm1022_vm11, %v10089_v15 }
 0x2b5   :  { %11264 = vmatmul.mubr.msk.bf16.gmra.mxu1 %vm1022_vm11, %v10089_v15 }
 0x2b6   :  { %11267 = vmatprep.mubr.msk.bf16.mxu1 %vm1022_vm11, %v10090_v63 }
 0x2ba   :  { %11240 = vmatmul.mubr.msk.bf16.gmra.mxu0 %vm1022_vm11, %v10090_v63 }
 0x2bd   :  { %11268 = vmatmul.mubr.msk.bf16.gmra.mxu1 %vm1022_vm11, %v10108_v42 }
 0x32f   :  { %v11201_v60 = vpop.f32.mrf.mxu1 }
 0x331   :  { %v2510_v18 = vpop.f32.mrf.mxu1 }
 0x333   :  { %v11202_v38 = vpop.f32.mrf.mxu1 }
 0x335   :  { %v2513_v27 = vpop.f32.mrf.mxu1 }
 0x33f   :  { %v11205_v13 = vpop.f32.mrf.mxu1 }
 0x341   :  { %v2526_v39 = vpop.f32.mrf.mxu1 }
 0x343   :  { %v11206_v31 = vpop.f32.mrf.mxu1 }
 0x345   :  { %v2529_v32 = vpop.f32.mrf.mxu1 }
 0x34f   :  { %v13245_v49 = vpop.f32.mrf.mxu1 }
 0x351   :  { %v13247_v10 = vpop.f32.mrf.mxu1 }
 0x353   :  { %v13249_v28 = vpop.f32.mrf.mxu1 }
 0x355   :  { %v13251_v22 = vpop.f32.mrf.mxu1 }
 0x35d   :  { %v13253_v23 = vpop.f32.mrf.mxu1 }
 0x35f   :  { %v13255_v3 = vpop.f32.mrf.mxu1 }
 0x361   :  { %v13257_v54 = vpop.f32.mrf.mxu1 }
 0x362   :  { %v11229_v25 = vpop.f32.mrf.mxu0 }
 0x363   :  { %v2688_v20 = vadd.f32 %v11229_v25, %v11201_v60  ;;  %v13259_v40 = vpop.f32.mrf.mxu1 }
 0x364   :  { %v2679_v56 = vpop.f32.mrf.mxu0 }
 0x365   :  { %v2680_v9 = vadd.f32 %v2679_v56, %v2510_v18  ;;  %v11257_v52 = vpop.f32.mrf.mxu1 }
 0x366   :  { %v2933_v36 = vadd.f32 %v11257_v52, %v2688_v20  ;;  %v11230_v59 = vpop.f32.mrf.mxu0 }
 0x367   :  { %v2691_v46 = vadd.f32 %v11230_v59, %v11202_v38  ;;  %v2868_v11 = vpop.f32.mrf.mxu1 }
 0x368   :  { %v2956_v21 = vmul.f32 %v13264_v35, %v2933_v36  ;;  %v2931_v6 = vadd.f32 %v2868_v11, %v2680_v9  ;;  %v2682_v50 = vpop.f32.mrf.mxu0 }
 0x369   :  { %v2683_v55 = vadd.f32 %v2682_v50, %v2513_v27  ;;  %v11258_v43 = vpop.f32.mrf.mxu1 }
 0x36a   :  { %v2979_v51 = vadd.f32 %v13272_v8, %v2956_v21  ;;  %v2954_v1 = vmul.f32 %v13264_v35, %v2931_v6  ;;  %v2934_v19 = vadd.f32 %v11258_v43, %v2691_v46  ;;  %v11233_v0 = vpop.f32.mrf.mxu0 }
 0x36b   :  { %v2704_v41 = vadd.f32 %v11233_v0, %v11205_v13  ;;  %v2871_v24 = vpop.f32.mrf.mxu1 }
 0x36c   :  { %v2995_v15 = vmax.f32 %v2979_v51, 0.0  ;;  %v2977_v61 = vadd.f32 %v13272_v8, %v2954_v1  ;;  %v2957_v63 = vmul.f32 %v13264_v35, %v2934_v19  ;;  %v2932_v29 = vadd.f32 %v2871_v24, %v2683_v55  ;;  %v2695_v57 = vpop.f32.mrf.mxu0  ;;  %v3249_v19 = vld [vmem:[#allocation3 + $0x1c] sm:$0x1] }
 0x36d   :  { %v2696_v30 = vadd.f32 %v2695_v57, %v2526_v39  ;;  %v11261_v42 = vpop.f32.mrf.mxu1 }
 0x36e   :  { %v10747_v60 = vpack.c.bf16 %v2995_v15, %v2995_v15  ;;  %v2993_v18 = vmax.f32 %v2977_v61, 0.0  ;;  %v2980_v38 = vadd.f32 %v13272_v8, %v2957_v63  ;;  %v2955_v27 = vmul.f32 %v13264_v35, %v2932_v29  ;;  %v11234_v25 = vpop.f32.mrf.mxu0 }
 0x36f   :  { %v2937_v20 = vadd.f32 %v11261_v42, %v2704_v41  ;;  %v2707_v56 = vadd.f32 %v11234_v25, %v11206_v31  ;;  %v2884_v13 = vpop.f32.mrf.mxu1  ;;  %v3246_v31 = vld [vmem:[#allocation3 + $0x18] sm:$0xf]  ;;  %v3234_v42 = vld [vmem:[#allocation3 + $0x8] sm:$0xf] }
 0x370   :  { %v3090_v9 = vshrl.u32 %v10747_v60, 16  ;;  %v3093_v52 = vshll.u32 %v10747_v60, 16  ;;  %v10745_v36 = vpack.c.bf16 %v2993_v18, %v2993_v18  ;;  %v2996_v59 = vmax.f32 %v2980_v38, 0.0  ;;  %v2698_v26 = vpop.f32.mrf.mxu0  ;;  %v3237_v60 = vld [vmem:[#allocation3 + $0xc] sm:$0x1] }
 0x371   :  { %v2978_v46 = vadd.f32 %v13272_v8, %v2955_v27  ;;  %v2960_v39 = vmul.f32 %v13264_v35, %v2937_v20  ;;  %v2935_v11 = vadd.f32 %v2884_v13, %v2696_v30  ;;  %v13283_v21 = vadd.f32 %v2698_v26, %v2529_v32  ;;  %v11262_v6 = vpop.f32.mrf.mxu1 }
 0x372   :  { %v3092_v50 = vrot.slane %v3090_v9, 7  ;;  %v3074_v55 = vshrl.u32 %v10745_v36, 16  ;;  %v3077_v43 = vshll.u32 %v10745_v36, 16  ;;  %v10748_v51 = vpack.c.bf16 %v2996_v59, %v2996_v59  ;;  %v11237_v1 = vpop.f32.mrf.mxu0 }
 0x373   :  { %v2994_v0 = vmax.f32 %v2978_v46, 0.0  ;;  %v2983_v41 = vadd.f32 %v13272_v8, %v2960_v39  ;;  %v2958_v24 = vmul.f32 %v13264_v35, %v2935_v11  ;;  %v2938_v15 = vadd.f32 %v11262_v6, %v2707_v56  ;;  %v2887_v61 = vpop.f32.mrf.mxu1 }
 0x374   :  { %v3095_v63 = vor.u32 %v3093_v52, %v3092_v50  ;;  %v3096_v29 = vrot.slane %v3092_v50, 4  ;;  %v3076_v57 = vrot.slane %v3074_v55, 7  ;;  %v3098_v32 = vshrl.u32 %v10748_v51, 16  ;;  %v2711_v30 = vpop.f32.mrf.mxu0  ;;  %v3252_v55 = vld [vmem:[#allocation3 + $0x20] sm:$0xf] }
 0x375   :  { %v3101_v18 = vshll.u32 %v10748_v51, 16  ;;  %v10746_v38 = vpack.c.bf16 %v2994_v0, %v2994_v0  ;;  %v2999_v27 = vmax.f32 %v2983_v41, 0.0  ;;  %v2981_v25 = vadd.f32 %v13272_v8, %v2958_v24  ;;  %v11265_v20 = vpop.f32.mrf.mxu1  ;;  %v3255_v51 = vld [vmem:[#allocation3 + $0x24] sm:$0x1] }
 0x376   :  { %v3247_v13 = vsel %vm12781_vm12, %v3095_v63, %v3246_v31  ;;  %v3250_v56 = vsel %vm12245_vm6, %v3096_v29, %v3249_v19  ;;  %v3079_v9 = vor.u32 %v3077_v43, %v3076_v57  ;;  %v3080_v52 = vrot.slane %v3076_v57, 4  ;;  %v11238_v36 = vpop.f32.mrf.mxu0  ;;  %v3240_v29 = vld [vmem:[#allocation3 + $0x10] sm:$0xf]  ;;  %v3243_v57 = vld [vmem:[#allocation3 + $0x14] sm:$0x1] }
 0x377   :  { %3248 = vst [vmem:[#allocation3 + $0x18] sm:$0xf] %v3247_v13  ;;  %3251 = vst [vmem:[#allocation3 + $0x1c] sm:$0x1] %v3250_v56  ;;  %v3100_v59 = vrot.slane %v3098_v32, 7  ;;  %v3082_v26 = vshrl.u32 %v10746_v38, 16  ;;  %v10751_v39 = vpack.c.bf16 %v2999_v27, %v2999_v27  ;;  %v2900_v11 = vpop.f32.mrf.mxu1  ;;  %v2961_v43 = vmul.f32 %v13264_v35, %v2938_v15 }
 0x378   :  { %v3085_v46 = vshll.u32 %v10746_v38, 16  ;;  %v3235_v6 = vsel %vm12781_vm12, %v3079_v9, %v3234_v42  ;;  %v3238_v50 = vsel %vm12245_vm6, %v3080_v52, %v3237_v60  ;;  %v2997_v31 = vmax.f32 %v2981_v25, 0.0  ;;  %v2714_v63 = vpop.f32.mrf.mxu0 }
 0x379   :  { %3236 = vst [vmem:[#allocation3 + $0x8] sm:$0xf] %v3235_v6  ;;  %3239 = vst [vmem:[#allocation3 + $0xc] sm:$0x1] %v3238_v50  ;;  %v3103_v19 = vor.u32 %v3101_v18, %v3100_v59  ;;  %v3104_v0 = vrot.slane %v3100_v59, 4  ;;  %v3084_v41 = vrot.slane %v3082_v26, 7  ;;  %v2984_v42 = vadd.f32 %v13272_v8, %v2961_v43  ;;  %v11266_v27 = vpop.f32.mrf.mxu1 }
 0x37a   :  { %v3122_v24 = vshrl.u32 %v10751_v39, 16  ;;  %v3125_v32 = vshll.u32 %v10751_v39, 16  ;;  %v10749_v38 = vpack.c.bf16 %v2997_v31, %v2997_v31  ;;  %v2720_v60 = vadd.f32 %v11237_v1, %v13245_v49  ;;  %v3270_v1 = vld [vmem:[#allocation3 + $0x38] sm:$0xf]  ;;  %v3273_v39 = vld [vmem:[#allocation3 + $0x3c] sm:$0x1] }
 0x37b   :  { %v3253_v25 = vsel %vm12781_vm12, %v3103_v19, %v3252_v55  ;;  %v3256_v15 = vsel %vm12245_vm6, %v3104_v0, %v3255_v51  ;;  %v3087_v18 = vor.u32 %v3085_v46, %v3084_v41  ;;  %v3088_v13 = vrot.slane %v3084_v41, 4  ;;  %v11241_v46 = vpop.f32.mrf.mxu0  ;;  %v2903_v19 = vpop.f32.mrf.mxu1  ;;  %v3258_v0 = vld [vmem:[#allocation3 + $0x28] sm:$0xf]  ;;  %v3261_v41 = vld [vmem:[#allocation3 + $0x2c] sm:$0x1] }
 0x37c   :  { %3254 = vst [vmem:[#allocation3 + $0x20] sm:$0xf] %v3253_v25  ;;  %3257 = vst [vmem:[#allocation3 + $0x24] sm:$0x1] %v3256_v15  ;;  %v3124_v56 = vrot.slane %v3122_v24, 7  ;;  %v3106_v9 = vshrl.u32 %v10749_v38, 16  ;;  %v2936_v6 = vadd.f32 %v2887_v61, %v13283_v21  ;;  %v2712_v50 = vadd.f32 %v2711_v30, %v13247_v10 }
 0x37d   :  { %v3109_v52 = vshll.u32 %v10749_v38, 16  ;;  %v3000_v59 = vmax.f32 %v2984_v42, 0.0  ;;  %v3241_v26 = vsel %vm12781_vm12, %v3087_v18, %v3240_v29  ;;  %v3244_v49 = vsel %vm12245_vm6, %v3088_v13, %v3243_v57  ;;  %v11269_v18 = vpop.f32.mrf.mxu1 }
 0x37e   :  { %3242 = vst [vmem:[#allocation3 + $0x10] sm:$0xf] %v3241_v26  ;;  %3245 = vst [vmem:[#allocation3 + $0x14] sm:$0x1] %v3244_v49  ;;  %v3127_v55 = vor.u32 %v3125_v32, %v3124_v56  ;;  %v3128_v51 = vrot.slane %v3124_v56, 4  ;;  %v3108_v31 = vrot.slane %v3106_v9, 7  ;;  %v2959_v24 = vmul.f32 %v13264_v35, %v2936_v6 }
 0x37f   :  { %v10752_v43 = vpack.c.bf16 %v3000_v59, %v3000_v59  ;;  %v2941_v29 = vadd.f32 %v11265_v20, %v2720_v60  ;;  %v2723_v57 = vadd.f32 %v11238_v36, %v13249_v28  ;;  %v2939_v38 = vadd.f32 %v2900_v11, %v2712_v50  ;;  %v2727_v20 = vpop.f32.mrf.mxu0  ;;  %v3276_v59 = vld [vmem:[#allocation3 + $0x40] sm:$0xf]  ;;  %v3279_v26 = vld [vmem:[#allocation3 + $0x44] sm:$0x1] }
 0x380   :  { %v3271_v21 = vsel %vm12781_vm12, %v3127_v55, %v3270_v1  ;;  %v3274_v10 = vsel %vm12245_vm6, %v3128_v51, %v3273_v39  ;;  %v3111_v61 = vor.u32 %v3109_v52, %v3108_v31  ;;  %v3112_v30 = vrot.slane %v3108_v31, 4 }
 0x381   :  { %3272 = vst [vmem:[#allocation3 + $0x38] sm:$0xf] %v3271_v21  ;;  %3275 = vst [vmem:[#allocation3 + $0x3c] sm:$0x1] %v3274_v10  ;;  %v3130_v32 = vshrl.u32 %v10752_v43, 16  ;;  %v3133_v42 = vshll.u32 %v10752_v43, 16  ;;  %v2982_v25 = vadd.f32 %v13272_v8, %v2959_v24  ;;  %v2964_v15 = vmul.f32 %v13264_v35, %v2941_v29 }
 0x382   :  { %v3259_v28 = vsel %vm12781_vm12, %v3111_v61, %v3258_v0  ;;  %v3262_v36 = vsel %vm12245_vm6, %v3112_v30, %v3261_v41  ;;  %v2962_v11 = vmul.f32 %v13264_v35, %v2939_v38  ;;  %v2715_v60 = vadd.f32 %v2714_v63, %v13251_v22  ;;  %v2916_v41 = vpop.f32.mrf.mxu1  ;;  %v11803_v21 = vld [vmem:[%s15729_s4 + $0xe0] sm:$0xff]   ;;  %v3264_v61 = vld [vmem:[#allocation3 + $0x30] sm:$0xf] }
 0x383   :  { %3260 = vst [vmem:[#allocation3 + $0x28] sm:$0xf] %v3259_v28  ;;  %3263 = vst [vmem:[#allocation3 + $0x2c] sm:$0x1] %v3262_v36  ;;  %v3132_v13 = vrot.slane %v3130_v32, 7  ;;  %v2998_v56 = vmax.f32 %v2982_v25, 0.0  ;;  %v2987_v9 = vadd.f32 %v13272_v8, %v2964_v15  ;;  %v2942_v52 = vadd.f32 %v11266_v27, %v2723_v57  ;;  %v11242_v27 = vpop.f32.mrf.mxu0  ;;  %11273 = vmatprep.subr.bf16.mxu0 %v11803_v21 }
 0x384   :  { %v2985_v49 = vadd.f32 %v13272_v8, %v2962_v11  ;;  %v2736_v1 = vadd.f32 %v11241_v46, %v13253_v23  ;;  %v2940_v39 = vadd.f32 %v2903_v19, %v2715_v60  ;;  %v2728_v6 = vadd.f32 %v2727_v20, %v13255_v3  ;;  %v3267_v25 = vld [vmem:[#allocation3 + $0x34] sm:$0x1]  ;;  %11274 = vmatpush3.bf16.msra.mxu0 %v11803_v21 }
 0x385   :  { %v3135_v50 = vor.u32 %v3133_v42, %v3132_v13  ;;  %v3136_v55 = vrot.slane %v3132_v13, 4  ;;  %v10750_v22 = vpack.c.bf16 %v2998_v56, %v2998_v56  ;;  %v3003_v63 = vmax.f32 %v2987_v9, 0.0 }
 0x386   :  { %v3001_v51 = vmax.f32 %v2985_v49, 0.0  ;;  %v2965_v31 = vmul.f32 %v13264_v35, %v2942_v52  ;;  %v2963_v43 = vmul.f32 %v13264_v35, %v2940_v39  ;;  %v2945_v0 = vadd.f32 %v11269_v18, %v2736_v1  ;;  %v3294_v18 = vld [vmem:[#allocation3 + $0x68] sm:$0xf]  ;;  %v3297_v52 = vld [vmem:[#allocation3 + $0x6c] sm:$0x1] }
 0x387   :  { %v3277_v24 = vsel %vm12781_vm12, %v3135_v50, %v3276_v59  ;;  %v3280_v23 = vsel %vm12245_vm6, %v3136_v55, %v3279_v26  ;;  %v3114_v46 = vshrl.u32 %v10750_v22, 16  ;;  %v3117_v3 = vshll.u32 %v10750_v22, 16  ;;  %v3282_v26 = vld [vmem:[#allocation3 + $0x58] sm:$0xf] }
 0x388   :  { %3278 = vst [vmem:[#allocation3 + $0x40] sm:$0xf] %v3277_v24  ;;  %3281 = vst [vmem:[#allocation3 + $0x44] sm:$0x1] %v3280_v23  ;;  %v10755_v19 = vpack.c.bf16 %v3003_v63, %v3003_v63  ;;  %v10753_v29 = vpack.c.bf16 %v3001_v51, %v3001_v51  ;;  %v2988_v57 = vadd.f32 %v13272_v8, %v2965_v31  ;;  %v13346_v22 = vld [vmem:[#allocation3 + $0x18] sm:$0xf] }
 0x389   :  { %v2986_v38 = vadd.f32 %v13272_v8, %v2963_v43  ;;  %v3116_v10 = vrot.slane %v3114_v46, 7  ;;  %v2968_v30 = vmul.f32 %v13264_v35, %v2945_v0  ;;  %v2739_v32 = vadd.f32 %v11242_v27, %v13257_v54  ;;  %v11804_v63 = vld [vmem:[%s15729_s4 + $0xd8] sm:$0xff]  }
 0x38a   :  { %v2943_v42 = vadd.f32 %v2916_v41, %v2728_v6  ;;  %v3154_v15 = vshrl.u32 %v10755_v19, 16  ;;  %v3157_v20 = vshll.u32 %v10755_v19, 16  ;;  %v3138_v28 = vshrl.u32 %v10753_v29, 16  ;;  %v3285_v6 = vld [vmem:[#allocation3 + $0x5c] sm:$0x1]  ;;  %v2730_v19 = vpop.f32.mrf.mxu0  ;;  %11275 = vmatprep.subr.bf16.mxu0 %v11804_v63 }
 0x38b   :  { %v3141_v36 = vshll.u32 %v10753_v29, 16  ;;  %v3119_v11 = vor.u32 %v3117_v3, %v3116_v10  ;;  %v3120_v60 = vrot.slane %v3116_v10, 4  ;;  %v3004_v13 = vmax.f32 %v2988_v57, 0.0  ;;  %v3374_v27 = vld [vmem:[#allocation3 + $0x1c] sm:$0x1]  ;;  %v11270_v29 = vpop.f32.mrf.mxu1  ;;  %11276 = vmatpush3.bf16.msra.mxu0 %v11804_v63 }
 0x38c   :  { %v3002_v56 = vmax.f32 %v2986_v38, 0.0  ;;  %v3156_v9 = vrot.slane %v3154_v15, 7  ;;  %v3140_v59 = vrot.slane %v3138_v28, 7  ;;  %v2991_v49 = vadd.f32 %v13272_v8, %v2968_v30  ;;  %v13351_v41 = vld [vmem:[#allocation3 + $0x20] sm:$0xf] }
 0x38d   :  { %v2966_v54 = vmul.f32 %v13264_v35, %v2943_v42  ;;  %v3265_v1 = vsel %vm12781_vm12, %v3119_v11, %v3264_v61  ;;  %v3268_v39 = vsel %vm12245_vm6, %v3120_v60, %v3267_v25  ;;  %v10756_v50 = vpack.c.bf16 %v3004_v13, %v3004_v13  ;;  %v3376_v57 = vld [vmem:[#allocation3 + $0x24] sm:$0x1]  ;;  %v3300_v42 = vld [vmem:[#allocation3 + $0x70] sm:$0xf]  ;;  %v3303_v28 = vld [vmem:[#allocation3 + $0x74] sm:$0x1] }
 0x38e   :  { %v10754_v55 = vpack.c.bf16 %v3002_v56, %v3002_v56  ;;  %3266 = vst [vmem:[#allocation3 + $0x30] sm:$0xf] %v3265_v1  ;;  %3269 = vst [vmem:[#allocation3 + $0x34] sm:$0x1] %v3268_v39  ;;  %v3159_v51 = vor.u32 %v3157_v20, %v3156_v9  ;;  %v3160_v31 = vrot.slane %v3156_v9, 4  ;;  %v3143_v43 = vor.u32 %v3141_v36, %v3140_v59 }
 0x38f   :  { %v3144_v0 = vrot.slane %v3140_v59, 4  ;;  %v3162_v24 = vshrl.u32 %v10756_v50, 16  ;;  %v3165_v23 = vshll.u32 %v10756_v50, 16  ;;  %v3007_v15 = vmax.f32 %v2991_v49, 0.0  ;;  %v3288_v36 = vld [vmem:[#allocation3 + $0x60] sm:$0xf] }
 0x390   :  { %v3146_v46 = vshrl.u32 %v10754_v55, 16  ;;  %v3149_v3 = vshll.u32 %v10754_v55, 16  ;;  %v3295_v38 = vsel %vm12781_vm12, %v3159_v51, %v3294_v18  ;;  %v3298_v21 = vsel %vm12245_vm6, %v3160_v31, %v3297_v52  ;;  %v3291_v11 = vld [vmem:[#allocation3 + $0x64] sm:$0x1]  ;;  %v13369_v1 = vld [vmem:[#allocation3 + $0x8] sm:$0xf] }
 0x391   :  { %v3283_v10 = vsel %vm12781_vm12, %v3143_v43, %v3282_v26  ;;  %v3286_v61 = vsel %vm12245_vm6, %v3144_v0, %v3285_v6  ;;  %3296 = vst [vmem:[#allocation3 + $0x68] sm:$0xf] %v3295_v38  ;;  %3299 = vst [vmem:[#allocation3 + $0x6c] sm:$0x1] %v3298_v21  ;;  %v3164_v30 = vrot.slane %v3162_v24, 7  ;;  %v2989_v20 = vadd.f32 %v13272_v8, %v2966_v54  ;;  %v11805_v0 = vld [vmem:[%s15729_s4 + $0xd0] sm:$0xff]  }
 0x392   :  { %3284 = vst [vmem:[#allocation3 + $0x58] sm:$0xf] %v3283_v10  ;;  %3287 = vst [vmem:[#allocation3 + $0x5c] sm:$0x1] %v3286_v61  ;;  %v3148_v25 = vrot.slane %v3146_v46, 7  ;;  %v2731_v60 = vadd.f32 %v2730_v19, %v13259_v40  ;;  %v2946_v18 = vadd.f32 %v11270_v29, %v2739_v32  ;;  %v13364_v13 = vcombine.low %v13346_v22, %v3374_v27  ;;  %v2919_v32 = vpop.f32.mrf.mxu1 }
 0x393   :  { %v13367_v56 = vcombine.low %v13351_v41, %v3376_v57  ;;  %v3167_v9 = vor.u32 %v3165_v23, %v3164_v30  ;;  %v3168_v52 = vrot.slane %v3164_v30, 4  ;;  %v3370_v49 = vld [vmem:[#allocation3 + $0xc] sm:$0x1]  ;;  %v10759_v54 = vpack.c.bf16 %v3007_v15, %v3007_v15  ;;  %v13373_v50 = vld [vmem:[#allocation3 + $0x10] sm:$0xf]  ;;  %11277 = vmatprep.subr.bf16.mxu0 %v11805_v0 }
 0x394   :  { %v3151_v59 = vor.u32 %v3149_v3, %v3148_v25  ;;  %v3152_v26 = vrot.slane %v3148_v25, 4  ;;  %v3005_v39 = vmax.f32 %v2989_v20, 0.0  ;;  %v2969_v6 = vmul.f32 %v13264_v35, %v2946_v18  ;;  %v3372_v55 = vld [vmem:[#allocation3 + $0x14] sm:$0x1]  ;;  %v3318_v21 = vld [vmem:[#allocation3 + $0x88] sm:$0xf]  ;;  %11278 = vmatpush3.bf16.msra.mxu0 %v11805_v0 }
 0x395   :  { %v3634_v40 = vrot.slane %v13364_v13, 1  ;;  %v3301_v63 = vsel %vm12781_vm12, %v3167_v9, %v3300_v42  ;;  %v3304_v51 = vsel %vm12245_vm6, %v3168_v52, %v3303_v28  ;;  %v3186_v27 = vshrl.u32 %v10759_v54, 16  ;;  %v3321_v30 = vld [vmem:[#allocation3 + $0x8c] sm:$0x1]  ;;  %v3309_v9 = vld [vmem:[#allocation3 + $0x7c] sm:$0x1] }
 0x396   :  { %v3289_v31 = vsel %vm12781_vm12, %v3151_v59, %v3288_v36  ;;  %v3292_v43 = vsel %vm12245_vm6, %v3152_v26, %v3291_v11  ;;  %3302 = vst [vmem:[#allocation3 + $0x70] sm:$0xf] %v3301_v63  ;;  %3305 = vst [vmem:[#allocation3 + $0x74] sm:$0x1] %v3304_v51  ;;  %v10757_v24 = vpack.c.bf16 %v3005_v39, %v3005_v39  ;;  %v3635_v3 = vrot.slane %v13367_v56, 1 }
 0x397   :  { %3290 = vst [vmem:[#allocation3 + $0x60] sm:$0xf] %v3289_v31  ;;  %3293 = vst [vmem:[#allocation3 + $0x64] sm:$0x1] %v3292_v43  ;;  %v2992_v23 = vadd.f32 %v13272_v8, %v2969_v6  ;;  %3653 = vrot.lane.b32.xlu0 %v3634_v40, %s11982_s29  ;;  %v2944_v46 = vadd.f32 %v2919_v32, %v2731_v60  ;;  %v13390_v19 = vcombine.low %v13369_v1, %v3370_v49  ;;  %v3306_v60 = vld [vmem:[#allocation3 + $0x78] sm:$0xf] }
 0x398   :  { %v13393_v29 = vcombine.low %v13373_v50, %v3372_v55  ;;  %v3188_v57 = vrot.slane %v3186_v27, 7  ;;  %v3189_v38 = vshll.u32 %v10759_v54, 16  ;;  %v3170_v10 = vshrl.u32 %v10757_v24, 16  ;;  %3655 = vrot.lane.b32.xlu1 %v3635_v3, %s11982_s29  ;;  %v11806_v49 = vld [vmem:[%s15729_s4 + $0xc8] sm:$0xff]   ;;  %v13411_v40 = vld [vmem:[#allocation3 + $0x38] sm:$0xf] }
 0x399   :  { %v3008_v61 = vmax.f32 %v2992_v23, 0.0  ;;  %v3173_v42 = vshll.u32 %v10757_v24, 16  ;;  %v2967_v25 = vmul.f32 %v13264_v35, %v2944_v46  ;;  %v3632_v15 = vrot.slane %v13390_v19, 1  ;;  %v3382_v31 = vld [vmem:[#allocation3 + $0x3c] sm:$0x1]  ;;  %11279 = vmatprep.subr.bf16.mxu0 %v11806_v49 }
 0x39a   :  { %v3633_v20 = vrot.slane %v13393_v29, 1  ;;  %v3191_v28 = vor.u32 %v3189_v38, %v3188_v57  ;;  %v3192_v36 = vrot.slane %v3188_v57, 4  ;;  %v3172_v11 = vrot.slane %v3170_v10, 7  ;;  %v3324_v24 = vld [vmem:[#allocation3 + $0x90] sm:$0xf]  ;;  %11280 = vmatpush3.bf16.msra.mxu0 %v11806_v49 }
 0x39b   :  { %v10760_v18 = vpack.c.bf16 %v3008_v61, %v3008_v61  ;;  %v2990_v52 = vadd.f32 %v13272_v8, %v2967_v25  ;;  %3649 = vrot.lane.b32.xlu0 %v3632_v15, %s11982_s29  ;;  %v3509_v59 = vshrl.u32 %v13364_v13, 16  ;;  %v3511_v35 = vshll.u32 %v13364_v13, 16  ;;  %v11807_v13 = vld [vmem:[%s15729_s4 + $0xc0] sm:$0xff]   ;;  %v3327_v3 = vld [vmem:[#allocation3 + $0x94] sm:$0x1] }
 0x39c   :  { %v3518_v26 = vshll.u32 %v13367_v56, 16  ;;  %v3319_v54 = vsel %vm12781_vm12, %v3191_v28, %v3318_v21  ;;  %v3322_v39 = vsel %vm12245_vm6, %v3192_v36, %v3321_v30  ;;  %v3175_v6 = vor.u32 %v3173_v42, %v3172_v11  ;;  %3651 = vrot.lane.b32.xlu1 %v3633_v20, %s11982_s29  ;;  %v13423_v21 = vld [vmem:[#allocation3 + $0x28] sm:$0xf]  ;;  %11281 = vmatprep.subr.bf16.mxu0 %v11807_v13  ;;  %v3378_v42 = vld [vmem:[#allocation3 + $0x2c] sm:$0x1] }
 0x39d   :  { %v3176_v8 = vrot.slane %v3172_v11, 4  ;;  %3320 = vst [vmem:[#allocation3 + $0x88] sm:$0xf] %v3319_v54  ;;  %3323 = vst [vmem:[#allocation3 + $0x8c] sm:$0x1] %v3322_v39  ;;  %v3194_v32 = vshrl.u32 %v10760_v18, 16  ;;  %v10184_v30 = vcombine.low %v13411_v40, %v3382_v31 }
 0x39e   :  { %v3006_v55 = vmax.f32 %v2990_v52, 0.0  ;;  %v3513_v63 = vrot.slane %v3511_v35, 1  ;;  %v3516_v51 = vshrl.u32 %v13367_v56, 16  ;;  %v3307_v43 = vsel %vm12781_vm12, %v3175_v6, %v3306_v60  ;;  %v13427_v25 = vld [vmem:[#allocation3 + $0x40] sm:$0xf]  ;;  %11282 = vmatpush3.bf16.msra.mxu0 %v11807_v13 }
 0x39f   :  { %v3310_v0 = vsel %vm12245_vm6, %v3176_v8, %v3309_v9  ;;  %v3197_v27 = vshll.u32 %v10760_v18, 16  ;;  %v3520_v23 = vrot.slane %v3518_v26, 1  ;;  %3308 = vst [vmem:[#allocation3 + $0x78] sm:$0xf] %v3307_v43  ;;  %v3196_v46 = vrot.slane %v3194_v32, 7 }
 0x3a0   :  { %3311 = vst [vmem:[#allocation3 + $0x7c] sm:$0x1] %v3310_v0  ;;  %v10758_v57 = vpack.c.bf16 %v3006_v55, %v3006_v55  ;;  %v3514_v38 = vor.u32 %v3513_v63, %v3509_v59  ;;  %v3497_v56 = vshll.u32 %v13390_v19, 16  ;;  %v3504_v61 = vshll.u32 %v13393_v29, 16  ;;  %v3384_v11 = vld [vmem:[#allocation3 + $0x44] sm:$0x1] }
 0x3a1   :  { %v3521_v10 = vor.u32 %v3520_v23, %v3516_v51  ;;  %v3199_v15 = vor.u32 %v3197_v27, %v3196_v46  ;;  %v3200_v20 = vrot.slane %v3196_v46, 4  ;;  %v3495_v36 = vshrl.u32 %v13390_v19, 16  ;;  %v3312_v19 = vld [vmem:[#allocation3 + $0x80] sm:$0xf]  ;;  %v3315_v54 = vld [vmem:[#allocation3 + $0x84] sm:$0x1] }
 0x3a2   :  { %v3178_v28 = vshrl.u32 %v10758_v57, 16  ;;  %3605 = vrot.lane.b32.xlu0 %v3514_v38, %s11983_s24  ;;  %v3181_v60 = vshll.u32 %v10758_v57, 16  ;;  %v3499_v18 = vrot.slane %v3497_v56, 1  ;;  %v3502_v9 = vshrl.u32 %v13393_v29, 16  ;;  %v13439_v55 = vld [vmem:[#allocation3 + $0x30] sm:$0xf] }
 0x3a3   :  { %3607 = vrot.lane.b32.xlu1 %v3521_v10, %s11983_s24  ;;  %v3506_v52 = vrot.slane %v3504_v61, 1  ;;  %v3325_v59 = vsel %vm12781_vm12, %v3199_v15, %v3324_v24  ;;  %v3328_v35 = vsel %vm12245_vm6, %v3200_v20, %v3327_v3  ;;  %v3539_v49 = vshll.u32 %v10184_v30, 16  ;;  %v3380_v63 = vld [vmem:[#allocation3 + $0x34] sm:$0x1] }
 0x3a4   :  { %v3180_v26 = vrot.slane %v3178_v28, 7  ;;  %3326 = vst [vmem:[#allocation3 + $0x90] sm:$0xf] %v3325_v59  ;;  %3329 = vst [vmem:[#allocation3 + $0x94] sm:$0x1] %v3328_v35  ;;  %v3500_v39 = vor.u32 %v3499_v18, %v3495_v36  ;;  %v10182_v8 = vcombine.low %v13423_v21, %v3378_v42  ;;  %v10193_v29 = vcombine.low %v13427_v25, %v3384_v11 }
 0x3a5   :  { %v3507_v6 = vor.u32 %v3506_v52, %v3502_v9  ;;  %v3638_v43 = vrot.slane %v10184_v30, 1  ;;  %v3541_v0 = vrot.slane %v3539_v49, 1  ;;  %v10183_v46 = vcombine.low %v13439_v55, %v3380_v63  ;;  %v13452_v11 = vld [vmem:[#allocation3 + $0x68] sm:$0xf]  ;;  %v3396_v18 = vld [vmem:[#allocation3 + $0x74] sm:$0x1] }
 0x3a6   :  { %v3183_v32 = vor.u32 %v3181_v60, %v3180_v26  ;;  %v3184_v13 = vrot.slane %v3180_v26, 4  ;;  %3601 = vrot.lane.b32.xlu0 %v3500_v39, %s11983_s24  ;;  %v3636_v27 = vrot.slane %v10182_v8, 1  ;;  %v3525_v24 = vshll.u32 %v10182_v8, 16  ;;  %v3394_v60 = vld [vmem:[#allocation3 + $0x6c] sm:$0x1] }
 0x3a7   :  { %3603 = vrot.lane.b32.xlu1 %v3507_v6, %s11983_s24  ;;  %v3772_v23 = vshll.u32 %v10193_v29, 16  ;;  %v3537_v3 = vshrl.u32 %v10184_v30, 16  ;;  %v3787_v57 = vrot.slane %v10193_v29, 1  ;;  %v3532_v61 = vshll.u32 %v10183_v46, 16  ;;  %v13454_v30 = vld [vmem:[#allocation3 + $0x70] sm:$0xf] }
 0x3a8   :  { %v3313_v51 = vsel %vm12781_vm12, %v3183_v32, %v3312_v19  ;;  %v3316_v31 = vsel %vm12245_vm6, %v3184_v13, %v3315_v54  ;;  %v3527_v56 = vrot.slane %v3525_v24, 1  ;;  %v3523_v42 = vshrl.u32 %v10182_v8, 16  ;;  %v13458_v52 = vld [vmem:[#allocation3 + $0x58] sm:$0xf]  ;;  %v3390_v59 = vld [vmem:[#allocation3 + $0x5c] sm:$0x1] }
 0x3a9   :  { %3314 = vst [vmem:[#allocation3 + $0x80] sm:$0xf] %v3313_v51  ;;  %3317 = vst [vmem:[#allocation3 + $0x84] sm:$0x1] %v3316_v31  ;;  %v3542_v38 = vor.u32 %v3541_v0, %v3537_v3  ;;  %v3774_v10 = vrot.slane %v3772_v23, 1  ;;  %v3770_v15 = vshrl.u32 %v10193_v29, 16  ;;  %v10188_v49 = vcombine.low %v13452_v11, %v3394_v60 }
 0x3aa   :  { %3661 = vrot.lane.b32.xlu0 %v3638_v43, %s11982_s29  ;;  %v3528_v20 = vor.u32 %v3527_v56, %v3523_v42  ;;  %v3534_v36 = vrot.slane %v3532_v61, 1  ;;  %v3530_v9 = vshrl.u32 %v10183_v46, 16  ;;  %v3637_v35 = vrot.slane %v10183_v46, 1  ;;  %v13462_v54 = vld [vmem:[#allocation3 + $0x60] sm:$0xf]  ;;  %v11808_v6 = vld [vmem:[%s15729_s4 + $0xb8] sm:$0xff]  }
 0x3ab   :  { %3657 = vrot.lane.b32.xlu1 %v3636_v27, %s11982_s29  ;;  %v3775_v28 = vor.u32 %v3774_v10, %v3770_v15  ;;  %v10189_v19 = vcombine.low %v13454_v30, %v3396_v18  ;;  %v3392_v39 = vld [vmem:[#allocation3 + $0x64] sm:$0x1]  ;;  %v13472_v8 = vld [vmem:[%s15729_s4 + $0x118] sm:$0xff]   ;;  %v10186_v29 = vcombine.low %v13458_v52, %v3390_v59  ;;  %v13476_v13 = vld [vmem:[#allocation3 + $0x88] sm:$0xf]  ;;  %v3642_v63 = vrot.slane %v10188_v49, 1  ;;  %11299 = vmatprep.subr.bf16.mxu1 %v11808_v6 }
 0x3ac   :  { %v3535_v26 = vor.u32 %v3534_v36, %v3530_v9  ;;  %v10187_v32 = vcombine.low %v13462_v54, %v3392_v39  ;;  %v3567_v31 = vshll.u32 %v10188_v49, 16  ;;  %v3402_v0 = vld [vmem:[#allocation3 + $0x8c] sm:$0x1]  ;;  %11327 = vmatprep.subr.bf16.mxu0 %v13472_v8  ;;  %11300 = vmatpush3.bf16.msra.mxu1 %v11808_v6  ;;  %v11810_v27 = vld [vmem:[%s15729_s4 + $0xb0] sm:$0xff]   ;;  %v13487_v3 = vld [vmem:[#allocation3 + $0x78] sm:$0xf] }
 0x3ad   :  { %v3643_v51 = vrot.slane %v10189_v19, 1  ;;  %v3574_v43 = vshll.u32 %v10189_v19, 16  ;;  %v3640_v24 = vrot.slane %v10186_v29, 1  ;;  %v3553_v23 = vshll.u32 %v10186_v29, 16  ;;  %v3398_v61 = vld [vmem:[#allocation3 + $0x7c] sm:$0x1]  ;;  %11301 = vmatprep.subr.bf16.mxu1 %v11810_v27 }
 0x3ae   :  { %3613 = vrot.lane.b32.xlu0 %v3542_v38, %s11983_s24  ;;  %v13485_v46 = vcombine.low %v13476_v13, %v3402_v0  ;;  %v3569_v38 = vrot.slane %v3567_v31, 1  ;;  %v3560_v10 = vshll.u32 %v10187_v32, 16  ;;  %v13489_v42 = vld [vmem:[#allocation3 + $0x90] sm:$0xf]  ;;  %v3404_v15 = vld [vmem:[#allocation3 + $0x94] sm:$0x1]  ;;  %v10190_v9 = vcombine.low %v13487_v3, %v3398_v61 }
 0x3af   :  { %3789 = vrot.lane.b32.xlu1 %v3787_v57, %s11982_s29  ;;  %v3641_v57 = vrot.slane %v10187_v32, 1  ;;  %v3576_v56 = vrot.slane %v3574_v43, 1  ;;  %v3572_v36 = vshrl.u32 %v10189_v19, 16  ;;  %v3555_v60 = vrot.slane %v3553_v23, 1 }
 0x3b0   :  { %11302 = vmatpush3.bf16.msra.mxu1 %v11810_v27  ;;  %v3595_v18 = vshll.u32 %v13485_v46, 16  ;;  %v13499_v39 = vcombine.low %v13489_v42, %v3404_v15  ;;  %v3551_v6 = vshrl.u32 %v10186_v29, 16  ;;  %v3581_v0 = vshll.u32 %v10190_v9, 16  ;;  %v11814_v29 = vld [vmem:[%s15729_s4 + $0xa0] sm:$0xff]  }
 0x3b1   :  { %v3593_v23 = vshrl.u32 %v13485_v46, 16 }
 0x3b2   :  { %3609 = vrot.lane.b32.xlu0 %v3528_v20, %s11983_s24  ;;  %v11812_v20 = vld [vmem:[%s15729_s4 + $0xa8] sm:$0xff]   ;;  %v3556_v19 = vor.u32 %v3555_v60, %v3551_v6  ;;  %v3597_v31 = vrot.slane %v3595_v18, 1  ;;  %v3779_v27 = vshll.u32 %v13499_v39, 16  ;;  %v11816_v60 = vld [vmem:[%s15729_s4 + $0x98] sm:$0xff]  }
 0x3b3   :  { %3783 = vrot.lane.b32.xlu1 %v3775_v28, %s11983_s24  ;;  %v3565_v28 = vshrl.u32 %v10188_v49, 16  ;;  %11303 = vmatprep.subr.bf16.mxu1 %v11812_v20  ;;  %v3558_v49 = vshrl.u32 %v10187_v32, 16  ;;  %v3368_v32 = vld [vmem:[#allocation3 + $0x4] sm:$0x1]  ;;  %v13522_v18 = vld [vmem:[#allocation3 + $0x48] sm:$0xf] }
 0x3b4   :  { %11304 = vmatpush3.bf16.msra.mxu1 %v11812_v20  ;;  %v3781_v61 = vrot.slane %v3779_v27, 1 }
 0x3b5   :  { %v3570_v59 = vor.u32 %v3569_v38, %v3565_v28  ;;  %v3644_v38 = vrot.slane %v10190_v9, 1  ;;  %11305 = vmatprep.subr.bf16.mxu1 %v11814_v29  ;;  %v3579_v28 = vshrl.u32 %v10190_v9, 16 }
 0x3b6   :  { %3659 = vrot.lane.b32.xlu0 %v3637_v35, %s11982_s29  ;;  %v3577_v35 = vor.u32 %v3576_v56, %v3572_v36  ;;  %v3598_v56 = vor.u32 %v3597_v31, %v3593_v23  ;;  %v3777_v36 = vshrl.u32 %v13499_v39, 16  ;;  %v13530_v31 = vld [vmem:[#allocation3 + $0x50] sm:$0xf] }
 0x3b7   :  { %3611 = vrot.lane.b32.xlu1 %v3535_v26, %s11983_s24  ;;  %v3562_v26 = vrot.slane %v3560_v10, 1  ;;  %v3583_v10 = vrot.slane %v3581_v0, 1 }
 0x3b8   :  { %11306 = vmatpush3.bf16.msra.mxu1 %v11814_v29 }
 0x3b9   :  { %v3563_v43 = vor.u32 %v3562_v26, %v3558_v49  ;;  %v3782_v26 = vor.u32 %v3781_v61, %v3777_v36  ;;  %11307 = vmatprep.subr.bf16.mxu1 %v11816_v60  ;;  %v11818_v49 = vld [vmem:[%s15729_s4 + $0x90] sm:$0xff]   ;;  %v3646_v61 = vrot.slane %v13485_v46, 1 }
 0x3ba   :  { %3669 = vrot.lane.b32.xlu0 %v3642_v63, %s11982_s29  ;;  %v13501_v63 = vld [vmem:[#allocation3 + $0x80] sm:$0xf] }
 0x3bb   :  { %3671 = vrot.lane.b32.xlu1 %v3643_v51, %s11982_s29  ;;  %v3400_v51 = vld [vmem:[#allocation3 + $0x84] sm:$0x1] }
 0x3bc   :  { %11308 = vmatpush3.bf16.msra.mxu1 %v11816_v60 }
 0x3bd   :  { %11309 = vmatprep.subr.bf16.mxu1 %v11818_v49 }
 0x3be   :  { %3665 = vrot.lane.b32.xlu0 %v3640_v24, %s11982_s29  ;;  %v10191_v24 = vcombine.low %v13501_v63, %v3400_v51 }
 0x3bf   :  { %3667 = vrot.lane.b32.xlu1 %v3641_v57, %s11982_s29  ;;  %v13513_v57 = vld [vmem:[#allocation3] sm:$0xf] }
 0x3c0   :  { %v3588_v15 = vshll.u32 %v10191_v24, 16  ;;  %v10177_v20 = vcombine.low %v13513_v57, %v3368_v32  ;;  %v3586_v9 = vshrl.u32 %v10191_v24, 16  ;;  %v3645_v0 = vrot.slane %v10191_v24, 1  ;;  %11310 = vmatpush3.bf16.msra.mxu1 %v11818_v49 }
 0x3c2   :  { %3621 = vrot.lane.b32.xlu0 %v3570_v59, %s11983_s24  ;;  %v3386_v59 = vld [vmem:[#allocation3 + $0x4c] sm:$0x1]  ;;  %v3590_v6 = vrot.slane %v3588_v15, 1  ;;  %v3490_v51 = vshll.u32 %v10177_v20, 16  ;;  %v3488_v29 = vshrl.u32 %v10177_v20, 16  ;;  %v3788_v15 = vrot.slane %v13499_v39, 1 }
 0x3c3   :  { %3623 = vrot.lane.b32.xlu1 %v3577_v35, %s11983_s24  ;;  %v3584_v35 = vor.u32 %v3583_v10, %v3579_v28  ;;  %v3406_v10 = vld [vmem:[#allocation3 + $0x9c] sm:$0x1]  ;;  %v3631_v24 = vrot.slane %v10177_v20, 1 }
 0x3c4   :  { %v3591_v27 = vor.u32 %v3590_v6, %v3586_v9  ;;  %v3492_v23 = vrot.slane %v3490_v51, 1 }
 0x3c6   :  { %3617 = vrot.lane.b32.xlu0 %v3556_v19, %s11983_s24  ;;  %v10239_v19 = vcombine.low %v13522_v18, %v3386_v59  ;;  %v3493_v28 = vor.u32 %v3492_v23, %v3488_v29 }
 0x3c7   :  { %3619 = vrot.lane.b32.xlu1 %v3563_v43, %s11983_s24  ;;  %v3388_v43 = vld [vmem:[#allocation3 + $0x54] sm:$0x1] }
 0x3c8   :  { %v4182_v32 = vshll.u32 %v10239_v19, 16  ;;  %v4180_v36 = vshrl.u32 %v10239_v19, 16 }
 0x3ca   :  { %3629 = vrot.lane.b32.xlu0 %v3598_v56, %s11983_s24  ;;  %v13535_v56 = vld [vmem:[#allocation3 + $0x98] sm:$0xf]  ;;  %v4184_v60 = vrot.slane %v4182_v32, 1 }
 0x3cb   :  { %3673 = vrot.lane.b32.xlu1 %v3644_v38, %s11982_s29  ;;  %v10185_v38 = vcombine.low %v13530_v31, %v3388_v43 }
 0x3cc   :  { %v4185_v6 = vor.u32 %v4184_v60, %v4180_v36 }
 0x3cd   :  { %v3546_v59 = vshll.u32 %v10185_v38, 16  ;;  %v3544_v46 = vshrl.u32 %v10185_v38, 16  ;;  %v3639_v49 = vrot.slane %v10185_v38, 1 }
 0x3ce   :  { %3625 = vrot.lane.b32.xlu0 %v3584_v35, %s11983_s24  ;;  %v10240_v35 = vcombine.low %v13535_v56, %v3406_v10 }
 0x3cf   :  { %3785 = vrot.lane.b32.xlu1 %v3782_v26, %s11983_s24  ;;  %v4197_v26 = vrot.slane %v10239_v19, 1  ;;  %v3548_v51 = vrot.slane %v3546_v59, 1 }
 0x3d0   :  { %v4189_v39 = vshll.u32 %v10240_v35, 16  ;;  %v4187_v9 = vshrl.u32 %v10240_v35, 16 }
 0x3d1   :  { %v3549_v20 = vor.u32 %v3548_v51, %v3544_v46 }
 0x3d2   :  { %3675 = vrot.lane.b32.xlu0 %v3645_v0, %s11982_s29  ;;  %v4191_v43 = vrot.slane %v4189_v39, 1  ;;  %v4198_v0 = vrot.slane %v10240_v35, 1 }
 0x3d3   :  { %3627 = vrot.lane.b32.xlu1 %v3591_v27, %s11983_s24 }
 0x3d4   :  { %v4192_v19 = vor.u32 %v4191_v43, %v4187_v9  ;;  %v11815_v43 = vld [vmem:[%s15729_s4 + $0x100] sm:$0xff]  }
 0x3d6   :  { %3677 = vrot.lane.b32.xlu0 %v3646_v61, %s11982_s29 }
 0x3d7   :  { %3791 = vrot.lane.b32.xlu1 %v3788_v15, %s11982_s29 }
 0x3da   :  { %3599 = vrot.lane.b32.xlu0 %v3493_v28, %s11983_s24 }
 0x3db   :  { %3647 = vrot.lane.b32.xlu1 %v3631_v24, %s11982_s29 }
 0x3de   :  { %4193 = vrot.lane.b32.xlu0 %v4185_v6, %s11983_s24 }
 0x3df   :  { %4199 = vrot.lane.b32.xlu1 %v4197_v26, %s11982_s29 }
 0x3e2   :  { %3615 = vrot.lane.b32.xlu0 %v3549_v20, %s11983_s24  ;;  %v11813_v20 = vld [vmem:[%s15729_s4 + $0x108] sm:$0xff]  }
 0x3e3   :  { %3663 = vrot.lane.b32.xlu1 %v3639_v49, %s11982_s29 }
 0x3e6   :  { %4195 = vrot.lane.b32.xlu0 %v4192_v19, %s11983_s24 }
 0x3e7   :  { %4201 = vrot.lane.b32.xlu1 %v4198_v0, %s11982_s29 }
 0x409   :  { %v3654_v27 = vpop.permute.xlu0 %3653 }
 0x40a   :  { %v3656_v29 = vpop.permute.xlu1 %3655 }
 0x40d   :  { %v3650_v23 = vpop.permute.xlu0 %3649 }
 0x40e   :  { %v3652_v32 = vpop.permute.xlu1 %3651 }
 0x414   :  { %v3606_v10 = vpop.permute.xlu0 %3605 }
 0x415   :  { %v3608_v61 = vpop.permute.xlu1 %3607  ;;  %v3690_v15 = vsel %vm820_vm9, %v13346_v22, %v3606_v10 }
 0x416   :  { %v3693_v38 = vsel %vm820_vm9, %v13351_v41, %v3608_v61  ;;  %v13568_v41 = vsel %vm869_vm10, %v3690_v15, %v3654_v27 }
 0x417   :  { %v13555_v36 = vsel %vm869_vm10, %v3693_v38, %v3656_v29 }
 0x418   :  { %v3602_v28 = vpop.permute.xlu0 %3601  ;;  %v10196_v6 = vcombine.low %v13568_v41, %v13555_v36 }
 0x419   :  { %v3604_v24 = vpop.permute.xlu1 %3603  ;;  %v3684_v60 = vsel %vm820_vm9, %v13369_v1, %v3602_v28 }
 0x41a   :  { %v3687_v59 = vsel %vm820_vm9, %v13373_v50, %v3604_v24  ;;  %v13562_v35 = vsel %vm869_vm10, %v3684_v60, %v3650_v23  ;;  %v11811_v50 = vld [vmem:[%s15729_s4 + $0x110] sm:$0xff]   ;;  %v11817_v23 = vld [vmem:[%s15729_s4 + $0xf8] sm:$0xff]  }
 0x41b   :  { %v13565_v26 = vsel %vm869_vm10, %v3687_v59, %v3652_v32 }
 0x41c   :  { %v10195_v22 = vcombine.low %v13562_v35, %v13565_v26  ;;  %v3662_v46 = vpop.permute.xlu0 %3661 }
 0x41d   :  { %v3658_v1 = vpop.permute.xlu1 %3657 }
 0x41e   :  { %11283 = vmatprep.mubr.msk.bf16.mxu0 %vm1022_vm11, %v10195_v22 }
 0x41f   :  { %11284 = vmatmul.mubr.msk.bf16.vlgmr.msra.gmra.mxu0 %vm1022_vm11, %v10196_v6 }
 0x420   :  { %11328 = vmatpush3.bf16.msra.mxu0 %v13472_v8  ;;  %v3614_v51 = vpop.permute.xlu0 %3613 }
 0x421   :  { %v3790_v39 = vpop.permute.xlu1 %3789  ;;  %11329 = vmatprep.subr.bf16.mxu0 %v11811_v50  ;;  %v3702_v0 = vsel %vm820_vm9, %v13411_v40, %v3614_v51 }
 0x422   :  { %v13605_v40 = vsel %vm869_vm10, %v3702_v0, %v3662_v46 }
 0x424   :  { %11330 = vmatpush3.bf16.msra.mxu0 %v11811_v50  ;;  %v3610_v49 = vpop.permute.xlu0 %3609 }
 0x425   :  { %v3784_v9 = vpop.permute.xlu1 %3783  ;;  %11331 = vmatprep.subr.bf16.mxu0 %v11813_v20  ;;  %v3696_v8 = vsel %vm820_vm9, %v13423_v21, %v3610_v49 }
 0x426   :  { %v3795_v19 = vsel %vm820_vm9, %v13427_v25, %v3784_v9  ;;  %v3738_v10 = vsel %vm869_vm10, %v3696_v8, %v3658_v1 }
 0x427   :  { %v13596_v32 = vsel %vm869_vm10, %v3795_v19, %v3790_v39 }
 0x428   :  { %11332 = vmatpush3.bf16.msra.mxu0 %v11813_v20  ;;  %v3660_v27 = vpop.permute.xlu0 %3659  ;;  %v10198_v38 = vcombine.low %v13605_v40, %v13596_v32 }
 0x429   :  { %v3612_v29 = vpop.permute.xlu1 %3611  ;;  %11333 = vmatprep.subr.bf16.mxu0 %v11815_v43 }
 0x42a   :  { %v3699_v25 = vsel %vm820_vm9, %v13439_v55, %v3612_v29  ;;  %v11819_v55 = vld [vmem:[%s15729_s4 + $0xf0] sm:$0xff]  }
 0x42b   :  { %v13602_v21 = vsel %vm869_vm10, %v3699_v25, %v3660_v27 }
 0x42c   :  { %v10197_v61 = vcombine.low %v3738_v10, %v13602_v21  ;;  %11334 = vmatpush3.bf16.msra.mxu0 %v11815_v43  ;;  %v3670_v15 = vpop.permute.xlu0 %3669 }
 0x42d   :  { %v3672_v28 = vpop.permute.xlu1 %3671  ;;  %11335 = vmatprep.subr.bf16.mxu0 %v11817_v23 }
 0x42e   :  { %11287 = vmatprep.mubr.msk.bf16.mxu0 %vm1022_vm11, %v10197_v61 }
 0x42f   :  { %11288 = vmatmul.mubr.msk.bf16.gmra.mxu0 %vm1022_vm11, %v10198_v38 }
 0x430   :  { %11336 = vmatpush3.bf16.msra.mxu0 %v11817_v23  ;;  %v3666_v24 = vpop.permute.xlu0 %3665 }
 0x431   :  { %v3668_v60 = vpop.permute.xlu1 %3667  ;;  %11337 = vmatprep.subr.bf16.mxu0 %v11819_v55 }
 0x434   :  { %11338 = vmatpush3.bf16.msra.mxu0 %v11819_v55  ;;  %v3622_v59 = vpop.permute.xlu0 %3621 }
 0x435   :  { %v3624_v22 = vpop.permute.xlu1 %3623  ;;  %v3714_v46 = vsel %vm820_vm9, %v13452_v11, %v3622_v59  ;;  %v10218_v59 = vcombine.low %v13565_v26, %v13568_v41  ;;  %v10220_v26 = vcombine.low %v13602_v21, %v13605_v40 }
 0x436   :  { %v3717_v6 = vsel %vm820_vm9, %v13454_v30, %v3624_v22  ;;  %v3750_v43 = vsel %vm869_vm10, %v3714_v46, %v3670_v15 }
 0x437   :  { %v3752_v51 = vsel %vm869_vm10, %v3717_v6, %v3672_v28 }
 0x438   :  { %v3618_v1 = vpop.permute.xlu0 %3617  ;;  %v10200_v19 = vcombine.low %v3750_v43, %v3752_v51 }
 0x439   :  { %v3620_v50 = vpop.permute.xlu1 %3619  ;;  %v3708_v39 = vsel %vm820_vm9, %v13458_v52, %v3618_v1 }
 0x43a   :  { %v3711_v20 = vsel %vm820_vm9, %v13462_v54, %v3620_v50  ;;  %v3746_v49 = vsel %vm869_vm10, %v3708_v39, %v3666_v24  ;;  %v10219_v39 = vcombine.low %v13555_v36, %v3738_v10 }
 0x43b   :  { %v3748_v9 = vsel %vm869_vm10, %v3711_v20, %v3668_v60 }
 0x43c   :  { %v10199_v30 = vcombine.low %v3746_v49, %v3748_v9  ;;  %v3630_v8 = vpop.permute.xlu0 %3629  ;;  %v10222_v40 = vcombine.low %v3748_v9, %v3750_v43 }
 0x43d   :  { %v3674_v11 = vpop.permute.xlu1 %3673  ;;  %v3726_v15 = vsel %vm820_vm9, %v13476_v13, %v3630_v8 }
 0x43e   :  { %11291 = vmatprep.mubr.msk.bf16.mxu0 %vm1022_vm11, %v10199_v30 }
 0x43f   :  { %11292 = vmatmul.mubr.msk.bf16.gmra.mxu0 %vm1022_vm11, %v10200_v19 }
 0x440   :  { %v3626_v0 = vpop.permute.xlu0 %3625 }
 0x441   :  { %v3786_v27 = vpop.permute.xlu1 %3785  ;;  %v3720_v52 = vsel %vm820_vm9, %v13487_v3, %v3626_v0 }
 0x442   :  { %v3754_v25 = vsel %vm869_vm10, %v3720_v52, %v3674_v11  ;;  %v3798_v28 = vsel %vm820_vm9, %v13489_v42, %v3786_v27 }
 0x444   :  { %v3676_v54 = vpop.permute.xlu0 %3675 }
 0x445   :  { %v3628_v29 = vpop.permute.xlu1 %3627 }
 0x446   :  { %v3723_v23 = vsel %vm820_vm9, %v13501_v63, %v3628_v29 }
 0x447   :  { %v3756_v61 = vsel %vm869_vm10, %v3723_v23, %v3676_v54 }
 0x448   :  { %v10201_v38 = vcombine.low %v3754_v25, %v3756_v61  ;;  %v3678_v55 = vpop.permute.xlu0 %3677 }
 0x449   :  { %v3792_v24 = vpop.permute.xlu1 %3791  ;;  %v3758_v3 = vsel %vm869_vm10, %v3726_v15, %v3678_v55 }
 0x44a   :  { %v3802_v60 = vsel %vm869_vm10, %v3798_v28, %v3792_v24  ;;  %11295 = vmatprep.mubr.msk.bf16.mxu0 %vm1022_vm11, %v10201_v38  ;;  %v10224_v19 = vcombine.low %v3756_v61, %v3758_v3 }
 0x44b   :  { %v10202_v63 = vcombine.low %v3758_v3, %v3802_v60 }
 0x44c   :  { %v3600_v22 = vpop.permute.xlu0 %3599 }
 0x44d   :  { %v3648_v6 = vpop.permute.xlu1 %3647  ;;  %11296 = vmatmul.mubr.msk.bf16.gmra.mxu0 %vm1022_vm11, %v10202_v63  ;;  %v3681_v13 = vsel %vm820_vm9, %v13513_v57, %v3600_v22 }
 0x44e   :  { %11339 = vmatprep.mubr.msk.bf16.mxu0 %vm1022_vm11, %v10218_v59  ;;  %v3728_v42 = vsel %vm869_vm10, %v3681_v13, %v3648_v6  ;;  %v13704_v13 = vld [vmem:[%s15731_s6 + $0x1] ss:$0 sm:$0xff] }
 0x44f   :  { %v10217_v46 = vcombine.low %v3728_v42, %v13562_v35 }
 0x450   :  { %v4194_v1 = vpop.permute.xlu0 %4193 }
 0x451   :  { %v4200_v50 = vpop.permute.xlu1 %4199  ;;  %11311 = vmatprep.mubr.msk.bf16.mxu1 %vm1022_vm11, %v10217_v46  ;;  %v4205_v57 = vsel %vm820_vm9, %v13522_v18, %v4194_v1  ;;  %v10223_v18 = vcombine.low %v3752_v51, %v3754_v25 }
 0x452   :  { %11312 = vmatmul.mubr.msk.bf16.vlgmr.msra.gmra.mxu1 %vm1022_vm11, %v10218_v59  ;;  %v4210_v10 = vsel %vm869_vm10, %v4205_v57, %v4200_v50  ;;  %v13699_v59 = vld [vmem:[%s15730_s5 + $0x1] ss:$0 sm:$0xff] }
 0x453   :  { %11315 = vmatprep.mubr.msk.bf16.mxu1 %vm1022_vm11, %v10219_v39  ;;  %v10241_v21 = vcombine.low %v13596_v32, %v4210_v10 }
 0x454   :  { %v3616_v41 = vpop.permute.xlu0 %3615 }
 0x455   :  { %v3664_v20 = vpop.permute.xlu1 %3663  ;;  %11340 = vmatmul.mubr.msk.bf16.vlgmr.msra.gmra.mxu0 %vm1022_vm11, %v10219_v39  ;;  %v3705_v35 = vsel %vm820_vm9, %v13530_v31, %v3616_v41 }
 0x456   :  { %11343 = vmatprep.mubr.msk.bf16.mxu0 %vm1022_vm11, %v10220_v26  ;;  %v3744_v36 = vsel %vm869_vm10, %v3705_v35, %v3664_v20 }
 0x457   :  { %v10221_v30 = vcombine.low %v3744_v36, %v3746_v49 }
 0x458   :  { %v4196_v31 = vpop.permute.xlu0 %4195 }
 0x459   :  { %v4208_v49 = vsel %vm820_vm9, %v13535_v56, %v4196_v31  ;;  %v4202_v32 = vpop.permute.xlu1 %4201 }
 0x45a   :  { %11316 = vmatmul.mubr.msk.bf16.gmra.mxu1 %vm1022_vm11, %v10220_v26  ;;  %v4212_v9 = vsel %vm869_vm10, %v4208_v49, %v4202_v32 }
 0x45b   :  { %11319 = vmatprep.mubr.msk.bf16.mxu1 %vm1022_vm11, %v10221_v30  ;;  %v10242_v43 = vcombine.low %v3802_v60, %v4212_v9 }
 0x45d   :  { %11344 = vmatmul.mubr.msk.bf16.gmra.mxu0 %vm1022_vm11, %v10241_v21 }
 0x45e   :  { %11347 = vmatprep.mubr.msk.bf16.mxu0 %vm1022_vm11, %v10222_v40 }
 0x462   :  { %11320 = vmatmul.mubr.msk.bf16.gmra.mxu1 %vm1022_vm11, %v10222_v40 }
 0x463   :  { %11323 = vmatprep.mubr.msk.bf16.mxu1 %vm1022_vm11, %v10223_v18 }
 0x465   :  { %11348 = vmatmul.mubr.msk.bf16.gmra.mxu0 %vm1022_vm11, %v10223_v18 }
 0x466   :  { %11351 = vmatprep.mubr.msk.bf16.mxu0 %vm1022_vm11, %v10224_v19 }
 0x46a   :  { %11324 = vmatmul.mubr.msk.bf16.gmra.mxu1 %vm1022_vm11, %v10224_v19  ;;  %v11840_v19 = vld [vmem:[%s15729_s4 + $0x178] sm:$0xff]  }
 0x46b   :  { %11355 = vmatprep.subr.bf16.mxu1 %v11840_v19 }
 0x46c   :  { %11356 = vmatpush3.bf16.msra.mxu1 %v11840_v19 }
 0x46d   :  { %11352 = vmatmul.mubr.msk.bf16.gmra.mxu0 %vm1022_vm11, %v10242_v43 }
 0x4df   :  { %v11285_v51 = vpop.f32.mrf.mxu0 }
 0x4e1   :  { %v3937_v8 = vpop.f32.mrf.mxu0 }
 0x4e3   :  { %v11286_v11 = vpop.f32.mrf.mxu0 }
 0x4e5   :  { %v3940_v0 = vpop.f32.mrf.mxu0 }
 0x4ef   :  { %v11289_v27 = vpop.f32.mrf.mxu0 }
 0x4f1   :  { %v3953_v52 = vpop.f32.mrf.mxu0 }
 0x4f3   :  { %v11290_v54 = vpop.f32.mrf.mxu0 }
 0x4f5   :  { %v13678_v56 = vpop.f32.mrf.mxu0 }
 0x4ff   :  { %v13680_v29 = vpop.f32.mrf.mxu0 }
 0x501   :  { %v13682_v23 = vpop.f32.mrf.mxu0 }
 0x503   :  { %v13684_v25 = vpop.f32.mrf.mxu0 }
 0x505   :  { %v13686_v61 = vpop.f32.mrf.mxu0 }
 0x50d   :  { %v13688_v38 = vpop.f32.mrf.mxu0 }
 0x50f   :  { %v13690_v15 = vpop.f32.mrf.mxu0 }
 0x511   :  { %v13692_v28 = vpop.f32.mrf.mxu0 }
 0x512   :  { %v11313_v55 = vpop.f32.mrf.mxu1 }
 0x513   :  { %v13694_v24 = vpop.f32.mrf.mxu0  ;;  %v4115_v3 = vadd.f32 %v11313_v55, %v11285_v51 }
 0x514   :  { %v4106_v60 = vpop.f32.mrf.mxu1 }
 0x515   :  { %v11341_v63 = vpop.f32.mrf.mxu0  ;;  %v4107_v22 = vadd.f32 %v4106_v60, %v3937_v8 }
 0x516   :  { %v4360_v6 = vadd.f32 %v11341_v63, %v4115_v3  ;;  %v11314_v42 = vpop.f32.mrf.mxu1 }
 0x517   :  { %v4295_v46 = vpop.f32.mrf.mxu0  ;;  %v4118_v50 = vadd.f32 %v11314_v42, %v11286_v11 }
 0x518   :  { %v4384_v1 = vmul.f32 %v13699_v59, %v4360_v6  ;;  %v4358_v39 = vadd.f32 %v4295_v46, %v4107_v22  ;;  %v4109_v26 = vpop.f32.mrf.mxu1 }
 0x519   :  { %v11342_v57 = vpop.f32.mrf.mxu0  ;;  %v4110_v35 = vadd.f32 %v4109_v26, %v3940_v0 }
 0x51a   :  { %v4408_v41 = vadd.f32 %v13704_v13, %v4384_v1  ;;  %v4382_v20 = vmul.f32 %v13699_v59, %v4358_v39  ;;  %v4361_v36 = vadd.f32 %v11342_v57, %v4118_v50  ;;  %v11317_v10 = vpop.f32.mrf.mxu1 }
 0x51b   :  { %v4298_v30 = vpop.f32.mrf.mxu0  ;;  %v4131_v31 = vadd.f32 %v11317_v10, %v11289_v27 }
 0x51c   :  { %v4424_v21 = vadd.f32 %v4408_v41, %v12761_v16  ;;  %v4406_v40 = vadd.f32 %v13704_v13, %v4382_v20  ;;  %v4385_v18 = vmul.f32 %v13699_v59, %v4361_v36  ;;  %v4359_v49 = vadd.f32 %v4298_v30, %v4110_v35  ;;  %v4122_v32 = vpop.f32.mrf.mxu1 }
 0x51d   :  { %v11345_v9 = vpop.f32.mrf.mxu0  ;;  %v4123_v11 = vadd.f32 %v4122_v32, %v3953_v52 }
 0x51e   :  { %v13715_v43 = vmax.f32 %v4424_v21, 0.0  ;;  %v4422_v51 = vadd.f32 %v4406_v40, %v12767_v58  ;;  %v4409_v8 = vadd.f32 %v13704_v13, %v4385_v18  ;;  %v4383_v16 = vmul.f32 %v13699_v59, %v4359_v49  ;;  %v11318_v55 = vpop.f32.mrf.mxu1 }
 0x51f   :  { %v4364_v0 = vadd.f32 %v11345_v9, %v4131_v31  ;;  %v4311_v27 = vpop.f32.mrf.mxu0  ;;  %v4134_v6 = vadd.f32 %v11318_v55, %v11290_v54 }
 0x520   :  { %v10763_v3 = vpack.c.bf16 %v13715_v43, %v13715_v43  ;;  %v13722_v60 = vmax.f32 %v4422_v51, 0.0  ;;  %v4425_v63 = vadd.f32 %v4409_v8, %v12773_v53  ;;  %v4407_v22 = vadd.f32 %v13704_v13, %v4383_v16  ;;  %v4125_v42 = vpop.f32.mrf.mxu1  ;;  %v4690_v8 = vld [vmem:[#allocation2 + $0x18] sm:$0xf] }
 0x521   :  { %v4388_v58 = vmul.f32 %v13699_v59, %v4364_v0  ;;  %v4362_v52 = vadd.f32 %v4311_v27, %v4123_v11  ;;  %v11346_v46 = vpop.f32.mrf.mxu0  ;;  %v13735_v20 = vadd.f32 %v4125_v42, %v13678_v56  ;;  %v4693_v11 = vld [vmem:[#allocation2 + $0x1c] sm:$0x1] }
 0x522   :  { %v4535_v1 = vshrl.u32 %v10763_v3, 16  ;;  %v4538_v50 = vshll.u32 %v10763_v3, 16  ;;  %v10761_v39 = vpack.c.bf16 %v13722_v60, %v13722_v60  ;;  %v13729_v26 = vmax.f32 %v4425_v63, 0.0  ;;  %v11321_v54 = vpop.f32.mrf.mxu1 }
 0x523   :  { %v4423_v57 = vadd.f32 %v4407_v22, %v12785_v48  ;;  %v4412_v41 = vadd.f32 %v13704_v13, %v4388_v58  ;;  %v4386_v53 = vmul.f32 %v13699_v59, %v4362_v52  ;;  %v13737_v35 = vpop.f32.mrf.mxu0  ;;  %v4365_v31 = vadd.f32 %v11346_v46, %v4134_v6  ;;  %v4678_v58 = vld [vmem:[#allocation2 + $0x8] sm:$0xf]  ;;  %v4681_v52 = vld [vmem:[#allocation2 + $0xc] sm:$0x1] }
 0x524   :  { %v4537_v36 = vrot.slane %v4535_v1, 7  ;;  %v4519_v10 = vshrl.u32 %v10761_v39, 16  ;;  %v4522_v30 = vshll.u32 %v10761_v39, 16  ;;  %v10764_v21 = vpack.c.bf16 %v13729_v26, %v13729_v26  ;;  %v4138_v19 = vpop.f32.mrf.mxu1 }
 0x525   :  { %v13741_v40 = vmax.f32 %v4423_v57, 0.0  ;;  %v4428_v48 = vadd.f32 %v4412_v41, %v12792_v62  ;;  %v4410_v18 = vadd.f32 %v13704_v13, %v4386_v53  ;;  %v13745_v49 = vpop.f32.mrf.mxu0  ;;  %v4389_v53 = vmul.f32 %v13699_v59, %v4365_v31 }
 0x526   :  { %v4540_v56 = vor.u32 %v4538_v50, %v4537_v36  ;;  %v4541_v32 = vrot.slane %v4537_v36, 4  ;;  %v4521_v9 = vrot.slane %v4519_v10, 7  ;;  %v4543_v51 = vshrl.u32 %v10764_v21, 16  ;;  %v11322_v6 = vpop.f32.mrf.mxu1 }
 0x527   :  { %v4546_v16 = vshll.u32 %v10764_v21, 16  ;;  %v10762_v0 = vpack.c.bf16 %v13741_v40, %v13741_v40  ;;  %v13749_v55 = vmax.f32 %v4428_v48, 0.0  ;;  %v4426_v62 = vadd.f32 %v4410_v18, %v12805_v34  ;;  %v4327_v34 = vpop.f32.mrf.mxu0  ;;  %v4696_v48 = vld [vmem:[#allocation2 + $0x20] sm:$0xf]  ;;  %v4699_v18 = vld [vmem:[#allocation2 + $0x24] sm:$0x1] }
 0x528   :  { %v4691_v27 = vsel %vm12781_vm12, %v4540_v56, %v4690_v8  ;;  %v4694_v3 = vsel %vm12245_vm6, %v4541_v32, %v4693_v11  ;;  %v4524_v63 = vor.u32 %v4522_v30, %v4521_v9  ;;  %v4525_v22 = vrot.slane %v4521_v9, 4  ;;  %v4141_v8 = vpop.f32.mrf.mxu1 }
 0x529   :  { %4692 = vst [vmem:[#allocation2 + $0x18] sm:$0xf] %v4691_v27  ;;  %4695 = vst [vmem:[#allocation2 + $0x1c] sm:$0x1] %v4694_v3  ;;  %v4545_v42 = vrot.slane %v4543_v51, 7  ;;  %v4527_v46 = vshrl.u32 %v10762_v0, 16  ;;  %v10767_v50 = vpack.c.bf16 %v13749_v55, %v13749_v55  ;;  %v4413_v9 = vadd.f32 %v13704_v13, %v4389_v53  ;;  %v11350_v27 = vpop.f32.mrf.mxu0 }
 0x52a   :  { %v4530_v1 = vshll.u32 %v10762_v0, 16  ;;  %v4679_v39 = vsel %vm12781_vm12, %v4524_v63, %v4678_v58  ;;  %v4682_v57 = vsel %vm12245_vm6, %v4525_v22, %v4681_v52  ;;  %v13762_v41 = vmax.f32 %v4426_v62, 0.0  ;;  %v4684_v62 = vld [vmem:[#allocation2 + $0x10] sm:$0xf]  ;;  %v4687_v3 = vld [vmem:[#allocation2 + $0x14] sm:$0x1]  ;;  %v11325_v53 = vpop.f32.mrf.mxu1 }
 0x52b   :  { %4680 = vst [vmem:[#allocation2 + $0x8] sm:$0xf] %v4679_v39  ;;  %4683 = vst [vmem:[#allocation2 + $0xc] sm:$0x1] %v4682_v57  ;;  %v4548_v36 = vor.u32 %v4546_v16, %v4545_v42  ;;  %v4549_v10 = vrot.slane %v4545_v42, 4  ;;  %v4529_v30 = vrot.slane %v4527_v46, 7  ;;  %v4147_v51 = vadd.f32 %v11321_v54, %v13680_v29 }
 0x52c   :  { %v4567_v21 = vshrl.u32 %v10767_v50, 16  ;;  %v4570_v56 = vshll.u32 %v10767_v50, 16  ;;  %v10765_v32 = vpack.c.bf16 %v13762_v41, %v13762_v41  ;;  %v4429_v52 = vadd.f32 %v4413_v9, %v12821_v4  ;;  %v4714_v4 = vld [vmem:[#allocation2 + $0x38] sm:$0xf] }
 0x52d   :  { %v4697_v31 = vsel %vm12781_vm12, %v4548_v36, %v4696_v48  ;;  %v4700_v11 = vsel %vm12245_vm6, %v4549_v10, %v4699_v18  ;;  %v4532_v16 = vor.u32 %v4530_v1, %v4529_v30  ;;  %v4533_v0 = vrot.slane %v4529_v30, 4  ;;  %v4717_v36 = vld [vmem:[#allocation2 + $0x3c] sm:$0x1] }
 0x52e   :  { %4698 = vst [vmem:[#allocation2 + $0x20] sm:$0xf] %v4697_v31  ;;  %4701 = vst [vmem:[#allocation2 + $0x24] sm:$0x1] %v4700_v11  ;;  %v4569_v63 = vrot.slane %v4567_v21, 7  ;;  %v4551_v22 = vshrl.u32 %v10765_v32, 16  ;;  %v4363_v42 = vadd.f32 %v13737_v35, %v13735_v20  ;;  %v4139_v46 = vadd.f32 %v4138_v19, %v13682_v23  ;;  %v4330_v20 = vpop.f32.mrf.mxu0 }
 0x52f   :  { %v4554_v58 = vshll.u32 %v10765_v32, 16  ;;  %v4685_v29 = vsel %vm12781_vm12, %v4532_v16, %v4684_v62  ;;  %v4688_v54 = vsel %vm12245_vm6, %v4533_v0, %v4687_v3  ;;  %v13781_v57 = vmax.f32 %v4429_v52, 0.0  ;;  %v4705_v32 = vld [vmem:[#allocation2 + $0x2c] sm:$0x1]  ;;  %v4154_v16 = vpop.f32.mrf.mxu1 }
 0x530   :  { %4686 = vst [vmem:[#allocation2 + $0x10] sm:$0xf] %v4685_v29  ;;  %4689 = vst [vmem:[#allocation2 + $0x14] sm:$0x1] %v4688_v54  ;;  %v4572_v1 = vor.u32 %v4570_v56, %v4569_v63  ;;  %v4573_v50 = vrot.slane %v4569_v63, 4  ;;  %v4553_v39 = vrot.slane %v4551_v22, 7  ;;  %v4387_v10 = vmul.f32 %v13699_v59, %v4363_v42  ;;  %v11353_v22 = vpop.f32.mrf.mxu0 }
 0x531   :  { %v4368_v30 = vadd.f32 %v13745_v49, %v4147_v51  ;;  %v4150_v21 = vadd.f32 %v11322_v6, %v13684_v25  ;;  %v4366_v48 = vadd.f32 %v4327_v34, %v4139_v46  ;;  %v4702_v56 = vld [vmem:[#allocation2 + $0x28] sm:$0xf]  ;;  %v10768_v9 = vpack.c.bf16 %v13781_v57, %v13781_v57 }
 0x532   :  { %v4715_v23 = vsel %vm12781_vm12, %v4572_v1, %v4714_v4  ;;  %v4718_v35 = vsel %vm12245_vm6, %v4573_v50, %v4717_v36  ;;  %v4556_v19 = vor.u32 %v4554_v58, %v4553_v39  ;;  %v4557_v18 = vrot.slane %v4553_v39, 4  ;;  %v4720_v36 = vld [vmem:[#allocation2 + $0x40] sm:$0xf] }
 0x533   :  { %4716 = vst [vmem:[#allocation2 + $0x38] sm:$0xf] %v4715_v23  ;;  %4719 = vst [vmem:[#allocation2 + $0x3c] sm:$0x1] %v4718_v35  ;;  %v4411_v49 = vadd.f32 %v13704_v13, %v4387_v10  ;;  %v4392_v25 = vmul.f32 %v13699_v59, %v4368_v30  ;;  %v4390_v6 = vmul.f32 %v13699_v59, %v4366_v48  ;;  %v4575_v0 = vshrl.u32 %v10768_v9, 16  ;;  %v4343_v48 = vpop.f32.mrf.mxu0 }
 0x534   :  { %v4703_v34 = vsel %vm12781_vm12, %v4556_v19, %v4702_v56  ;;  %v4706_v51 = vsel %vm12245_vm6, %v4557_v18, %v4705_v32  ;;  %v4142_v31 = vadd.f32 %v4141_v8, %v13686_v61  ;;  %v4369_v11 = vadd.f32 %v11350_v27, %v4150_v21  ;;  %v4723_v10 = vld [vmem:[#allocation2 + $0x44] sm:$0x1]  ;;  %v11326_v21 = vpop.f32.mrf.mxu1 }
 0x535   :  { %4704 = vst [vmem:[#allocation2 + $0x28] sm:$0xf] %v4703_v34  ;;  %4707 = vst [vmem:[#allocation2 + $0x2c] sm:$0x1] %v4706_v51  ;;  %v4578_v62 = vshll.u32 %v10768_v9, 16  ;;  %v4427_v3 = vadd.f32 %v4411_v49, %v12839_v17  ;;  %v4416_v63 = vadd.f32 %v13704_v13, %v4392_v25  ;;  %v4414_v58 = vadd.f32 %v13704_v13, %v4390_v6  ;;  %v11841_v34 = vld [vmem:[%s15729_s4 + $0x170] sm:$0xff]  }
 0x536   :  { %v4393_v52 = vmul.f32 %v13699_v59, %v4369_v11  ;;  %v4163_v29 = vadd.f32 %v11325_v53, %v13688_v38  ;;  %v4367_v54 = vadd.f32 %v4330_v20, %v4142_v31  ;;  %v4577_v42 = vrot.slane %v4575_v0, 7  ;;  %11357 = vmatprep.subr.bf16.mxu1 %v11841_v34 }
 0x537   :  { %v13805_v61 = vmax.f32 %v4427_v3, 0.0  ;;  %v4432_v8 = vadd.f32 %v4416_v63, %v12847_v47  ;;  %v4155_v27 = vadd.f32 %v4154_v16, %v13690_v15  ;;  %v4430_v46 = vadd.f32 %v4414_v58, %v12850_v45  ;;  %v4708_v63 = vld [vmem:[#allocation2 + $0x30] sm:$0xf]  ;;  %11358 = vmatpush3.bf16.msra.mxu1 %v11841_v34 }
 0x538   :  { %v4417_v17 = vadd.f32 %v13704_v13, %v4393_v52  ;;  %v4391_v1 = vmul.f32 %v13699_v59, %v4367_v54  ;;  %v4372_v50 = vadd.f32 %v11353_v22, %v4163_v29  ;;  %v4580_v39 = vor.u32 %v4578_v62, %v4577_v42  ;;  %v4711_v22 = vld [vmem:[#allocation2 + $0x34] sm:$0x1]  ;;  %v4744_v34 = vld [vmem:[#allocation2 + $0x70] sm:$0xf] }
 0x539   :  { %v4581_v4 = vrot.slane %v4577_v42, 4  ;;  %v10766_v38 = vpack.c.bf16 %v13805_v61, %v13805_v61  ;;  %v13814_v53 = vmax.f32 %v4432_v8, 0.0  ;;  %v13816_v30 = vmax.f32 %v4430_v46, 0.0  ;;  %v11842_v46 = vld [vmem:[%s15729_s4 + $0x168] sm:$0xff]  }
 0x53a   :  { %v4433_v47 = vadd.f32 %v4417_v17, %v12858_v7  ;;  %v4415_v45 = vadd.f32 %v13704_v13, %v4391_v1  ;;  %v4396_v15 = vmul.f32 %v13699_v59, %v4372_v50  ;;  %v4721_v20 = vsel %vm12781_vm12, %v4580_v39, %v4720_v36  ;;  %v4741_v50 = vld [vmem:[#allocation2 + $0x6c] sm:$0x1]  ;;  %v4726_v36 = vld [vmem:[#allocation2 + $0x58] sm:$0xf]  ;;  %11359 = vmatprep.subr.bf16.mxu1 %v11842_v46 }
 0x53b   :  { %v4724_v23 = vsel %vm12245_vm6, %v4581_v4, %v4723_v10  ;;  %v4559_v35 = vshrl.u32 %v10766_v38, 16  ;;  %v4562_v19 = vshll.u32 %v10766_v38, 16  ;;  %4722 = vst [vmem:[#allocation2 + $0x40] sm:$0xf] %v4721_v20  ;;  %v10771_v18 = vpack.c.bf16 %v13814_v53, %v13814_v53  ;;  %v11354_v38 = vpop.f32.mrf.mxu0  ;;  %v4729_v10 = vld [vmem:[#allocation2 + $0x5c] sm:$0x1]  ;;  %11360 = vmatpush3.bf16.msra.mxu1 %v11842_v46 }
 0x53c   :  { %4725 = vst [vmem:[#allocation2 + $0x44] sm:$0x1] %v4724_v23  ;;  %v10769_v7 = vpack.c.bf16 %v13816_v30, %v13816_v30  ;;  %v13829_v56 = vmax.f32 %v4433_v47, 0.0  ;;  %v4431_v32 = vadd.f32 %v4415_v45, %v12871_v37  ;;  %v4420_v49 = vadd.f32 %v13704_v13, %v4396_v15 }
 0x53d   :  { %v4561_v9 = vrot.slane %v4559_v35, 7  ;;  %v4166_v25 = vadd.f32 %v11326_v21, %v13692_v28  ;;  %v4370_v6 = vadd.f32 %v4343_v48, %v4155_v27  ;;  %v4599_v51 = vshrl.u32 %v10771_v18, 16  ;;  %v4157_v48 = vpop.f32.mrf.mxu1 }
 0x53e   :  { %v4602_v31 = vshll.u32 %v10771_v18, 16  ;;  %v4583_v11 = vshrl.u32 %v10769_v7, 16  ;;  %v4586_v16 = vshll.u32 %v10769_v7, 16  ;;  %v10772_v3 = vpack.c.bf16 %v13829_v56, %v13829_v56  ;;  %v13863_v18 = vld [vmem:[#allocation2 + $0x18] sm:$0xf] }
 0x53f   :  { %v4564_v0 = vor.u32 %v4562_v19, %v4561_v9  ;;  %v4565_v62 = vrot.slane %v4561_v9, 4  ;;  %v13839_v37 = vmax.f32 %v4431_v32, 0.0  ;;  %v4601_v28 = vrot.slane %v4599_v51, 7  ;;  %v4818_v7 = vld [vmem:[#allocation2 + $0x1c] sm:$0x1] }
 0x540   :  { %v4585_v58 = vrot.slane %v4583_v11, 7  ;;  %v4436_v52 = vadd.f32 %v4420_v49, %v12886_v33  ;;  %v4394_v29 = vmul.f32 %v13699_v59, %v4370_v6  ;;  %v4607_v8 = vshrl.u32 %v10772_v3, 16  ;;  %v4738_v33 = vld [vmem:[#allocation2 + $0x68] sm:$0xf]  ;;  %v4747_v51 = vld [vmem:[#allocation2 + $0x74] sm:$0x1] }
 0x541   :  { %v4709_v54 = vsel %vm12781_vm12, %v4564_v0, %v4708_v63  ;;  %v4712_v42 = vsel %vm12245_vm6, %v4565_v62, %v4711_v22  ;;  %v4610_v27 = vshll.u32 %v10772_v3, 16  ;;  %v4604_v17 = vor.u32 %v4602_v31, %v4601_v28  ;;  %v4346_v62 = vpop.f32.mrf.mxu0  ;;  %v13869_v3 = vld [vmem:[#allocation2 + $0x8] sm:$0xf] }
 0x542   :  { %4710 = vst [vmem:[#allocation2 + $0x30] sm:$0xf] %v4709_v54  ;;  %4713 = vst [vmem:[#allocation2 + $0x34] sm:$0x1] %v4712_v42  ;;  %v4605_v1 = vrot.slane %v4601_v28, 4  ;;  %v4588_v39 = vor.u32 %v4586_v16, %v4585_v58  ;;  %v4589_v4 = vrot.slane %v4585_v58, 4  ;;  %v10770_v45 = vpack.c.bf16 %v13839_v37, %v13839_v37 }
 0x543   :  { %v4609_v47 = vrot.slane %v4607_v8, 7  ;;  %v13852_v15 = vmax.f32 %v4436_v52, 0.0  ;;  %v4418_v21 = vadd.f32 %v13704_v13, %v4394_v29  ;;  %v4739_v20 = vsel %vm12781_vm12, %v4604_v17, %v4738_v33  ;;  %v13878_v52 = vld [vmem:[#allocation2 + $0x20] sm:$0xf]  ;;  %v4820_v29 = vld [vmem:[#allocation2 + $0x24] sm:$0x1] }
 0x544   :  { %v4742_v23 = vsel %vm12245_vm6, %v4605_v1, %v4741_v50  ;;  %v4727_v35 = vsel %vm12781_vm12, %v4588_v39, %v4726_v36  ;;  %v4730_v19 = vsel %vm12245_vm6, %v4589_v4, %v4729_v10  ;;  %4740 = vst [vmem:[#allocation2 + $0x68] sm:$0xf] %v4739_v20  ;;  %v4591_v49 = vshrl.u32 %v10770_v45, 16  ;;  %v4814_v42 = vld [vmem:[#allocation2 + $0xc] sm:$0x1]  ;;  %v11843_v36 = vld [vmem:[%s15729_s4 + $0x160] sm:$0xff]  }
 0x545   :  { %4743 = vst [vmem:[#allocation2 + $0x6c] sm:$0x1] %v4742_v23  ;;  %4728 = vst [vmem:[#allocation2 + $0x58] sm:$0xf] %v4727_v35  ;;  %v4612_v32 = vor.u32 %v4610_v27, %v4609_v47  ;;  %v4613_v9 = vrot.slane %v4609_v47, 4  ;;  %v4594_v6 = vshll.u32 %v10770_v45, 16  ;;  %v10775_v31 = vpack.c.bf16 %v13852_v15, %v13852_v15  ;;  %11361 = vmatprep.subr.bf16.mxu1 %v11843_v36 }
 0x546   :  { %4731 = vst [vmem:[#allocation2 + $0x5c] sm:$0x1] %v4730_v19  ;;  %v4434_v11 = vadd.f32 %v4418_v21, %v12916_v5  ;;  %v4158_v16 = vadd.f32 %v4157_v48, %v13694_v24  ;;  %v4373_v0 = vadd.f32 %v11354_v38, %v4166_v25  ;;  %v4593_v28 = vrot.slane %v4591_v49, 7  ;;  %v4732_v1 = vld [vmem:[#allocation2 + $0x60] sm:$0xf]  ;;  %11362 = vmatpush3.bf16.msra.mxu1 %v11843_v36 }
 0x547   :  { %v4745_v63 = vsel %vm12781_vm12, %v4612_v32, %v4744_v34  ;;  %v4748_v22 = vsel %vm12245_vm6, %v4613_v9, %v4747_v51  ;;  %v13876_v58 = vcombine.low %v13863_v18, %v4818_v7  ;;  %v4631_v5 = vshrl.u32 %v10775_v31, 16  ;;  %v4735_v33 = vld [vmem:[#allocation2 + $0x64] sm:$0x1]  ;;  %v13902_v48 = vld [vmem:[#allocation2 + $0x10] sm:$0xf] }
 0x548   :  { %4746 = vst [vmem:[#allocation2 + $0x70] sm:$0xf] %v4745_v63  ;;  %4749 = vst [vmem:[#allocation2 + $0x74] sm:$0x1] %v4748_v22  ;;  %v4634_v24 = vshll.u32 %v10775_v31, 16  ;;  %v13880_v25 = vmax.f32 %v4434_v11, 0.0  ;;  %v4397_v54 = vmul.f32 %v13699_v59, %v4373_v0  ;;  %v4596_v8 = vor.u32 %v4594_v6, %v4593_v28 }
 0x549   :  { %v4597_v27 = vrot.slane %v4593_v28, 4  ;;  %v4371_v46 = vadd.f32 %v4346_v62, %v4158_v16  ;;  %v5078_v17 = vrot.slane %v13876_v58, 1  ;;  %v4633_v50 = vrot.slane %v4631_v5, 7  ;;  %v4816_v20 = vld [vmem:[#allocation2 + $0x14] sm:$0x1] }
 0x54a   :  { %v10773_v39 = vpack.c.bf16 %v13880_v25, %v13880_v25  ;;  %v4421_v4 = vadd.f32 %v13704_v13, %v4397_v54  ;;  %v13888_v38 = vcombine.low %v13878_v52, %v4820_v29  ;;  %v4733_v10 = vsel %vm12781_vm12, %v4596_v8, %v4732_v1  ;;  %v4762_v32 = vld [vmem:[#allocation2 + $0x88] sm:$0xf]  ;;  %v4765_v9 = vld [vmem:[#allocation2 + $0x8c] sm:$0x1]  ;;  %v4750_v28 = vld [vmem:[#allocation2 + $0x78] sm:$0xf] }
 0x54b   :  { %v4736_v47 = vsel %vm12245_vm6, %v4597_v27, %v4735_v33  ;;  %v4395_v45 = vmul.f32 %v13699_v59, %v4371_v46  ;;  %5097 = vrot.lane.b32.xlu0 %v5078_v17, %s11982_s29  ;;  %v13900_v21 = vcombine.low %v13869_v3, %v4814_v42  ;;  %4734 = vst [vmem:[#allocation2 + $0x60] sm:$0xf] %v4733_v10  ;;  %v4637_v35 = vrot.slane %v4633_v50, 4  ;;  %v11845_v27 = vld [vmem:[%s15729_s4 + $0x150] sm:$0xff]   ;;  %v13939_v1 = vld [vmem:[#allocation2 + $0x38] sm:$0xf] }
 0x54c   :  { %4737 = vst [vmem:[#allocation2 + $0x64] sm:$0x1] %v4736_v47  ;;  %v4636_v23 = vor.u32 %v4634_v24, %v4633_v50  ;;  %v4615_v19 = vshrl.u32 %v10773_v39, 16  ;;  %v4618_v7 = vshll.u32 %v10773_v39, 16  ;;  %v4437_v49 = vadd.f32 %v4421_v4, %v12936_v44  ;;  %v11844_v44 = vld [vmem:[%s15729_s4 + $0x158] sm:$0xff]  }
 0x54d   :  { %v4419_v59 = vadd.f32 %v13704_v13, %v4395_v45  ;;  %v5079_v6 = vrot.slane %v13888_v38, 1  ;;  %v5076_v34 = vrot.slane %v13900_v21, 1  ;;  %v4766_v31 = vsel %vm12245_vm6, %v4637_v35, %v4765_v9  ;;  %11363 = vmatprep.subr.bf16.mxu1 %v11844_v44  ;;  %v4753_v24 = vld [vmem:[#allocation2 + $0x7c] sm:$0x1]  ;;  %v13945_v10 = vld [vmem:[#allocation2 + $0x28] sm:$0xf] }
 0x54e   :  { %v4763_v51 = vsel %vm12781_vm12, %v4636_v23, %v4762_v32  ;;  %v4617_v11 = vrot.slane %v4615_v19, 7  ;;  %v13913_v16 = vcombine.low %v13902_v48, %v4816_v20  ;;  %4767 = vst [vmem:[#allocation2 + $0x8c] sm:$0x1] %v4766_v31  ;;  %v13918_v13 = vmax.f32 %v4437_v49, 0.0  ;;  %11364 = vmatpush3.bf16.msra.mxu1 %v11844_v44  ;;  %v4826_v33 = vld [vmem:[#allocation2 + $0x3c] sm:$0x1] }
 0x54f   :  { %4764 = vst [vmem:[#allocation2 + $0x88] sm:$0xf] %v4763_v51  ;;  %v4435_v0 = vadd.f32 %v4419_v59, %v12953_v2  ;;  %5099 = vrot.lane.b32.xlu1 %v5079_v6, %s11982_s29  ;;  %5093 = vrot.lane.b32.xlu0 %v5076_v34, %s11982_s29  ;;  %v4955_v62 = vshll.u32 %v13876_v58, 16  ;;  %v4953_v5 = vshrl.u32 %v13876_v58, 16  ;;  %v4962_v8 = vshll.u32 %v13888_v38, 16 }
 0x550   :  { %v4620_v63 = vor.u32 %v4618_v7, %v4617_v11  ;;  %v4621_v22 = vrot.slane %v4617_v11, 4  ;;  %v5077_v29 = vrot.slane %v13913_v16, 1  ;;  %v10776_v54 = vpack.c.bf16 %v13918_v13, %v13918_v13  ;;  %11365 = vmatprep.subr.bf16.mxu1 %v11845_v27  ;;  %v4822_v35 = vld [vmem:[#allocation2 + $0x2c] sm:$0x1]  ;;  %v13952_v11 = vld [vmem:[#allocation2 + $0x40] sm:$0xf] }
 0x551   :  { %v13928_v42 = vmax.f32 %v4435_v0, 0.0  ;;  %v4957_v2 = vrot.slane %v4955_v62, 1  ;;  %v4941_v17 = vshll.u32 %v13900_v21, 16  ;;  %v4960_v36 = vshrl.u32 %v13888_v38, 16  ;;  %v4828_v44 = vld [vmem:[#allocation2 + $0x44] sm:$0x1] }
 0x552   :  { %v4751_v46 = vsel %vm12781_vm12, %v4620_v63, %v4750_v28  ;;  %v4754_v58 = vsel %vm12245_vm6, %v4621_v22, %v4753_v24  ;;  %v4639_v50 = vshrl.u32 %v10776_v54, 16  ;;  %v4964_v47 = vrot.slane %v4962_v8, 1  ;;  %11366 = vmatpush3.bf16.msra.mxu1 %v11845_v27  ;;  %v4768_v0 = vld [vmem:[#allocation2 + $0x90] sm:$0xf]  ;;  %v4771_v62 = vld [vmem:[#allocation2 + $0x94] sm:$0x1] }
 0x553   :  { %4752 = vst [vmem:[#allocation2 + $0x78] sm:$0xf] %v4751_v46  ;;  %4755 = vst [vmem:[#allocation2 + $0x7c] sm:$0x1] %v4754_v58  ;;  %v10774_v39 = vpack.c.bf16 %v13928_v42, %v13928_v42  ;;  %5095 = vrot.lane.b32.xlu1 %v5077_v29, %s11982_s29  ;;  %v4958_v4 = vor.u32 %v4957_v2, %v4953_v5  ;;  %v4939_v45 = vshrl.u32 %v13900_v21, 16  ;;  %v4943_v20 = vrot.slane %v4941_v17, 1 }
 0x554   :  { %v4948_v23 = vshll.u32 %v13913_v16, 16  ;;  %v4641_v19 = vrot.slane %v4639_v50, 7  ;;  %v4642_v7 = vshll.u32 %v10776_v54, 16  ;;  %v10320_v9 = vcombine.low %v13939_v1, %v4826_v33  ;;  %v4756_v54 = vld [vmem:[#allocation2 + $0x80] sm:$0xf] }
 0x555   :  { %v4623_v32 = vshrl.u32 %v10774_v39, 16  ;;  %5049 = vrot.lane.b32.xlu0 %v4958_v4, %s11983_s24  ;;  %v4626_v49 = vshll.u32 %v10774_v39, 16  ;;  %v4965_v38 = vor.u32 %v4964_v47, %v4960_v36  ;;  %v4944_v59 = vor.u32 %v4943_v20, %v4939_v45  ;;  %v4759_v2 = vld [vmem:[#allocation2 + $0x84] sm:$0x1]  ;;  %v13966_v50 = vld [vmem:[#allocation2 + $0x30] sm:$0xf] }
 0x556   :  { %v4950_v6 = vrot.slane %v4948_v23, 1  ;;  %v4644_v34 = vor.u32 %v4642_v7, %v4641_v19  ;;  %v4645_v51 = vrot.slane %v4641_v19, 4  ;;  %v10318_v21 = vcombine.low %v13945_v10, %v4822_v35  ;;  %v4824_v39 = vld [vmem:[#allocation2 + $0x34] sm:$0x1] }
 0x557   :  { %v4625_v31 = vrot.slane %v4623_v32, 7  ;;  %5051 = vrot.lane.b32.xlu1 %v4965_v38, %s11983_s24  ;;  %v4946_v63 = vshrl.u32 %v13913_v16, 16  ;;  %v4983_v22 = vshll.u32 %v10320_v9, 16  ;;  %v5082_v27 = vrot.slane %v10320_v9, 1 }
 0x558   :  { %v4769_v28 = vsel %vm12781_vm12, %v4644_v34, %v4768_v0  ;;  %v4772_v29 = vsel %vm12245_vm6, %v4645_v51, %v4771_v62  ;;  %v10329_v46 = vcombine.low %v13952_v11, %v4828_v44  ;;  %v4969_v33 = vshll.u32 %v10318_v21, 16  ;;  %v13978_v44 = vld [vmem:[#allocation2 + $0x70] sm:$0xf]  ;;  %v13981_v62 = vld [vmem:[#allocation2 + $0x58] sm:$0xf] }
 0x559   :  { %v4628_v5 = vor.u32 %v4626_v49, %v4625_v31  ;;  %v4629_v24 = vrot.slane %v4625_v31, 4  ;;  %5045 = vrot.lane.b32.xlu0 %v4944_v59, %s11983_s24  ;;  %4770 = vst [vmem:[#allocation2 + $0x90] sm:$0xf] %v4769_v28  ;;  %4773 = vst [vmem:[#allocation2 + $0x94] sm:$0x1] %v4772_v29  ;;  %v4951_v8 = vor.u32 %v4950_v6, %v4946_v63  ;;  %v4985_v17 = vrot.slane %v4983_v22, 1 }
 0x55a   :  { %v4981_v4 = vshrl.u32 %v10320_v9, 16  ;;  %v5080_v36 = vrot.slane %v10318_v21, 1  ;;  %v5216_v47 = vshll.u32 %v10329_v46, 16  ;;  %v10319_v45 = vcombine.low %v13966_v50, %v4824_v39  ;;  %v13974_v59 = vld [vmem:[#allocation2 + $0x68] sm:$0xf] }
 0x55b   :  { %v4757_v16 = vsel %vm12781_vm12, %v4628_v5, %v4756_v54  ;;  %v4760_v58 = vsel %vm12245_vm6, %v4629_v24, %v4759_v2  ;;  %5047 = vrot.lane.b32.xlu1 %v4951_v8, %s11983_s24  ;;  %v4971_v23 = vrot.slane %v4969_v33, 1  ;;  %v4967_v35 = vshrl.u32 %v10318_v21, 16  ;;  %v4838_v9 = vld [vmem:[#allocation2 + $0x6c] sm:$0x1]  ;;  %v4840_v21 = vld [vmem:[#allocation2 + $0x74] sm:$0x1] }
 0x55c   :  { %4758 = vst [vmem:[#allocation2 + $0x80] sm:$0xf] %v4757_v16  ;;  %4761 = vst [vmem:[#allocation2 + $0x84] sm:$0x1] %v4760_v58  ;;  %v4986_v20 = vor.u32 %v4985_v17, %v4981_v4  ;;  %v5231_v19 = vrot.slane %v10329_v46, 1  ;;  %v5218_v7 = vrot.slane %v5216_v47, 1  ;;  %v10324_v31 = vcombine.low %v13974_v59, %v4838_v9 }
 0x55d   :  { %5105 = vrot.lane.b32.xlu0 %v5082_v27, %s11982_s29  ;;  %v4976_v32 = vshll.u32 %v10319_v45, 16  ;;  %v4972_v49 = vor.u32 %v4971_v23, %v4967_v35  ;;  %v5214_v38 = vshrl.u32 %v10329_v46, 16  ;;  %v5081_v51 = vrot.slane %v10319_v45, 1  ;;  %v4834_v63 = vld [vmem:[#allocation2 + $0x5c] sm:$0x1]  ;;  %v11846_v22 = vld [vmem:[%s15729_s4 + $0x148] sm:$0xff]  }
 0x55e   :  { %v4974_v0 = vshrl.u32 %v10319_v45, 16  ;;  %v13990_v28 = vld [vmem:[%s15729_s4 + $0x1a8] sm:$0xff]   ;;  %v10325_v5 = vcombine.low %v13978_v44, %v4840_v21  ;;  %v5086_v24 = vrot.slane %v10324_v31, 1  ;;  %v10322_v54 = vcombine.low %v13981_v62, %v4834_v63  ;;  %v13994_v2 = vld [vmem:[#allocation2 + $0x60] sm:$0xf]  ;;  %11383 = vmatprep.subr.bf16.mxu0 %v11846_v22 }
 0x55f   :  { %5101 = vrot.lane.b32.xlu1 %v5080_v36, %s11982_s29  ;;  %v5219_v6 = vor.u32 %v5218_v7, %v5214_v38  ;;  %v4978_v34 = vrot.slane %v4976_v32, 1  ;;  %v4836_v8 = vld [vmem:[#allocation2 + $0x64] sm:$0x1]  ;;  %v5011_v27 = vshll.u32 %v10324_v31, 16  ;;  %11411 = vmatprep.subr.bf16.mxu1 %v13990_v28  ;;  %v13998_v46 = vld [vmem:[#allocation2 + $0x88] sm:$0xf] }
 0x560   :  { %v4846_v16 = vld [vmem:[#allocation2 + $0x8c] sm:$0x1]  ;;  %11384 = vmatpush3.bf16.msra.mxu0 %v11846_v22  ;;  %v11848_v58 = vld [vmem:[%s15729_s4 + $0x140] sm:$0xff]   ;;  %v5087_v17 = vrot.slane %v10325_v5, 1  ;;  %v10323_v33 = vcombine.low %v13994_v2, %v4836_v8  ;;  %v5018_v39 = vshll.u32 %v10325_v5, 16  ;;  %v5084_v4 = vrot.slane %v10322_v54, 1 }
 0x561   :  { %5057 = vrot.lane.b32.xlu0 %v4986_v20, %s11983_s24  ;;  %v4979_v29 = vor.u32 %v4978_v34, %v4974_v0  ;;  %v5013_v36 = vrot.slane %v5011_v27, 1  ;;  %v4997_v47 = vshll.u32 %v10322_v54, 16  ;;  %v14006_v45 = vcombine.low %v13998_v46, %v4846_v16  ;;  %11385 = vmatprep.subr.bf16.mxu0 %v11848_v58  ;;  %v14009_v20 = vld [vmem:[#allocation2 + $0x78] sm:$0xf]  ;;  %v4842_v23 = vld [vmem:[#allocation2 + $0x7c] sm:$0x1] }
 0x562   :  { %v5009_v35 = vshrl.u32 %v10324_v31, 16  ;;  %v5085_v7 = vrot.slane %v10323_v33, 1  ;;  %v5020_v32 = vrot.slane %v5018_v39, 1  ;;  %v10326_v34 = vcombine.low %v14009_v20, %v4842_v23  ;;  %v4848_v21 = vld [vmem:[#allocation2 + $0x94] sm:$0x1] }
 0x563   :  { %5233 = vrot.lane.b32.xlu1 %v5231_v19, %s11982_s29  ;;  %v11850_v19 = vld [vmem:[%s15729_s4 + $0x138] sm:$0xff]   ;;  %v4999_v9 = vrot.slane %v4997_v47, 1  ;;  %v5016_v31 = vshrl.u32 %v10325_v5, 16  ;;  %v4995_v0 = vshrl.u32 %v10322_v54, 16  ;;  %v5002_v5 = vshrl.u32 %v10323_v33, 16 }
 0x564   :  { %11386 = vmatpush3.bf16.msra.mxu0 %v11848_v58  ;;  %v5014_v38 = vor.u32 %v5013_v36, %v5009_v35  ;;  %v5025_v16 = vshll.u32 %v10326_v34, 16  ;;  %v4844_v58 = vld [vmem:[#allocation2 + $0x84] sm:$0x1]  ;;  %v5037_v54 = vshrl.u32 %v14006_v45, 16  ;;  %v14032_v39 = vld [vmem:[#allocation2] sm:$0xf] }
 0x565   :  { %5053 = vrot.lane.b32.xlu0 %v4972_v49, %s11983_s24  ;;  %v5004_v49 = vshll.u32 %v10323_v33, 16  ;;  %11387 = vmatprep.subr.bf16.mxu0 %v11850_v19  ;;  %v5021_v63 = vor.u32 %v5020_v32, %v5016_v31  ;;  %v5000_v8 = vor.u32 %v4999_v9, %v4995_v0  ;;  %v14039_v32 = vld [vmem:[#allocation2 + $0x48] sm:$0xf] }
 0x567   :  { %5227 = vrot.lane.b32.xlu1 %v5219_v6, %s11983_s24  ;;  %v5039_v6 = vshll.u32 %v14006_v45, 16  ;;  %v5006_v22 = vrot.slane %v5004_v49, 1  ;;  %v11854_v49 = vld [vmem:[%s15729_s4 + $0x128] sm:$0xff]  }
 0x568   :  { %11388 = vmatpush3.bf16.msra.mxu0 %v11850_v19  ;;  %v5027_v19 = vrot.slane %v5025_v16, 1  ;;  %v14051_v16 = vld [vmem:[#allocation2 + $0x50] sm:$0xf] }
 0x569   :  { %5103 = vrot.lane.b32.xlu0 %v5081_v51, %s11982_s29  ;;  %v14017_v51 = vld [vmem:[#allocation2 + $0x90] sm:$0xf]  ;;  %v5041_v27 = vrot.slane %v5039_v6, 1  ;;  %v5007_v36 = vor.u32 %v5006_v22, %v5002_v5  ;;  %v11856_v22 = vld [vmem:[%s15729_s4 + $0x120] sm:$0xff]  }
 0x56b   :  { %5055 = vrot.lane.b32.xlu1 %v4979_v29, %s11983_s24  ;;  %v14022_v29 = vcombine.low %v14017_v51, %v4848_v21  ;;  %v5042_v35 = vor.u32 %v5041_v27, %v5037_v54  ;;  %v4830_v21 = vld [vmem:[#allocation2 + $0x4c] sm:$0x1] }
 0x56d   :  { %5113 = vrot.lane.b32.xlu0 %v5086_v24, %s11982_s29  ;;  %v14024_v24 = vld [vmem:[#allocation2 + $0x80] sm:$0xf]  ;;  %v5223_v47 = vshll.u32 %v14022_v29, 16  ;;  %v5221_v0 = vshrl.u32 %v14022_v29, 16 }
 0x56e   :  { %v10327_v23 = vcombine.low %v14024_v24, %v4844_v58  ;;  %v4832_v58 = vld [vmem:[#allocation2 + $0x54] sm:$0x1] }
 0x56f   :  { %5115 = vrot.lane.b32.xlu1 %v5087_v17, %s11982_s29  ;;  %v11852_v17 = vld [vmem:[%s15729_s4 + $0x130] sm:$0xff]   ;;  %v5225_v9 = vrot.slane %v5223_v47, 1  ;;  %v10321_v47 = vcombine.low %v14051_v16, %v4832_v58 }
 0x570   :  { %11389 = vmatprep.subr.bf16.mxu0 %v11852_v17  ;;  %v5032_v6 = vshll.u32 %v10327_v23, 16  ;;  %v5030_v5 = vshrl.u32 %v10327_v23, 16 }
 0x571   :  { %5109 = vrot.lane.b32.xlu0 %v5084_v4, %s11982_s29  ;;  %v4812_v4 = vld [vmem:[#allocation2 + $0x4] sm:$0x1]  ;;  %11390 = vmatpush3.bf16.msra.mxu0 %v11852_v17  ;;  %v5089_v17 = vrot.slane %v10327_v23, 1 }
 0x572   :  { %v10313_v33 = vcombine.low %v14032_v39, %v4812_v4  ;;  %11391 = vmatprep.subr.bf16.mxu0 %v11854_v49  ;;  %v5034_v27 = vrot.slane %v5032_v6, 1  ;;  %v4990_v6 = vshll.u32 %v10321_v47, 16 }
 0x573   :  { %5111 = vrot.lane.b32.xlu1 %v5085_v7, %s11982_s29  ;;  %v5023_v7 = vshrl.u32 %v10326_v34, 16 }
 0x574   :  { %v4932_v54 = vshrl.u32 %v10313_v33, 16 }
 0x575   :  { %5065 = vrot.lane.b32.xlu0 %v5014_v38, %s11983_s24  ;;  %v5088_v38 = vrot.slane %v10326_v34, 1  ;;  %v5028_v31 = vor.u32 %v5027_v19, %v5023_v7  ;;  %11392 = vmatpush3.bf16.msra.mxu0 %v11854_v49  ;;  %v5226_v34 = vor.u32 %v5225_v9, %v5221_v0  ;;  %v14056_v19 = vld [vmem:[#allocation2 + $0x98] sm:$0xf]  ;;  %v4850_v7 = vld [vmem:[#allocation2 + $0x9c] sm:$0x1]  ;;  %v5090_v49 = vrot.slane %v14006_v45, 1 }
 0x576   :  { %11393 = vmatprep.subr.bf16.mxu0 %v11856_v22  ;;  %v5075_v0 = vrot.slane %v10313_v33, 1  ;;  %v4992_v45 = vrot.slane %v4990_v6, 1 }
 0x577   :  { %5067 = vrot.lane.b32.xlu1 %v5021_v63, %s11983_s24  ;;  %v4934_v63 = vshll.u32 %v10313_v33, 16 }
 0x579   :  { %5061 = vrot.lane.b32.xlu0 %v5000_v8, %s11983_s24  ;;  %v10375_v8 = vcombine.low %v14039_v32, %v4830_v21  ;;  %v4936_v4 = vrot.slane %v4934_v63, 1  ;;  %11394 = vmatpush3.bf16.msra.mxu0 %v11856_v22  ;;  %v10376_v21 = vcombine.low %v14056_v19, %v4850_v7  ;;  %v4988_v22 = vshrl.u32 %v10321_v47, 16 }
 0x57b   :  { %5063 = vrot.lane.b32.xlu1 %v5007_v36, %s11983_s24  ;;  %v5626_v36 = vshll.u32 %v10375_v8, 16  ;;  %v5624_v23 = vshrl.u32 %v10375_v8, 16  ;;  %v4993_v58 = vor.u32 %v4992_v45, %v4988_v22 }
 0x57d   :  { %5073 = vrot.lane.b32.xlu0 %v5042_v35, %s11983_s24  ;;  %v5035_v35 = vor.u32 %v5034_v27, %v5030_v5  ;;  %v5628_v9 = vrot.slane %v5626_v36, 1  ;;  %v5641_v27 = vrot.slane %v10375_v8, 1 }
 0x57f   :  { %5117 = vrot.lane.b32.xlu1 %v5088_v38, %s11982_s29  ;;  %v4937_v38 = vor.u32 %v4936_v4, %v4932_v54  ;;  %v5629_v63 = vor.u32 %v5628_v9, %v5624_v23  ;;  %v5642_v54 = vrot.slane %v10376_v21, 1 }
 0x581   :  { %5069 = vrot.lane.b32.xlu0 %v5028_v31, %s11983_s24  ;;  %v5232_v31 = vrot.slane %v14022_v29, 1  ;;  %v5083_v29 = vrot.slane %v10321_v47, 1 }
 0x583   :  { %5229 = vrot.lane.b32.xlu1 %v5226_v34, %s11983_s24  ;;  %v5633_v34 = vshll.u32 %v10376_v21, 16 }
 0x585   :  { %5119 = vrot.lane.b32.xlu0 %v5089_v17, %s11982_s29  ;;  %v5631_v17 = vshrl.u32 %v10376_v21, 16  ;;  %v5635_v5 = vrot.slane %v5633_v34, 1 }
 0x587   :  { %5071 = vrot.lane.b32.xlu1 %v5035_v35, %s11983_s24  ;;  %v5636_v33 = vor.u32 %v5635_v5, %v5631_v17 }
 0x589   :  { %5121 = vrot.lane.b32.xlu0 %v5090_v49, %s11982_s29 }
 0x58b   :  { %5235 = vrot.lane.b32.xlu1 %v5232_v31, %s11982_s29 }
 0x58d   :  { %5043 = vrot.lane.b32.xlu0 %v4937_v38, %s11983_s24 }
 0x58f   :  { %5091 = vrot.lane.b32.xlu1 %v5075_v0, %s11982_s29 }
 0x591   :  { %5637 = vrot.lane.b32.xlu0 %v5629_v63, %s11983_s24 }
 0x593   :  { %5643 = vrot.lane.b32.xlu1 %v5641_v27, %s11982_s29 }
 0x595   :  { %5059 = vrot.lane.b32.xlu0 %v4993_v58, %s11983_s24  ;;  %v11851_v58 = vld [vmem:[%s15729_s4 + $0x198] sm:$0xff]  }
 0x597   :  { %5107 = vrot.lane.b32.xlu1 %v5083_v29, %s11982_s29  ;;  %v11853_v29 = vld [vmem:[%s15729_s4 + $0x190] sm:$0xff]  }
 0x599   :  { %5639 = vrot.lane.b32.xlu0 %v5636_v33, %s11983_s24 }
 0x59b   :  { %5645 = vrot.lane.b32.xlu1 %v5642_v54, %s11982_s29 }
 0x5bd   :  { %v5098_v4 = vpop.permute.xlu0 %5097 }
 0x5c1   :  { %v5100_v8 = vpop.permute.xlu1 %5099  ;;  %v5094_v36 = vpop.permute.xlu0 %5093 }
 0x5c5   :  { %v5096_v35 = vpop.permute.xlu1 %5095 }
 0x5c7   :  { %v5050_v7 = vpop.permute.xlu0 %5049 }
 0x5c8   :  { %v5134_v9 = vsel %vm820_vm9, %v13863_v18, %v5050_v7 }
 0x5c9   :  { %v5052_v49 = vpop.permute.xlu1 %5051 }
 0x5ca   :  { %v5137_v47 = vsel %vm820_vm9, %v13878_v52, %v5052_v49  ;;  %v14090_v52 = vsel %vm869_vm10, %v5134_v9, %v5098_v4 }
 0x5cb   :  { %v5046_v38 = vpop.permute.xlu0 %5045  ;;  %v14079_v21 = vsel %vm869_vm10, %v5137_v47, %v5100_v8 }
 0x5cc   :  { %v5128_v23 = vsel %vm820_vm9, %v13869_v3, %v5046_v38  ;;  %v10332_v3 = vcombine.low %v14090_v52, %v14079_v21 }
 0x5cd   :  { %v5048_v6 = vpop.permute.xlu1 %5047  ;;  %v14084_v63 = vsel %vm869_vm10, %v5128_v23, %v5094_v36  ;;  %v11855_v36 = vld [vmem:[%s15729_s4 + $0x188] sm:$0xff]  }
 0x5ce   :  { %v5131_v31 = vsel %vm820_vm9, %v13902_v48, %v5048_v6  ;;  %v11849_v48 = vld [vmem:[%s15729_s4 + $0x1a0] sm:$0xff]  }
 0x5cf   :  { %v5106_v0 = vpop.permute.xlu0 %5105  ;;  %v14087_v22 = vsel %vm869_vm10, %v5131_v31, %v5096_v35 }
 0x5d0   :  { %v10331_v18 = vcombine.low %v14084_v63, %v14087_v22 }
 0x5d1   :  { %v5102_v45 = vpop.permute.xlu1 %5101 }
 0x5d2   :  { %11367 = vmatprep.mubr.msk.bf16.mxu1 %vm1022_vm11, %v10331_v18 }
 0x5d3   :  { %v5058_v34 = vpop.permute.xlu0 %5057  ;;  %11368 = vmatmul.mubr.msk.bf16.vlgmr.msra.gmra.mxu1 %vm1022_vm11, %v10332_v3 }
 0x5d4   :  { %11412 = vmatpush3.bf16.msra.mxu1 %v13990_v28  ;;  %v5146_v4 = vsel %vm820_vm9, %v13939_v1, %v5058_v34 }
 0x5d5   :  { %v5234_v27 = vpop.permute.xlu1 %5233  ;;  %11413 = vmatprep.subr.bf16.mxu1 %v11849_v48  ;;  %v14127_v1 = vsel %vm869_vm10, %v5146_v4, %v5106_v0 }
 0x5d7   :  { %v5054_v17 = vpop.permute.xlu0 %5053 }
 0x5d8   :  { %11414 = vmatpush3.bf16.msra.mxu1 %v11849_v48  ;;  %v5140_v28 = vsel %vm820_vm9, %v13945_v10, %v5054_v17 }
 0x5d9   :  { %v5228_v5 = vpop.permute.xlu1 %5227  ;;  %11415 = vmatprep.subr.bf16.mxu1 %v11851_v58  ;;  %v5182_v49 = vsel %vm869_vm10, %v5140_v28, %v5102_v45 }
 0x5da   :  { %v5239_v54 = vsel %vm820_vm9, %v13952_v11, %v5228_v5 }
 0x5db   :  { %v5104_v33 = vpop.permute.xlu0 %5103  ;;  %v14118_v35 = vsel %vm869_vm10, %v5239_v54, %v5234_v27 }
 0x5dc   :  { %11416 = vmatpush3.bf16.msra.mxu1 %v11851_v58  ;;  %v10334_v47 = vcombine.low %v14127_v1, %v14118_v35 }
 0x5dd   :  { %v5056_v8 = vpop.permute.xlu1 %5055  ;;  %11417 = vmatprep.subr.bf16.mxu1 %v11853_v29 }
 0x5de   :  { %v5143_v7 = vsel %vm820_vm9, %v13966_v50, %v5056_v8  ;;  %v11857_v50 = vld [vmem:[%s15729_s4 + $0x180] sm:$0xff]  }
 0x5df   :  { %v5114_v11 = vpop.permute.xlu0 %5113  ;;  %v14124_v10 = vsel %vm869_vm10, %v5143_v7, %v5104_v33 }
 0x5e0   :  { %v10333_v38 = vcombine.low %v5182_v49, %v14124_v10  ;;  %11418 = vmatpush3.bf16.msra.mxu1 %v11853_v29 }
 0x5e1   :  { %v5116_v23 = vpop.permute.xlu1 %5115  ;;  %11419 = vmatprep.subr.bf16.mxu1 %v11855_v36 }
 0x5e2   :  { %11371 = vmatprep.mubr.msk.bf16.mxu1 %vm1022_vm11, %v10333_v38 }
 0x5e3   :  { %v5110_v9 = vpop.permute.xlu0 %5109  ;;  %11372 = vmatmul.mubr.msk.bf16.gmra.mxu1 %vm1022_vm11, %v10334_v47 }
 0x5e4   :  { %11420 = vmatpush3.bf16.msra.mxu1 %v11855_v36 }
 0x5e5   :  { %v5112_v6 = vpop.permute.xlu1 %5111  ;;  %11421 = vmatprep.subr.bf16.mxu1 %v11857_v50 }
 0x5e7   :  { %v5066_v31 = vpop.permute.xlu0 %5065 }
 0x5e8   :  { %11422 = vmatpush3.bf16.msra.mxu1 %v11857_v50  ;;  %v5158_v48 = vsel %vm820_vm9, %v13974_v59, %v5066_v31 }
 0x5e9   :  { %v5068_v0 = vpop.permute.xlu1 %5067  ;;  %v5194_v33 = vsel %vm869_vm10, %v5158_v48, %v5114_v11  ;;  %v10355_v48 = vcombine.low %v14079_v21, %v5182_v49 }
 0x5ea   :  { %v5161_v3 = vsel %vm820_vm9, %v13978_v44, %v5068_v0 }
 0x5eb   :  { %v5062_v18 = vpop.permute.xlu0 %5061  ;;  %v5196_v27 = vsel %vm869_vm10, %v5161_v3, %v5116_v23 }
 0x5ec   :  { %v5152_v45 = vsel %vm820_vm9, %v13981_v62, %v5062_v18  ;;  %v10336_v54 = vcombine.low %v5194_v33, %v5196_v27  ;;  %v10354_v18 = vcombine.low %v14087_v22, %v14090_v52  ;;  %v10356_v52 = vcombine.low %v14124_v10, %v14127_v1 }
 0x5ed   :  { %v5064_v34 = vpop.permute.xlu1 %5063  ;;  %v5190_v5 = vsel %vm869_vm10, %v5152_v45, %v5110_v9 }
 0x5ee   :  { %v5155_v58 = vsel %vm820_vm9, %v13994_v2, %v5064_v34 }
 0x5ef   :  { %v5074_v17 = vpop.permute.xlu0 %5073  ;;  %v5192_v29 = vsel %vm869_vm10, %v5155_v58, %v5112_v6 }
 0x5f0   :  { %v10335_v44 = vcombine.low %v5190_v5, %v5192_v29  ;;  %v5170_v23 = vsel %vm820_vm9, %v13998_v46, %v5074_v17  ;;  %v10358_v10 = vcombine.low %v5192_v29, %v5194_v33 }
 0x5f1   :  { %v5118_v28 = vpop.permute.xlu1 %5117 }
 0x5f2   :  { %11375 = vmatprep.mubr.msk.bf16.mxu1 %vm1022_vm11, %v10335_v44 }
 0x5f3   :  { %v5070_v62 = vpop.permute.xlu0 %5069  ;;  %11376 = vmatmul.mubr.msk.bf16.gmra.mxu1 %vm1022_vm11, %v10336_v54 }
 0x5f4   :  { %v5164_v2 = vsel %vm820_vm9, %v14009_v20, %v5070_v62 }
 0x5f5   :  { %v5230_v59 = vpop.permute.xlu1 %5229  ;;  %v5198_v11 = vsel %vm869_vm10, %v5164_v2, %v5118_v28 }
 0x5f6   :  { %v5242_v50 = vsel %vm820_vm9, %v14017_v51, %v5230_v59 }
 0x5f7   :  { %v5120_v4 = vpop.permute.xlu0 %5119 }
 0x5f9   :  { %v5072_v8 = vpop.permute.xlu1 %5071 }
 0x5fa   :  { %v5167_v36 = vsel %vm820_vm9, %v14024_v24, %v5072_v8 }
 0x5fb   :  { %v5122_v7 = vpop.permute.xlu0 %5121  ;;  %v5200_v38 = vsel %vm869_vm10, %v5167_v36, %v5120_v4 }
 0x5fc   :  { %v10337_v47 = vcombine.low %v5198_v11, %v5200_v38  ;;  %v5202_v6 = vsel %vm869_vm10, %v5170_v23, %v5122_v7 }
 0x5fd   :  { %v5236_v9 = vpop.permute.xlu1 %5235  ;;  %v10360_v44 = vcombine.low %v5200_v38, %v5202_v6 }
 0x5fe   :  { %v5246_v20 = vsel %vm869_vm10, %v5242_v50, %v5236_v9  ;;  %11379 = vmatprep.mubr.msk.bf16.mxu1 %vm1022_vm11, %v10337_v47 }
 0x5ff   :  { %v5044_v24 = vpop.permute.xlu0 %5043  ;;  %v10338_v31 = vcombine.low %v5202_v6, %v5246_v20 }
 0x600   :  { %v5125_v0 = vsel %vm820_vm9, %v14032_v39, %v5044_v24 }
 0x601   :  { %v5092_v3 = vpop.permute.xlu1 %5091  ;;  %11380 = vmatmul.mubr.msk.bf16.gmra.mxu1 %vm1022_vm11, %v10338_v31 }
 0x602   :  { %v5172_v46 = vsel %vm869_vm10, %v5125_v0, %v5092_v3  ;;  %11423 = vmatprep.mubr.msk.bf16.mxu1 %vm1022_vm11, %v10354_v18  ;;  %v14219_v0 = vld [vmem:[%s15730_s5 + $0x2] ss:$0 sm:$0xff] }
 0x603   :  { %v5638_v51 = vpop.permute.xlu0 %5637  ;;  %v10353_v45 = vcombine.low %v5172_v46, %v14084_v63  ;;  %v11878_v46 = vld [vmem:[%s15729_s4 + $0x208] sm:$0xff]  }
 0x604   :  { %v5649_v58 = vsel %vm820_vm9, %v14039_v32, %v5638_v51  ;;  %v10359_v32 = vcombine.low %v5196_v27, %v5198_v11  ;;  %v14227_v51 = vld [vmem:[%s15731_s6 + $0x2] ss:$0 sm:$0xff]  ;;  %11439 = vmatprep.subr.bf16.mxu0 %v11878_v46 }
 0x605   :  { %v5644_v34 = vpop.permute.xlu1 %5643  ;;  %11395 = vmatprep.mubr.msk.bf16.mxu0 %vm1022_vm11, %v10353_v45 }
 0x606   :  { %11396 = vmatmul.mubr.msk.bf16.vlgmr.msra.gmra.mxu0 %vm1022_vm11, %v10354_v18  ;;  %v5654_v49 = vsel %vm869_vm10, %v5649_v58, %v5644_v34 }
 0x607   :  { %v5060_v39 = vpop.permute.xlu0 %5059  ;;  %11399 = vmatprep.mubr.msk.bf16.mxu0 %vm1022_vm11, %v10355_v48  ;;  %11440 = vmatpush3.bf16.msra.mxu0 %v11878_v46 }
 0x608   :  { %v5149_v22 = vsel %vm820_vm9, %v14051_v16, %v5060_v39  ;;  %v10377_v16 = vcombine.low %v14118_v35, %v5654_v49 }
 0x609   :  { %v5108_v63 = vpop.permute.xlu1 %5107  ;;  %11424 = vmatmul.mubr.msk.bf16.vlgmr.msra.gmra.mxu1 %vm1022_vm11, %v10355_v48 }
 0x60a   :  { %v5188_v21 = vsel %vm869_vm10, %v5149_v22, %v5108_v63  ;;  %11427 = vmatprep.mubr.msk.bf16.mxu1 %vm1022_vm11, %v10356_v52 }
 0x60b   :  { %v10357_v17 = vcombine.low %v5188_v21, %v5190_v5  ;;  %v5640_v1 = vpop.permute.xlu0 %5639 }
 0x60c   :  { %v5652_v5 = vsel %vm820_vm9, %v14056_v19, %v5640_v1 }
 0x60d   :  { %v5646_v54 = vpop.permute.xlu1 %5645 }
 0x60e   :  { %11400 = vmatmul.mubr.msk.bf16.gmra.mxu0 %vm1022_vm11, %v10356_v52  ;;  %v5656_v35 = vsel %vm869_vm10, %v5652_v5, %v5646_v54 }
 0x60f   :  { %11403 = vmatprep.mubr.msk.bf16.mxu0 %vm1022_vm11, %v10357_v17  ;;  %v10378_v29 = vcombine.low %v5246_v20, %v5656_v35 }
 0x611   :  { %11428 = vmatmul.mubr.msk.bf16.gmra.mxu1 %vm1022_vm11, %v10377_v16 }
 0x612   :  { %11431 = vmatprep.mubr.msk.bf16.mxu1 %vm1022_vm11, %v10358_v10 }
 0x616   :  { %11404 = vmatmul.mubr.msk.bf16.gmra.mxu0 %vm1022_vm11, %v10358_v10 }
 0x617   :  { %11407 = vmatprep.mubr.msk.bf16.mxu0 %vm1022_vm11, %v10359_v32 }
 0x619   :  { %11432 = vmatmul.mubr.msk.bf16.gmra.mxu1 %vm1022_vm11, %v10359_v32 }
 0x61a   :  { %11435 = vmatprep.mubr.msk.bf16.mxu1 %vm1022_vm11, %v10360_v44 }
 0x61e   :  { %11408 = vmatmul.mubr.msk.bf16.gmra.mxu0 %vm1022_vm11, %v10360_v44 }
 0x621   :  { %11436 = vmatmul.mubr.msk.bf16.gmra.mxu1 %vm1022_vm11, %v10378_v29 }
 0x693   :  { %v11369_v27 = vpop.f32.mrf.mxu1 }
 0x695   :  { %v5381_v33 = vpop.f32.mrf.mxu1 }
 0x697   :  { %v11370_v28 = vpop.f32.mrf.mxu1 }
 0x699   :  { %v5384_v62 = vpop.f32.mrf.mxu1 }
 0x6a3   :  { %v11373_v59 = vpop.f32.mrf.mxu1 }
 0x6a5   :  { %v5397_v4 = vpop.f32.mrf.mxu1 }
 0x6a7   :  { %v11374_v2 = vpop.f32.mrf.mxu1 }
 0x6a9   :  { %v5400_v19 = vpop.f32.mrf.mxu1 }
 0x6b3   :  { %v14200_v8 = vpop.f32.mrf.mxu1 }
 0x6b5   :  { %v14202_v36 = vpop.f32.mrf.mxu1 }
 0x6b7   :  { %v14204_v7 = vpop.f32.mrf.mxu1 }
 0x6b9   :  { %v14206_v11 = vpop.f32.mrf.mxu1 }
 0x6c1   :  { %v14208_v38 = vpop.f32.mrf.mxu1 }
 0x6c3   :  { %v14210_v47 = vpop.f32.mrf.mxu1 }
 0x6c5   :  { %v14212_v23 = vpop.f32.mrf.mxu1 }
 0x6c6   :  { %v11397_v50 = vpop.f32.mrf.mxu0 }
 0x6c7   :  { %v5559_v9 = vadd.f32 %v11397_v50, %v11369_v27  ;;  %v14214_v6 = vpop.f32.mrf.mxu1 }
 0x6c8   :  { %v5550_v20 = vpop.f32.mrf.mxu0 }
 0x6c9   :  { %v5551_v24 = vadd.f32 %v5550_v20, %v5381_v33  ;;  %v11425_v31 = vpop.f32.mrf.mxu1 }
 0x6ca   :  { %v5804_v18 = vadd.f32 %v11425_v31, %v5559_v9  ;;  %v11398_v3 = vpop.f32.mrf.mxu0 }
 0x6cb   :  { %v5562_v45 = vadd.f32 %v11398_v3, %v11370_v28  ;;  %v5739_v48 = vpop.f32.mrf.mxu1 }
 0x6cc   :  { %v5828_v34 = vmul.f32 %v14219_v0, %v5804_v18  ;;  %v5802_v39 = vadd.f32 %v5739_v48, %v5551_v24  ;;  %v5553_v22 = vpop.f32.mrf.mxu0 }
 0x6cd   :  { %v5554_v52 = vadd.f32 %v5553_v22, %v5384_v62  ;;  %v11426_v58 = vpop.f32.mrf.mxu1 }
 0x6ce   :  { %v5852_v63 = vadd.f32 %v14227_v51, %v5828_v34  ;;  %v5826_v21 = vmul.f32 %v14219_v0, %v5802_v39  ;;  %v5805_v49 = vadd.f32 %v11426_v58, %v5562_v45  ;;  %v11401_v17 = vpop.f32.mrf.mxu0 }
 0x6cf   :  { %v5575_v16 = vadd.f32 %v11401_v17, %v11373_v59  ;;  %v5742_v10 = vpop.f32.mrf.mxu1 }
 0x6d0   :  { %v5868_v32 = vmax.f32 %v5852_v63, 0.0  ;;  %v5850_v1 = vadd.f32 %v14227_v51, %v5826_v21  ;;  %v5829_v44 = vmul.f32 %v14219_v0, %v5805_v49  ;;  %v5803_v5 = vadd.f32 %v5742_v10, %v5554_v52  ;;  %v5566_v54 = vpop.f32.mrf.mxu0 }
 0x6d1   :  { %v5567_v35 = vadd.f32 %v5566_v54, %v5397_v4  ;;  %v11429_v29 = vpop.f32.mrf.mxu1 }
 0x6d2   :  { %v10779_v27 = vpack.c.bf16 %v5868_v32, %v5868_v32  ;;  %v5866_v33 = vmax.f32 %v5850_v1, 0.0  ;;  %v5853_v28 = vadd.f32 %v14227_v51, %v5829_v44  ;;  %v5827_v62 = vmul.f32 %v14219_v0, %v5803_v5  ;;  %v11402_v50 = vpop.f32.mrf.mxu0 }
 0x6d3   :  { %v5808_v9 = vadd.f32 %v11429_v29, %v5575_v16  ;;  %v5578_v20 = vadd.f32 %v11402_v50, %v11374_v2  ;;  %v5755_v59 = vpop.f32.mrf.mxu1 }
 0x6d4   :  { %v5963_v24 = vshrl.u32 %v10779_v27, 16  ;;  %v5966_v31 = vshll.u32 %v10779_v27, 16  ;;  %v10777_v18 = vpack.c.bf16 %v5866_v33, %v5866_v33  ;;  %v5869_v3 = vmax.f32 %v5853_v28, 0.0  ;;  %v5569_v46 = vpop.f32.mrf.mxu0 }
 0x6d5   :  { %v5851_v45 = vadd.f32 %v14227_v51, %v5827_v62  ;;  %v5832_v4 = vmul.f32 %v14219_v0, %v5808_v9  ;;  %v5806_v48 = vadd.f32 %v5755_v59, %v5567_v35  ;;  %v14238_v34 = vadd.f32 %v5569_v46, %v5400_v19  ;;  %v11430_v39 = vpop.f32.mrf.mxu1  ;;  %v6118_v19 = vld [vmem:[#allocation3 + $0x18] sm:$0xf]  ;;  %v6121_v35 = vld [vmem:[#allocation3 + $0x1c] sm:$0x1] }
 0x6d6   :  { %v5965_v22 = vrot.slane %v5963_v24, 7  ;;  %v5947_v52 = vshrl.u32 %v10777_v18, 16  ;;  %v5950_v58 = vshll.u32 %v10777_v18, 16  ;;  %v10780_v63 = vpack.c.bf16 %v5869_v3, %v5869_v3  ;;  %v11405_v21 = vpop.f32.mrf.mxu0  ;;  %v6106_v24 = vld [vmem:[#allocation3 + $0x8] sm:$0xf] }
 0x6d7   :  { %v5867_v2 = vmax.f32 %v5851_v45, 0.0  ;;  %v5856_v49 = vadd.f32 %v14227_v51, %v5832_v4  ;;  %v5830_v17 = vmul.f32 %v14219_v0, %v5806_v48  ;;  %v5809_v16 = vadd.f32 %v11430_v39, %v5578_v20  ;;  %v5758_v10 = vpop.f32.mrf.mxu1  ;;  %v6109_v18 = vld [vmem:[#allocation3 + $0xc] sm:$0x1] }
 0x6d8   :  { %v5968_v32 = vor.u32 %v5966_v31, %v5965_v22  ;;  %v5969_v1 = vrot.slane %v5965_v22, 4  ;;  %v5949_v44 = vrot.slane %v5947_v52, 7  ;;  %v5971_v5 = vshrl.u32 %v10780_v63, 16  ;;  %v5582_v54 = vpop.f32.mrf.mxu0 }
 0x6d9   :  { %v5974_v29 = vshll.u32 %v10780_v63, 16  ;;  %v10778_v27 = vpack.c.bf16 %v5867_v2, %v5867_v2  ;;  %v5872_v33 = vmax.f32 %v5856_v49, 0.0  ;;  %v5854_v28 = vadd.f32 %v14227_v51, %v5830_v17  ;;  %v11433_v62 = vpop.f32.mrf.mxu1 }
 0x6da   :  { %v6119_v50 = vsel %vm12781_vm12, %v5968_v32, %v6118_v19  ;;  %v6122_v9 = vsel %vm12245_vm6, %v5969_v1, %v6121_v35  ;;  %v5952_v20 = vor.u32 %v5950_v58, %v5949_v44  ;;  %v5953_v59 = vrot.slane %v5949_v44, 4  ;;  %v11406_v31 = vpop.f32.mrf.mxu0  ;;  %v6124_v1 = vld [vmem:[#allocation3 + $0x20] sm:$0xf]  ;;  %v6127_v44 = vld [vmem:[#allocation3 + $0x24] sm:$0x1] }
 0x6db   :  { %6120 = vst [vmem:[#allocation3 + $0x18] sm:$0xf] %v6119_v50  ;;  %6123 = vst [vmem:[#allocation3 + $0x1c] sm:$0x1] %v6122_v9  ;;  %v5973_v3 = vrot.slane %v5971_v5, 7  ;;  %v5955_v46 = vshrl.u32 %v10778_v27, 16  ;;  %v10783_v4 = vpack.c.bf16 %v5872_v33, %v5872_v33  ;;  %v5771_v48 = vpop.f32.mrf.mxu1  ;;  %v5833_v58 = vmul.f32 %v14219_v0, %v5809_v16 }
 0x6dc   :  { %v5958_v45 = vshll.u32 %v10778_v27, 16  ;;  %v6107_v39 = vsel %vm12781_vm12, %v5952_v20, %v6106_v24  ;;  %v6110_v22 = vsel %vm12245_vm6, %v5953_v59, %v6109_v18  ;;  %v5870_v52 = vmax.f32 %v5854_v28, 0.0  ;;  %v5585_v32 = vpop.f32.mrf.mxu0  ;;  %v6112_v9 = vld [vmem:[#allocation3 + $0x10] sm:$0xf]  ;;  %v6115_v20 = vld [vmem:[#allocation3 + $0x14] sm:$0x1] }
 0x6dd   :  { %6108 = vst [vmem:[#allocation3 + $0x8] sm:$0xf] %v6107_v39  ;;  %6111 = vst [vmem:[#allocation3 + $0xc] sm:$0x1] %v6110_v22  ;;  %v5976_v63 = vor.u32 %v5974_v29, %v5973_v3  ;;  %v5977_v2 = vrot.slane %v5973_v3, 4  ;;  %v5957_v49 = vrot.slane %v5955_v46, 7  ;;  %v5857_v35 = vadd.f32 %v14227_v51, %v5833_v58  ;;  %v11434_v33 = vpop.f32.mrf.mxu1 }
 0x6de   :  { %v5995_v17 = vshrl.u32 %v10783_v4, 16  ;;  %v5998_v5 = vshll.u32 %v10783_v4, 16  ;;  %v10781_v19 = vpack.c.bf16 %v5870_v52, %v5870_v52  ;;  %v5591_v27 = vadd.f32 %v11405_v21, %v14200_v8 }
 0x6df   :  { %v6125_v28 = vsel %vm12781_vm12, %v5976_v63, %v6124_v1  ;;  %v6128_v16 = vsel %vm12245_vm6, %v5977_v2, %v6127_v44  ;;  %v5960_v29 = vor.u32 %v5958_v45, %v5957_v49  ;;  %v5961_v50 = vrot.slane %v5957_v49, 4  ;;  %v11409_v45 = vpop.f32.mrf.mxu0  ;;  %v5774_v63 = vpop.f32.mrf.mxu1  ;;  %v6142_v2 = vld [vmem:[#allocation3 + $0x38] sm:$0xf]  ;;  %v6145_v49 = vld [vmem:[#allocation3 + $0x3c] sm:$0x1] }
 0x6e0   :  { %6126 = vst [vmem:[#allocation3 + $0x20] sm:$0xf] %v6125_v28  ;;  %6129 = vst [vmem:[#allocation3 + $0x24] sm:$0x1] %v6128_v16  ;;  %v5997_v59 = vrot.slane %v5995_v17, 7  ;;  %v5979_v24 = vshrl.u32 %v10781_v19, 16  ;;  %v5807_v46 = vadd.f32 %v5758_v10, %v14238_v34  ;;  %v5583_v4 = vadd.f32 %v5582_v54, %v14202_v36 }
 0x6e1   :  { %v5982_v18 = vshll.u32 %v10781_v19, 16  ;;  %v5873_v3 = vmax.f32 %v5857_v35, 0.0  ;;  %v6113_v8 = vsel %vm12781_vm12, %v5960_v29, %v6112_v9  ;;  %v6116_v21 = vsel %vm12245_vm6, %v5961_v50, %v6115_v20  ;;  %v6133_v35 = vld [vmem:[#allocation3 + $0x2c] sm:$0x1]  ;;  %v11437_v9 = vpop.f32.mrf.mxu1 }
 0x6e2   :  { %6114 = vst [vmem:[#allocation3 + $0x10] sm:$0xf] %v6113_v8  ;;  %6117 = vst [vmem:[#allocation3 + $0x14] sm:$0x1] %v6116_v21  ;;  %v6000_v39 = vor.u32 %v5998_v5, %v5997_v59  ;;  %v6001_v22 = vrot.slane %v5997_v59, 4  ;;  %v5981_v52 = vrot.slane %v5979_v24, 7  ;;  %v5831_v17 = vmul.f32 %v14219_v0, %v5807_v46 }
 0x6e3   :  { %v10784_v58 = vpack.c.bf16 %v5873_v3, %v5873_v3  ;;  %v5812_v1 = vadd.f32 %v11433_v62, %v5591_v27  ;;  %v5594_v44 = vadd.f32 %v11406_v31, %v14204_v7  ;;  %v5810_v19 = vadd.f32 %v5771_v48, %v5583_v4  ;;  %v6130_v5 = vld [vmem:[#allocation3 + $0x28] sm:$0xf]  ;;  %v5598_v7 = vpop.f32.mrf.mxu0 }
 0x6e4   :  { %v6143_v34 = vsel %vm12781_vm12, %v6000_v39, %v6142_v2  ;;  %v6146_v36 = vsel %vm12245_vm6, %v6001_v22, %v6145_v49  ;;  %v5984_v10 = vor.u32 %v5982_v18, %v5981_v52  ;;  %v5985_v54 = vrot.slane %v5981_v52, 4 }
 0x6e5   :  { %6144 = vst [vmem:[#allocation3 + $0x38] sm:$0xf] %v6143_v34  ;;  %6147 = vst [vmem:[#allocation3 + $0x3c] sm:$0x1] %v6146_v36  ;;  %v6003_v28 = vshrl.u32 %v10784_v58, 16  ;;  %v6006_v16 = vshll.u32 %v10784_v58, 16  ;;  %v5855_v29 = vadd.f32 %v14227_v51, %v5831_v17  ;;  %v5836_v62 = vmul.f32 %v14219_v0, %v5812_v1  ;;  %v5787_v1 = vpop.f32.mrf.mxu1 }
 0x6e6   :  { %v6131_v31 = vsel %vm12781_vm12, %v5984_v10, %v6130_v5  ;;  %v6134_v48 = vsel %vm12245_vm6, %v5985_v54, %v6133_v35  ;;  %v5834_v27 = vmul.f32 %v14219_v0, %v5810_v19  ;;  %v5586_v50 = vadd.f32 %v5585_v32, %v14206_v11  ;;  %v6148_v11 = vld [vmem:[#allocation3 + $0x40] sm:$0xf]  ;;  %v6151_v32 = vld [vmem:[#allocation3 + $0x44] sm:$0x1] }
 0x6e7   :  { %6132 = vst [vmem:[#allocation3 + $0x28] sm:$0xf] %v6131_v31  ;;  %6135 = vst [vmem:[#allocation3 + $0x2c] sm:$0x1] %v6134_v48  ;;  %v6005_v20 = vrot.slane %v6003_v28, 7  ;;  %v5871_v59 = vmax.f32 %v5855_v29, 0.0  ;;  %v5860_v24 = vadd.f32 %v14227_v51, %v5836_v62  ;;  %v5813_v18 = vadd.f32 %v11434_v33, %v5594_v44  ;;  %v11410_v33 = vpop.f32.mrf.mxu0 }
 0x6e8   :  { %v5858_v3 = vadd.f32 %v14227_v51, %v5834_v27  ;;  %v5607_v8 = vadd.f32 %v11409_v45, %v14208_v38  ;;  %v5811_v21 = vadd.f32 %v5774_v63, %v5586_v50  ;;  %v5599_v46 = vadd.f32 %v5598_v7, %v14210_v47  ;;  %v11879_v10 = vld [vmem:[%s15729_s4 + $0x200] sm:$0xff]  }
 0x6e9   :  { %v6008_v4 = vor.u32 %v6006_v16, %v6005_v20  ;;  %v6009_v39 = vrot.slane %v6005_v20, 4  ;;  %v10782_v22 = vpack.c.bf16 %v5871_v59, %v5871_v59  ;;  %v5876_v52 = vmax.f32 %v5860_v24, 0.0  ;;  %11441 = vmatprep.subr.bf16.mxu0 %v11879_v10  ;;  %v6139_v20 = vld [vmem:[#allocation3 + $0x34] sm:$0x1] }
 0x6ea   :  { %v5874_v58 = vmax.f32 %v5858_v3, 0.0  ;;  %v5837_v2 = vmul.f32 %v14219_v0, %v5813_v18  ;;  %v5835_v49 = vmul.f32 %v14219_v0, %v5811_v21  ;;  %v5816_v17 = vadd.f32 %v11437_v9, %v5607_v8  ;;  %11442 = vmatpush3.bf16.msra.mxu0 %v11879_v10  ;;  %v6136_v9 = vld [vmem:[#allocation3 + $0x30] sm:$0xf]  ;;  %v6166_v21 = vld [vmem:[#allocation3 + $0x68] sm:$0xf] }
 0x6eb   :  { %v6149_v38 = vsel %vm12781_vm12, %v6008_v4, %v6148_v11  ;;  %v6152_v47 = vsel %vm12245_vm6, %v6009_v39, %v6151_v32  ;;  %v5987_v45 = vshrl.u32 %v10782_v22, 16  ;;  %v5990_v63 = vshll.u32 %v10782_v22, 16  ;;  %v6154_v4 = vld [vmem:[#allocation3 + $0x58] sm:$0xf]  ;;  %v6157_v39 = vld [vmem:[#allocation3 + $0x5c] sm:$0x1] }
 0x6ec   :  { %6150 = vst [vmem:[#allocation3 + $0x40] sm:$0xf] %v6149_v38  ;;  %6153 = vst [vmem:[#allocation3 + $0x44] sm:$0x1] %v6152_v47  ;;  %v10787_v44 = vpack.c.bf16 %v5876_v52, %v5876_v52  ;;  %v10785_v19 = vpack.c.bf16 %v5874_v58, %v5874_v58  ;;  %v5861_v34 = vadd.f32 %v14227_v51, %v5837_v2  ;;  %v14301_v11 = vld [vmem:[#allocation3 + $0x18] sm:$0xf] }
 0x6ed   :  { %v5859_v36 = vadd.f32 %v14227_v51, %v5835_v49  ;;  %v5989_v54 = vrot.slane %v5987_v45, 7  ;;  %v5840_v5 = vmul.f32 %v14219_v0, %v5816_v17  ;;  %v5610_v35 = vadd.f32 %v11410_v33, %v14212_v23  ;;  %v11880_v32 = vld [vmem:[%s15729_s4 + $0x1f8] sm:$0xff]  }
 0x6ee   :  { %v5814_v28 = vadd.f32 %v5787_v1, %v5599_v46  ;;  %v6027_v16 = vshrl.u32 %v10787_v44, 16  ;;  %v6030_v29 = vshll.u32 %v10787_v44, 16  ;;  %v6011_v62 = vshrl.u32 %v10785_v19, 16  ;;  %v6169_v46 = vld [vmem:[#allocation3 + $0x6c] sm:$0x1]  ;;  %v5601_v44 = vpop.f32.mrf.mxu0  ;;  %11443 = vmatprep.subr.bf16.mxu0 %v11880_v32 }
 0x6ef   :  { %v6014_v7 = vshll.u32 %v10785_v19, 16  ;;  %v5992_v31 = vor.u32 %v5990_v63, %v5989_v54  ;;  %v5993_v48 = vrot.slane %v5989_v54, 4  ;;  %v5877_v27 = vmax.f32 %v5861_v34, 0.0  ;;  %v6246_v33 = vld [vmem:[#allocation3 + $0x1c] sm:$0x1]  ;;  %v11438_v19 = vpop.f32.mrf.mxu1  ;;  %11444 = vmatpush3.bf16.msra.mxu0 %v11880_v32 }
 0x6f0   :  { %v5875_v50 = vmax.f32 %v5859_v36, 0.0  ;;  %v6029_v59 = vrot.slane %v6027_v16, 7  ;;  %v6013_v24 = vrot.slane %v6011_v62, 7  ;;  %v5864_v18 = vadd.f32 %v14227_v51, %v5840_v5  ;;  %v14306_v1 = vld [vmem:[#allocation3 + $0x20] sm:$0xf] }
 0x6f1   :  { %v5838_v3 = vmul.f32 %v14219_v0, %v5814_v28  ;;  %v6137_v23 = vsel %vm12781_vm12, %v5992_v31, %v6136_v9  ;;  %v6140_v8 = vsel %vm12245_vm6, %v5993_v48, %v6139_v20  ;;  %v10788_v22 = vpack.c.bf16 %v5877_v27, %v5877_v27  ;;  %v6248_v34 = vld [vmem:[#allocation3 + $0x24] sm:$0x1]  ;;  %v6175_v31 = vld [vmem:[#allocation3 + $0x74] sm:$0x1]  ;;  %v6160_v48 = vld [vmem:[#allocation3 + $0x60] sm:$0xf] }
 0x6f2   :  { %v10786_v52 = vpack.c.bf16 %v5875_v50, %v5875_v50  ;;  %6138 = vst [vmem:[#allocation3 + $0x30] sm:$0xf] %v6137_v23  ;;  %6141 = vst [vmem:[#allocation3 + $0x34] sm:$0x1] %v6140_v8  ;;  %v6032_v58 = vor.u32 %v6030_v29, %v6029_v59  ;;  %v6033_v2 = vrot.slane %v6029_v59, 4  ;;  %v6016_v49 = vor.u32 %v6014_v7, %v6013_v24 }
 0x6f3   :  { %v6017_v17 = vrot.slane %v6013_v24, 4  ;;  %v6035_v38 = vshrl.u32 %v10788_v22, 16  ;;  %v6038_v47 = vshll.u32 %v10788_v22, 16  ;;  %v5880_v29 = vmax.f32 %v5864_v18, 0.0  ;;  %v6172_v7 = vld [vmem:[#allocation3 + $0x70] sm:$0xf] }
 0x6f4   :  { %v6019_v45 = vshrl.u32 %v10786_v52, 16  ;;  %v6022_v63 = vshll.u32 %v10786_v52, 16  ;;  %v6167_v36 = vsel %vm12781_vm12, %v6032_v58, %v6166_v21  ;;  %v6170_v10 = vsel %vm12245_vm6, %v6033_v2, %v6169_v46  ;;  %v6163_v27 = vld [vmem:[#allocation3 + $0x64] sm:$0x1]  ;;  %v14324_v18 = vld [vmem:[#allocation3 + $0x8] sm:$0xf] }
 0x6f5   :  { %v6155_v54 = vsel %vm12781_vm12, %v6016_v49, %v6154_v4  ;;  %v6158_v5 = vsel %vm12245_vm6, %v6017_v17, %v6157_v39  ;;  %6168 = vst [vmem:[#allocation3 + $0x68] sm:$0xf] %v6167_v36  ;;  %6171 = vst [vmem:[#allocation3 + $0x6c] sm:$0x1] %v6170_v10  ;;  %v6037_v28 = vrot.slane %v6035_v38, 7  ;;  %v5862_v62 = vadd.f32 %v14227_v51, %v5838_v3  ;;  %v11881_v17 = vld [vmem:[%s15729_s4 + $0x1f0] sm:$0xff]  }
 0x6f6   :  { %6156 = vst [vmem:[#allocation3 + $0x58] sm:$0xf] %v6155_v54  ;;  %6159 = vst [vmem:[#allocation3 + $0x5c] sm:$0x1] %v6158_v5  ;;  %v6021_v16 = vrot.slane %v6019_v45, 7  ;;  %v5602_v50 = vadd.f32 %v5601_v44, %v14214_v6  ;;  %v5817_v9 = vadd.f32 %v11438_v19, %v5610_v35  ;;  %v14319_v20 = vcombine.low %v14301_v11, %v6246_v33  ;;  %v5790_v35 = vpop.f32.mrf.mxu1 }
 0x6f7   :  { %v14322_v59 = vcombine.low %v14306_v1, %v6248_v34  ;;  %v6040_v24 = vor.u32 %v6038_v47, %v6037_v28  ;;  %v6041_v23 = vrot.slane %v6037_v28, 4  ;;  %v6242_v3 = vld [vmem:[#allocation3 + $0xc] sm:$0x1]  ;;  %v10791_v46 = vpack.c.bf16 %v5880_v29, %v5880_v29  ;;  %v14328_v22 = vld [vmem:[#allocation3 + $0x10] sm:$0xf]  ;;  %11445 = vmatprep.subr.bf16.mxu0 %v11881_v17 }
 0x6f8   :  { %v6024_v8 = vor.u32 %v6022_v63, %v6021_v16  ;;  %v6025_v21 = vrot.slane %v6021_v16, 4  ;;  %v5878_v4 = vmax.f32 %v5862_v62, 0.0  ;;  %v5841_v39 = vmul.f32 %v14219_v0, %v5817_v9  ;;  %v6244_v52 = vld [vmem:[#allocation3 + $0x14] sm:$0x1]  ;;  %11446 = vmatpush3.bf16.msra.mxu0 %v11881_v17  ;;  %v6178_v9 = vld [vmem:[#allocation3 + $0x78] sm:$0xf] }
 0x6f9   :  { %v6506_v6 = vrot.slane %v14319_v20, 1  ;;  %v6173_v32 = vsel %vm12781_vm12, %v6040_v24, %v6172_v7  ;;  %v6176_v58 = vsel %vm12245_vm6, %v6041_v23, %v6175_v31  ;;  %v6059_v33 = vshrl.u32 %v10791_v46, 16  ;;  %v6190_v31 = vld [vmem:[#allocation3 + $0x88] sm:$0xf] }
 0x6fa   :  { %v6161_v2 = vsel %vm12781_vm12, %v6024_v8, %v6160_v48  ;;  %v6164_v49 = vsel %vm12245_vm6, %v6025_v21, %v6163_v27  ;;  %6174 = vst [vmem:[#allocation3 + $0x70] sm:$0xf] %v6173_v32  ;;  %6177 = vst [vmem:[#allocation3 + $0x74] sm:$0x1] %v6176_v58  ;;  %v10789_v38 = vpack.c.bf16 %v5878_v4, %v5878_v4  ;;  %v6507_v63 = vrot.slane %v14322_v59, 1  ;;  %v11882_v21 = vld [vmem:[%s15729_s4 + $0x1e8] sm:$0xff]  }
 0x6fb   :  { %6162 = vst [vmem:[#allocation3 + $0x60] sm:$0xf] %v6161_v2  ;;  %6165 = vst [vmem:[#allocation3 + $0x64] sm:$0x1] %v6164_v49  ;;  %v5865_v47 = vadd.f32 %v14227_v51, %v5841_v39  ;;  %6525 = vrot.lane.b32.xlu0 %v6506_v6, %s11982_s29  ;;  %v5815_v45 = vadd.f32 %v5790_v35, %v5602_v50  ;;  %v14345_v44 = vcombine.low %v14324_v18, %v6242_v3  ;;  %v6193_v48 = vld [vmem:[#allocation3 + $0x8c] sm:$0x1] }
 0x6fc   :  { %v14348_v19 = vcombine.low %v14328_v22, %v6244_v52  ;;  %v6061_v34 = vrot.slane %v6059_v33, 7  ;;  %v6062_v36 = vshll.u32 %v10791_v46, 16  ;;  %v6043_v10 = vshrl.u32 %v10789_v38, 16  ;;  %6527 = vrot.lane.b32.xlu1 %v6507_v63, %s11982_s29  ;;  %v6181_v39 = vld [vmem:[#allocation3 + $0x7c] sm:$0x1]  ;;  %11447 = vmatprep.subr.bf16.mxu0 %v11882_v21 }
 0x6fd   :  { %v5881_v54 = vmax.f32 %v5865_v47, 0.0  ;;  %v6046_v5 = vshll.u32 %v10789_v38, 16  ;;  %v5839_v28 = vmul.f32 %v14219_v0, %v5815_v45  ;;  %v6504_v16 = vrot.slane %v14345_v44, 1  ;;  %v14366_v6 = vld [vmem:[#allocation3 + $0x38] sm:$0xf]  ;;  %11448 = vmatpush3.bf16.msra.mxu0 %v11882_v21 }
 0x6fe   :  { %v6505_v29 = vrot.slane %v14348_v19, 1  ;;  %v6064_v62 = vor.u32 %v6062_v36, %v6061_v34  ;;  %v6065_v7 = vrot.slane %v6061_v34, 4  ;;  %v6045_v27 = vrot.slane %v6043_v10, 7  ;;  %v6254_v2 = vld [vmem:[#allocation3 + $0x3c] sm:$0x1] }
 0x6ff   :  { %v10792_v50 = vpack.c.bf16 %v5881_v54, %v5881_v54  ;;  %v5863_v24 = vadd.f32 %v14227_v51, %v5839_v28  ;;  %6521 = vrot.lane.b32.xlu0 %v6504_v16, %s11982_s29  ;;  %v6381_v23 = vshrl.u32 %v14319_v20, 16  ;;  %v6383_v0 = vshll.u32 %v14319_v20, 16  ;;  %v11883_v20 = vld [vmem:[%s15729_s4 + $0x1e0] sm:$0xff]   ;;  %v14378_v36 = vld [vmem:[#allocation3 + $0x28] sm:$0xf] }
 0x700   :  { %v6390_v8 = vshll.u32 %v14322_v59, 16  ;;  %v6191_v3 = vsel %vm12781_vm12, %v6064_v62, %v6190_v31  ;;  %v6194_v46 = vsel %vm12245_vm6, %v6065_v7, %v6193_v48  ;;  %v6048_v4 = vor.u32 %v6046_v5, %v6045_v27  ;;  %6523 = vrot.lane.b32.xlu1 %v6505_v29, %s11982_s29  ;;  %11449 = vmatprep.subr.bf16.mxu0 %v11883_v20  ;;  %v6250_v28 = vld [vmem:[#allocation3 + $0x2c] sm:$0x1]  ;;  %v14382_v16 = vld [vmem:[#allocation3 + $0x40] sm:$0xf] }
 0x701   :  { %v6049_v51 = vrot.slane %v6045_v27, 4  ;;  %6192 = vst [vmem:[#allocation3 + $0x88] sm:$0xf] %v6191_v3  ;;  %6195 = vst [vmem:[#allocation3 + $0x8c] sm:$0x1] %v6194_v46  ;;  %v6067_v35 = vshrl.u32 %v10792_v50, 16  ;;  %v10456_v5 = vcombine.low %v14366_v6, %v6254_v2  ;;  %11450 = vmatpush3.bf16.msra.mxu0 %v11883_v20 }
 0x702   :  { %v5879_v52 = vmax.f32 %v5863_v24, 0.0  ;;  %v6385_v32 = vrot.slane %v6383_v0, 1  ;;  %v6388_v58 = vshrl.u32 %v14322_v59, 16  ;;  %v6179_v49 = vsel %vm12781_vm12, %v6048_v4, %v6178_v9  ;;  %v6196_v59 = vld [vmem:[#allocation3 + $0x90] sm:$0xf] }
 0x703   :  { %v6182_v17 = vsel %vm12245_vm6, %v6049_v51, %v6181_v39  ;;  %v6070_v33 = vshll.u32 %v10792_v50, 16  ;;  %v6392_v38 = vrot.slane %v6390_v8, 1  ;;  %6180 = vst [vmem:[#allocation3 + $0x78] sm:$0xf] %v6179_v49  ;;  %v6069_v47 = vrot.slane %v6067_v35, 7 }
 0x704   :  { %6183 = vst [vmem:[#allocation3 + $0x7c] sm:$0x1] %v6182_v17  ;;  %v10790_v45 = vpack.c.bf16 %v5879_v52, %v5879_v52  ;;  %v6386_v63 = vor.u32 %v6385_v32, %v6381_v23  ;;  %v6369_v34 = vshll.u32 %v14345_v44, 16  ;;  %v6376_v54 = vshll.u32 %v14348_v19, 16  ;;  %v6256_v48 = vld [vmem:[#allocation3 + $0x44] sm:$0x1] }
 0x705   :  { %v6393_v10 = vor.u32 %v6392_v38, %v6388_v58  ;;  %v6072_v29 = vor.u32 %v6070_v33, %v6069_v47  ;;  %v6073_v62 = vrot.slane %v6069_v47, 4  ;;  %v6367_v31 = vshrl.u32 %v14345_v44, 16  ;;  %v6199_v27 = vld [vmem:[#allocation3 + $0x94] sm:$0x1]  ;;  %v14394_v35 = vld [vmem:[#allocation3 + $0x30] sm:$0xf] }
 0x706   :  { %v6051_v7 = vshrl.u32 %v10790_v45, 16  ;;  %6477 = vrot.lane.b32.xlu0 %v6386_v63, %s11983_s24  ;;  %v6054_v50 = vshll.u32 %v10790_v45, 16  ;;  %v6371_v9 = vrot.slane %v6369_v34, 1  ;;  %v6374_v24 = vshrl.u32 %v14348_v19, 16  ;;  %v6252_v20 = vld [vmem:[#allocation3 + $0x34] sm:$0x1] }
 0x707   :  { %6479 = vrot.lane.b32.xlu1 %v6393_v10, %s11983_s24  ;;  %v6378_v23 = vrot.slane %v6376_v54, 1  ;;  %v6197_v0 = vsel %vm12781_vm12, %v6072_v29, %v6196_v59  ;;  %v6200_v8 = vsel %vm12245_vm6, %v6073_v62, %v6199_v27  ;;  %v6411_v3 = vshll.u32 %v10456_v5, 16  ;;  %v6184_v52 = vld [vmem:[#allocation3 + $0x80] sm:$0xf]  ;;  %v6187_v32 = vld [vmem:[#allocation3 + $0x84] sm:$0x1] }
 0x708   :  { %v6053_v21 = vrot.slane %v6051_v7, 7  ;;  %6198 = vst [vmem:[#allocation3 + $0x90] sm:$0xf] %v6197_v0  ;;  %6201 = vst [vmem:[#allocation3 + $0x94] sm:$0x1] %v6200_v8  ;;  %v6372_v44 = vor.u32 %v6371_v9, %v6367_v31  ;;  %v10454_v4 = vcombine.low %v14378_v36, %v6250_v28  ;;  %v10465_v51 = vcombine.low %v14382_v16, %v6256_v48 }
 0x709   :  { %v6379_v46 = vor.u32 %v6378_v23, %v6374_v24  ;;  %v6510_v49 = vrot.slane %v10456_v5, 1  ;;  %v6413_v17 = vrot.slane %v6411_v3, 1  ;;  %v10455_v45 = vcombine.low %v14394_v35, %v6252_v20  ;;  %v14407_v27 = vld [vmem:[#allocation3 + $0x68] sm:$0xf]  ;;  %v6268_v9 = vld [vmem:[#allocation3 + $0x74] sm:$0x1] }
 0x70a   :  { %v6056_v39 = vor.u32 %v6054_v50, %v6053_v21  ;;  %v6057_v19 = vrot.slane %v6053_v21, 4  ;;  %6473 = vrot.lane.b32.xlu0 %v6372_v44, %s11983_s24  ;;  %v6508_v33 = vrot.slane %v10454_v4, 1  ;;  %v6397_v38 = vshll.u32 %v10454_v4, 16  ;;  %v6266_v50 = vld [vmem:[#allocation3 + $0x6c] sm:$0x1] }
 0x70b   :  { %6475 = vrot.lane.b32.xlu1 %v6379_v46, %s11983_s24  ;;  %v6644_v47 = vshll.u32 %v10465_v51, 16  ;;  %v6409_v63 = vshrl.u32 %v10456_v5, 16  ;;  %v6659_v34 = vrot.slane %v10465_v51, 1  ;;  %v6404_v28 = vshll.u32 %v10455_v45, 16  ;;  %v14409_v5 = vld [vmem:[#allocation3 + $0x70] sm:$0xf] }
 0x70c   :  { %v6185_v58 = vsel %vm12781_vm12, %v6056_v39, %v6184_v52  ;;  %v6188_v2 = vsel %vm12245_vm6, %v6057_v19, %v6187_v32  ;;  %v6399_v10 = vrot.slane %v6397_v38, 1  ;;  %v6395_v29 = vshrl.u32 %v10454_v4, 16  ;;  %v14413_v23 = vld [vmem:[#allocation3 + $0x58] sm:$0xf]  ;;  %v6262_v0 = vld [vmem:[#allocation3 + $0x5c] sm:$0x1] }
 0x70d   :  { %6186 = vst [vmem:[#allocation3 + $0x80] sm:$0xf] %v6185_v58  ;;  %6189 = vst [vmem:[#allocation3 + $0x84] sm:$0x1] %v6188_v2  ;;  %v6414_v59 = vor.u32 %v6413_v17, %v6409_v63  ;;  %v6646_v54 = vrot.slane %v6644_v47, 1  ;;  %v6642_v62 = vshrl.u32 %v10465_v51, 16  ;;  %v10460_v3 = vcombine.low %v14407_v27, %v6266_v50 }
 0x70e   :  { %6533 = vrot.lane.b32.xlu0 %v6510_v49, %s11982_s29  ;;  %v6400_v7 = vor.u32 %v6399_v10, %v6395_v29  ;;  %v6406_v48 = vrot.slane %v6404_v28, 1  ;;  %v6402_v24 = vshrl.u32 %v10455_v45, 16  ;;  %v6509_v8 = vrot.slane %v10455_v45, 1  ;;  %v14417_v46 = vld [vmem:[#allocation3 + $0x60] sm:$0xf]  ;;  %v11884_v51 = vld [vmem:[%s15729_s4 + $0x1d8] sm:$0xff]  }
 0x70f   :  { %6529 = vrot.lane.b32.xlu1 %v6508_v33, %s11982_s29  ;;  %v6647_v31 = vor.u32 %v6646_v54, %v6642_v62  ;;  %v10461_v44 = vcombine.low %v14409_v5, %v6268_v9  ;;  %v6264_v4 = vld [vmem:[#allocation3 + $0x64] sm:$0x1]  ;;  %v14427_v39 = vld [vmem:[%s15729_s4 + $0x238] sm:$0xff]   ;;  %v10458_v19 = vcombine.low %v14413_v23, %v6262_v0  ;;  %v14431_v52 = vld [vmem:[#allocation3 + $0x88] sm:$0xf]  ;;  %v6514_v32 = vrot.slane %v10460_v3, 1  ;;  %11467 = vmatprep.subr.bf16.mxu1 %v11884_v51 }
 0x710   :  { %v6407_v21 = vor.u32 %v6406_v48, %v6402_v24  ;;  %v10459_v20 = vcombine.low %v14417_v46, %v6264_v4  ;;  %v6439_v2 = vshll.u32 %v10460_v3, 16  ;;  %v6274_v17 = vld [vmem:[#allocation3 + $0x8c] sm:$0x1]  ;;  %11495 = vmatprep.subr.bf16.mxu0 %v14427_v39  ;;  %11468 = vmatpush3.bf16.msra.mxu1 %v11884_v51  ;;  %v11886_v33 = vld [vmem:[%s15729_s4 + $0x1d0] sm:$0xff]   ;;  %v14442_v63 = vld [vmem:[#allocation3 + $0x78] sm:$0xf] }
 0x711   :  { %v6515_v58 = vrot.slane %v10461_v44, 1  ;;  %v6446_v49 = vshll.u32 %v10461_v44, 16  ;;  %v6512_v38 = vrot.slane %v10458_v19, 1  ;;  %v6425_v47 = vshll.u32 %v10458_v19, 16  ;;  %v6270_v28 = vld [vmem:[#allocation3 + $0x7c] sm:$0x1]  ;;  %11469 = vmatprep.subr.bf16.mxu1 %v11886_v33 }
 0x712   :  { %6485 = vrot.lane.b32.xlu0 %v6414_v59, %s11983_s24  ;;  %v14440_v45 = vcombine.low %v14431_v52, %v6274_v17  ;;  %v6441_v59 = vrot.slane %v6439_v2, 1  ;;  %v6432_v54 = vshll.u32 %v10459_v20, 16  ;;  %v14444_v29 = vld [vmem:[#allocation3 + $0x90] sm:$0xf]  ;;  %v6276_v62 = vld [vmem:[#allocation3 + $0x94] sm:$0x1]  ;;  %v10462_v24 = vcombine.low %v14442_v63, %v6270_v28 }
 0x713   :  { %6661 = vrot.lane.b32.xlu1 %v6659_v34, %s11982_s29  ;;  %v6513_v34 = vrot.slane %v10459_v20, 1  ;;  %v6448_v10 = vrot.slane %v6446_v49, 1  ;;  %v6444_v48 = vshrl.u32 %v10461_v44, 16  ;;  %v6427_v50 = vrot.slane %v6425_v47, 1 }
 0x714   :  { %11470 = vmatpush3.bf16.msra.mxu1 %v11886_v33  ;;  %v6467_v9 = vshll.u32 %v14440_v45, 16  ;;  %v14454_v4 = vcombine.low %v14444_v29, %v6276_v62  ;;  %v6423_v51 = vshrl.u32 %v10458_v19, 16  ;;  %v6453_v17 = vshll.u32 %v10462_v24, 16  ;;  %v11890_v19 = vld [vmem:[%s15729_s4 + $0x1c0] sm:$0xff]  }
 0x715   :  { %v6465_v47 = vshrl.u32 %v14440_v45, 16 }
 0x716   :  { %6481 = vrot.lane.b32.xlu0 %v6400_v7, %s11983_s24  ;;  %v11888_v7 = vld [vmem:[%s15729_s4 + $0x1c8] sm:$0xff]   ;;  %v6428_v44 = vor.u32 %v6427_v50, %v6423_v51  ;;  %v6469_v2 = vrot.slane %v6467_v9, 1  ;;  %v6651_v33 = vshll.u32 %v14454_v4, 16  ;;  %v11892_v50 = vld [vmem:[%s15729_s4 + $0x1b8] sm:$0xff]  }
 0x717   :  { %6655 = vrot.lane.b32.xlu1 %v6647_v31, %s11983_s24  ;;  %v6437_v31 = vshrl.u32 %v10460_v3, 16  ;;  %11471 = vmatprep.subr.bf16.mxu1 %v11888_v7  ;;  %v6430_v3 = vshrl.u32 %v10459_v20, 16  ;;  %v6240_v20 = vld [vmem:[#allocation3 + $0x4] sm:$0x1]  ;;  %v14477_v9 = vld [vmem:[#allocation3 + $0x48] sm:$0xf] }
 0x718   :  { %11472 = vmatpush3.bf16.msra.mxu1 %v11888_v7  ;;  %v6653_v28 = vrot.slane %v6651_v33, 1 }
 0x719   :  { %v6442_v0 = vor.u32 %v6441_v59, %v6437_v31  ;;  %v6516_v59 = vrot.slane %v10462_v24, 1  ;;  %11473 = vmatprep.subr.bf16.mxu1 %v11890_v19  ;;  %v6451_v31 = vshrl.u32 %v10462_v24, 16 }
 0x71a   :  { %6531 = vrot.lane.b32.xlu0 %v6509_v8, %s11982_s29  ;;  %v6449_v8 = vor.u32 %v6448_v10, %v6444_v48  ;;  %v6470_v10 = vor.u32 %v6469_v2, %v6465_v47  ;;  %v6649_v48 = vshrl.u32 %v14454_v4, 16  ;;  %v14485_v2 = vld [vmem:[#allocation3 + $0x50] sm:$0xf] }
 0x71b   :  { %6483 = vrot.lane.b32.xlu1 %v6407_v21, %s11983_s24  ;;  %v6434_v21 = vrot.slane %v6432_v54, 1  ;;  %v6455_v54 = vrot.slane %v6453_v17, 1 }
 0x71c   :  { %11474 = vmatpush3.bf16.msra.mxu1 %v11890_v19 }
 0x71d   :  { %v6435_v49 = vor.u32 %v6434_v21, %v6430_v3  ;;  %v6654_v21 = vor.u32 %v6653_v28, %v6649_v48  ;;  %11475 = vmatprep.subr.bf16.mxu1 %v11892_v50  ;;  %v11894_v3 = vld [vmem:[%s15729_s4 + $0x1b0] sm:$0xff]   ;;  %v6518_v28 = vrot.slane %v14440_v45, 1 }
 0x71e   :  { %6541 = vrot.lane.b32.xlu0 %v6514_v32, %s11982_s29  ;;  %v14456_v32 = vld [vmem:[#allocation3 + $0x80] sm:$0xf] }
 0x71f   :  { %6543 = vrot.lane.b32.xlu1 %v6515_v58, %s11982_s29  ;;  %v6272_v58 = vld [vmem:[#allocation3 + $0x84] sm:$0x1] }
 0x720   :  { %11476 = vmatpush3.bf16.msra.mxu1 %v11892_v50 }
 0x721   :  { %11477 = vmatprep.subr.bf16.mxu1 %v11894_v3 }
 0x722   :  { %6537 = vrot.lane.b32.xlu0 %v6512_v38, %s11982_s29  ;;  %v10463_v38 = vcombine.low %v14456_v32, %v6272_v58 }
 0x723   :  { %6539 = vrot.lane.b32.xlu1 %v6513_v34, %s11982_s29  ;;  %v14468_v34 = vld [vmem:[#allocation3] sm:$0xf] }
 0x724   :  { %v6460_v62 = vshll.u32 %v10463_v38, 16  ;;  %v10449_v7 = vcombine.low %v14468_v34, %v6240_v20  ;;  %v6458_v24 = vshrl.u32 %v10463_v38, 16  ;;  %v6517_v17 = vrot.slane %v10463_v38, 1  ;;  %11478 = vmatpush3.bf16.msra.mxu1 %v11894_v3 }
 0x726   :  { %6493 = vrot.lane.b32.xlu0 %v6442_v0, %s11983_s24  ;;  %v6258_v0 = vld [vmem:[#allocation3 + $0x4c] sm:$0x1]  ;;  %v6462_v51 = vrot.slane %v6460_v62, 1  ;;  %v6362_v58 = vshll.u32 %v10449_v7, 16  ;;  %v6360_v19 = vshrl.u32 %v10449_v7, 16  ;;  %v6660_v62 = vrot.slane %v14454_v4, 1 }
 0x727   :  { %6495 = vrot.lane.b32.xlu1 %v6449_v8, %s11983_s24  ;;  %v6456_v8 = vor.u32 %v6455_v54, %v6451_v31  ;;  %v6278_v54 = vld [vmem:[#allocation3 + $0x9c] sm:$0x1]  ;;  %v6503_v38 = vrot.slane %v10449_v7, 1 }
 0x728   :  { %v6463_v33 = vor.u32 %v6462_v51, %v6458_v24  ;;  %v6364_v47 = vrot.slane %v6362_v58, 1 }
 0x72a   :  { %6489 = vrot.lane.b32.xlu0 %v6428_v44, %s11983_s24  ;;  %v10511_v44 = vcombine.low %v14477_v9, %v6258_v0  ;;  %v6365_v31 = vor.u32 %v6364_v47, %v6360_v19 }
 0x72b   :  { %6491 = vrot.lane.b32.xlu1 %v6435_v49, %s11983_s24  ;;  %v6260_v49 = vld [vmem:[#allocation3 + $0x54] sm:$0x1] }
 0x72c   :  { %v7054_v20 = vshll.u32 %v10511_v44, 16  ;;  %v7052_v48 = vshrl.u32 %v10511_v44, 16 }
 0x72e   :  { %6501 = vrot.lane.b32.xlu0 %v6470_v10, %s11983_s24  ;;  %v14490_v10 = vld [vmem:[#allocation3 + $0x98] sm:$0xf]  ;;  %v7056_v50 = vrot.slane %v7054_v20, 1 }
 0x72f   :  { %6545 = vrot.lane.b32.xlu1 %v6516_v59, %s11982_s29  ;;  %v10457_v59 = vcombine.low %v14485_v2, %v6260_v49 }
 0x730   :  { %v7057_v51 = vor.u32 %v7056_v50, %v7052_v48 }
 0x731   :  { %v6418_v0 = vshll.u32 %v10457_v59, 16  ;;  %v6416_v45 = vshrl.u32 %v10457_v59, 16  ;;  %v6511_v3 = vrot.slane %v10457_v59, 1 }
 0x732   :  { %6497 = vrot.lane.b32.xlu0 %v6456_v8, %s11983_s24  ;;  %v10512_v8 = vcombine.low %v14490_v10, %v6278_v54 }
 0x733   :  { %6657 = vrot.lane.b32.xlu1 %v6654_v21, %s11983_s24  ;;  %v7069_v21 = vrot.slane %v10511_v44, 1  ;;  %v6420_v58 = vrot.slane %v6418_v0, 1 }
 0x734   :  { %v7061_v4 = vshll.u32 %v10512_v8, 16  ;;  %v7059_v24 = vshrl.u32 %v10512_v8, 16 }
 0x735   :  { %v6421_v7 = vor.u32 %v6420_v58, %v6416_v45 }
 0x736   :  { %6547 = vrot.lane.b32.xlu0 %v6517_v17, %s11982_s29  ;;  %v7063_v49 = vrot.slane %v7061_v4, 1  ;;  %v7070_v17 = vrot.slane %v10512_v8, 1 }
 0x737   :  { %6499 = vrot.lane.b32.xlu1 %v6463_v33, %s11983_s24 }
 0x738   :  { %v7064_v44 = vor.u32 %v7063_v49, %v7059_v24  ;;  %v11891_v49 = vld [vmem:[%s15729_s4 + $0x220] sm:$0xff]  }
 0x73a   :  { %6549 = vrot.lane.b32.xlu0 %v6518_v28, %s11982_s29 }
 0x73b   :  { %6663 = vrot.lane.b32.xlu1 %v6660_v62, %s11982_s29 }
 0x73e   :  { %6471 = vrot.lane.b32.xlu0 %v6365_v31, %s11983_s24 }
 0x73f   :  { %6519 = vrot.lane.b32.xlu1 %v6503_v38, %s11982_s29 }
 0x742   :  { %7065 = vrot.lane.b32.xlu0 %v7057_v51, %s11983_s24 }
 0x743   :  { %7071 = vrot.lane.b32.xlu1 %v7069_v21, %s11982_s29 }
 0x746   :  { %6487 = vrot.lane.b32.xlu0 %v6421_v7, %s11983_s24  ;;  %v11889_v7 = vld [vmem:[%s15729_s4 + $0x228] sm:$0xff]  }
 0x747   :  { %6535 = vrot.lane.b32.xlu1 %v6511_v3, %s11982_s29 }
 0x74a   :  { %7067 = vrot.lane.b32.xlu0 %v7064_v44, %s11983_s24 }
 0x74b   :  { %7073 = vrot.lane.b32.xlu1 %v7070_v17, %s11982_s29 }
 0x76d   :  { %v6526_v33 = vpop.permute.xlu0 %6525 }
 0x76e   :  { %v6528_v19 = vpop.permute.xlu1 %6527 }
 0x771   :  { %v6522_v47 = vpop.permute.xlu0 %6521 }
 0x772   :  { %v6524_v20 = vpop.permute.xlu1 %6523 }
 0x778   :  { %v6478_v54 = vpop.permute.xlu0 %6477 }
 0x779   :  { %v6480_v28 = vpop.permute.xlu1 %6479  ;;  %v6562_v62 = vsel %vm820_vm9, %v14301_v11, %v6478_v54 }
 0x77a   :  { %v6565_v59 = vsel %vm820_vm9, %v14306_v1, %v6480_v28  ;;  %v14523_v1 = vsel %vm869_vm10, %v6562_v62, %v6526_v33 }
 0x77b   :  { %v14510_v48 = vsel %vm869_vm10, %v6565_v59, %v6528_v19 }
 0x77c   :  { %v6474_v31 = vpop.permute.xlu0 %6473  ;;  %v10468_v51 = vcombine.low %v14523_v1, %v14510_v48 }
 0x77d   :  { %v6476_v38 = vpop.permute.xlu1 %6475  ;;  %v6556_v50 = vsel %vm820_vm9, %v14324_v18, %v6474_v31 }
 0x77e   :  { %v6559_v0 = vsel %vm820_vm9, %v14328_v22, %v6476_v38  ;;  %v14517_v8 = vsel %vm869_vm10, %v6556_v50, %v6522_v47  ;;  %v11887_v22 = vld [vmem:[%s15729_s4 + $0x230] sm:$0xff]   ;;  %v11893_v47 = vld [vmem:[%s15729_s4 + $0x218] sm:$0xff]  }
 0x77f   :  { %v14520_v21 = vsel %vm869_vm10, %v6559_v0, %v6524_v20 }
 0x780   :  { %v10467_v11 = vcombine.low %v14517_v8, %v14520_v21  ;;  %v6534_v45 = vpop.permute.xlu0 %6533 }
 0x781   :  { %v6530_v18 = vpop.permute.xlu1 %6529 }
 0x782   :  { %11451 = vmatprep.mubr.msk.bf16.mxu0 %vm1022_vm11, %v10467_v11 }
 0x783   :  { %11452 = vmatmul.mubr.msk.bf16.vlgmr.msra.gmra.mxu0 %vm1022_vm11, %v10468_v51 }
 0x784   :  { %11496 = vmatpush3.bf16.msra.mxu0 %v14427_v39  ;;  %v6486_v58 = vpop.permute.xlu0 %6485 }
 0x785   :  { %v6662_v4 = vpop.permute.xlu1 %6661  ;;  %11497 = vmatprep.subr.bf16.mxu0 %v11887_v22  ;;  %v6574_v17 = vsel %vm820_vm9, %v14366_v6, %v6486_v58 }
 0x786   :  { %v14560_v6 = vsel %vm869_vm10, %v6574_v17, %v6534_v45 }
 0x788   :  { %11498 = vmatpush3.bf16.msra.mxu0 %v11887_v22  ;;  %v6482_v3 = vpop.permute.xlu0 %6481 }
 0x789   :  { %v6656_v24 = vpop.permute.xlu1 %6655  ;;  %11499 = vmatprep.subr.bf16.mxu0 %v11889_v7  ;;  %v6568_v39 = vsel %vm820_vm9, %v14378_v36, %v6482_v3 }
 0x78a   :  { %v6667_v44 = vsel %vm820_vm9, %v14382_v16, %v6656_v24  ;;  %v6610_v54 = vsel %vm869_vm10, %v6568_v39, %v6530_v18 }
 0x78b   :  { %v14551_v20 = vsel %vm869_vm10, %v6667_v44, %v6662_v4 }
 0x78c   :  { %11500 = vmatpush3.bf16.msra.mxu0 %v11889_v7  ;;  %v6532_v33 = vpop.permute.xlu0 %6531  ;;  %v10470_v59 = vcombine.low %v14560_v6, %v14551_v20 }
 0x78d   :  { %v6484_v19 = vpop.permute.xlu1 %6483  ;;  %11501 = vmatprep.subr.bf16.mxu0 %v11891_v49 }
 0x78e   :  { %v6571_v16 = vsel %vm820_vm9, %v14394_v35, %v6484_v19  ;;  %v11895_v35 = vld [vmem:[%s15729_s4 + $0x210] sm:$0xff]  }
 0x78f   :  { %v14557_v36 = vsel %vm869_vm10, %v6571_v16, %v6532_v33 }
 0x790   :  { %v10469_v28 = vcombine.low %v6610_v54, %v14557_v36  ;;  %11502 = vmatpush3.bf16.msra.mxu0 %v11891_v49  ;;  %v6542_v62 = vpop.permute.xlu0 %6541 }
 0x791   :  { %v6544_v31 = vpop.permute.xlu1 %6543  ;;  %11503 = vmatprep.subr.bf16.mxu0 %v11893_v47 }
 0x792   :  { %11455 = vmatprep.mubr.msk.bf16.mxu0 %vm1022_vm11, %v10469_v28 }
 0x793   :  { %11456 = vmatmul.mubr.msk.bf16.gmra.mxu0 %vm1022_vm11, %v10470_v59 }
 0x794   :  { %11504 = vmatpush3.bf16.msra.mxu0 %v11893_v47  ;;  %v6538_v38 = vpop.permute.xlu0 %6537 }
 0x795   :  { %v6540_v50 = vpop.permute.xlu1 %6539  ;;  %11505 = vmatprep.subr.bf16.mxu0 %v11895_v35 }
 0x798   :  { %11506 = vmatpush3.bf16.msra.mxu0 %v11895_v35  ;;  %v6494_v0 = vpop.permute.xlu0 %6493 }
 0x799   :  { %v6496_v11 = vpop.permute.xlu1 %6495  ;;  %v6586_v45 = vsel %vm820_vm9, %v14407_v27, %v6494_v0  ;;  %v10490_v0 = vcombine.low %v14520_v21, %v14523_v1  ;;  %v10492_v21 = vcombine.low %v14557_v36, %v14560_v6 }
 0x79a   :  { %v6589_v51 = vsel %vm820_vm9, %v14409_v5, %v6496_v11  ;;  %v6622_v49 = vsel %vm869_vm10, %v6586_v45, %v6542_v62 }
 0x79b   :  { %v6624_v58 = vsel %vm869_vm10, %v6589_v51, %v6544_v31 }
 0x79c   :  { %v6490_v18 = vpop.permute.xlu0 %6489  ;;  %v10472_v44 = vcombine.low %v6622_v49, %v6624_v58 }
 0x79d   :  { %v6492_v22 = vpop.permute.xlu1 %6491  ;;  %v6580_v4 = vsel %vm820_vm9, %v14413_v23, %v6490_v18 }
 0x79e   :  { %v6583_v7 = vsel %vm820_vm9, %v14417_v46, %v6492_v22  ;;  %v6618_v3 = vsel %vm869_vm10, %v6580_v4, %v6538_v38  ;;  %v10491_v4 = vcombine.low %v14510_v48, %v6610_v54 }
 0x79f   :  { %v6620_v24 = vsel %vm869_vm10, %v6583_v7, %v6540_v50 }
 0x7a0   :  { %v10471_v5 = vcombine.low %v6618_v3, %v6620_v24  ;;  %v6502_v39 = vpop.permute.xlu0 %6501  ;;  %v10494_v6 = vcombine.low %v6620_v24, %v6622_v49 }
 0x7a1   :  { %v6546_v27 = vpop.permute.xlu1 %6545  ;;  %v6598_v62 = vsel %vm820_vm9, %v14431_v52, %v6502_v39  ;;  %v7683_v39 = vld [vmem:[#allocation2 + $0x4] sm:$0x1] }
 0x7a2   :  { %11459 = vmatprep.mubr.msk.bf16.mxu0 %vm1022_vm11, %v10471_v5 }
 0x7a3   :  { %11460 = vmatmul.mubr.msk.bf16.gmra.mxu0 %vm1022_vm11, %v10472_v44 }
 0x7a4   :  { %v6498_v17 = vpop.permute.xlu0 %6497 }
 0x7a5   :  { %v6658_v33 = vpop.permute.xlu1 %6657  ;;  %v6592_v23 = vsel %vm820_vm9, %v14442_v63, %v6498_v17 }
 0x7a6   :  { %v6626_v16 = vsel %vm869_vm10, %v6592_v23, %v6546_v27  ;;  %v6670_v31 = vsel %vm820_vm9, %v14444_v29, %v6658_v33 }
 0x7a8   :  { %v6548_v46 = vpop.permute.xlu0 %6547 }
 0x7a9   :  { %v6500_v19 = vpop.permute.xlu1 %6499 }
 0x7aa   :  { %v6595_v47 = vsel %vm820_vm9, %v14456_v32, %v6500_v19 }
 0x7ab   :  { %v6628_v28 = vsel %vm869_vm10, %v6595_v47, %v6548_v46  ;;  %v7700_v46 = vld [vmem:[#allocation2 + $0x48] sm:$0xf] }
 0x7ac   :  { %v10473_v59 = vcombine.low %v6626_v16, %v6628_v28  ;;  %v6550_v35 = vpop.permute.xlu0 %6549 }
 0x7ad   :  { %v6664_v38 = vpop.permute.xlu1 %6663  ;;  %v6630_v63 = vsel %vm869_vm10, %v6598_v62, %v6550_v35  ;;  %v7702_v62 = vld [vmem:[#allocation2 + $0x50] sm:$0xf] }
 0x7ae   :  { %v6674_v50 = vsel %vm869_vm10, %v6670_v31, %v6664_v38  ;;  %11463 = vmatprep.mubr.msk.bf16.mxu0 %vm1022_vm11, %v10473_v59  ;;  %v10496_v44 = vcombine.low %v6628_v28, %v6630_v63  ;;  %v7703_v31 = vld [vmem:[#allocation2 + $0x54] sm:$0x1] }
 0x7af   :  { %v10474_v32 = vcombine.low %v6630_v63, %v6674_v50  ;;  %v10557_v35 = vcombine.low %v7702_v62, %v7703_v31  ;;  %v14665_v62 = vld [vmem:[%s15730_s5 + $0x3] ss:$0 sm:$0xff] }
 0x7b0   :  { %v6472_v11 = vpop.permute.xlu0 %6471 }
 0x7b1   :  { %v6520_v51 = vpop.permute.xlu1 %6519  ;;  %11464 = vmatmul.mubr.msk.bf16.gmra.mxu0 %vm1022_vm11, %v10474_v32  ;;  %v6553_v52 = vsel %vm820_vm9, %v14468_v34, %v6472_v11  ;;  %v7861_v63 = vshll.u32 %v10557_v35, 16  ;;  %v7721_v11 = vld [vmem:[#allocation2 + $0x9c] sm:$0x1] }
 0x7b2   :  { %11507 = vmatprep.mubr.msk.bf16.mxu0 %vm1022_vm11, %v10490_v0  ;;  %v6600_v29 = vsel %vm869_vm10, %v6553_v52, %v6520_v51 }
 0x7b3   :  { %v10489_v45 = vcombine.low %v6600_v29, %v14517_v8  ;;  %v7863_v32 = vrot.slane %v7861_v63, 1 }
 0x7b4   :  { %v7066_v18 = vpop.permute.xlu0 %7065 }
 0x7b5   :  { %v7072_v22 = vpop.permute.xlu1 %7071  ;;  %11479 = vmatprep.mubr.msk.bf16.mxu1 %vm1022_vm11, %v10489_v45  ;;  %v7077_v34 = vsel %vm820_vm9, %v14477_v9, %v7066_v18  ;;  %v10495_v9 = vcombine.low %v6624_v58, %v6626_v16  ;;  %v7682_v58 = vld [vmem:[#allocation2] sm:$0xf] }
 0x7b6   :  { %11480 = vmatmul.mubr.msk.bf16.vlgmr.msra.gmra.mxu1 %vm1022_vm11, %v10490_v0  ;;  %v7082_v54 = vsel %vm869_vm10, %v7077_v34, %v7072_v22  ;;  %v10549_v27 = vcombine.low %v7682_v58, %v7683_v39  ;;  %v7720_v0 = vld [vmem:[#allocation2 + $0x98] sm:$0xf]  ;;  %v8819_v34 = vld [vmem:[#allocation2] sm:$0xf] }
 0x7b7   :  { %11483 = vmatprep.mubr.msk.bf16.mxu1 %vm1022_vm11, %v10491_v4  ;;  %v10513_v36 = vcombine.low %v14551_v20, %v7082_v54  ;;  %v10612_v51 = vcombine.low %v7720_v0, %v7721_v11 }
 0x7b8   :  { %v6488_v1 = vpop.permute.xlu0 %6487  ;;  %v7805_v17 = vshll.u32 %v10549_v27, 16  ;;  %v7803_v33 = vshrl.u32 %v10549_v27, 16  ;;  %v7946_v29 = vrot.slane %v10549_v27, 1 }
 0x7b9   :  { %v6536_v7 = vpop.permute.xlu1 %6535  ;;  %11508 = vmatmul.mubr.msk.bf16.vlgmr.msra.gmra.mxu0 %vm1022_vm11, %v10491_v4  ;;  %v6577_v8 = vsel %vm820_vm9, %v14485_v2, %v6488_v1  ;;  %v8504_v45 = vshll.u32 %v10612_v51, 16  ;;  %v8502_v18 = vshrl.u32 %v10612_v51, 16  ;;  %v8820_v1 = vld [vmem:[#allocation2 + $0x4] sm:$0x1] }
 0x7ba   :  { %11511 = vmatprep.mubr.msk.bf16.mxu0 %vm1022_vm11, %v10492_v21  ;;  %v6616_v48 = vsel %vm869_vm10, %v6577_v8, %v6536_v7  ;;  %v7807_v23 = vrot.slane %v7805_v17, 1  ;;  %7962 = vrot.lane.b32.xlu1 %v7946_v29, %s11982_s29  ;;  %v14639_v7 = vcombine.low %v8819_v34, %v8820_v1 }
 0x7bb   :  { %v10493_v5 = vcombine.low %v6616_v48, %v6618_v3  ;;  %v8506_v22 = vrot.slane %v8504_v45, 1 }
 0x7bc   :  { %v7068_v2 = vpop.permute.xlu0 %7067  ;;  %v7808_v47 = vor.u32 %v7807_v23, %v7803_v33  ;;  %v8942_v8 = vshll.u32 %v14639_v7, 16  ;;  %v8940_v48 = vshrl.u32 %v14639_v7, 16 }
 0x7bd   :  { %v7080_v3 = vsel %vm820_vm9, %v14490_v10, %v7068_v2  ;;  %v7074_v20 = vpop.permute.xlu1 %7073  ;;  %v7701_v10 = vld [vmem:[#allocation2 + $0x4c] sm:$0x1]  ;;  %v8507_v4 = vor.u32 %v8506_v22, %v8502_v18 }
 0x7be   :  { %11484 = vmatmul.mubr.msk.bf16.gmra.mxu1 %vm1022_vm11, %v10492_v21  ;;  %v7084_v24 = vsel %vm869_vm10, %v7080_v3, %v7074_v20  ;;  %v10611_v19 = vcombine.low %v7700_v46, %v7701_v10  ;;  %7914 = vrot.lane.b32.xlu0 %v7808_v47, %s11983_s24  ;;  %v8944_v54 = vrot.slane %v8942_v8, 1 }
 0x7bf   :  { %11487 = vmatprep.mubr.msk.bf16.mxu1 %vm1022_vm11, %v10493_v5  ;;  %v10514_v49 = vcombine.low %v6674_v50, %v7084_v24  ;;  %v7859_v50 = vshrl.u32 %v10557_v35, 16 }
 0x7c0   :  { %v8497_v16 = vshll.u32 %v10611_v19, 16  ;;  %v8495_v28 = vshrl.u32 %v10611_v19, 16  ;;  %v8512_v21 = vrot.slane %v10611_v19, 1  ;;  %v8945_v5 = vor.u32 %v8944_v54, %v8940_v48 }
 0x7c1   :  { %11512 = vmatmul.mubr.msk.bf16.gmra.mxu0 %vm1022_vm11, %v10513_v36  ;;  %v7864_v52 = vor.u32 %v7863_v32, %v7859_v50  ;;  %v7954_v36 = vrot.slane %v10557_v35, 1 }
 0x7c2   :  { %11515 = vmatprep.mubr.msk.bf16.mxu0 %vm1022_vm11, %v10494_v6  ;;  %v8499_v59 = vrot.slane %v8497_v16, 1  ;;  %8514 = vrot.lane.b32.xlu1 %v8512_v21, %s11982_s29 }
 0x7c4   :  { %v8500_v38 = vor.u32 %v8499_v59, %v8495_v28 }
 0x7c6   :  { %11488 = vmatmul.mubr.msk.bf16.gmra.mxu1 %vm1022_vm11, %v10494_v6  ;;  %8508 = vrot.lane.b32.xlu0 %v8500_v38, %s11983_s24  ;;  %v8513_v6 = vrot.slane %v10612_v51, 1  ;;  %v14670_v38 = vld [vmem:[%s15731_s6 + $0x3] ss:$0 sm:$0xff] }
 0x7c7   :  { %11491 = vmatprep.mubr.msk.bf16.mxu1 %vm1022_vm11, %v10495_v9  ;;  %7978 = vrot.lane.b32.xlu1 %v7954_v36, %s11982_s29 }
 0x7c9   :  { %11516 = vmatmul.mubr.msk.bf16.gmra.mxu0 %vm1022_vm11, %v10495_v9 }
 0x7ca   :  { %11519 = vmatprep.mubr.msk.bf16.mxu0 %vm1022_vm11, %v10496_v44  ;;  %7930 = vrot.lane.b32.xlu0 %v7864_v52, %s11983_s24 }
 0x7cb   :  { %8516 = vrot.lane.b32.xlu1 %v8513_v6, %s11982_s29 }
 0x7ce   :  { %11492 = vmatmul.mubr.msk.bf16.gmra.mxu1 %vm1022_vm11, %v10496_v44  ;;  %8510 = vrot.lane.b32.xlu0 %v8507_v4, %s11983_s24 }
 0x7d1   :  { %11520 = vmatmul.mubr.msk.bf16.gmra.mxu0 %vm1022_vm11, %v10514_v49 }
 0x7d2   :  { %9051 = vrot.lane.b32.xlu0 %v8945_v5, %s11983_s24 }
 0x843   :  { %v11453_v9 = vpop.f32.mrf.mxu0 }
 0x845   :  { %v6809_v2 = vpop.f32.mrf.mxu0 }
 0x847   :  { %v11454_v44 = vpop.f32.mrf.mxu0 }
 0x849   :  { %v6812_v3 = vpop.f32.mrf.mxu0 }
 0x853   :  { %v11457_v20 = vpop.f32.mrf.mxu0 }
 0x855   :  { %v6825_v24 = vpop.f32.mrf.mxu0 }
 0x857   :  { %v11458_v49 = vpop.f32.mrf.mxu0 }
 0x859   :  { %v6828_v58 = vpop.f32.mrf.mxu0 }
 0x863   :  { %v14646_v39 = vpop.f32.mrf.mxu0 }
 0x865   :  { %v14648_v27 = vpop.f32.mrf.mxu0 }
 0x867   :  { %v14650_v17 = vpop.f32.mrf.mxu0 }
 0x869   :  { %v14652_v33 = vpop.f32.mrf.mxu0 }
 0x871   :  { %v14654_v23 = vpop.f32.mrf.mxu0 }
 0x873   :  { %v14656_v46 = vpop.f32.mrf.mxu0 }
 0x875   :  { %v14658_v10 = vpop.f32.mrf.mxu0 }
 0x876   :  { %v11481_v19 = vpop.f32.mrf.mxu1 }
 0x877   :  { %v14660_v47 = vpop.f32.mrf.mxu0  ;;  %v6987_v16 = vadd.f32 %v11481_v19, %v11453_v9 }
 0x878   :  { %v6978_v28 = vpop.f32.mrf.mxu1 }
 0x879   :  { %v11509_v59 = vpop.f32.mrf.mxu0  ;;  %v6979_v31 = vadd.f32 %v6978_v28, %v6809_v2 }
 0x87a   :  { %v7232_v35 = vadd.f32 %v11509_v59, %v6987_v16  ;;  %v11482_v63 = vpop.f32.mrf.mxu1 }
 0x87b   :  { %v7167_v50 = vpop.f32.mrf.mxu0  ;;  %v6990_v0 = vadd.f32 %v11482_v63, %v11454_v44 }
 0x87c   :  { %v7256_v32 = vmul.f32 %v14665_v62, %v7232_v35  ;;  %v7230_v11 = vadd.f32 %v7167_v50, %v6979_v31  ;;  %v6981_v51 = vpop.f32.mrf.mxu1 }
 0x87d   :  { %v11510_v52 = vpop.f32.mrf.mxu0  ;;  %v6982_v18 = vadd.f32 %v6981_v51, %v6812_v3 }
 0x87e   :  { %v7280_v29 = vadd.f32 %v14670_v38, %v7256_v32  ;;  %v7254_v45 = vmul.f32 %v14665_v62, %v7230_v11  ;;  %v7233_v22 = vadd.f32 %v11510_v52, %v6990_v0  ;;  %v11485_v4 = vpop.f32.mrf.mxu1 }
 0x87f   :  { %v7170_v21 = vpop.f32.mrf.mxu0  ;;  %v7003_v48 = vadd.f32 %v11485_v4, %v11457_v20 }
 0x880   :  { %v7296_v34 = vadd.f32 %v7280_v29, %v13715_v43  ;;  %v7278_v1 = vadd.f32 %v14670_v38, %v7254_v45  ;;  %v7257_v8 = vmul.f32 %v14665_v62, %v7233_v22  ;;  %v7231_v54 = vadd.f32 %v7170_v21, %v6982_v18  ;;  %v6994_v5 = vpop.f32.mrf.mxu1 }
 0x881   :  { %v11513_v36 = vpop.f32.mrf.mxu0  ;;  %v6995_v44 = vadd.f32 %v6994_v5, %v6825_v24 }
 0x882   :  { %v7312_v6 = vmax.f32 %v7296_v34, 0.0  ;;  %v7294_v9 = vadd.f32 %v7278_v1, %v13722_v60  ;;  %v7281_v2 = vadd.f32 %v14670_v38, %v7257_v8  ;;  %v7255_v3 = vmul.f32 %v14665_v62, %v7231_v54  ;;  %v11486_v16 = vpop.f32.mrf.mxu1 }
 0x883   :  { %v7236_v19 = vadd.f32 %v11513_v36, %v7003_v48  ;;  %v7183_v28 = vpop.f32.mrf.mxu0  ;;  %v7006_v63 = vadd.f32 %v11486_v16, %v11458_v49 }
 0x884   :  { %v10795_v43 = vpack.c.bf16 %v7312_v6, %v7312_v6  ;;  %v7310_v59 = vmax.f32 %v7294_v9, 0.0  ;;  %v7297_v31 = vadd.f32 %v7281_v2, %v13729_v26  ;;  %v7279_v20 = vadd.f32 %v14670_v38, %v7255_v3  ;;  %v6997_v32 = vpop.f32.mrf.mxu1  ;;  %v7562_v2 = vld [vmem:[#allocation2 + $0x18] sm:$0xf] }
 0x885   :  { %v7260_v35 = vmul.f32 %v14665_v62, %v7236_v19  ;;  %v7234_v50 = vadd.f32 %v7183_v28, %v6995_v44  ;;  %v11514_v60 = vpop.f32.mrf.mxu0  ;;  %v14687_v18 = vadd.f32 %v6997_v32, %v6828_v58  ;;  %v7565_v44 = vld [vmem:[#allocation2 + $0x1c] sm:$0x1] }
 0x886   :  { %v7407_v0 = vshrl.u32 %v10795_v43, 16  ;;  %v7410_v11 = vshll.u32 %v10795_v43, 16  ;;  %v10793_v24 = vpack.c.bf16 %v7310_v59, %v7310_v59  ;;  %v7313_v51 = vmax.f32 %v7297_v31, 0.0  ;;  %v11489_v26 = vpop.f32.mrf.mxu1 }
 0x887   :  { %v7295_v52 = vadd.f32 %v7279_v20, %v13741_v40  ;;  %v7284_v29 = vadd.f32 %v14670_v38, %v7260_v35  ;;  %v7258_v45 = vmul.f32 %v14665_v62, %v7234_v50  ;;  %v14689_v22 = vpop.f32.mrf.mxu0  ;;  %v7237_v54 = vadd.f32 %v11514_v60, %v7006_v63  ;;  %v7550_v20 = vld [vmem:[#allocation2 + $0x8] sm:$0xf]  ;;  %v7553_v63 = vld [vmem:[#allocation2 + $0xc] sm:$0x1] }
 0x888   :  { %v7409_v4 = vrot.slane %v7407_v0, 7  ;;  %v7391_v49 = vshrl.u32 %v10793_v24, 16  ;;  %v7394_v21 = vshll.u32 %v10793_v24, 16  ;;  %v10796_v34 = vpack.c.bf16 %v7313_v51, %v7313_v51  ;;  %v7010_v40 = vpop.f32.mrf.mxu1 }
 0x889   :  { %v7311_v1 = vmax.f32 %v7295_v52, 0.0  ;;  %v7300_v8 = vadd.f32 %v7284_v29, %v13749_v55  ;;  %v7282_v48 = vadd.f32 %v14670_v38, %v7258_v45  ;;  %v14693_v5 = vpop.f32.mrf.mxu0  ;;  %v7261_v52 = vmul.f32 %v14665_v62, %v7237_v54 }
 0x88a   :  { %v7412_v36 = vor.u32 %v7410_v11, %v7409_v4  ;;  %v7413_v6 = vrot.slane %v7409_v4, 4  ;;  %v7393_v58 = vrot.slane %v7391_v49, 7  ;;  %v7415_v9 = vshrl.u32 %v10796_v34, 16  ;;  %v11490_v35 = vpop.f32.mrf.mxu1 }
 0x88b   :  { %v7418_v3 = vshll.u32 %v10796_v34, 16  ;;  %v10794_v19 = vpack.c.bf16 %v7311_v1, %v7311_v1  ;;  %v7316_v16 = vmax.f32 %v7300_v8, 0.0  ;;  %v7298_v28 = vadd.f32 %v7282_v48, %v13762_v41  ;;  %v7199_v11 = vpop.f32.mrf.mxu0  ;;  %v7571_v34 = vld [vmem:[#allocation2 + $0x24] sm:$0x1] }
 0x88c   :  { %v7563_v55 = vsel %vm12781_vm12, %v7412_v36, %v7562_v2  ;;  %v7566_v43 = vsel %vm12245_vm6, %v7413_v6, %v7565_v44  ;;  %v7396_v59 = vor.u32 %v7394_v21, %v7393_v58  ;;  %v7397_v31 = vrot.slane %v7393_v58, 4  ;;  %v7568_v21 = vld [vmem:[#allocation2 + $0x20] sm:$0xf]  ;;  %v7013_v6 = vpop.f32.mrf.mxu1  ;;  %v7556_v44 = vld [vmem:[#allocation2 + $0x10] sm:$0xf] }
 0x88d   :  { %7564 = vst [vmem:[#allocation2 + $0x18] sm:$0xf] %v7563_v55  ;;  %7567 = vst [vmem:[#allocation2 + $0x1c] sm:$0x1] %v7566_v43  ;;  %v7417_v50 = vrot.slane %v7415_v9, 7  ;;  %v7399_v32 = vshrl.u32 %v10794_v19, 16  ;;  %v10799_v0 = vpack.c.bf16 %v7316_v16, %v7316_v16  ;;  %v7285_v48 = vadd.f32 %v14670_v38, %v7261_v52 }
 0x88e   :  { %v7402_v60 = vshll.u32 %v10794_v19, 16  ;;  %v7551_v41 = vsel %vm12781_vm12, %v7396_v59, %v7550_v20  ;;  %v7554_v24 = vsel %vm12245_vm6, %v7397_v31, %v7553_v63  ;;  %v7314_v51 = vmax.f32 %v7298_v28, 0.0  ;;  %v7559_v19 = vld [vmem:[#allocation2 + $0x14] sm:$0x1] }
 0x88f   :  { %7552 = vst [vmem:[#allocation2 + $0x8] sm:$0xf] %v7551_v41  ;;  %7555 = vst [vmem:[#allocation2 + $0xc] sm:$0x1] %v7554_v24  ;;  %v7420_v29 = vor.u32 %v7418_v3, %v7417_v50  ;;  %v7421_v45 = vrot.slane %v7417_v50, 4  ;;  %v7401_v4 = vrot.slane %v7399_v32, 7  ;;  %v7019_v36 = vadd.f32 %v11489_v26, %v14646_v39  ;;  %v11518_v3 = vpop.f32.mrf.mxu0 }
 0x890   :  { %v7439_v49 = vshrl.u32 %v10799_v0, 16  ;;  %v7442_v1 = vshll.u32 %v10799_v0, 16  ;;  %v10797_v8 = vpack.c.bf16 %v7314_v51, %v7314_v51  ;;  %v7301_v43 = vadd.f32 %v7285_v48, %v13781_v57  ;;  %v7586_v0 = vld [vmem:[#allocation2 + $0x38] sm:$0xf]  ;;  %v7589_v57 = vld [vmem:[#allocation2 + $0x3c] sm:$0x1] }
 0x891   :  { %v7569_v58 = vsel %vm12781_vm12, %v7420_v29, %v7568_v21  ;;  %v7572_v54 = vsel %vm12245_vm6, %v7421_v45, %v7571_v34  ;;  %v7404_v9 = vor.u32 %v7402_v60, %v7401_v4  ;;  %v7405_v2 = vrot.slane %v7401_v4, 4  ;;  %v11493_v60 = vpop.f32.mrf.mxu1  ;;  %v7202_v29 = vpop.f32.mrf.mxu0  ;;  %v7574_v45 = vld [vmem:[#allocation2 + $0x28] sm:$0xf]  ;;  %v7577_v4 = vld [vmem:[#allocation2 + $0x2c] sm:$0x1] }
 0x892   :  { %7570 = vst [vmem:[#allocation2 + $0x20] sm:$0xf] %v7569_v58  ;;  %7573 = vst [vmem:[#allocation2 + $0x24] sm:$0x1] %v7572_v54  ;;  %v7441_v16 = vrot.slane %v7439_v49, 7  ;;  %v7423_v28 = vshrl.u32 %v10797_v8, 16  ;;  %v7235_v59 = vadd.f32 %v14689_v22, %v14687_v18  ;;  %v7011_v31 = vadd.f32 %v7010_v40, %v14648_v27 }
 0x893   :  { %v7426_v55 = vshll.u32 %v10797_v8, 16  ;;  %v7557_v39 = vsel %vm12781_vm12, %v7404_v9, %v7556_v44  ;;  %v7560_v26 = vsel %vm12245_vm6, %v7405_v2, %v7559_v19  ;;  %v7317_v32 = vmax.f32 %v7301_v43, 0.0  ;;  %v7026_v8 = vpop.f32.mrf.mxu1  ;;  %v11521_v9 = vpop.f32.mrf.mxu0 }
 0x894   :  { %7558 = vst [vmem:[#allocation2 + $0x10] sm:$0xf] %v7557_v39  ;;  %7561 = vst [vmem:[#allocation2 + $0x14] sm:$0x1] %v7560_v26  ;;  %v7444_v20 = vor.u32 %v7442_v1, %v7441_v16  ;;  %v7445_v63 = vrot.slane %v7441_v16, 4  ;;  %v7425_v50 = vrot.slane %v7423_v28, 7  ;;  %v7259_v41 = vmul.f32 %v14665_v62, %v7235_v59 }
 0x895   :  { %v7240_v24 = vadd.f32 %v14693_v5, %v7019_v36  ;;  %v7022_v51 = vadd.f32 %v11490_v35, %v14650_v17  ;;  %v7238_v52 = vadd.f32 %v7199_v11, %v7011_v31  ;;  %v10800_v49 = vpack.c.bf16 %v7317_v32, %v7317_v32 }
 0x896   :  { %v7587_v27 = vsel %vm12781_vm12, %v7444_v20, %v7586_v0  ;;  %v7590_v18 = vsel %vm12245_vm6, %v7445_v63, %v7589_v57  ;;  %v7428_v22 = vor.u32 %v7426_v55, %v7425_v50  ;;  %v7429_v40 = vrot.slane %v7425_v50, 4  ;;  %v7592_v63 = vld [vmem:[#allocation2 + $0x40] sm:$0xf] }
 0x897   :  { %7588 = vst [vmem:[#allocation2 + $0x38] sm:$0xf] %v7587_v27  ;;  %7591 = vst [vmem:[#allocation2 + $0x3c] sm:$0x1] %v7590_v18  ;;  %v7283_v21 = vadd.f32 %v14670_v38, %v7259_v41  ;;  %v7264_v5 = vmul.f32 %v14665_v62, %v7240_v24  ;;  %v7262_v17 = vmul.f32 %v14665_v62, %v7238_v52  ;;  %v7447_v48 = vshrl.u32 %v10800_v49, 16 }
 0x898   :  { %v7575_v35 = vsel %vm12781_vm12, %v7428_v22, %v7574_v45  ;;  %v7578_v11 = vsel %vm12245_vm6, %v7429_v40, %v7577_v4  ;;  %v7014_v34 = vadd.f32 %v7013_v6, %v14652_v33  ;;  %v7241_v1 = vadd.f32 %v11518_v3, %v7022_v51  ;;  %v7580_v45 = vld [vmem:[#allocation2 + $0x30] sm:$0xf]  ;;  %v7583_v4 = vld [vmem:[#allocation2 + $0x34] sm:$0x1] }
 0x899   :  { %7576 = vst [vmem:[#allocation2 + $0x28] sm:$0xf] %v7575_v35  ;;  %7579 = vst [vmem:[#allocation2 + $0x2c] sm:$0x1] %v7578_v11  ;;  %v7450_v36 = vshll.u32 %v10800_v49, 16  ;;  %v7299_v58 = vadd.f32 %v7283_v21, %v13805_v61  ;;  %v7288_v54 = vadd.f32 %v14670_v38, %v7264_v5  ;;  %v7286_v2 = vadd.f32 %v14670_v38, %v7262_v17 }
 0x89a   :  { %v7265_v44 = vmul.f32 %v14665_v62, %v7241_v1  ;;  %v7035_v19 = vadd.f32 %v11493_v60, %v14654_v23  ;;  %v7239_v16 = vadd.f32 %v7202_v29, %v7014_v34  ;;  %v7449_v28 = vrot.slane %v7447_v48, 7  ;;  %v7595_v23 = vld [vmem:[#allocation2 + $0x44] sm:$0x1]  ;;  %v11494_v60 = vpop.f32.mrf.mxu1 }
 0x89b   :  { %v7315_v33 = vmax.f32 %v7299_v58, 0.0  ;;  %v7304_v6 = vadd.f32 %v7288_v54, %v13814_v53  ;;  %v7027_v3 = vadd.f32 %v7026_v8, %v14656_v46  ;;  %v7302_v55 = vadd.f32 %v7286_v2, %v13816_v30  ;;  %v7215_v30 = vpop.f32.mrf.mxu0  ;;  %v11931_v58 = vld [vmem:[%s15732_s7 + $0x58] sm:$0xff]   ;;  %v7610_v2 = vld [vmem:[#allocation2 + $0x68] sm:$0xf] }
 0x89c   :  { %v7289_v61 = vadd.f32 %v14670_v38, %v7265_v44  ;;  %v7263_v43 = vmul.f32 %v14665_v62, %v7239_v16  ;;  %v7244_v39 = vadd.f32 %v11521_v9, %v7035_v19  ;;  %v7452_v26 = vor.u32 %v7450_v36, %v7449_v28  ;;  %v7613_v44 = vld [vmem:[#allocation2 + $0x6c] sm:$0x1]  ;;  %11523 = vmatprep.subr.bf16.mxu1 %v11931_v58 }
 0x89d   :  { %v7453_v59 = vrot.slane %v7449_v28, 4  ;;  %v10798_v31 = vpack.c.bf16 %v7315_v33, %v7315_v33  ;;  %v7320_v20 = vmax.f32 %v7304_v6, 0.0  ;;  %v7318_v50 = vmax.f32 %v7302_v55, 0.0  ;;  %v11933_v55 = vld [vmem:[%s15732_s7 + $0x20] sm:$0xff]   ;;  %11524 = vmatpush3.bf16.msra.mxu1 %v11931_v58 }
 0x89e   :  { %v7305_v32 = vadd.f32 %v7289_v61, %v13829_v56  ;;  %v7287_v53 = vadd.f32 %v14670_v38, %v7263_v43  ;;  %v7268_v46 = vmul.f32 %v14665_v62, %v7244_v39  ;;  %v7593_v0 = vsel %vm12781_vm12, %v7452_v26, %v7592_v63  ;;  %v11934_v61 = vld [vmem:[%s15732_s7 + $0x50] sm:$0xff]   ;;  %v7598_v43 = vld [vmem:[#allocation2 + $0x58] sm:$0xf]  ;;  %v7601_v39 = vld [vmem:[#allocation2 + $0x5c] sm:$0x1]  ;;  %v7029_v63 = vpop.f32.mrf.mxu1 }
 0x89f   :  { %v7596_v57 = vsel %vm12245_vm6, %v7453_v59, %v7595_v23  ;;  %v7431_v41 = vshrl.u32 %v10798_v31, 16  ;;  %v7434_v24 = vshll.u32 %v10798_v31, 16  ;;  %7594 = vst [vmem:[#allocation2 + $0x40] sm:$0xf] %v7593_v0  ;;  %v10803_v51 = vpack.c.bf16 %v7320_v20, %v7320_v20  ;;  %v7689_v0 = vld [vmem:[#allocation2 + $0x1c] sm:$0x1]  ;;  %11525 = vmatprep.subr.bf16.mxu1 %v11934_v61 }
 0x8a0   :  { %7597 = vst [vmem:[#allocation2 + $0x44] sm:$0x1] %v7596_v57  ;;  %v10801_v52 = vpack.c.bf16 %v7318_v50, %v7318_v50  ;;  %v7321_v29 = vmax.f32 %v7305_v32, 0.0  ;;  %v7303_v56 = vadd.f32 %v7287_v53, %v13839_v37  ;;  %v7292_v18 = vadd.f32 %v14670_v38, %v7268_v46  ;;  %v7616_v46 = vld [vmem:[#allocation2 + $0x70] sm:$0xf] }
 0x8a1   :  { %v7433_v27 = vrot.slane %v7431_v41, 7  ;;  %v14754_v22 = vadd.f32 %v11494_v60, %v14658_v10  ;;  %v7242_v40 = vadd.f32 %v7215_v30, %v7027_v3  ;;  %v7471_v49 = vshrl.u32 %v10803_v51, 16  ;;  %v11930_v10 = vld [vmem:[%s15732_s7 + $0x28] sm:$0xff]   ;;  %v11522_v3 = vpop.f32.mrf.mxu0  ;;  %v7619_v60 = vld [vmem:[#allocation2 + $0x74] sm:$0x1]  ;;  %11526 = vmatpush3.bf16.msra.mxu1 %v11934_v61 }
 0x8a2   :  { %v7474_v21 = vshll.u32 %v10803_v51, 16  ;;  %v7455_v5 = vshrl.u32 %v10801_v52, 16  ;;  %v7458_v17 = vshll.u32 %v10801_v52, 16  ;;  %v10804_v34 = vpack.c.bf16 %v7321_v29, %v7321_v29  ;;  %11551 = vmatprep.subr.bf16.mxu0 %v11930_v10  ;;  %v7688_v30 = vld [vmem:[#allocation2 + $0x18] sm:$0xf] }
 0x8a3   :  { %v7436_v35 = vor.u32 %v7434_v24, %v7433_v27  ;;  %v7437_v11 = vrot.slane %v7433_v27, 4  ;;  %v7319_v1 = vmax.f32 %v7303_v56, 0.0  ;;  %v7473_v8 = vrot.slane %v7471_v49, 7  ;;  %11552 = vmatpush3.bf16.msra.mxu0 %v11930_v10  ;;  %v7690_v52 = vld [vmem:[#allocation2 + $0x20] sm:$0xf] }
 0x8a4   :  { %v7457_v48 = vrot.slane %v7455_v5, 7  ;;  %v7308_v37 = vadd.f32 %v7292_v18, %v13852_v15  ;;  %v7266_v36 = vmul.f32 %v14665_v62, %v7242_v40  ;;  %v7479_v19 = vshrl.u32 %v10804_v34, 16  ;;  %11553 = vmatprep.subr.bf16.mxu0 %v11933_v55  ;;  %v7691_v29 = vld [vmem:[#allocation2 + $0x24] sm:$0x1]  ;;  %v7685_v49 = vld [vmem:[#allocation2 + $0xc] sm:$0x1] }
 0x8a5   :  { %v7581_v54 = vsel %vm12781_vm12, %v7436_v35, %v7580_v45  ;;  %v7584_v9 = vsel %vm12245_vm6, %v7437_v11, %v7583_v4  ;;  %v7482_v15 = vshll.u32 %v10804_v34, 16  ;;  %v7476_v16 = vor.u32 %v7474_v21, %v7473_v8  ;;  %v7218_v45 = vpop.f32.mrf.mxu0  ;;  %v7684_v4 = vld [vmem:[#allocation2 + $0x8] sm:$0xf] }
 0x8a6   :  { %7582 = vst [vmem:[#allocation2 + $0x30] sm:$0xf] %v7581_v54  ;;  %7585 = vst [vmem:[#allocation2 + $0x34] sm:$0x1] %v7584_v9  ;;  %v7477_v28 = vrot.slane %v7473_v8, 4  ;;  %v7460_v33 = vor.u32 %v7458_v17, %v7457_v48  ;;  %v7461_v6 = vrot.slane %v7457_v48, 4  ;;  %v10802_v59 = vpack.c.bf16 %v7319_v1, %v7319_v1 }
 0x8a7   :  { %v7481_v26 = vrot.slane %v7479_v19, 7  ;;  %v7324_v31 = vmax.f32 %v7308_v37, 0.0  ;;  %v7290_v20 = vadd.f32 %v14670_v38, %v7266_v36  ;;  %v7611_v23 = vsel %vm12781_vm12, %v7476_v16, %v7610_v2  ;;  %11554 = vmatpush3.bf16.msra.mxu0 %v11933_v55  ;;  %v7604_v8 = vld [vmem:[#allocation2 + $0x60] sm:$0xf]  ;;  %v7607_v48 = vld [vmem:[#allocation2 + $0x64] sm:$0x1] }
 0x8a8   :  { %v7614_v50 = vsel %vm12245_vm6, %v7477_v28, %v7613_v44  ;;  %v7599_v32 = vsel %vm12781_vm12, %v7460_v33, %v7598_v43  ;;  %v7602_v53 = vsel %vm12245_vm6, %v7461_v6, %v7601_v39  ;;  %7612 = vst [vmem:[#allocation2 + $0x68] sm:$0xf] %v7611_v23  ;;  %v7463_v24 = vshrl.u32 %v10802_v59, 16  ;;  %v14797_v2 = vld [vmem:[#allocation2 + $0x10] sm:$0xf]  ;;  %v11936_v19 = vld [vmem:[%s15732_s7 + $0x18] sm:$0xff]  }
 0x8a9   :  { %7615 = vst [vmem:[#allocation2 + $0x6c] sm:$0x1] %v7614_v50  ;;  %7600 = vst [vmem:[#allocation2 + $0x58] sm:$0xf] %v7599_v32  ;;  %v7484_v57 = vor.u32 %v7482_v15, %v7481_v26  ;;  %v7485_v41 = vrot.slane %v7481_v26, 4  ;;  %v7466_v51 = vshll.u32 %v10802_v59, 16  ;;  %v10807_v56 = vpack.c.bf16 %v7324_v31, %v7324_v31  ;;  %11555 = vmatprep.subr.bf16.mxu0 %v11936_v19 }
 0x8aa   :  { %7603 = vst [vmem:[#allocation2 + $0x5c] sm:$0x1] %v7602_v53  ;;  %v7306_v27 = vadd.f32 %v7290_v20, %v13880_v25  ;;  %v7030_v18 = vadd.f32 %v7029_v63, %v14660_v47  ;;  %v7245_v40 = vadd.f32 %v11522_v3, %v14754_v22  ;;  %v7465_v17 = vrot.slane %v7463_v24, 7  ;;  %v7687_v44 = vld [vmem:[#allocation2 + $0x14] sm:$0x1]  ;;  %v11937_v3 = vld [vmem:[%s15732_s7 + $0x48] sm:$0xff]  }
 0x8ab   :  { %v7617_v21 = vsel %vm12781_vm12, %v7484_v57, %v7616_v46  ;;  %v7620_v5 = vsel %vm12245_vm6, %v7485_v41, %v7619_v60  ;;  %v14790_v35 = vcombine.low %v7688_v30, %v7689_v0  ;;  %v7503_v25 = vshrl.u32 %v10807_v56, 16  ;;  %v7634_v28 = vld [vmem:[#allocation2 + $0x88] sm:$0xf]  ;;  %v7637_v43 = vld [vmem:[#allocation2 + $0x8c] sm:$0x1]  ;;  %11527 = vmatprep.subr.bf16.mxu1 %v11937_v3  ;;  %11556 = vmatpush3.bf16.msra.mxu0 %v11936_v19  ;;  %v11939_v30 = vld [vmem:[%s15732_s7 + $0x10] sm:$0xff]  }
 0x8ac   :  { %7618 = vst [vmem:[#allocation2 + $0x70] sm:$0xf] %v7617_v21  ;;  %7621 = vst [vmem:[#allocation2 + $0x74] sm:$0x1] %v7620_v5  ;;  %v7506_v47 = vshll.u32 %v10807_v56, 16  ;;  %v7322_v11 = vmax.f32 %v7306_v27, 0.0  ;;  %v7269_v22 = vmul.f32 %v14665_v62, %v7245_v40  ;;  %v7468_v34 = vor.u32 %v7466_v51, %v7465_v17  ;;  %11528 = vmatpush3.bf16.msra.mxu1 %v11937_v3 }
 0x8ad   :  { %v7469_v1 = vrot.slane %v7465_v17, 4  ;;  %v7243_v37 = vadd.f32 %v7218_v45, %v7030_v18  ;;  %v7949_v36 = vrot.slane %v14790_v35, 1  ;;  %v7505_v10 = vrot.slane %v7503_v25, 7  ;;  %v8821_v63 = vld [vmem:[#allocation2 + $0x8] sm:$0xf]  ;;  %11557 = vmatprep.subr.bf16.mxu0 %v11939_v30  ;;  %v11940_v18 = vld [vmem:[%s15732_s7 + $0x40] sm:$0xff]  }
 0x8ae   :  { %v10805_v58 = vpack.c.bf16 %v7322_v11, %v7322_v11  ;;  %v7293_v54 = vadd.f32 %v14670_v38, %v7269_v22  ;;  %v14795_v9 = vcombine.low %v7690_v52, %v7691_v29  ;;  %v7605_v15 = vsel %vm12781_vm12, %v7468_v34, %v7604_v8  ;;  %v8822_v23 = vld [vmem:[#allocation2 + $0xc] sm:$0x1]  ;;  %v7622_v41 = vld [vmem:[#allocation2 + $0x78] sm:$0xf]  ;;  %v7625_v52 = vld [vmem:[#allocation2 + $0x7c] sm:$0x1]  ;;  %11529 = vmatprep.subr.bf16.mxu1 %v11940_v18 }
 0x8af   :  { %v7608_v16 = vsel %vm12245_vm6, %v7469_v1, %v7607_v48  ;;  %v7267_v33 = vmul.f32 %v14665_v62, %v7243_v37  ;;  %7968 = vrot.lane.b32.xlu0 %v7949_v36, %s11982_s29  ;;  %v14808_v6 = vcombine.low %v7684_v4, %v7685_v49  ;;  %7606 = vst [vmem:[#allocation2 + $0x60] sm:$0xf] %v7605_v15  ;;  %v7509_v61 = vrot.slane %v7505_v10, 4  ;;  %v14844_v17 = vld [vmem:[#allocation2 + $0x38] sm:$0xf]  ;;  %v11942_v37 = vld [vmem:[%s15732_s7 + $0x8] sm:$0xff]  }
 0x8b0   :  { %7609 = vst [vmem:[#allocation2 + $0x64] sm:$0x1] %v7608_v16  ;;  %v7508_v55 = vor.u32 %v7506_v47, %v7505_v10  ;;  %v7487_v39 = vshrl.u32 %v10805_v58, 16  ;;  %v7490_v26 = vshll.u32 %v10805_v58, 16  ;;  %v7309_v59 = vadd.f32 %v7293_v54, %v13918_v13  ;;  %11558 = vmatpush3.bf16.msra.mxu0 %v11939_v30  ;;  %11530 = vmatpush3.bf16.msra.mxu1 %v11940_v18  ;;  %v11943_v19 = vld [vmem:[%s15732_s7 + $0x38] sm:$0xff]   ;;  %v11945_v3 = vld [vmem:[%s15732_s7] sm:$0xff]  }
 0x8b1   :  { %v7291_v62 = vadd.f32 %v14670_v38, %v7267_v33  ;;  %v7950_v31 = vrot.slane %v14795_v9, 1  ;;  %v7947_v20 = vrot.slane %v14808_v6, 1  ;;  %v7638_v32 = vsel %vm12245_vm6, %v7509_v61, %v7637_v43  ;;  %11559 = vmatprep.subr.bf16.mxu0 %v11942_v37  ;;  %v7643_v61 = vld [vmem:[#allocation2 + $0x94] sm:$0x1]  ;;  %11531 = vmatprep.subr.bf16.mxu1 %v11943_v19  ;;  %v14879_v30 = vld [vmem:[#allocation2 + $0x40] sm:$0xf] }
 0x8b2   :  { %v7635_v50 = vsel %vm12781_vm12, %v7508_v55, %v7634_v28  ;;  %v7489_v53 = vrot.slane %v7487_v39, 7  ;;  %v14822_v46 = vcombine.low %v14797_v2, %v7687_v44  ;;  %7639 = vst [vmem:[#allocation2 + $0x8c] sm:$0x1] %v7638_v32  ;;  %v7325_v13 = vmax.f32 %v7309_v59, 0.0  ;;  %v14855_v44 = vld [vmem:[#allocation2 + $0x28] sm:$0xf] }
 0x8b3   :  { %7636 = vst [vmem:[#allocation2 + $0x88] sm:$0xf] %v7635_v50  ;;  %v7307_v38 = vadd.f32 %v7291_v62, %v13928_v42  ;;  %7970 = vrot.lane.b32.xlu1 %v7950_v31, %s11982_s29  ;;  %7964 = vrot.lane.b32.xlu0 %v7947_v20, %s11982_s29  ;;  %v7826_v60 = vshll.u32 %v14790_v35, 16  ;;  %v7824_v24 = vshrl.u32 %v14790_v35, 16  ;;  %v14832_v51 = vcombine.low %v8821_v63, %v8822_v23  ;;  %v7697_v35 = vld [vmem:[#allocation2 + $0x3c] sm:$0x1] }
 0x8b4   :  { %v7492_v0 = vor.u32 %v7490_v26, %v7489_v53  ;;  %v7493_v57 = vrot.slane %v7489_v53, 4  ;;  %v10808_v29 = vpack.c.bf16 %v7325_v13, %v7325_v13  ;;  %v7948_v56 = vrot.slane %v14822_v46, 1  ;;  %v7640_v55 = vld [vmem:[#allocation2 + $0x90] sm:$0xf]  ;;  %11560 = vmatpush3.bf16.msra.mxu0 %v11942_v37  ;;  %11532 = vmatpush3.bf16.msra.mxu1 %v11943_v19  ;;  %v7631_v23 = vld [vmem:[#allocation2 + $0x84] sm:$0x1] }
 0x8b5   :  { %v7323_v42 = vmax.f32 %v7307_v38, 0.0  ;;  %v7828_v27 = vrot.slane %v7826_v60, 1  ;;  %v8949_v4 = vshll.u32 %v14832_v51, 16  ;;  %v8947_v25 = vshrl.u32 %v14832_v51, 16  ;;  %v11946_v63 = vld [vmem:[%s15732_s7 + $0x30] sm:$0xff]   ;;  %11561 = vmatprep.subr.bf16.mxu0 %v11945_v3 }
 0x8b6   :  { %v7623_v40 = vsel %vm12781_vm12, %v7492_v0, %v7622_v41  ;;  %v7626_v45 = vsel %vm12245_vm6, %v7493_v57, %v7625_v52  ;;  %v7511_v49 = vshrl.u32 %v10808_v29, 16  ;;  %v7812_v11 = vshll.u32 %v14808_v6, 16  ;;  %v7699_v0 = vld [vmem:[#allocation2 + $0x44] sm:$0x1]  ;;  %11533 = vmatprep.subr.bf16.mxu1 %v11946_v63 }
 0x8b7   :  { %7624 = vst [vmem:[#allocation2 + $0x78] sm:$0xf] %v7623_v40  ;;  %7627 = vst [vmem:[#allocation2 + $0x7c] sm:$0x1] %v7626_v45  ;;  %v10806_v21 = vpack.c.bf16 %v7323_v42, %v7323_v42  ;;  %7966 = vrot.lane.b32.xlu1 %v7948_v56, %s11982_s29  ;;  %v7829_v5 = vor.u32 %v7828_v27, %v7824_v24  ;;  %v8951_v47 = vrot.slane %v8949_v4, 1  ;;  %v7833_v22 = vshll.u32 %v14795_v9, 16 }
 0x8b8   :  { %v7513_v34 = vrot.slane %v7511_v49, 7  ;;  %v7514_v1 = vshll.u32 %v10808_v29, 16  ;;  %v7810_v48 = vshrl.u32 %v14808_v6, 16  ;;  %v7814_v10 = vrot.slane %v7812_v11, 1  ;;  %v7693_v6 = vld [vmem:[#allocation2 + $0x2c] sm:$0x1]  ;;  %11562 = vmatpush3.bf16.msra.mxu0 %v11945_v3  ;;  %11534 = vmatpush3.bf16.msra.mxu1 %v11946_v63 }
 0x8b9   :  { %v7495_v8 = vshrl.u32 %v10806_v21, 16  ;;  %7920 = vrot.lane.b32.xlu0 %v7829_v5, %s11983_s24  ;;  %v8952_v36 = vor.u32 %v8951_v47, %v8947_v25  ;;  %v7835_v58 = vrot.slane %v7833_v22, 1  ;;  %v10556_v54 = vcombine.low %v14844_v17, %v7697_v35  ;;  %v14885_v42 = vld [vmem:[#allocation2 + $0x30] sm:$0xf]  ;;  %v7695_v56 = vld [vmem:[#allocation2 + $0x34] sm:$0x1] }
 0x8ba   :  { %v7516_v15 = vor.u32 %v7514_v1, %v7513_v34  ;;  %v7517_v16 = vrot.slane %v7513_v34, 4  ;;  %v7498_v33 = vshll.u32 %v10806_v21, 16  ;;  %v7815_v43 = vor.u32 %v7814_v10, %v7810_v48  ;;  %v14891_v21 = vld [vmem:[#allocation2 + $0x68] sm:$0xf]  ;;  %v7709_v5 = vld [vmem:[#allocation2 + $0x6c] sm:$0x1] }
 0x8bb   :  { %v7497_v28 = vrot.slane %v7495_v8, 7  ;;  %9053 = vrot.lane.b32.xlu1 %v8952_v36, %s11983_s24  ;;  %v7831_v39 = vshrl.u32 %v14795_v9, 16  ;;  %v7819_v26 = vshll.u32 %v14822_v46, 16  ;;  %v7628_v9 = vld [vmem:[#allocation2 + $0x80] sm:$0xf]  ;;  %v7854_v53 = vshll.u32 %v10556_v54, 16 }
 0x8bc   :  { %v7641_v59 = vsel %vm12781_vm12, %v7516_v15, %v7640_v55  ;;  %v7644_v62 = vsel %vm12245_vm6, %v7517_v16, %v7643_v61  ;;  %v10554_v13 = vcombine.low %v14855_v44, %v7693_v6  ;;  %v7953_v57 = vrot.slane %v10556_v54, 1  ;;  %v14896_v1 = vld [vmem:[#allocation2 + $0x58] sm:$0xf]  ;;  %v7705_v8 = vld [vmem:[#allocation2 + $0x5c] sm:$0x1] }
 0x8bd   :  { %v7500_v31 = vor.u32 %v7498_v33, %v7497_v28  ;;  %v7501_v20 = vrot.slane %v7497_v28, 4  ;;  %7642 = vst [vmem:[#allocation2 + $0x90] sm:$0xf] %v7641_v59  ;;  %7645 = vst [vmem:[#allocation2 + $0x94] sm:$0x1] %v7644_v62  ;;  %7916 = vrot.lane.b32.xlu0 %v7815_v43, %s11983_s24  ;;  %v7836_v50 = vor.u32 %v7835_v58, %v7831_v39  ;;  %v7821_v32 = vrot.slane %v7819_v26, 1 }
 0x8be   :  { %v7817_v41 = vshrl.u32 %v14822_v46, 16  ;;  %v7856_v24 = vrot.slane %v7854_v53, 1  ;;  %v7840_v52 = vshll.u32 %v10554_v13, 16  ;;  %v7852_v14 = vshrl.u32 %v10556_v54, 16  ;;  %v14899_v36 = vld [vmem:[#allocation2 + $0x70] sm:$0xf] }
 0x8bf   :  { %v7629_v38 = vsel %vm12781_vm12, %v7500_v31, %v7628_v9  ;;  %v7632_v60 = vsel %vm12245_vm6, %v7501_v20, %v7631_v23  ;;  %7922 = vrot.lane.b32.xlu1 %v7836_v50, %s11983_s24  ;;  %v10565_v29 = vcombine.low %v14879_v30, %v7699_v0  ;;  %v7951_v46 = vrot.slane %v10554_v13, 1  ;;  %v7711_v10 = vld [vmem:[#allocation2 + $0x74] sm:$0x1]  ;;  %v14905_v33 = vld [vmem:[#allocation2 + $0x60] sm:$0xf]  ;;  %v14913_v26 = vld [vmem:[%s15732_s7 + $0x88] sm:$0xff]  }
 0x8c0   :  { %7630 = vst [vmem:[#allocation2 + $0x80] sm:$0xf] %v7629_v38  ;;  %7633 = vst [vmem:[#allocation2 + $0x84] sm:$0x1] %v7632_v60  ;;  %v7822_v12 = vor.u32 %v7821_v32, %v7817_v41  ;;  %v7857_v27 = vor.u32 %v7856_v24, %v7852_v14  ;;  %v7842_v18 = vrot.slane %v7840_v52, 1  ;;  %v7838_v40 = vshrl.u32 %v10554_v13, 16  ;;  %11579 = vmatprep.subr.bf16.mxu1 %v14913_v26 }
 0x8c1   :  { %7976 = vrot.lane.b32.xlu0 %v7953_v57, %s11982_s29  ;;  %v10555_v45 = vcombine.low %v14885_v42, %v7695_v56  ;;  %v8087_v4 = vshll.u32 %v10565_v29, 16  ;;  %v8102_v35 = vrot.slane %v10565_v29, 1  ;;  %v8085_v22 = vshrl.u32 %v10565_v29, 16  ;;  %v7707_v6 = vld [vmem:[#allocation2 + $0x64] sm:$0x1] }
 0x8c2   :  { %v7843_v49 = vor.u32 %v7842_v18, %v7838_v40  ;;  %v10560_v34 = vcombine.low %v14891_v21, %v7709_v5  ;;  %v10558_v19 = vcombine.low %v14896_v1, %v7705_v8  ;;  %v10561_v28 = vcombine.low %v14899_v36, %v7711_v10  ;;  %v14907_v3 = vld [vmem:[#allocation2 + $0x88] sm:$0xf]  ;;  %v7717_v39 = vld [vmem:[#allocation2 + $0x8c] sm:$0x1]  ;;  %v14920_v50 = vld [vmem:[#allocation2 + $0x78] sm:$0xf] }
 0x8c3   :  { %7918 = vrot.lane.b32.xlu1 %v7822_v12, %s11983_s24  ;;  %v8089_v25 = vrot.slane %v8087_v4, 1  ;;  %v7847_v47 = vshll.u32 %v10555_v45, 16  ;;  %v7952_v11 = vrot.slane %v10555_v45, 1  ;;  %v7845_v54 = vshrl.u32 %v10555_v45, 16  ;;  %v7713_v32 = vld [vmem:[#allocation2 + $0x7c] sm:$0x1] }
 0x8c4   :  { %v7957_v58 = vrot.slane %v10560_v34, 1  ;;  %v7882_v15 = vshll.u32 %v10560_v34, 16  ;;  %v7955_v55 = vrot.slane %v10558_v19, 1  ;;  %v7868_v43 = vshll.u32 %v10558_v19, 16  ;;  %v14926_v14 = vld [vmem:[#allocation2 + $0x90] sm:$0xf] }
 0x8c5   :  { %7928 = vrot.lane.b32.xlu0 %v7857_v27, %s11983_s24  ;;  %v8090_v48 = vor.u32 %v8089_v25, %v8085_v22  ;;  %v7849_v37 = vrot.slane %v7847_v47, 1  ;;  %v7958_v59 = vrot.slane %v10561_v28, 1  ;;  %v7880_v62 = vshrl.u32 %v10560_v34, 16  ;;  %v7719_v29 = vld [vmem:[#allocation2 + $0x94] sm:$0x1]  ;;  %v14938_v47 = vld [vmem:[%s15733_s10 + $0x58] sm:$0xff]  }
 0x8c6   :  { %v7884_v61 = vrot.slane %v7882_v15, 1  ;;  %v10559_v31 = vcombine.low %v14905_v33, %v7707_v6  ;;  %v7889_v20 = vshll.u32 %v10561_v28, 16  ;;  %v7870_v9 = vrot.slane %v7868_v43, 1  ;;  %v14931_v45 = vld [vmem:[#allocation2 + $0x10] sm:$0xf]  ;;  %11607 = vmatprep.subr.bf16.mxu0 %v14938_v47 }
 0x8c7   :  { %7972 = vrot.lane.b32.xlu1 %v7951_v46, %s11982_s29  ;;  %v7850_v16 = vor.u32 %v7849_v37, %v7845_v54  ;;  %v10564_v23 = vcombine.low %v14907_v3, %v7717_v39  ;;  %v7866_v13 = vshrl.u32 %v10558_v19, 16  ;;  %v7887_v57 = vshrl.u32 %v10561_v28, 16  ;;  %v14929_v40 = vld [vmem:[#allocation2 + $0x80] sm:$0xf]  ;;  %v8824_v4 = vld [vmem:[#allocation2 + $0x14] sm:$0x1] }
 0x8c8   :  { %v7885_v63 = vor.u32 %v7884_v61, %v7880_v62  ;;  %v7956_v53 = vrot.slane %v10559_v31, 1  ;;  %v7891_v38 = vrot.slane %v7889_v20, 1  ;;  %v7875_v60 = vshll.u32 %v10559_v31, 16  ;;  %v7715_v25 = vld [vmem:[#allocation2 + $0x84] sm:$0x1] }
 0x8c9   :  { %7924 = vrot.lane.b32.xlu0 %v7843_v49, %s11983_s24  ;;  %v7871_v0 = vor.u32 %v7870_v9, %v7866_v13  ;;  %v7910_v41 = vshll.u32 %v10564_v23, 16  ;;  %v10562_v24 = vcombine.low %v14920_v50, %v7713_v32  ;;  %v7961_v56 = vrot.slane %v10564_v23, 1  ;;  %v14944_v8 = vld [vmem:[#allocation2 + $0x18] sm:$0xf]  ;;  %v14948_v10 = vld [vmem:[#allocation2 + $0x20] sm:$0xf] }
 0x8ca   :  { %v7892_v52 = vor.u32 %v7891_v38, %v7887_v57  ;;  %v7877_v12 = vrot.slane %v7875_v60, 1  ;;  %v7873_v27 = vshrl.u32 %v10559_v31, 16  ;;  %v7908_v5 = vshrl.u32 %v10564_v23, 16  ;;  %v8830_v13 = vld [vmem:[#allocation2 + $0x2c] sm:$0x1] }
 0x8cb   :  { %8104 = vrot.lane.b32.xlu1 %v8102_v35, %s11982_s29  ;;  %v7912_v18 = vrot.slane %v7910_v41, 1  ;;  %v7896_v46 = vshll.u32 %v10562_v24, 16  ;;  %v10566_v35 = vcombine.low %v14926_v14, %v7719_v29  ;;  %v14942_v34 = vcombine.low %v14931_v45, %v8824_v4  ;;  %v8832_v4 = vld [vmem:[#allocation2 + $0x34] sm:$0x1] }
 0x8cc   :  { %v7878_v49 = vor.u32 %v7877_v12, %v7873_v27  ;;  %v10563_v37 = vcombine.low %v14929_v40, %v7715_v25  ;;  %v7959_v54 = vrot.slane %v10562_v24, 1  ;;  %v7894_v19 = vshrl.u32 %v10562_v24, 16  ;;  %v8834_v27 = vld [vmem:[#allocation2 + $0x3c] sm:$0x1] }
 0x8cd   :  { %7974 = vrot.lane.b32.xlu0 %v7952_v11, %s11982_s29  ;;  %v7913_v11 = vor.u32 %v7912_v18, %v7908_v5  ;;  %v7898_v22 = vrot.slane %v7896_v46, 1  ;;  %v8094_v15 = vshll.u32 %v10566_v35, 16  ;;  %v8956_v28 = vshll.u32 %v14942_v34, 16  ;;  %v14972_v46 = vld [vmem:[#allocation2 + $0x30] sm:$0xf] }
 0x8ce   :  { %v8103_v43 = vrot.slane %v10566_v35, 1  ;;  %v8092_v62 = vshrl.u32 %v10566_v35, 16  ;;  %v8954_v31 = vshrl.u32 %v14942_v34, 16  ;;  %v9083_v5 = vrot.slane %v14639_v7, 1  ;;  %v8840_v7 = vld [vmem:[#allocation2 + $0x54] sm:$0x1] }
 0x8cf   :  { %8098 = vrot.lane.b32.xlu1 %v8090_v48, %s11983_s24  ;;  %v8826_v48 = vld [vmem:[#allocation2 + $0x1c] sm:$0x1]  ;;  %v8096_v39 = vrot.slane %v8094_v15, 1  ;;  %v8958_v20 = vrot.slane %v8956_v28, 1  ;;  %v14985_v15 = vld [vmem:[#allocation2 + $0x40] sm:$0xf] }
 0x8d0   :  { %v10634_v61 = vcombine.low %v14944_v8, %v8826_v48 }
 0x8d1   :  { %7984 = vrot.lane.b32.xlu0 %v7957_v58, %s11982_s29  ;;  %v8828_v58 = vld [vmem:[#allocation2 + $0x24] sm:$0x1]  ;;  %v8097_v32 = vor.u32 %v8096_v39, %v8092_v62  ;;  %v8959_v38 = vor.u32 %v8958_v20, %v8954_v31  ;;  %v14994_v62 = vpop.permute.xlu0 %7914 }
 0x8d2   :  { %v14954_v6 = vcombine.low %v14948_v10, %v8828_v58  ;;  %v8963_v23 = vshll.u32 %v10634_v61, 16  ;;  %v8961_v29 = vshrl.u32 %v10634_v61, 16 }
 0x8d3   :  { %7926 = vrot.lane.b32.xlu1 %v7850_v16, %s11983_s24  ;;  %v7899_v16 = vor.u32 %v7898_v22, %v7894_v19  ;;  %v9086_v22 = vrot.slane %v10634_v61, 1  ;;  %v14983_v19 = vld [vmem:[#allocation2 + $0x50] sm:$0xf] }
 0x8d4   :  { %v8968_v57 = vshrl.u32 %v14954_v6, 16  ;;  %v8965_v41 = vrot.slane %v8963_v23, 1 }
 0x8d5   :  { %7980 = vrot.lane.b32.xlu0 %v7955_v55, %s11982_s29  ;;  %v7903_v55 = vshll.u32 %v10563_v37, 16 }
 0x8d6   :  { %v8966_v18 = vor.u32 %v8965_v41, %v8961_v29  ;;  %v15007_v41 = vpop.permute.xlu0 %8508 }
 0x8d7   :  { %7986 = vrot.lane.b32.xlu1 %v7958_v59, %s11982_s29  ;;  %v7960_v59 = vrot.slane %v10563_v37, 1  ;;  %v7905_v9 = vrot.slane %v7903_v55, 1 }
 0x8d9   :  { %7936 = vrot.lane.b32.xlu0 %v7885_v63, %s11983_s24  ;;  %v8970_v63 = vshll.u32 %v14954_v6, 16 }
 0x8db   :  { %7982 = vrot.lane.b32.xlu1 %v7956_v53, %s11982_s29  ;;  %v14962_v53 = vld [vmem:[#allocation2 + $0x28] sm:$0xf]  ;;  %v8972_v60 = vrot.slane %v8970_v63, 1  ;;  %v14997_v63 = vld [vmem:[#allocation2 + $0x60] sm:$0xf] }
 0x8dd   :  { %7932 = vrot.lane.b32.xlu0 %v7871_v0, %s11983_s24  ;;  %v7901_v0 = vshrl.u32 %v10563_v37, 16  ;;  %v8973_v12 = vor.u32 %v8972_v60, %v8968_v57 }
 0x8df   :  { %7938 = vrot.lane.b32.xlu1 %v7892_v52, %s11983_s24  ;;  %v7906_v24 = vor.u32 %v7905_v9, %v7901_v0  ;;  %v14967_v52 = vld [vmem:[#allocation2 + $0x38] sm:$0xf]  ;;  %v8844_v9 = vld [vmem:[#allocation2 + $0x64] sm:$0x1] }
 0x8e0   :  { %v10638_v25 = vcombine.low %v14967_v52, %v8834_v27  ;;  %v15005_v0 = vcombine.low %v14997_v63, %v8844_v9 }
 0x8e1   :  { %7992 = vrot.lane.b32.xlu0 %v7961_v56, %s11982_s29  ;;  %v10636_v56 = vcombine.low %v14962_v53, %v8830_v13  ;;  %v15001_v13 = vld [vmem:[#allocation2 + $0x58] sm:$0xf] }
 0x8e2   :  { %v8991_v37 = vshll.u32 %v10638_v25, 16  ;;  %v8989_v61 = vshrl.u32 %v10638_v25, 16 }
 0x8e3   :  { %7934 = vrot.lane.b32.xlu1 %v7878_v49, %s11983_s24  ;;  %v9084_v49 = vrot.slane %v14832_v51, 1  ;;  %v8977_v35 = vshll.u32 %v10636_v56, 16  ;;  %v8975_v58 = vshrl.u32 %v10636_v56, 16  ;;  %v9085_v51 = vrot.slane %v14942_v34, 1 }
 0x8e4   :  { %v8993_v55 = vrot.slane %v8991_v37, 1  ;;  %v9088_v57 = vrot.slane %v10636_v56, 1 }
 0x8e5   :  { %7944 = vrot.lane.b32.xlu0 %v7913_v11, %s11983_s24  ;;  %v10637_v11 = vcombine.low %v14972_v46, %v8832_v4  ;;  %v8979_v48 = vrot.slane %v8977_v35, 1  ;;  %v9090_v35 = vrot.slane %v10638_v25, 1 }
 0x8e6   :  { %v8994_v31 = vor.u32 %v8993_v55, %v8989_v61 }
 0x8e7   :  { %7988 = vrot.lane.b32.xlu1 %v7959_v54, %s11982_s29  ;;  %v8984_v54 = vshll.u32 %v10637_v11, 16  ;;  %v8980_v28 = vor.u32 %v8979_v48, %v8975_v58  ;;  %v8982_v20 = vshrl.u32 %v10637_v11, 16  ;;  %v9089_v60 = vrot.slane %v10637_v11, 1  ;;  %v15021_v48 = vpop.permute.xlu1 %7962 }
 0x8e8   :  { %v9012_v11 = vshll.u32 %v15005_v0, 16 }
 0x8e9   :  { %7940 = vrot.lane.b32.xlu0 %v7899_v16, %s11983_s24  ;;  %v8836_v16 = vld [vmem:[#allocation2 + $0x44] sm:$0x1]  ;;  %v8986_v39 = vrot.slane %v8984_v54, 1 }
 0x8ea   :  { %v10647_v34 = vcombine.low %v14985_v15, %v8836_v16  ;;  %v9014_v25 = vrot.slane %v9012_v11, 1 }
 0x8eb   :  { %8106 = vrot.lane.b32.xlu1 %v8103_v43, %s11982_s29  ;;  %v9087_v43 = vrot.slane %v14954_v6, 1  ;;  %v8987_v23 = vor.u32 %v8986_v39, %v8982_v20  ;;  %v15031_v39 = vpop.permute.xlu1 %8514 }
 0x8ec   :  { %v9222_v56 = vshrl.u32 %v10647_v34, 16  ;;  %v9239_v55 = vrot.slane %v10647_v34, 1 }
 0x8ed   :  { %7990 = vrot.lane.b32.xlu0 %v7960_v59, %s11982_s29  ;;  %v14991_v59 = vcombine.low %v14983_v19, %v8840_v7  ;;  %v15025_v7 = vpop.permute.xlu0 %7930 }
 0x8ef   :  { %8100 = vrot.lane.b32.xlu1 %v8097_v32, %s11983_s24  ;;  %v8998_v6 = vshll.u32 %v14991_v59, 16  ;;  %v9224_v32 = vshll.u32 %v10647_v34, 16  ;;  %v8996_v29 = vshrl.u32 %v14991_v59, 16 }
 0x8f1   :  { %9055 = vrot.lane.b32.xlu0 %v8959_v38, %s11983_s24  ;;  %v8842_v38 = vld [vmem:[#allocation2 + $0x5c] sm:$0x1]  ;;  %v9000_v27 = vrot.slane %v8998_v6, 1  ;;  %v15036_v6 = vld [vmem:[#allocation2 + $0x78] sm:$0xf] }
 0x8f2   :  { %v10640_v4 = vcombine.low %v15001_v13, %v8842_v38  ;;  %15754 = vst [vmem:[#allocation4_spill] sm:$0xff] %v15036_v6 }
 0x8f3   :  { %7942 = vrot.lane.b32.xlu1 %v7906_v24, %s11983_s24  ;;  %v15009_v24 = vld [vmem:[#allocation2 + $0x70] sm:$0xf]  ;;  %v9001_v37 = vor.u32 %v9000_v27, %v8996_v29  ;;  %v15042_v27 = vpop.permute.xlu1 %7978 }
 0x8f4   :  { %v9003_v9 = vshrl.u32 %v10640_v4, 16  ;;  %v9092_v11 = vrot.slane %v10640_v4, 1 }
 0x8f5   :  { %9059 = vrot.lane.b32.xlu0 %v8973_v12, %s11983_s24  ;;  %v8848_v12 = vld [vmem:[#allocation2 + $0x74] sm:$0x1] }
 0x8f7   :  { %9057 = vrot.lane.b32.xlu1 %v8966_v18, %s11983_s24  ;;  %v9226_v18 = vrot.slane %v9224_v32, 1  ;;  %v8850_v32 = vld [vmem:[#allocation2 + $0x7c] sm:$0x1] }
 0x8f8   :  { %v10644_v29 = vcombine.low %v15036_v6, %v8850_v32  ;;  %v15067_v32 = vld [vmem:[#allocation2 + $0x80] sm:$0xf]  ;;  %v11975_v6 = vld [vmem:[#allocation2 + $0x18] sm:$0xf] }
 0x8f9   :  { %9101 = vrot.lane.b32.xlu0 %v9084_v49, %s11982_s29  ;;  %v15014_v49 = vld [vmem:[#allocation2 + $0x68] sm:$0xf]  ;;  %v9227_v58 = vor.u32 %v9226_v18, %v9222_v56  ;;  %15758 = vst [vmem:[#allocation8_spill] sm:$0xff] %v15067_v32 }
 0x8fa   :  { %v15044_v18 = vld [vmem:[#allocation2 + $0x88] sm:$0xf] }
 0x8fb   :  { %9099 = vrot.lane.b32.xlu1 %v9083_v5, %s11982_s29  ;;  %v8846_v5 = vld [vmem:[#allocation2 + $0x6c] sm:$0x1]  ;;  %15755 = vst [vmem:[#allocation5_spill] sm:$0xff] %v15044_v18 }
 0x8fc   :  { %v10642_v54 = vcombine.low %v15014_v49, %v8846_v5  ;;  %v8854_v5 = vld [vmem:[#allocation2 + $0x8c] sm:$0x1] }
 0x8fd   :  { %9105 = vrot.lane.b32.xlu0 %v9086_v22, %s11982_s29  ;;  %v15019_v22 = vcombine.low %v15009_v24, %v8848_v12 }
 0x8fe   :  { %v9017_v12 = vshrl.u32 %v10642_v54, 16 }
 0x8ff   :  { %9103 = vrot.lane.b32.xlu1 %v9085_v51, %s11982_s29  ;;  %v9005_v51 = vshll.u32 %v10640_v4, 16  ;;  %v9026_v16 = vshll.u32 %v15019_v22, 16  ;;  %v9024_v38 = vshrl.u32 %v15019_v22, 16 }
 0x901   :  { %9061 = vrot.lane.b32.xlu0 %v8980_v28, %s11983_s24  ;;  %v9010_v28 = vshrl.u32 %v15005_v0, 16  ;;  %v9007_v61 = vrot.slane %v9005_v51, 1  ;;  %v9028_v20 = vrot.slane %v9026_v16, 1  ;;  %v10646_v51 = vcombine.low %v15044_v18, %v8854_v5  ;;  %v15055_v16 = vld [vmem:[#allocation2 + $0x90] sm:$0xf] }
 0x902   :  { %15756 = vst [vmem:[#allocation6_spill] sm:$0xff] %v15055_v16  ;;  %v9095_v5 = vrot.slane %v15019_v22, 1 }
 0x903   :  { %9107 = vrot.lane.b32.xlu1 %v9087_v43, %s11982_s29  ;;  %v9019_v43 = vshll.u32 %v10642_v54, 16  ;;  %v9098_v18 = vrot.slane %v10646_v51, 1 }
 0x905   :  { %9065 = vrot.lane.b32.xlu0 %v8994_v31, %s11983_s24  ;;  %v9015_v31 = vor.u32 %v9014_v25, %v9010_v28  ;;  %v9021_v34 = vrot.slane %v9019_v43, 1  ;;  %v15053_v25 = vpop.permute.xlu1 %8516  ;;  %v8856_v28 = vld [vmem:[#allocation2 + $0x94] sm:$0x1]  ;;  %v9047_v43 = vshll.u32 %v10646_v51, 16 }
 0x907   :  { %9063 = vrot.lane.b32.xlu1 %v8987_v23, %s11983_s24  ;;  %v15034_v23 = vpop.permute.xlu0 %8510 }
 0x909   :  { %9111 = vrot.lane.b32.xlu0 %v9089_v60, %s11982_s29  ;;  %v9008_v60 = vor.u32 %v9007_v61, %v9003_v9  ;;  %v15065_v9 = vld [vmem:[#allocation2 + $0x48] sm:$0xf] }
 0x90a   :  { %15757 = vst [vmem:[#allocation7_spill] sm:$0xff] %v15065_v9 }
 0x90b   :  { %9109 = vrot.lane.b32.xlu1 %v9088_v57, %s11982_s29  ;;  %v9029_v57 = vor.u32 %v9028_v20, %v9024_v38  ;;  %v15047_v56 = vpop.permute.xlu0 %9051  ;;  %v15063_v20 = vcombine.low %v15055_v16, %v8856_v28  ;;  %v8852_v38 = vld [vmem:[#allocation2 + $0x84] sm:$0x1] }
 0x90d   :  { %9113 = vrot.lane.b32.xlu0 %v9090_v35, %s11982_s29  ;;  %v9022_v35 = vor.u32 %v9021_v34, %v9017_v12  ;;  %v9049_v34 = vrot.slane %v9047_v43, 1  ;;  %v9096_v43 = vrot.slane %v10644_v29, 1 }
 0x90f   :  { %9235 = vrot.lane.b32.xlu1 %v9227_v58, %s11983_s24  ;;  %v9033_v58 = vshll.u32 %v10644_v29, 16 }
 0x911   :  { %9067 = vrot.lane.b32.xlu0 %v9001_v37, %s11983_s24  ;;  %v9091_v37 = vrot.slane %v14991_v59, 1  ;;  %v9035_v61 = vrot.slane %v9033_v58, 1  ;;  %v9031_v59 = vshrl.u32 %v10644_v29, 16 }
 0x913   :  { %9241 = vrot.lane.b32.xlu1 %v9239_v55, %s11982_s29  ;;  %v9094_v55 = vrot.slane %v10642_v54, 1  ;;  %v8838_v54 = vld [vmem:[#allocation2 + $0x4c] sm:$0x1] }
 0x915   :  { %9071 = vrot.lane.b32.xlu0 %v9015_v31, %s11983_s24  ;;  %v9093_v31 = vrot.slane %v15005_v0, 1  ;;  %v9045_v0 = vshrl.u32 %v10646_v51, 16  ;;  %v11974_v51 = vld [vmem:[#allocation2 + $0x20] sm:$0xf] }
 0x917   :  { %9069 = vrot.lane.b32.xlu1 %v9008_v60, %s11983_s24  ;;  %v9036_v60 = vor.u32 %v9035_v61, %v9031_v59  ;;  %v9050_v58 = vor.u32 %v9049_v34, %v9045_v0  ;;  %v8858_v61 = vld [vmem:[#allocation2 + $0x9c] sm:$0x1] }
 0x919   :  { %9075 = vrot.lane.b32.xlu0 %v9029_v57, %s11983_s24 }
 0x91b   :  { %9073 = vrot.lane.b32.xlu1 %v9022_v35, %s11983_s24  ;;  %v10645_v35 = vcombine.low %v15067_v32, %v8852_v38  ;;  %v9229_v38 = vshrl.u32 %v15063_v20, 16 }
 0x91d   :  { %9117 = vrot.lane.b32.xlu0 %v9092_v11, %s11982_s29  ;;  %v9231_v11 = vshll.u32 %v15063_v20, 16  ;;  %v9097_v16 = vrot.slane %v10645_v35, 1 }
 0x91f   :  { %9115 = vrot.lane.b32.xlu1 %v9091_v37, %s11982_s29  ;;  %v10693_v37 = vcombine.low %v15065_v9, %v8838_v54  ;;  %v9233_v22 = vrot.slane %v9231_v11, 1  ;;  %v11972_v11 = vld [vmem:[#allocation2] sm:$0xf] }
 0x920   :  { %v7996_v9 = vsel %vm820_vm9, %v11972_v11, %v14994_v62 }
 0x921   :  { %v15058_v4 = vpop.permute.xlu0 %7968  ;;  %9121 = vrot.lane.b32.xlu0 %v9094_v55, %s11982_s29  ;;  %v15076_v55 = vld [vmem:[#allocation2 + $0x98] sm:$0xf]  ;;  %v9634_v59 = vshll.u32 %v10693_v37, 16  ;;  %v9632_v0 = vshrl.u32 %v10693_v37, 16 }
 0x922   :  { %15759 = vst [vmem:[#allocation9_spill] sm:$0xff] %v15076_v55  ;;  %v15082_v54 = vcombine.low %v15076_v55, %v8858_v61  ;;  %v11973_v55 = vld [vmem:[#allocation2 + $0x8] sm:$0xf] }
 0x923   :  { %9119 = vrot.lane.b32.xlu1 %v9093_v31, %s11982_s29  ;;  %v9040_v31 = vshll.u32 %v10645_v35, 16 }
 0x924   :  { %v9641_v61 = vshll.u32 %v15082_v54, 16 }
 0x925   :  { %v7971_v57 = vpop.permute.xlu1 %7970  ;;  %v7965_v12 = vpop.permute.xlu0 %7964  ;;  %9077 = vrot.lane.b32.xlu0 %v9036_v60, %s11983_s24  ;;  %v9042_v29 = vrot.slane %v9040_v31, 1 }
 0x927   :  { %9123 = vrot.lane.b32.xlu1 %v9095_v5, %s11982_s29  ;;  %v9234_v5 = vor.u32 %v9233_v22, %v9229_v38  ;;  %v8043_v22 = vsel %vm869_vm10, %v7996_v9, %v15021_v48  ;;  %v9649_v9 = vrot.slane %v10693_v37, 1 }
 0x929   :  { %v7967_v28 = vpop.permute.xlu1 %7966  ;;  %9081 = vrot.lane.b32.xlu0 %v9050_v58, %s11983_s24  ;;  %v9636_v58 = vrot.slane %v9634_v59, 1 }
 0x92b   :  { %v7921_v60 = vpop.permute.xlu0 %7920  ;;  %9125 = vrot.lane.b32.xlu1 %v9096_v43, %s11982_s29  ;;  %v9038_v43 = vshrl.u32 %v10645_v35, 16  ;;  %v9637_v38 = vor.u32 %v9636_v58, %v9632_v0 }
 0x92c   :  { %v8005_v48 = vsel %vm820_vm9, %v11975_v6, %v7921_v60 }
 0x92d   :  { %9127 = vrot.lane.b32.xlu0 %v9097_v16, %s11982_s29  ;;  %v15085_v34 = vpop.permute.xlu1 %9053  ;;  %v9043_v62 = vor.u32 %v9042_v29, %v9038_v43  ;;  %v8049_v29 = vsel %vm869_vm10, %v8005_v48, %v15058_v4  ;;  %v11953_v4 = vld [vmem:[%s15733_s10 + $0x50] sm:$0xff]   ;;  %v11955_v48 = vld [vmem:[%s15732_s7 + $0x68] sm:$0xff]  }
 0x92f   :  { %v7917_v32 = vpop.permute.xlu0 %7916  ;;  %9237 = vrot.lane.b32.xlu1 %v9234_v5, %s11983_s24 }
 0x930   :  { %v7999_v16 = vsel %vm820_vm9, %v11973_v55, %v7917_v32  ;;  %v9639_v32 = vshrl.u32 %v15082_v54, 16  ;;  %v9643_v55 = vrot.slane %v9641_v61, 1 }
 0x931   :  { %v8045_v59 = vsel %vm869_vm10, %v7999_v16, %v7965_v12  ;;  %9129 = vrot.lane.b32.xlu0 %v9098_v18, %s11982_s29  ;;  %v7923_v31 = vpop.permute.xlu1 %7922  ;;  %v9240_v12 = vrot.slane %v15063_v20, 1 }
 0x932   :  { %v10589_v11 = vcombine.low %v8043_v22, %v8045_v59  ;;  %v8008_v5 = vsel %vm820_vm9, %v11974_v51, %v7923_v31  ;;  %v9644_v6 = vor.u32 %v9643_v55, %v9639_v32 }
 0x933   :  { %v15097_v35 = vpop.permute.xlu0 %7976  ;;  %9079 = vrot.lane.b32.xlu1 %v9043_v62, %s11983_s24  ;;  %v8051_v0 = vsel %vm869_vm10, %v8008_v5, %v7971_v57 }
 0x934   :  { %11563 = vmatprep.mubr.msk.bf16.mxu0 %vm1022_vm11, %v10589_v11  ;;  %v10568_v37 = vcombine.low %v8049_v29, %v8051_v0  ;;  %v11956_v11 = vld [vmem:[%s15733_s10 + $0x40] sm:$0xff]  }
 0x935   :  { %9645 = vrot.lane.b32.xlu0 %v9637_v38, %s11983_s24  ;;  %v7919_v18 = vpop.permute.xlu1 %7918  ;;  %v11950_v38 = vld [vmem:[%s15732_s7 + $0x78] sm:$0xff]  }
 0x936   :  { %v8002_v58 = vsel %vm820_vm9, %v14797_v2, %v7919_v18  ;;  %v11949_v2 = vld [vmem:[%s15732_s7 + $0x80] sm:$0xff]  }
 0x937   :  { %v8047_v43 = vsel %vm869_vm10, %v8002_v58, %v7967_v28  ;;  %v7929_v61 = vpop.permute.xlu0 %7928  ;;  %9243 = vrot.lane.b32.xlu1 %v9240_v12, %s11982_s29  ;;  %v9650_v28 = vrot.slane %v15082_v54, 1  ;;  %v11954_v54 = vld [vmem:[%s15733_s10 + $0x48] sm:$0xff]  }
 0x938   :  { %v10567_v60 = vcombine.low %v8045_v59, %v8047_v43  ;;  %v15112_v16 = vcombine.low %v8047_v43, %v8049_v29  ;;  %v8017_v32 = vsel %vm820_vm9, %v14844_v17, %v7929_v61 }
 0x939   :  { %9651 = vrot.lane.b32.xlu0 %v9649_v9, %s11982_s29  ;;  %v7973_v20 = vpop.permute.xlu1 %7972 }
 0x93a   :  { %11535 = vmatprep.mubr.msk.bf16.mxu1 %vm1022_vm11, %v10567_v60  ;;  %11564 = vmatmul.mubr.msk.bf16.vlgmr.msra.gmra.mxu0 %vm1022_vm11, %v15112_v16 }
 0x93b   :  { %v7925_v57 = vpop.permute.xlu0 %7924  ;;  %9647 = vrot.lane.b32.xlu1 %v9644_v6, %s11983_s24  ;;  %11536 = vmatmul.mubr.msk.bf16.vlgmr.msra.gmra.mxu1 %vm1022_vm11, %v10568_v37  ;;  %v15183_v37 = vld [vmem:[%s15733_s10 + $0x28] sm:$0xff]  }
 0x93c   :  { %v8011_v22 = vsel %vm820_vm9, %v14855_v44, %v7925_v57  ;;  %11580 = vmatpush3.bf16.msra.mxu1 %v14913_v26  ;;  %11608 = vmatpush3.bf16.msra.mxu0 %v14938_v47  ;;  %v11952_v47 = vld [vmem:[%s15732_s7 + $0x70] sm:$0xff]  }
 0x93d   :  { %v8053_v59 = vsel %vm869_vm10, %v8011_v22, %v7973_v20  ;;  %v8105_v31 = vpop.permute.xlu1 %8104  ;;  %11581 = vmatprep.subr.bf16.mxu1 %v11949_v2  ;;  %11609 = vmatprep.subr.bf16.mxu0 %v11953_v4  ;;  %v11976_v20 = vld [vmem:[#allocation2 + $0x50] sm:$0xf] }
 0x93e   :  { %v15135_v62 = vcombine.low %v8051_v0, %v8053_v59  ;;  %v11958_v0 = vld [vmem:[%s15733_s10 + $0x38] sm:$0xff]  }
 0x93f   :  { %v7975_v44 = vpop.permute.xlu0 %7974  ;;  %9653 = vrot.lane.b32.xlu1 %v9650_v28, %s11982_s29  ;;  %v15192_v28 = vld [vmem:[%s15733_s10 + $0x88] sm:$0xff]  }
 0x940   :  { %11567 = vmatprep.mubr.msk.bf16.mxu0 %vm1022_vm11, %v15135_v62  ;;  %11582 = vmatpush3.bf16.msra.mxu1 %v11949_v2  ;;  %v8020_v2 = vsel %vm820_vm9, %v11976_v20, %v15025_v7 }
 0x941   :  { %v8099_v26 = vpop.permute.xlu1 %8098  ;;  %11583 = vmatprep.subr.bf16.mxu1 %v11950_v38  ;;  %11610 = vmatpush3.bf16.msra.mxu0 %v11953_v4  ;;  %v8059_v22 = vsel %vm869_vm10, %v8020_v2, %v15042_v27 }
 0x942   :  { %11611 = vmatprep.subr.bf16.mxu0 %v11954_v54  ;;  %v8110_v51 = vsel %vm820_vm9, %v14879_v30, %v8099_v26  ;;  %v8057_v30 = vsel %vm869_vm10, %v8017_v32, %v15097_v35  ;;  %v11960_v35 = vld [vmem:[%s15733_s10 + $0x30] sm:$0xff]  }
 0x943   :  { %v7985_v5 = vpop.permute.xlu0 %7984  ;;  %v15157_v18 = vsel %vm869_vm10, %v8110_v51, %v8105_v31 }
 0x944   :  { %11584 = vmatpush3.bf16.msra.mxu1 %v11950_v38  ;;  %v10570_v43 = vcombine.low %v8057_v30, %v15157_v18 }
 0x945   :  { %v7927_v55 = vpop.permute.xlu1 %7926  ;;  %11585 = vmatprep.subr.bf16.mxu1 %v11952_v47  ;;  %11612 = vmatpush3.bf16.msra.mxu0 %v11954_v54 }
 0x946   :  { %v8014_v9 = vsel %vm820_vm9, %v14885_v42, %v7927_v55  ;;  %11613 = vmatprep.subr.bf16.mxu0 %v11956_v11  ;;  %v11957_v42 = vld [vmem:[%s15732_s7 + $0x60] sm:$0xff]  }
 0x947   :  { %v8055_v17 = vsel %vm869_vm10, %v8014_v9, %v7975_v44  ;;  %v7981_v12 = vpop.permute.xlu0 %7980 }
 0x948   :  { %v10569_v58 = vcombine.low %v8053_v59, %v8055_v17  ;;  %v15167_v29 = vcombine.low %v8055_v17, %v8057_v30  ;;  %11586 = vmatpush3.bf16.msra.mxu1 %v11952_v47 }
 0x949   :  { %v7987_v61 = vpop.permute.xlu1 %7986  ;;  %11587 = vmatprep.subr.bf16.mxu1 %v11955_v48  ;;  %11614 = vmatpush3.bf16.msra.mxu0 %v11956_v11 }
 0x94a   :  { %11539 = vmatprep.mubr.msk.bf16.mxu1 %vm1022_vm11, %v10569_v58  ;;  %11568 = vmatmul.mubr.msk.bf16.gmra.mxu0 %vm1022_vm11, %v15167_v29 }
 0x94b   :  { %v7937_v6 = vpop.permute.xlu0 %7936  ;;  %11540 = vmatmul.mubr.msk.bf16.gmra.mxu1 %vm1022_vm11, %v10570_v43  ;;  %11615 = vmatprep.subr.bf16.mxu0 %v11958_v0 }
 0x94c   :  { %11588 = vmatpush3.bf16.msra.mxu1 %v11955_v48  ;;  %v8029_v54 = vsel %vm820_vm9, %v14891_v21, %v7937_v6 }
 0x94d   :  { %v7983_v60 = vpop.permute.xlu1 %7982  ;;  %11589 = vmatprep.subr.bf16.mxu1 %v11957_v42  ;;  %11616 = vmatpush3.bf16.msra.mxu0 %v11958_v0  ;;  %v8065_v47 = vsel %vm869_vm10, %v8029_v54, %v7985_v5 }
 0x94e   :  { %11617 = vmatprep.subr.bf16.mxu0 %v11960_v35 }
 0x94f   :  { %v7933_v4 = vpop.permute.xlu0 %7932 }
 0x950   :  { %v8023_v57 = vsel %vm820_vm9, %v14896_v1, %v7933_v4  ;;  %11590 = vmatpush3.bf16.msra.mxu1 %v11957_v42 }
 0x951   :  { %v8061_v59 = vsel %vm869_vm10, %v8023_v57, %v7981_v12  ;;  %v7939_v31 = vpop.permute.xlu1 %7938  ;;  %11635 = vmatprep.subr.bf16.mxu1 %v15183_v37  ;;  %11618 = vmatpush3.bf16.msra.mxu0 %v11960_v35 }
 0x952   :  { %v10593_v7 = vcombine.low %v8059_v22, %v8061_v59  ;;  %11663 = vmatprep.subr.bf16.mxu0 %v15192_v28  ;;  %v8032_v1 = vsel %vm820_vm9, %v14899_v36, %v7939_v31  ;;  %v11978_v22 = vld [vmem:[#allocation2 + $0x8] sm:$0xf] }
 0x953   :  { %v7993_v38 = vpop.permute.xlu0 %7992  ;;  %v8067_v27 = vsel %vm869_vm10, %v8032_v1, %v7987_v61 }
 0x954   :  { %11571 = vmatprep.mubr.msk.bf16.mxu0 %vm1022_vm11, %v10593_v7  ;;  %v10572_v36 = vcombine.low %v8065_v47, %v8067_v27 }
 0x955   :  { %v7935_v44 = vpop.permute.xlu1 %7934 }
 0x956   :  { %v8026_v26 = vsel %vm820_vm9, %v14905_v33, %v7935_v44 }
 0x957   :  { %v8063_v11 = vsel %vm869_vm10, %v8026_v26, %v7983_v60  ;;  %v7945_v51 = vpop.permute.xlu0 %7944 }
 0x958   :  { %v10571_v32 = vcombine.low %v8061_v59, %v8063_v11  ;;  %v15209_v55 = vcombine.low %v8063_v11, %v8065_v47  ;;  %v8041_v43 = vsel %vm820_vm9, %v14907_v3, %v7945_v51  ;;  %v9136_v59 = vsel %vm820_vm9, %v11978_v22, %v15085_v34 }
 0x959   :  { %v7989_v48 = vpop.permute.xlu1 %7988  ;;  %v8073_v35 = vsel %vm869_vm10, %v8041_v43, %v7993_v38  ;;  %v11965_v43 = vld [vmem:[%s15733_s10] sm:$0xff]  }
 0x95a   :  { %11543 = vmatprep.mubr.msk.bf16.mxu1 %vm1022_vm11, %v10571_v32  ;;  %11572 = vmatmul.mubr.msk.bf16.gmra.mxu0 %vm1022_vm11, %v15209_v55 }
 0x95b   :  { %v7941_v21 = vpop.permute.xlu0 %7940  ;;  %11544 = vmatmul.mubr.msk.bf16.gmra.mxu1 %vm1022_vm11, %v10572_v36 }
 0x95c   :  { %v8035_v33 = vsel %vm820_vm9, %v14920_v50, %v7941_v21  ;;  %v11963_v21 = vld [vmem:[%s15733_s10 + $0x10] sm:$0xff]  }
 0x95d   :  { %v8069_v5 = vsel %vm869_vm10, %v8035_v33, %v7989_v48  ;;  %v8107_v9 = vpop.permute.xlu1 %8106  ;;  %v15297_v33 = vld [vmem:[%s15733_s10 + $0x80] sm:$0xff]  }
 0x95e   :  { %v15218_v30 = vcombine.low %v8067_v27, %v8069_v5 }
 0x95f   :  { %v7991_v17 = vpop.permute.xlu0 %7990 }
 0x960   :  { %11575 = vmatprep.mubr.msk.bf16.mxu0 %vm1022_vm11, %v15218_v30 }
 0x961   :  { %v8101_v12 = vpop.permute.xlu1 %8100 }
 0x962   :  { %v8113_v0 = vsel %vm820_vm9, %v14926_v14, %v8101_v12 }
 0x963   :  { %v9056_v58 = vpop.permute.xlu0 %9055  ;;  %v15227_v50 = vsel %vm869_vm10, %v8113_v0, %v8107_v9 }
 0x964   :  { %v10574_v14 = vcombine.low %v8073_v35, %v15227_v50 }
 0x965   :  { %v7943_v61 = vpop.permute.xlu1 %7942 }
 0x966   :  { %v8038_v42 = vsel %vm820_vm9, %v14929_v40, %v7943_v61  ;;  %v11977_v40 = vld [vmem:[#allocation2] sm:$0xf]  ;;  %v15330_v61 = vld [vmem:[%s15733_s10 + $0x70] sm:$0xff]  }
 0x967   :  { %v8071_v6 = vsel %vm869_vm10, %v8038_v42, %v7991_v17  ;;  %v9060_v60 = vpop.permute.xlu0 %9059  ;;  %v9133_v57 = vsel %vm820_vm9, %v11977_v40, %v15047_v56  ;;  %v11961_v56 = vld [vmem:[%s15733_s10 + $0x20] sm:$0xff]   ;;  %v11964_v17 = vld [vmem:[%s15733_s10 + $0x8] sm:$0xff]  }
 0x968   :  { %v10573_v20 = vcombine.low %v8069_v5, %v8071_v6  ;;  %v15233_v2 = vcombine.low %v8071_v6, %v8073_v35  ;;  %v9145_v11 = vsel %vm820_vm9, %v14948_v10, %v9060_v60  ;;  %v11980_v35 = vld [vmem:[#allocation2 + $0x98] sm:$0xf] }
 0x969   :  { %v9058_v4 = vpop.permute.xlu1 %9057  ;;  %v8523_v6 = vsel %vm820_vm9, %v11980_v35, %v15034_v23  ;;  %v15764_v35 = vld [vmem:[#allocation9_spill] sm:$0xff] }
 0x96a   :  { %11547 = vmatprep.mubr.msk.bf16.mxu1 %vm1022_vm11, %v10573_v20  ;;  %11576 = vmatmul.mubr.msk.bf16.gmra.mxu0 %vm1022_vm11, %v15233_v2  ;;  %v9142_v51 = vsel %vm820_vm9, %v14944_v8, %v9058_v4 }
 0x96b   :  { %v9102_v3 = vpop.permute.xlu0 %9101  ;;  %11548 = vmatmul.mubr.msk.bf16.gmra.mxu1 %vm1022_vm11, %v10574_v14 }
 0x96c   :  { %11591 = vmatprep.mubr.msk.bf16.mxu1 %vm1022_vm11, %v15112_v16  ;;  %v15247_v7 = vsel %vm869_vm10, %v9136_v59, %v9102_v3  ;;  %v9139_v16 = vsel %vm820_vm9, %v14931_v45, %v9056_v58  ;;  %v11979_v45 = vld [vmem:[#allocation2 + $0x48] sm:$0xf] }
 0x96d   :  { %v9100_v31 = vpop.permute.xlu1 %9099  ;;  %v8520_v47 = vsel %vm820_vm9, %v11979_v45, %v15007_v41 }
 0x96e   :  { %v15250_v1 = vsel %vm869_vm10, %v9133_v57, %v9100_v31  ;;  %v8525_v8 = vsel %vm869_vm10, %v8520_v47, %v15031_v39  ;;  %v15364_v57 = vld [vmem:[%s15733_s10 + $0x60] sm:$0xff]  }
 0x96f   :  { %v10671_v38 = vcombine.low %v15250_v1, %v15247_v7  ;;  %v9106_v54 = vpop.permute.xlu0 %9105  ;;  %v10613_v36 = vcombine.low %v15157_v18, %v8525_v8 }
 0x971   :  { %v9104_v44 = vpop.permute.xlu1 %9103 }
 0x972   :  { %v15260_v34 = vsel %vm869_vm10, %v9139_v16, %v9104_v44 }
 0x973   :  { %v10649_v27 = vcombine.low %v15247_v7, %v15260_v34  ;;  %v9062_v26 = vpop.permute.xlu0 %9061  ;;  %11592 = vmatmul.mubr.msk.bf16.vlgmr.msra.gmra.mxu1 %vm1022_vm11, %v15135_v62  ;;  %v11962_v62 = vld [vmem:[%s15733_s10 + $0x18] sm:$0xff]  }
 0x974   :  { %11595 = vmatprep.mubr.msk.bf16.mxu1 %vm1022_vm11, %v15167_v29  ;;  %11636 = vmatpush3.bf16.msra.mxu1 %v15183_v37  ;;  %v15280_v29 = vsel %vm869_vm10, %v9142_v51, %v9106_v54  ;;  %v9148_v18 = vsel %vm820_vm9, %v14962_v53, %v9062_v26 }
 0x975   :  { %v9108_v32 = vpop.permute.xlu1 %9107  ;;  %11619 = vmatprep.mubr.msk.bf16.mxu0 %vm1022_vm11, %v10649_v27  ;;  %11637 = vmatprep.subr.bf16.mxu1 %v11961_v56  ;;  %v15376_v59 = vcombine.low %v15260_v34, %v15280_v29 }
 0x976   :  { %v15283_v37 = vsel %vm869_vm10, %v9145_v11, %v9108_v32 }
 0x977   :  { %v10650_v10 = vcombine.low %v15280_v29, %v15283_v37  ;;  %v9066_v41 = vpop.permute.xlu0 %9065 }
 0x978   :  { %11638 = vmatpush3.bf16.msra.mxu1 %v11961_v56  ;;  %v9154_v60 = vsel %vm820_vm9, %v14967_v52, %v9066_v41 }
 0x979   :  { %v9064_v48 = vpop.permute.xlu1 %9063  ;;  %11620 = vmatmul.mubr.msk.bf16.vlgmr.msra.gmra.mxu0 %vm1022_vm11, %v10650_v10  ;;  %11639 = vmatprep.subr.bf16.mxu1 %v11962_v62 }
 0x97a   :  { %11664 = vmatpush3.bf16.msra.mxu0 %v15192_v28  ;;  %v9151_v39 = vsel %vm820_vm9, %v14972_v46, %v9064_v48  ;;  %v15314_v46 = vld [vmem:[%s15733_s10 + $0x78] sm:$0xff]  }
 0x97b   :  { %v9112_v5 = vpop.permute.xlu0 %9111  ;;  %11596 = vmatmul.mubr.msk.bf16.gmra.mxu1 %vm1022_vm11, %v10613_v36  ;;  %11665 = vmatprep.subr.bf16.mxu0 %v15297_v33 }
 0x97c   :  { %11599 = vmatprep.mubr.msk.bf16.mxu1 %vm1022_vm11, %v15209_v55  ;;  %11640 = vmatpush3.bf16.msra.mxu1 %v11962_v62  ;;  %v15317_v12 = vsel %vm869_vm10, %v9151_v39, %v9112_v5  ;;  %v15762_v5 = vld [vmem:[#allocation8_spill] sm:$0xff] }
 0x97d   :  { %v9110_v9 = vpop.permute.xlu1 %9109  ;;  %11641 = vmatprep.subr.bf16.mxu1 %v11963_v21 }
 0x97e   :  { %v9190_v55 = vsel %vm869_vm10, %v9148_v18, %v9110_v9  ;;  %11666 = vmatpush3.bf16.msra.mxu0 %v15297_v33 }
 0x97f   :  { %v10651_v53 = vcombine.low %v9190_v55, %v15317_v12  ;;  %v9114_v0 = vpop.permute.xlu0 %9113  ;;  %11667 = vmatprep.subr.bf16.mxu0 %v15314_v46  ;;  %v15379_v54 = vcombine.low %v15283_v37, %v9190_v55  ;;  %v15763_v55 = vld [vmem:[#allocation6_spill] sm:$0xff] }
 0x980   :  { %11642 = vmatpush3.bf16.msra.mxu1 %v11963_v21 }
 0x981   :  { %v9236_v58 = vpop.permute.xlu1 %9235  ;;  %11623 = vmatprep.mubr.msk.bf16.mxu0 %vm1022_vm11, %v10651_v53  ;;  %11643 = vmatprep.subr.bf16.mxu1 %v11964_v17 }
 0x982   :  { %11668 = vmatpush3.bf16.msra.mxu0 %v15314_v46  ;;  %v9247_v20 = vsel %vm820_vm9, %v14985_v15, %v9236_v58  ;;  %v8527_v15 = vsel %vm869_vm10, %v8523_v6, %v15053_v25 }
 0x983   :  { %v9068_v42 = vpop.permute.xlu0 %9067  ;;  %11600 = vmatmul.mubr.msk.bf16.gmra.mxu1 %vm1022_vm11, %v15218_v30  ;;  %11669 = vmatprep.subr.bf16.mxu0 %v15330_v61  ;;  %v15347_v30 = vld [vmem:[%s15733_s10 + $0x68] sm:$0xff]   ;;  %v10614_v3 = vcombine.low %v15227_v50, %v8527_v15 }
 0x984   :  { %11603 = vmatprep.mubr.msk.bf16.mxu1 %vm1022_vm11, %v15233_v2  ;;  %11644 = vmatpush3.bf16.msra.mxu1 %v11964_v17  ;;  %v9194_v2 = vsel %vm869_vm10, %v9154_v60, %v9114_v0  ;;  %v9157_v44 = vsel %vm820_vm9, %v14983_v19, %v9068_v42 }
 0x985   :  { %v9242_v14 = vpop.permute.xlu1 %9241  ;;  %11645 = vmatprep.subr.bf16.mxu1 %v11965_v43 }
 0x986   :  { %v15351_v4 = vsel %vm869_vm10, %v9247_v20, %v9242_v14  ;;  %11670 = vmatpush3.bf16.msra.mxu0 %v15330_v61  ;;  %v15765_v20 = vld [vmem:[#allocation7_spill] sm:$0xff] }
 0x987   :  { %v10652_v23 = vcombine.low %v9194_v2, %v15351_v4  ;;  %v9072_v52 = vpop.permute.xlu0 %9071  ;;  %11671 = vmatprep.subr.bf16.mxu0 %v15347_v30 }
 0x988   :  { %11646 = vmatpush3.bf16.msra.mxu1 %v11965_v43  ;;  %v9163_v7 = vsel %vm820_vm9, %v14997_v63, %v9072_v52  ;;  %v10674_v63 = vcombine.low %v15317_v12, %v9194_v2 }
 0x989   :  { %v9070_v40 = vpop.permute.xlu1 %9069  ;;  %11624 = vmatmul.mubr.msk.bf16.gmra.mxu0 %vm1022_vm11, %v10652_v23  ;;  %11691 = vmatprep.subr.bf16.mxu1 %v15192_v28 }
 0x98a   :  { %11672 = vmatpush3.bf16.msra.mxu0 %v15347_v30  ;;  %v9160_v1 = vsel %vm820_vm9, %v15001_v13, %v9070_v40 }
 0x98b   :  { %v9076_v22 = vpop.permute.xlu0 %9075  ;;  %11604 = vmatmul.mubr.msk.bf16.gmra.mxu1 %vm1022_vm11, %v10614_v3  ;;  %11673 = vmatprep.subr.bf16.mxu0 %v15364_v57 }
 0x98c   :  { %11647 = vmatprep.mubr.msk.bf16.mxu1 %vm1022_vm11, %v10671_v38  ;;  %v9169_v13 = vsel %vm820_vm9, %v15009_v24, %v9076_v22 }
 0x98d   :  { %v9074_v25 = vpop.permute.xlu1 %9073 }
 0x98e   :  { %11674 = vmatpush3.bf16.msra.mxu0 %v15364_v57  ;;  %v9166_v45 = vsel %vm820_vm9, %v15014_v49, %v9074_v25  ;;  %v15760_v49 = vld [vmem:[#allocation4_spill] sm:$0xff] }
 0x98f   :  { %v9118_v50 = vpop.permute.xlu0 %9117 }
 0x990   :  { %v9198_v56 = vsel %vm869_vm10, %v9160_v1, %v9118_v50 }
 0x991   :  { %v9116_v31 = vpop.permute.xlu1 %9115 }
 0x992   :  { %v9196_v27 = vsel %vm869_vm10, %v9157_v44, %v9116_v31 }
 0x993   :  { %v9122_v16 = vpop.permute.xlu0 %9121  ;;  %11648 = vmatmul.mubr.msk.bf16.vlgmr.msra.gmra.mxu1 %vm1022_vm11, %v15376_v59  ;;  %v10675_v19 = vcombine.low %v9196_v27, %v9198_v56 }
 0x994   :  { %11651 = vmatprep.mubr.msk.bf16.mxu1 %vm1022_vm11, %v15379_v54  ;;  %11697 = vmatpush3.bf16.msra.mxu1 %v15192_v28  ;;  %v9202_v11 = vsel %vm869_vm10, %v9166_v45, %v9122_v16 }
 0x995   :  { %v9120_v38 = vpop.permute.xlu1 %9119  ;;  %11692 = vmatprep.subr.bf16.mxu1 %v15297_v33 }
 0x996   :  { %v9200_v34 = vsel %vm869_vm10, %v9163_v7, %v9120_v38 }
 0x997   :  { %v10653_v26 = vcombine.low %v9198_v56, %v9200_v34  ;;  %v9078_v28 = vpop.permute.xlu0 %9077  ;;  %v10676_v41 = vcombine.low %v9200_v34, %v9202_v11 }
 0x998   :  { %11698 = vmatpush3.bf16.msra.mxu1 %v15297_v33  ;;  %v9172_v29 = vsel %vm820_vm9, %v15760_v49, %v9078_v28  ;;  %v15761_v33 = vld [vmem:[#allocation5_spill] sm:$0xff]  ;;  %v15475_v49 = vld [vmem:[%s15734_s8] ss:$0 sm:$0xff] }
 0x999   :  { %v9124_v47 = vpop.permute.xlu1 %9123  ;;  %11627 = vmatprep.mubr.msk.bf16.mxu0 %vm1022_vm11, %v10653_v26  ;;  %11693 = vmatprep.subr.bf16.mxu1 %v15314_v46 }
 0x99a   :  { %v9204_v51 = vsel %vm869_vm10, %v9169_v13, %v9124_v47 }
 0x99b   :  { %v10654_v32 = vcombine.low %v9202_v11, %v9204_v51  ;;  %v9082_v62 = vpop.permute.xlu0 %9081  ;;  %11652 = vmatmul.mubr.msk.bf16.gmra.mxu1 %vm1022_vm11, %v10674_v63 }
 0x99c   :  { %11655 = vmatprep.mubr.msk.bf16.mxu1 %vm1022_vm11, %v10675_v19  ;;  %11699 = vmatpush3.bf16.msra.mxu1 %v15314_v46  ;;  %v9178_v39 = vsel %vm820_vm9, %v15761_v33, %v9082_v62 }
 0x99d   :  { %v9126_v24 = vpop.permute.xlu1 %9125  ;;  %11628 = vmatmul.mubr.msk.bf16.gmra.mxu0 %vm1022_vm11, %v10654_v32  ;;  %11694 = vmatprep.subr.bf16.mxu1 %v15330_v61 }
 0x99e   :  { %v9206_v37 = vsel %vm869_vm10, %v9172_v29, %v9126_v24 }
 0x99f   :  { %v9128_v10 = vpop.permute.xlu0 %9127  ;;  %v10677_v36 = vcombine.low %v9204_v51, %v9206_v37 }
 0x9a0   :  { %11700 = vmatpush3.bf16.msra.mxu1 %v15330_v61 }
 0x9a1   :  { %v9238_v8 = vpop.permute.xlu1 %9237  ;;  %11695 = vmatprep.subr.bf16.mxu1 %v15347_v30 }
 0x9a2   :  { %v9250_v53 = vsel %vm820_vm9, %v15763_v55, %v9238_v8 }
 0x9a3   :  { %11656 = vmatmul.mubr.msk.bf16.gmra.mxu1 %vm1022_vm11, %v10676_v41  ;;  %v9130_v48 = vpop.permute.xlu0 %9129 }
 0x9a4   :  { %11659 = vmatprep.mubr.msk.bf16.mxu1 %vm1022_vm11, %v10677_v36  ;;  %11701 = vmatpush3.bf16.msra.mxu1 %v15347_v30  ;;  %v9210_v9 = vsel %vm869_vm10, %v9178_v39, %v9130_v48 }
 0x9a5   :  { %v9080_v21 = vpop.permute.xlu1 %9079  ;;  %11696 = vmatprep.subr.bf16.mxu1 %v15364_v57 }
 0x9a6   :  { %v9175_v18 = vsel %vm820_vm9, %v15762_v5, %v9080_v21 }
 0x9a7   :  { %v9208_v17 = vsel %vm869_vm10, %v9175_v18, %v9128_v10  ;;  %v9646_v42 = vpop.permute.xlu0 %9645 }
 0x9a8   :  { %v10655_v46 = vcombine.low %v9206_v37, %v9208_v17  ;;  %v10678_v12 = vcombine.low %v9208_v17, %v9210_v9  ;;  %11702 = vmatpush3.bf16.msra.mxu1 %v15364_v57  ;;  %v9657_v14 = vsel %vm820_vm9, %v15765_v20, %v9646_v42 }
 0x9a9   :  { %v9244_v0 = vpop.permute.xlu1 %9243 }
 0x9aa   :  { %v9254_v58 = vsel %vm869_vm10, %v9250_v53, %v9244_v0  ;;  %11631 = vmatprep.mubr.msk.bf16.mxu0 %vm1022_vm11, %v10655_v46 }
 0x9ab   :  { %v10656_v43 = vcombine.low %v9210_v9, %v9254_v58  ;;  %11660 = vmatmul.mubr.msk.bf16.gmra.mxu1 %vm1022_vm11, %v10678_v12  ;;  %v9652_v30 = vpop.permute.xlu0 %9651 }
 0x9ac   :  { %11683 = vmatprep.mubr.msk.bf16.mxu1 %vm1022_vm11, %v10676_v41  ;;  %v9662_v23 = vsel %vm869_vm10, %v9657_v14, %v9652_v30  ;;  %v15482_v41 = vld [vmem:[%s15735_s9] ss:$0 sm:$0xff] }
 0x9ad   :  { %v9648_v61 = vpop.permute.xlu1 %9647  ;;  %11632 = vmatmul.mubr.msk.bf16.gmra.mxu0 %vm1022_vm11, %v10656_v43  ;;  %v10695_v15 = vcombine.low %v15351_v4, %v9662_v23 }
 0x9ae   :  { %11675 = vmatprep.mubr.msk.bf16.mxu0 %vm1022_vm11, %v15376_v59  ;;  %v9660_v6 = vsel %vm820_vm9, %v15764_v35, %v9648_v61 }
 0x9b1   :  { %v9654_v60 = vpop.permute.xlu1 %9653 }
 0x9b2   :  { %v9664_v2 = vsel %vm869_vm10, %v9660_v6, %v9654_v60 }
 0x9b3   :  { %11684 = vmatmul.mubr.msk.bf16.vlgmr.msra.gmra.mxu1 %vm1022_vm11, %v10677_v36  ;;  %v10696_v52 = vcombine.low %v9254_v58, %v9664_v2 }
 0x9b4   :  { %11687 = vmatprep.mubr.msk.bf16.mxu1 %vm1022_vm11, %v10678_v12 }
 0x9b5   :  { %11676 = vmatmul.mubr.msk.bf16.vlgmr.msra.gmra.mxu0 %vm1022_vm11, %v15379_v54 }
 0x9b6   :  { %11679 = vmatprep.mubr.msk.bf16.mxu0 %vm1022_vm11, %v10674_v63 }
 0x9bb   :  { %11688 = vmatmul.mubr.msk.bf16.gmra.mxu1 %vm1022_vm11, %v10696_v52 }
 0x9bd   :  { %11680 = vmatmul.mubr.msk.bf16.gmra.mxu0 %vm1022_vm11, %v10695_v15 }
 0x9fa   :  { %v11565_v22 = vpop.f32.mrf.mxu0 }
 0x9fb   :  { %v11537_v3 = vpop.f32.mrf.mxu1 }
 0x9fc   :  { %v8421_v50 = vpop.f32.mrf.mxu0  ;;  %v8430_v32 = vadd.f32 %v11565_v22, %v11537_v3 }
 0x9fd   :  { %v8252_v40 = vpop.f32.mrf.mxu1 }
 0x9fe   :  { %v11566_v31 = vpop.f32.mrf.mxu0  ;;  %v8422_v29 = vadd.f32 %v8421_v50, %v8252_v40 }
 0x9ff   :  { %v11538_v57 = vpop.f32.mrf.mxu1 }
 0xa00   :  { %v8424_v16 = vpop.f32.mrf.mxu0  ;;  %v8433_v36 = vadd.f32 %v11566_v31, %v11538_v57 }
 0xa01   :  { %v8255_v25 = vpop.f32.mrf.mxu1 }
 0xa02   :  { %v8425_v39 = vadd.f32 %v8424_v16, %v8255_v25 }
 0xa0a   :  { %v11569_v1 = vpop.f32.mrf.mxu0 }
 0xa0b   :  { %v11541_v59 = vpop.f32.mrf.mxu1 }
 0xa0c   :  { %v8437_v44 = vpop.f32.mrf.mxu0  ;;  %v8446_v58 = vadd.f32 %v11569_v1, %v11541_v59 }
 0xa0d   :  { %v8268_v54 = vpop.f32.mrf.mxu1 }
 0xa0e   :  { %v11570_v4 = vpop.f32.mrf.mxu0  ;;  %v8438_v43 = vadd.f32 %v8437_v44, %v8268_v54 }
 0xa0f   :  { %v11542_v7 = vpop.f32.mrf.mxu1 }
 0xa10   :  { %v8440_v27 = vpop.f32.mrf.mxu0  ;;  %v8449_v20 = vadd.f32 %v11570_v4, %v11542_v7 }
 0xa11   :  { %v8271_v38 = vpop.f32.mrf.mxu1 }
 0xa12   :  { %v8441_v40 = vadd.f32 %v8440_v27, %v8271_v38 }
 0xa1a   :  { %v11573_v28 = vpop.f32.mrf.mxu0 }
 0xa1b   :  { %v15450_v56 = vpop.f32.mrf.mxu1 }
 0xa1c   :  { %v15458_v13 = vpop.f32.mrf.mxu0  ;;  %v8462_v54 = vadd.f32 %v11573_v28, %v15450_v56 }
 0xa1d   :  { %v15452_v34 = vpop.f32.mrf.mxu1 }
 0xa1e   :  { %v15464_v19 = vpop.f32.mrf.mxu0 }
 0xa1f   :  { %v15454_v26 = vpop.f32.mrf.mxu1 }
 0xa20   :  { %v15470_v62 = vpop.f32.mrf.mxu0 }
 0xa21   :  { %v15456_v63 = vpop.f32.mrf.mxu1 }
 0xa2a   :  { %v15477_v10 = vpop.f32.mrf.mxu0 }
 0xa2b   :  { %v15460_v45 = vpop.f32.mrf.mxu1 }
 0xa2c   :  { %v15487_v17 = vpop.f32.mrf.mxu0 }
 0xa2d   :  { %v15462_v47 = vpop.f32.mrf.mxu1 }
 0xa2e   :  { %v15493_v14 = vpop.f32.mrf.mxu0 }
 0xa2f   :  { %v15466_v11 = vpop.f32.mrf.mxu1 }
 0xa30   :  { %v8472_v16 = vpop.f32.mrf.mxu0 }
 0xa31   :  { %v15468_v51 = vpop.f32.mrf.mxu1 }
 0xa33   :  { %v11593_v24 = vpop.f32.mrf.mxu1 }
 0xa34   :  { %v8675_v37 = vadd.f32 %v11593_v24, %v8430_v32 }
 0xa35   :  { %v8610_v8 = vpop.f32.mrf.mxu1 }
 0xa36   :  { %v8698_v48 = vmul.f32 %v15475_v49, %v8675_v37  ;;  %v8673_v21 = vadd.f32 %v8610_v8, %v8422_v29 }
 0xa37   :  { %v11594_v33 = vpop.f32.mrf.mxu1 }
 0xa38   :  { %v8721_v5 = vadd.f32 %v15482_v41, %v8698_v48  ;;  %v8696_v18 = vmul.f32 %v15475_v49, %v8673_v21  ;;  %v8676_v9 = vadd.f32 %v11594_v33, %v8433_v36  ;;  %v8454_v36 = vadd.f32 %v15458_v13, %v15452_v34 }
 0xa39   :  { %v8613_v46 = vpop.f32.mrf.mxu1  ;;  %v15514_v32 = vpop.f32.mrf.mxu0  ;;  %v8465_v48 = vadd.f32 %v15464_v19, %v15454_v26 }
 0xa3a   :  { %v8737_v12 = vmax.f32 %v8721_v5, 0.0  ;;  %v8719_v55 = vadd.f32 %v15482_v41, %v8696_v18  ;;  %v8699_v53 = vmul.f32 %v15475_v49, %v8676_v9  ;;  %v8674_v0 = vadd.f32 %v8613_v46, %v8425_v39 }
 0xa3b   :  { %v11597_v61 = vpop.f32.mrf.mxu1  ;;  %v8457_v46 = vadd.f32 %v15470_v62, %v15456_v63  ;;  %v15534_v34 = vpop.f32.mrf.mxu0  ;;  %v8478_v63 = vadd.f32 %v15477_v10, %v15460_v45 }
 0xa3c   :  { %v8753_v42 = vpack.c.bf16 %v8737_v12, %v8737_v12  ;;  %v8735_v35 = vmax.f32 %v8719_v55, 0.0  ;;  %v8722_v6 = vadd.f32 %v15482_v41, %v8699_v53  ;;  %v8697_v60 = vmul.f32 %v15475_v49, %v8674_v0 }
 0xa3d   :  { %v8679_v30 = vadd.f32 %v11597_v61, %v8446_v58  ;;  %v8626_v2 = vpop.f32.mrf.mxu1 }
 0xa3e   :  { %8769 = vst.msk [vmem:[%s15736_s13 + $0x8] sm:$0xf] %vm47_vm0, %v8753_v42  ;;  %v8751_v23 = vpack.c.bf16 %v8735_v35, %v8735_v35  ;;  %v8738_v52 = vmax.f32 %v8722_v6, 0.0  ;;  %v8720_v15 = vadd.f32 %v15482_v41, %v8697_v60  ;;  %v8677_v3 = vadd.f32 %v8626_v2, %v8438_v43  ;;  %v15551_v6 = vpop.f32.mrf.mxu0 }
 0xa3f   :  { %v8702_v57 = vmul.f32 %v15475_v49, %v8679_v30  ;;  %v11598_v22 = vpop.f32.mrf.mxu1  ;;  %v8470_v35 = vadd.f32 %v15487_v17, %v15462_v47 }
 0xa40   :  { %8767 = vst.msk [vmem:[%s15736_s13] sm:$0xf] %vm47_vm0, %v8751_v23  ;;  %v8754_v25 = vpack.c.bf16 %v8738_v52, %v8738_v52  ;;  %v8736_v50 = vmax.f32 %v8720_v15, 0.0  ;;  %v8700_v59 = vmul.f32 %v15475_v49, %v8677_v3  ;;  %v8680_v31 = vadd.f32 %v11598_v22, %v8449_v20  ;;  %v15569_v22 = vpop.f32.mrf.mxu0 }
 0xa41   :  { %v8725_v7 = vadd.f32 %v15482_v41, %v8702_v57  ;;  %v8629_v1 = vpop.f32.mrf.mxu1  ;;  %v8473_v57 = vadd.f32 %v8472_v16, %v15468_v51 }
 0xa42   :  { %8770 = vst.msk [vmem:[%s15736_s13 + $0xc] sm:$0xf] %vm47_vm0, %v8754_v25  ;;  %v8752_v38 = vpack.c.bf16 %v8736_v50, %v8736_v50  ;;  %v8723_v44 = vadd.f32 %v15482_v41, %v8700_v59  ;;  %v8703_v4 = vmul.f32 %v15475_v49, %v8680_v31  ;;  %v8678_v27 = vadd.f32 %v8629_v1, %v8441_v40 }
 0xa43   :  { %v8741_v24 = vmax.f32 %v8725_v7, 0.0  ;;  %v11601_v29 = vpop.f32.mrf.mxu1  ;;  %v8481_v40 = vadd.f32 %v15493_v14, %v15466_v11 }
 0xa44   :  { %8768 = vst.msk [vmem:[%s15736_s13 + $0x4] sm:$0xf] %vm47_vm0, %v8752_v38  ;;  %v8739_v56 = vmax.f32 %v8723_v44, 0.0  ;;  %v8726_v28 = vadd.f32 %v15482_v41, %v8703_v4  ;;  %v8701_v37 = vmul.f32 %v15475_v49, %v8678_v27  ;;  %v8683_v8 = vadd.f32 %v11601_v29, %v8462_v54 }
 0xa45   :  { %v8757_v21 = vpack.c.bf16 %v8741_v24, %v8741_v24  ;;  %v8642_v33 = vpop.f32.mrf.mxu1 }
 0xa46   :  { %v8755_v39 = vpack.c.bf16 %v8739_v56, %v8739_v56  ;;  %v8742_v5 = vmax.f32 %v8726_v28, 0.0  ;;  %v8724_v18 = vadd.f32 %v15482_v41, %v8701_v37  ;;  %v8706_v9 = vmul.f32 %v15475_v49, %v8683_v8 }
 0xa47   :  { %8773 = vst.msk [vmem:[%s15736_s13 + $0x18] sm:$0xf] %vm47_vm0, %v8757_v21  ;;  %v8681_v13 = vadd.f32 %v8642_v33, %v8454_v36  ;;  %v11602_v26 = vpop.f32.mrf.mxu1 }
 0xa48   :  { %8771 = vst.msk [vmem:[%s15736_s13 + $0x10] sm:$0xf] %vm47_vm0, %v8755_v39  ;;  %v8758_v19 = vpack.c.bf16 %v8742_v5, %v8742_v5  ;;  %v8740_v12 = vmax.f32 %v8724_v18, 0.0  ;;  %v8729_v55 = vadd.f32 %v15482_v41, %v8706_v9  ;;  %v8684_v53 = vadd.f32 %v11602_v26, %v8465_v48 }
 0xa49   :  { %v8704_v62 = vmul.f32 %v15475_v49, %v8681_v13  ;;  %v8645_v0 = vpop.f32.mrf.mxu1  ;;  %v11625_v1 = vpop.f32.mrf.mxu0 }
 0xa4a   :  { %8774 = vst.msk [vmem:[%s15736_s13 + $0x1c] sm:$0xf] %vm47_vm0, %v8758_v19  ;;  %v8756_v58 = vpack.c.bf16 %v8740_v12, %v8740_v12  ;;  %v8745_v43 = vmax.f32 %v8729_v55, 0.0  ;;  %v8707_v61 = vmul.f32 %v15475_v49, %v8684_v53  ;;  %v8682_v42 = vadd.f32 %v8645_v0, %v8457_v46 }
 0xa4b   :  { %v8727_v45 = vadd.f32 %v15482_v41, %v8704_v62  ;;  %v11605_v10 = vpop.f32.mrf.mxu1  ;;  %v9405_v28 = vpop.f32.mrf.mxu0 }
 0xa4c   :  { %8772 = vst.msk [vmem:[%s15736_s13 + $0x14] sm:$0xf] %vm47_vm0, %v8756_v58  ;;  %v8761_v60 = vpack.c.bf16 %v8745_v43, %v8745_v43  ;;  %v8730_v20 = vadd.f32 %v15482_v41, %v8707_v61  ;;  %v8705_v30 = vmul.f32 %v15475_v49, %v8682_v42  ;;  %v8687_v2 = vadd.f32 %v11605_v10, %v8478_v63 }
 0xa4d   :  { %v8743_v23 = vmax.f32 %v8727_v45, 0.0  ;;  %v8658_v52 = vpop.f32.mrf.mxu1  ;;  %v11626_v39 = vpop.f32.mrf.mxu0 }
 0xa4e   :  { %8777 = vst.msk [vmem:[%s15736_s13 + $0x28] sm:$0xf] %vm47_vm0, %v8761_v60  ;;  %v8746_v47 = vmax.f32 %v8730_v20, 0.0  ;;  %v8728_v17 = vadd.f32 %v15482_v41, %v8705_v30  ;;  %v8710_v15 = vmul.f32 %v15475_v49, %v8687_v2  ;;  %v8685_v3 = vadd.f32 %v8658_v52, %v8470_v35  ;;  %v15609_v52 = vld [vmem:[%s15737_s11] ss:$0 sm:$0xff] }
 0xa4f   :  { %v8759_v25 = vpack.c.bf16 %v8743_v23, %v8743_v23  ;;  %v11606_v50 = vpop.f32.mrf.mxu1 }
 0xa50   :  { %v8762_v59 = vpack.c.bf16 %v8746_v47, %v8746_v47  ;;  %v8744_v31 = vmax.f32 %v8728_v17, 0.0  ;;  %v8733_v54 = vadd.f32 %v15482_v41, %v8710_v15  ;;  %v8708_v7 = vmul.f32 %v15475_v49, %v8685_v3 }
 0xa51   :  { %8775 = vst.msk [vmem:[%s15736_s13 + $0x20] sm:$0xf] %vm47_vm0, %v8759_v25  ;;  %v8688_v38 = vadd.f32 %v11606_v50, %v8481_v40  ;;  %v8661_v11 = vpop.f32.mrf.mxu1  ;;  %v15618_v50 = vld [vmem:[%s15738_s12] ss:$0 sm:$0xff] }
 0xa52   :  { %8778 = vst.msk [vmem:[%s15736_s13 + $0x2c] sm:$0xf] %vm47_vm0, %v8762_v59  ;;  %v8760_v51 = vpack.c.bf16 %v8744_v31, %v8744_v31  ;;  %v8749_v14 = vmax.f32 %v8733_v54, 0.0  ;;  %v8731_v16 = vadd.f32 %v15482_v41, %v8708_v7  ;;  %v8686_v44 = vadd.f32 %v8661_v11, %v8473_v57 }
 0xa53   :  { %v8711_v4 = vmul.f32 %v15475_v49, %v8688_v38  ;;  %v11649_v27 = vpop.f32.mrf.mxu1 }
 0xa54   :  { %8776 = vst.msk [vmem:[%s15736_s13 + $0x24] sm:$0xf] %vm47_vm0, %v8760_v51  ;;  %v8765_v24 = vpack.c.bf16 %v8749_v14, %v8749_v14  ;;  %v8747_v29 = vmax.f32 %v8731_v16, 0.0  ;;  %v8709_v56 = vmul.f32 %v15475_v49, %v8686_v44  ;;  %v9567_v47 = vadd.f32 %v11649_v27, %v15514_v32 }
 0xa55   :  { %v8734_v37 = vadd.f32 %v15482_v41, %v8711_v4  ;;  %v9558_v8 = vpop.f32.mrf.mxu1 }
 0xa56   :  { %8781 = vst.msk [vmem:[%s15736_s13 + $0x38] sm:$0xf] %vm47_vm0, %v8765_v24  ;;  %v8763_v36 = vpack.c.bf16 %v8747_v29, %v8747_v29  ;;  %v8732_v48 = vadd.f32 %v15482_v41, %v8709_v56  ;;  %v9408_v41 = vpop.f32.mrf.mxu0  ;;  %v9559_v3 = vadd.f32 %v9558_v8, %v15534_v34 }
 0xa57   :  { %v8750_v21 = vmax.f32 %v8734_v37, 0.0  ;;  %v11650_v33 = vpop.f32.mrf.mxu1 }
 0xa58   :  { %8779 = vst.msk [vmem:[%s15736_s13 + $0x30] sm:$0xf] %vm47_vm0, %v8763_v36  ;;  %v8748_v49 = vmax.f32 %v8732_v48, 0.0  ;;  %v9570_v40 = vadd.f32 %v11650_v33, %v15551_v6 }
 0xa59   :  { %v8766_v5 = vpack.c.bf16 %v8750_v21, %v8750_v21  ;;  %v9561_v18 = vpop.f32.mrf.mxu1 }
 0xa5a   :  { %v8764_v9 = vpack.c.bf16 %v8748_v49, %v8748_v49  ;;  %v9562_v57 = vadd.f32 %v9561_v18, %v15569_v22 }
 0xa5b   :  { %8782 = vst.msk [vmem:[%s15736_s13 + $0x3c] sm:$0xf] %vm47_vm0, %v8766_v5  ;;  %v11653_v46 = vpop.f32.mrf.mxu1 }
 0xa5c   :  { %8780 = vst.msk [vmem:[%s15736_s13 + $0x34] sm:$0xf] %vm47_vm0, %v8764_v9  ;;  %v9583_v25 = vadd.f32 %v11653_v46, %v11625_v1 }
 0xa5d   :  { %v9574_v13 = vpop.f32.mrf.mxu1  ;;  %v11629_v26 = vpop.f32.mrf.mxu0 }
 0xa5e   :  { %v15620_v54 = vadd.f32 %v9574_v13, %v9405_v28 }
 0xa5f   :  { %v11654_v19 = vpop.f32.mrf.mxu1  ;;  %v9421_v55 = vpop.f32.mrf.mxu0 }
 0xa60   :  { %v15623_v11 = vadd.f32 %v11654_v19, %v11626_v39 }
 0xa61   :  { %v9577_v12 = vpop.f32.mrf.mxu1  ;;  %v11630_v62 = vpop.f32.mrf.mxu0 }
 0xa62   :  { %v15625_v34 = vadd.f32 %v9577_v12, %v9408_v41 }
 0xa63   :  { %v11657_v53 = vpop.f32.mrf.mxu1  ;;  %v9424_v43 = vpop.f32.mrf.mxu0 }
 0xa64   :  { %v9599_v30 = vadd.f32 %v11657_v53, %v11629_v26 }
 0xa65   :  { %v9590_v63 = vpop.f32.mrf.mxu1 }
 0xa66   :  { %v9591_v17 = vadd.f32 %v9590_v63, %v9421_v55 }
 0xa67   :  { %v11658_v0 = vpop.f32.mrf.mxu1 }
 0xa68   :  { %v9602_v6 = vadd.f32 %v11658_v0, %v11630_v62 }
 0xa69   :  { %v9593_v58 = vpop.f32.mrf.mxu1 }
 0xa6a   :  { %v9594_v22 = vadd.f32 %v9593_v58, %v9424_v43 }
 0xa6b   :  { %v11661_v61 = vpop.f32.mrf.mxu1 }
 0xa6d   :  { %v11633_v42 = vpop.f32.mrf.mxu0  ;;  %v9606_v35 = vpop.f32.mrf.mxu1 }
 0xa6e   :  { %v9615_v27 = vadd.f32 %v11661_v61, %v11633_v42 }
 0xa6f   :  { %v9437_v45 = vpop.f32.mrf.mxu0  ;;  %v11662_v10 = vpop.f32.mrf.mxu1 }
 0xa70   :  { %v9607_v24 = vadd.f32 %v9606_v35, %v9437_v45 }
 0xa71   :  { %v11634_v60 = vpop.f32.mrf.mxu0  ;;  %v9609_v20 = vpop.f32.mrf.mxu1 }
 0xa72   :  { %v9618_v29 = vadd.f32 %v11662_v10, %v11634_v60 }
 0xa73   :  { %v9440_v2 = vpop.f32.mrf.mxu0  ;;  %v11685_v23 = vpop.f32.mrf.mxu1 }
 0xa74   :  { %v9820_v15 = vadd.f32 %v11685_v23, %v9599_v30  ;;  %v9610_v33 = vadd.f32 %v9609_v20, %v9440_v2 }
 0xa75   :  { %v11677_v59 = vpop.f32.mrf.mxu0  ;;  %v9779_v31 = vpop.f32.mrf.mxu1 }
 0xa76   :  { %v9843_v32 = vmul.f32 %v15609_v52, %v9820_v15  ;;  %v9812_v7 = vadd.f32 %v11677_v59, %v9567_v47  ;;  %v9818_v38 = vadd.f32 %v9779_v31, %v9591_v17 }
 0xa77   :  { %v9747_v1 = vpop.f32.mrf.mxu0  ;;  %v11686_v51 = vpop.f32.mrf.mxu1 }
 0xa78   :  { %v9866_v14 = vadd.f32 %v15618_v50, %v9843_v32  ;;  %v9835_v16 = vmul.f32 %v15609_v52, %v9812_v7  ;;  %v9841_v44 = vmul.f32 %v15609_v52, %v9818_v38  ;;  %v9810_v4 = vadd.f32 %v9747_v1, %v9559_v3 }
 0xa79   :  { %v9821_v56 = vadd.f32 %v11686_v51, %v9602_v6  ;;  %v11678_v28 = vpop.f32.mrf.mxu0  ;;  %v9782_v37 = vpop.f32.mrf.mxu1 }
 0xa7a   :  { %v9882_v8 = vmax.f32 %v9866_v14, 0.0  ;;  %v9858_v36 = vadd.f32 %v15618_v50, %v9835_v16  ;;  %v9864_v48 = vadd.f32 %v15618_v50, %v9841_v44  ;;  %v9833_v21 = vmul.f32 %v15609_v52, %v9810_v4 }
 0xa7b   :  { %v9844_v49 = vmul.f32 %v15609_v52, %v9821_v56  ;;  %v9813_v39 = vadd.f32 %v11678_v28, %v9570_v40  ;;  %v9819_v5 = vadd.f32 %v9782_v37, %v9594_v22  ;;  %v9750_v18 = vpop.f32.mrf.mxu0  ;;  %v11689_v9 = vpop.f32.mrf.mxu1 }
 0xa7c   :  { %v9898_v46 = vpack.c.bf16 %v9882_v8, %v9882_v8  ;;  %v9874_v41 = vmax.f32 %v9858_v36, 0.0  ;;  %v9880_v13 = vmax.f32 %v9864_v48, 0.0  ;;  %v9856_v26 = vadd.f32 %v15618_v50, %v9833_v21 }
 0xa7d   :  { %v9867_v19 = vadd.f32 %v15618_v50, %v9844_v49  ;;  %v9836_v12 = vmul.f32 %v15609_v52, %v9813_v39  ;;  %v9842_v55 = vmul.f32 %v15609_v52, %v9819_v5  ;;  %v9811_v53 = vadd.f32 %v9750_v18, %v9562_v57  ;;  %v11681_v63 = vpop.f32.mrf.mxu0  ;;  %v9795_v62 = vpop.f32.mrf.mxu1 }
 0xa7e   :  { %9915 = vst.msk [vmem:[%s15739_s14 + $0x28] sm:$0xf] %vm370_vm2, %v9898_v46  ;;  %v9890_v0 = vpack.c.bf16 %v9874_v41, %v9874_v41  ;;  %v9896_v58 = vpack.c.bf16 %v9880_v13, %v9880_v13  ;;  %v9872_v43 = vmax.f32 %v9856_v26, 0.0  ;;  %v9824_v61 = vadd.f32 %v11689_v9, %v9615_v27 }
 0xa7f   :  { %v9883_v42 = vmax.f32 %v9867_v19, 0.0  ;;  %v9859_v35 = vadd.f32 %v15618_v50, %v9836_v12  ;;  %v9865_v45 = vadd.f32 %v15618_v50, %v9842_v55  ;;  %v9834_v10 = vmul.f32 %v15609_v52, %v9811_v53  ;;  %v9763_v60 = vpop.f32.mrf.mxu0  ;;  %v11690_v20 = vpop.f32.mrf.mxu1 }
 0xa80   :  { %9907 = vst.msk [vmem:[%s15739_s14 + $0x8] sm:$0xf] %vm370_vm2, %v9890_v0  ;;  %9913 = vst.msk [vmem:[%s15739_s14 + $0x20] sm:$0xf] %vm370_vm2, %v9896_v58  ;;  %v9888_v30 = vpack.c.bf16 %v9872_v43, %v9872_v43  ;;  %v9847_v2 = vmul.f32 %v15609_v52, %v9824_v61  ;;  %v9816_v23 = vadd.f32 %v11681_v63, %v9583_v25 }
 0xa81   :  { %v9822_v47 = vadd.f32 %v9795_v62, %v9607_v24  ;;  %v9899_v17 = vpack.c.bf16 %v9883_v42, %v9883_v42  ;;  %v9875_v15 = vmax.f32 %v9859_v35, 0.0  ;;  %v9881_v3 = vmax.f32 %v9865_v45, 0.0  ;;  %v11682_v57 = vpop.f32.mrf.mxu0  ;;  %v9798_v7 = vpop.f32.mrf.mxu1 }
 0xa82   :  { %v9857_v40 = vadd.f32 %v15618_v50, %v9834_v10  ;;  %9905 = vst.msk [vmem:[%s15739_s14] sm:$0xf] %vm370_vm2, %v9888_v30  ;;  %v9870_v59 = vadd.f32 %v15618_v50, %v9847_v2  ;;  %v9839_v31 = vmul.f32 %v15609_v52, %v9816_v23  ;;  %v9814_v25 = vadd.f32 %v9763_v60, %v15620_v54 }
 0xa83   :  { %v9845_v32 = vmul.f32 %v15609_v52, %v9822_v47  ;;  %9916 = vst.msk [vmem:[%s15739_s14 + $0x2c] sm:$0xf] %vm370_vm2, %v9899_v17  ;;  %v9891_v38 = vpack.c.bf16 %v9875_v15, %v9875_v15  ;;  %v9897_v6 = vpack.c.bf16 %v9881_v3, %v9881_v3  ;;  %v9825_v1 = vadd.f32 %v11690_v20, %v9618_v29  ;;  %v9766_v4 = vpop.f32.mrf.mxu0 }
 0xa84   :  { %v9873_v22 = vmax.f32 %v9857_v40, 0.0  ;;  %v9886_v51 = vmax.f32 %v9870_v59, 0.0  ;;  %v9862_v14 = vadd.f32 %v15618_v50, %v9839_v31  ;;  %v9837_v44 = vmul.f32 %v15609_v52, %v9814_v25 }
 0xa85   :  { %v9868_v16 = vadd.f32 %v15618_v50, %v9845_v32  ;;  %9908 = vst.msk [vmem:[%s15739_s14 + $0xc] sm:$0xf] %vm370_vm2, %v9891_v38  ;;  %9914 = vst.msk [vmem:[%s15739_s14 + $0x24] sm:$0xf] %vm370_vm2, %v9897_v6  ;;  %v9848_v27 = vmul.f32 %v15609_v52, %v9825_v1  ;;  %v9817_v24 = vadd.f32 %v11682_v57, %v15623_v11 }
 0xa86   :  { %v9889_v54 = vpack.c.bf16 %v9873_v22, %v9873_v22  ;;  %v9823_v29 = vadd.f32 %v9798_v7, %v9610_v33  ;;  %v9902_v56 = vpack.c.bf16 %v9886_v51, %v9886_v51  ;;  %v9878_v28 = vmax.f32 %v9862_v14, 0.0 }
 0xa87   :  { %v9884_v37 = vmax.f32 %v9868_v16, 0.0  ;;  %v9860_v8 = vadd.f32 %v15618_v50, %v9837_v44  ;;  %v9871_v36 = vadd.f32 %v15618_v50, %v9848_v27  ;;  %v9840_v48 = vmul.f32 %v15609_v52, %v9817_v24 }
 0xa88   :  { %9906 = vst.msk [vmem:[%s15739_s14 + $0x4] sm:$0xf] %vm370_vm2, %v9889_v54  ;;  %v9846_v21 = vmul.f32 %v15609_v52, %v9823_v29  ;;  %v9815_v49 = vadd.f32 %v9766_v4, %v15625_v34  ;;  %9919 = vst.msk [vmem:[%s15739_s14 + $0x38] sm:$0xf] %vm370_vm2, %v9902_v56  ;;  %v9894_v11 = vpack.c.bf16 %v9878_v28, %v9878_v28 }
 0xa89   :  { %v9900_v33 = vpack.c.bf16 %v9884_v37, %v9884_v37  ;;  %v9876_v39 = vmax.f32 %v9860_v8, 0.0  ;;  %v9887_v5 = vmax.f32 %v9871_v36, 0.0  ;;  %v9863_v18 = vadd.f32 %v15618_v50, %v9840_v48 }
 0xa8a   :  { %v9869_v9 = vadd.f32 %v15618_v50, %v9846_v21  ;;  %v9838_v46 = vmul.f32 %v15609_v52, %v9815_v49  ;;  %9911 = vst.msk [vmem:[%s15739_s14 + $0x18] sm:$0xf] %vm370_vm2, %v9894_v11 }
 0xa8b   :  { %9917 = vst.msk [vmem:[%s15739_s14 + $0x30] sm:$0xf] %vm370_vm2, %v9900_v33  ;;  %v9892_v34 = vpack.c.bf16 %v9876_v39, %v9876_v39  ;;  %v9903_v41 = vpack.c.bf16 %v9887_v5, %v9887_v5  ;;  %v9879_v13 = vmax.f32 %v9863_v18, 0.0 }
 0xa8c   :  { %v9885_v26 = vmax.f32 %v9869_v9, 0.0  ;;  %v9861_v19 = vadd.f32 %v15618_v50, %v9838_v46 }
 0xa8d   :  { %9909 = vst.msk [vmem:[%s15739_s14 + $0x10] sm:$0xf] %vm370_vm2, %v9892_v34  ;;  %9920 = vst.msk [vmem:[%s15739_s14 + $0x3c] sm:$0xf] %vm370_vm2, %v9903_v41  ;;  %v9895_v52 = vpack.c.bf16 %v9879_v13, %v9879_v13 }
 0xa8e   :  { %v9901_v12 = vpack.c.bf16 %v9885_v26, %v9885_v26  ;;  %v9877_v55 = vmax.f32 %v9861_v19, 0.0 }
 0xa8f   :  { %9912 = vst.msk [vmem:[%s15739_s14 + $0x1c] sm:$0xf] %vm370_vm2, %v9895_v52 }
 0xa90   :  { %9918 = vst.msk [vmem:[%s15739_s14 + $0x34] sm:$0xf] %vm370_vm2, %v9901_v12  ;;  %v9893_v50 = vpack.c.bf16 %v9877_v55, %v9877_v55 }
 0xa92   :  { %9910 = vst.msk [vmem:[%s15739_s14 + $0x14] sm:$0xf] %vm370_vm2, %v9893_v50 }

</bundles_post_ra>
